<compile_context>
chip_gen: v6e
topology: v6e:2x2x1
jax: 0.10.0
libtpu: 0.0.40
codegen_flags: <defaults>
</compile_context>

<pallas_src>
import math

import jax
import jax.numpy as jnp
from jax.experimental import pallas as pl
from jax.experimental.pallas import tpu as pltpu


_TOKENS_PER_GROUP = 9   # 3 sequence positions x 3 tables folded per output group
_N_VC_TOKENS = 6        # value + coord-type tokens per group (token columns 0..5)


def _round_up(x, m):
    return -(-x // m) * m


def _face_embed_kernel(tok_ref, vc_tab_ref, pos_tab_ref, out_ref):
    TR = tok_ref.shape[0]          # output groups (rows) in this tile
    vc_w = vc_tab_ref.shape[0]     # 384  : value + coord lane range
    pos_w = pos_tab_ref.shape[0]   # 1024 : position lane range

    tok = tok_ref[...]             # (TR, 9) int32; cols 0..5 -> vc slab, 6..8 -> pos slab

    # ---- multi-hot, value+coord lane range (fused: one accumulation chain,
    # no zeros init / no repeated full-width RMW passes) ----------------------
    iota_vc = jax.lax.broadcasted_iota(jnp.int32, (TR, vc_w), 1)
    mh_vc = (tok[:, 0:1] == iota_vc).astype(jnp.float32)
    for j in range(1, _N_VC_TOKENS):
        mh_vc = mh_vc + (tok[:, j:j + 1] == iota_vc).astype(jnp.float32)

    # ---- multi-hot, position lane range (table-local token ids) -------------
    iota_p = jax.lax.broadcasted_iota(jnp.int32, (TR, pos_w), 1)
    mh_p = (tok[:, _N_VC_TOKENS:_N_VC_TOKENS + 1] == iota_p).astype(jnp.float32)
    for j in range(_N_VC_TOKENS + 1, _TOKENS_PER_GROUP):
        mh_p = mh_p + (tok[:, j:j + 1] == iota_p).astype(jnp.float32)

    # ---- two sub-K MXU matmuls: gather + cross-table add + group-of-3 sum ---
    # sqrt(D) is already folded into the tables; HIGHEST precision keeps the
    # f32 table values exact (multi-hot counts are exact small integers).
    acc = jnp.dot(mh_vc, vc_tab_ref[...],
                  preferred_element_type=jnp.float32,
                  precision=jax.lax.Precision.HIGHEST)
    acc = acc + jnp.dot(mh_p, pos_tab_ref[...],
                        preferred_element_type=jnp.float32,
                        precision=jax.lax.Precision.HIGHEST)
    out_ref[...] = acc


def merge_face_tables(value_table, coord_type_table, position_table):
    """One-time table prep (pure function of the parameters, not the tokens).

    Returns two 128-lane-aligned slabs with sqrt(D) folded in:
      vc_tab  (384, D): value rows [0,Vv), coord rows nested at [Vv, Vv+Vc)
      pos_tab (1024, D): position rows, zero padded
    Hoist this out of the per-step path (or jit the whole wrapper so XLA
    CSEs it) — it is a ~1.3 MB HBM copy.
    """
    Vv, D = value_table.shape
    Vc = coord_type_table.shape[0]
    Vp = position_table.shape[0]
    scaler = math.sqrt(D)

    vc_rows = _round_up(Vv + Vc, 128)
    vc_tab = jnp.concatenate([value_table, coord_type_table], axis=0) * scaler
    vc_tab = jnp.pad(vc_tab, ((0, vc_rows - (Vv + Vc)), (0, 0)))

    pos_rows = _round_up(Vp, 128)
    pos_tab = jnp.pad(position_table * scaler, ((0, pos_rows - Vp), (0, 0)))
    return vc_tab, pos_tab


def face_encoder_embedding(value_tokens, coord_type_tokens, position_tokens,
                           value_table, coord_type_table, position_table):
    B, L = value_tokens.shape
    Vv, D = value_table.shape
    G = max(0, -(-(L - 1) // 3)) if L >= 1 else 0     # ceil((L-1)/3)
    if G == 0:                                         # L <= 1: no output groups
        return jnp.zeros((B, 0, D), jnp.float32)

    vc_tab, pos_tab = merge_face_tables(value_table, coord_type_table,
                                        position_table)
    vc_rows, pos_rows = vc_tab.shape[0], pos_tab.shape[0]

    # ---- token prep: per-table offset, drop last, pad groups with -1 --------
    def prep(tok, off):
        t = tok[:, :L - 1].astype(jnp.int32) + off
        t = jnp.pad(t, ((0, 0), (0, 3 * G - (L - 1))), constant_values=-1)
        return t.reshape(B * G, 3)

    toks = jnp.concatenate(
        [prep(value_tokens, 0),            # lanes [0, Vv)      of vc slab
         prep(coord_type_tokens, Vv),      # lanes [Vv, Vv+Vc)  of vc slab
         prep(position_tokens, 0)],        # lanes [0, Vp)      of pos slab
        axis=1)                            # (B*G, 9) int32

    # ---- adaptive row tiling -------------------------------------------------
    R = B * G
    if R >= 2048:
        TR = 1024
    elif R >= 1024:
        TR = 512
    elif R >= 256:
        TR = 256
    else:
        TR = _round_up(max(R, 1), 8)       # sublane-aligned small case
    R_pad = _round_up(R, TR)
    toks = jnp.pad(toks, ((0, R_pad - R), (0, 0)), constant_values=-1)

    # ---- explicit VMEM budget (tables single-buffered, out/toks double) ------
    est_bytes = 4 * (
        (vc_rows + pos_rows) * D           # resident table slabs
        + 2 * TR * D                       # output tile (double-buffered)
        + 2 * TR * 128                     # token tile padded to 128 lanes
        + 3 * TR * (vc_rows + pos_rows)    # multi-hot + iota + temps headroom
    )
    vmem_limit = int(min(56 << 20, max(32 << 20, est_bytes * 3 // 2)))

    out = pl.pallas_call(
        _face_embed_kernel,
        out_shape=jax.ShapeDtypeStruct((R_pad, D), jnp.float32),
        grid_spec=pltpu.PrefetchScalarGridSpec(
            num_scalar_prefetch=0,
            grid=(R_pad // TR,),
            in_specs=[
                pl.BlockSpec((TR, _TOKENS_PER_GROUP), lambda i: (i, 0)),
                # Grid-invariant tables: resident in VMEM, single-buffered.
                pl.BlockSpec((vc_rows, D), lambda i: (0, 0),
                             pipeline_mode=pl.Buffered(1)),
                pl.BlockSpec((pos_rows, D), lambda i: (0, 0),
                             pipeline_mode=pl.Buffered(1)),
            ],
            out_specs=pl.BlockSpec((TR, D), lambda i: (i, 0)),
        ),
        compiler_params=pltpu.CompilerParams(
            dimension_semantics=("parallel",),
            vmem_limit_bytes=vmem_limit,
        ),
    )(toks, vc_tab, pos_tab)

    return out[:R].reshape(B, G, D)


def init_params(key, embed_dim, vocab_value, pad_idx_value,
                vocab_coord_type, pad_idx_coord_type,
                vocab_position, pad_idx_position):
    k1, k2, k3 = jax.random.split(key, 3)
    vtab = jax.random.normal(k1, (vocab_value, embed_dim), jnp.float32)
    ctab = jax.random.normal(k2, (vocab_coord_type, embed_dim), jnp.float32)
    ptab = jax.random.normal(k3, (vocab_position, embed_dim), jnp.float32)
    # nn.Embedding zeroes the padding_idx row
    vtab = vtab.at[pad_idx_value].set(0.0)
    ctab = ctab.at[pad_idx_coord_type].set(0.0)
    ptab = ptab.at[pad_idx_position].set(0.0)
    return vtab, ctab, ptab


def reference(value_tokens, coord_type_tokens, position_tokens,
              vtab, ctab, ptab):
    D = vtab.shape[1]
    e = vtab[value_tokens] + ctab[coord_type_tokens] + ptab[position_tokens]
    e = e * math.sqrt(D)
    e = e[:, :-1]
    B, Lm1, _ = e.shape
    G = -(-Lm1 // 3)
    e = jnp.pad(e, ((0, 0), (0, 3 * G - Lm1), (0, 0)))
    return e.reshape(B, G, 3, D).sum(axis=2)


if __name__ == "__main__":
    embed_dim = 256
    vocab_value, pad_idx_value = 259, 2
    vocab_coord_type, pad_idx_coord_type = 4, 0
    vocab_position, pad_idx_position = 1000, 0

    key = jax.random.PRNGKey(0)
    kp, kv, kc, kpos, kv2, kc2, kpos2 = jax.random.split(key, 7)

    vtab, ctab, ptab = init_params(
        kp, embed_dim, vocab_value, pad_idx_value,
        vocab_coord_type, pad_idx_coord_type,
        vocab_position, pad_idx_position)

    # jit the whole wrapper so the one-time table merge/pad is fused/hoisted
    fwd = jax.jit(face_encoder_embedding)

    # Case 1: L-1 divisible by 3  (B=2, L=10 -> 3 full groups)
    B, L = 2, 10
    value_tokens = jax.random.randint(kv, (B, L), 0, vocab_value, jnp.int32)
    coord_type_tokens = jax.random.randint(kc, (B, L), 0, vocab_coord_type, jnp.int32)
    position_tokens = jax.random.randint(kpos, (B, L), 0, vocab_position, jnp.int32)

    out = jax.block_until_ready(
        fwd(value_tokens, coord_type_tokens, position_tokens, vtab, ctab, ptab))
    ref = reference(value_tokens, coord_type_tokens, position_tokens,
                    vtab, ctab, ptab)
    assert out.shape == (B, 3, embed_dim), out.shape
    assert jnp.allclose(out, ref, rtol=1e-5, atol=1e-4), "case 1 mismatch"

    # Case 2: ragged last group  (B=2, L=8 -> L-1=7 -> groups of 3, 3, 1)
    B2, L2 = 2, 8
    value_tokens2 = jax.random.randint(kv2, (B2, L2), 0, vocab_value, jnp.int32)
    coord_type_tokens2 = jax.random.randint(kc2, (B2, L2), 0, vocab_coord_type, jnp.int32)
    position_tokens2 = jax.random.randint(kpos2, (B2, L2), 0, vocab_position, jnp.int32)

    out2 = jax.block_until_ready(
        fwd(value_tokens2, coord_type_tokens2, position_tokens2, vtab, ctab, ptab))
    ref2 = reference(value_tokens2, coord_type_tokens2, position_tokens2,
                     vtab, ctab, ptab)
    assert out2.shape == (B2, 3, embed_dim), out2.shape
    assert jnp.allclose(out2, ref2, rtol=1e-5, atol=1e-4), "case 2 mismatch"

    print("KERNEL_OK")
</pallas_src>

<mosaic_0001>
module attributes {stable_mosaic.version = 11 : i64} {
  func.func @_face_embed_kernel(%arg0: i32, %arg1: memref<8x9xi32, #tpu.memory_space<vmem>>, %arg2: memref<384x256xf32, #tpu.memory_space<vmem>>, %arg3: memref<1024x256xf32, #tpu.memory_space<vmem>>, %arg4: memref<8x256xf32, #tpu.memory_space<vmem>>) attributes {dimension_semantics = [#tpu.dimension_semantics<parallel>], iteration_bounds = array<i64: 1>, scalar_prefetch = 0 : i64, scratch_operands = 0 : i64, tpu.core_type = #tpu.core_type<tc>, window_params = [{transform_indices = @transform_0, window_bounds = array<i64: 8, 9>}, {pipeline_mode = #tpu.pipeline_mode<synchronous>, transform_indices = @transform_1, window_bounds = array<i64: 384, 256>}, {pipeline_mode = #tpu.pipeline_mode<synchronous>, transform_indices = @transform_2, window_bounds = array<i64: 1024, 256>}, {transform_indices = @transform_3, window_bounds = array<i64: 8, 256>}]} {
    %c0 = arith.constant 0 : index
    %c0_0 = arith.constant 0 : index
    %0 = vector.load %arg1[%c0, %c0_0] : memref<8x9xi32, #tpu.memory_space<vmem>>, vector<8x9xi32>
    %1 = tpu.iota {dimensions = array<i32: 1>} : vector<8x384xi32>
    %2 = vector.extract_strided_slice %0 {offsets = [0, 0], sizes = [8, 1], strides = [1, 1]} : vector<8x9xi32> to vector<8x1xi32>
    %3 = vector.broadcast %2 : vector<8x1xi32> to vector<8x384xi32>
    %4 = arith.cmpi eq, %3, %1 : vector<8x384xi32>
    %5 = arith.extui %4 : vector<8x384xi1> to vector<8x384xi32>
    %6 = arith.sitofp %5 : vector<8x384xi32> to vector<8x384xf32>
    %7 = vector.extract_strided_slice %0 {offsets = [0, 1], sizes = [8, 1], strides = [1, 1]} : vector<8x9xi32> to vector<8x1xi32>
    %8 = vector.broadcast %7 : vector<8x1xi32> to vector<8x384xi32>
    %9 = arith.cmpi eq, %8, %1 : vector<8x384xi32>
    %10 = arith.extui %9 : vector<8x384xi1> to vector<8x384xi32>
    %11 = arith.sitofp %10 : vector<8x384xi32> to vector<8x384xf32>
    %12 = arith.addf %6, %11 : vector<8x384xf32>
    %13 = vector.extract_strided_slice %0 {offsets = [0, 2], sizes = [8, 1], strides = [1, 1]} : vector<8x9xi32> to vector<8x1xi32>
    %14 = vector.broadcast %13 : vector<8x1xi32> to vector<8x384xi32>
    %15 = arith.cmpi eq, %14, %1 : vector<8x384xi32>
    %16 = arith.extui %15 : vector<8x384xi1> to vector<8x384xi32>
    %17 = arith.sitofp %16 : vector<8x384xi32> to vector<8x384xf32>
    %18 = arith.addf %12, %17 : vector<8x384xf32>
    %19 = vector.extract_strided_slice %0 {offsets = [0, 3], sizes = [8, 1], strides = [1, 1]} : vector<8x9xi32> to vector<8x1xi32>
    %20 = vector.broadcast %19 : vector<8x1xi32> to vector<8x384xi32>
    %21 = arith.cmpi eq, %20, %1 : vector<8x384xi32>
    %22 = arith.extui %21 : vector<8x384xi1> to vector<8x384xi32>
    %23 = arith.sitofp %22 : vector<8x384xi32> to vector<8x384xf32>
    %24 = arith.addf %18, %23 : vector<8x384xf32>
    %25 = vector.extract_strided_slice %0 {offsets = [0, 4], sizes = [8, 1], strides = [1, 1]} : vector<8x9xi32> to vector<8x1xi32>
    %26 = vector.broadcast %25 : vector<8x1xi32> to vector<8x384xi32>
    %27 = arith.cmpi eq, %26, %1 : vector<8x384xi32>
    %28 = arith.extui %27 : vector<8x384xi1> to vector<8x384xi32>
    %29 = arith.sitofp %28 : vector<8x384xi32> to vector<8x384xf32>
    %30 = arith.addf %24, %29 : vector<8x384xf32>
    %31 = vector.extract_strided_slice %0 {offsets = [0, 5], sizes = [8, 1], strides = [1, 1]} : vector<8x9xi32> to vector<8x1xi32>
    %32 = vector.broadcast %31 : vector<8x1xi32> to vector<8x384xi32>
    %33 = arith.cmpi eq, %32, %1 : vector<8x384xi32>
    %34 = arith.extui %33 : vector<8x384xi1> to vector<8x384xi32>
    %35 = arith.sitofp %34 : vector<8x384xi32> to vector<8x384xf32>
    %36 = arith.addf %30, %35 : vector<8x384xf32>
    %37 = tpu.iota {dimensions = array<i32: 1>} : vector<8x1024xi32>
    %38 = vector.extract_strided_slice %0 {offsets = [0, 6], sizes = [8, 1], strides = [1, 1]} : vector<8x9xi32> to vector<8x1xi32>
    %39 = vector.broadcast %38 : vector<8x1xi32> to vector<8x1024xi32>
    %40 = arith.cmpi eq, %39, %37 : vector<8x1024xi32>
    %41 = arith.extui %40 : vector<8x1024xi1> to vector<8x1024xi32>
    %42 = arith.sitofp %41 : vector<8x1024xi32> to vector<8x1024xf32>
    %43 = vector.extract_strided_slice %0 {offsets = [0, 7], sizes = [8, 1], strides = [1, 1]} : vector<8x9xi32> to vector<8x1xi32>
    %44 = vector.broadcast %43 : vector<8x1xi32> to vector<8x1024xi32>
    %45 = arith.cmpi eq, %44, %37 : vector<8x1024xi32>
    %46 = arith.extui %45 : vector<8x1024xi1> to vector<8x1024xi32>
    %47 = arith.sitofp %46 : vector<8x1024xi32> to vector<8x1024xf32>
    %48 = arith.addf %42, %47 : vector<8x1024xf32>
    %49 = vector.extract_strided_slice %0 {offsets = [0, 8], sizes = [8, 1], strides = [1, 1]} : vector<8x9xi32> to vector<8x1xi32>
    %50 = vector.broadcast %49 : vector<8x1xi32> to vector<8x1024xi32>
    %51 = arith.cmpi eq, %50, %37 : vector<8x1024xi32>
    %52 = arith.extui %51 : vector<8x1024xi1> to vector<8x1024xi32>
    %53 = arith.sitofp %52 : vector<8x1024xi32> to vector<8x1024xf32>
    %54 = arith.addf %48, %53 : vector<8x1024xf32>
    %c0_1 = arith.constant 0 : index
    %c0_2 = arith.constant 0 : index
    %55 = vector.load %arg2[%c0_1, %c0_2] : memref<384x256xf32, #tpu.memory_space<vmem>>, vector<384x256xf32>
    %cst = arith.constant dense<0.000000e+00> : vector<8x256xf32>
    %56 = tpu.matmul %36, %55, %cst {dimension_numbers = #tpu.dot_dimension_numbers<[1], [0], [0], [1], [0, 0, 1, 1], [], []>, precision = #tpu.contract_precision<fp32>} : vector<8x384xf32>, vector<384x256xf32>, vector<8x256xf32> -> vector<8x256xf32>
    %c0_3 = arith.constant 0 : index
    %c0_4 = arith.constant 0 : index
    %57 = vector.load %arg3[%c0_3, %c0_4] : memref<1024x256xf32, #tpu.memory_space<vmem>>, vector<1024x256xf32>
    %cst_5 = arith.constant dense<0.000000e+00> : vector<8x256xf32>
    %58 = tpu.matmul %54, %57, %cst_5 {dimension_numbers = #tpu.dot_dimension_numbers<[1], [0], [0], [1], [0, 0, 1, 1], [], []>, precision = #tpu.contract_precision<fp32>} : vector<8x1024xf32>, vector<1024x256xf32>, vector<8x256xf32> -> vector<8x256xf32>
    %59 = arith.addf %56, %58 : vector<8x256xf32>
    %c0_6 = arith.constant 0 : index
    %c0_7 = arith.constant 0 : index
    %60 = vector.load %arg4[%c0_6, %c0_7] : memref<8x256xf32, #tpu.memory_space<vmem>>, vector<8x256xf32>
    tpu.vector_store %arg4[%c0_6, %c0_7], %59 {strides = array<i32>} : memref<8x256xf32, #tpu.memory_space<vmem>>, vector<8x256xf32>,
    return
  }
  func.func @transform_0(%arg0: i32) -> (i32, i32) {
    %c0_i32 = arith.constant 0 : i32
    %c0_i32_0 = arith.constant 0 : i32
    return %arg0, %c0_i32 : i32, i32
  }
  func.func @transform_1(%arg0: i32) -> (i32, i32) {
    %c0_i32 = arith.constant 0 : i32
    %c0_i32_0 = arith.constant 0 : i32
    %c0_i32_1 = arith.constant 0 : i32
    return %c0_i32, %c0_i32_0 : i32, i32
  }
  func.func @transform_2(%arg0: i32) -> (i32, i32) {
    %c0_i32 = arith.constant 0 : i32
    %c0_i32_0 = arith.constant 0 : i32
    %c0_i32_1 = arith.constant 0 : i32
    return %c0_i32, %c0_i32_0 : i32, i32
  }
  func.func @transform_3(%arg0: i32) -> (i32, i32) {
    %c0_i32 = arith.constant 0 : i32
    %c0_i32_0 = arith.constant 0 : i32
    return %arg0, %c0_i32 : i32, i32
  }
}

</mosaic_0001>

<bundles_post_ra>
// kernel: face_encoder_embedding.1
= control target key start
LH: loop header
LB: loop body
LE: loop exit
PB: predicated region body
PF: predicated region fallthrough
CT: control target
= control target key end

     0   :  { %v7904_v0 = vmov 6   ;;  %v15592_v2 = vmov 8   ;;  %v7906_v24 = vmov 7   ;;  %s15588_s0 = inlined_call_operand.vmem [shape: s32[8,9], index: 0, kind: input, shape index: {}]   ;;  %s15589_s2 = inlined_call_operand.vmem [shape: f32[1024,256], index: 2, kind: input, shape index: {}]   ;;  %s15590_s1 = inlined_call_operand.vmem [shape: f32[384,256], index: 1, kind: input, shape index: {}]   ;;  %s15591_s3 = inlined_call_operand.vmem [shape: f32[8,256], index: 3, kind: output, shape index: {}]  }
   0x1   :  { %7893 = vset.pattern.permute.xlu0 %v7904_v0  ;;  %v14_v1 = vld [vmem:[%s15588_s0] sm:$0xff]  ;;  %7895 = vset.pattern.permute.xlu1 %v15592_v2  ;;  %v335_v3 = vld [vmem:[%s15589_s2 + $0xf8] sm:$0xff]  ;;  %v334_v4 = vld [vmem:[%s15589_s2 + $0xf0] sm:$0xff] }
   0x2   :  { %112 = vperm.xlu0 %7893, %v14_v1   ;;  %174 = vperm.xlu1 %7895, %v14_v1   ;;  %v7944_v5 = vand.u32 4294901760, %v335_v3  ;;  %v7946_v6 = vand.u32 4294901760, %v334_v4  ;;  %v333_v7 = vld [vmem:[%s15589_s2 + $0xe8] sm:$0xff]  ;;  %v332_v8 = vld [vmem:[%s15589_s2 + $0xe0] sm:$0xff]  ;;  %v331_v9 = vld [vmem:[%s15589_s2 + $0xd8] sm:$0xff] }
   0x3   :  { %v7957_v10 = vand.u32 4294901760, %v333_v7  ;;  %v7959_v11 = vand.u32 4294901760, %v332_v8  ;;  %v7961_v12 = vand.u32 4294901760, %v331_v9  ;;  %v330_v13 = vld [vmem:[%s15589_s2 + $0xd0] sm:$0xff]  ;;  %v329_v14 = vld [vmem:[%s15589_s2 + $0xc8] sm:$0xff]  ;;  %v328_v15 = vld [vmem:[%s15589_s2 + $0xc0] sm:$0xff] }
   0x4   :  { %v7973_v16 = vsub.f32 %v335_v3, %v7944_v5  ;;  %v7976_v17 = vsub.f32 %v334_v4, %v7946_v6  ;;  %v7978_v18 = vand.u32 4294901760, %v330_v13  ;;  %v7980_v19 = vand.u32 4294901760, %v329_v14  ;;  %561 = vmatprep.subr.mxu0 %v7944_v5  ;;  %v327_v41 = vld [vmem:[%s15589_s2 + $0xb8] sm:$0xff]  ;;  %v326_v42 = vld [vmem:[%s15589_s2 + $0xb0] sm:$0xff]  ;;  %v325_v47 = vld [vmem:[%s15589_s2 + $0xa8] sm:$0xff] }
   0x5   :  { %v7984_v20 = vsub.f32 %v333_v7, %v7957_v10  ;;  %v7987_v21 = vsub.f32 %v332_v8, %v7959_v11  ;;  %v7990_v22 = vsub.f32 %v331_v9, %v7961_v12  ;;  %v7992_v23 = vand.u32 4294901760, %v328_v15  ;;  %563 = vmatpush1.msra.mxu0 %v7946_v6  ;;  %v324_v48 = vld [vmem:[%s15589_s2 + $0xa0] sm:$0xff]  ;;  %v323_v49 = vld [vmem:[%s15589_s2 + $0x98] sm:$0xff]  ;;  %v322_v54 = vld [vmem:[%s15589_s2 + $0x90] sm:$0xff] }
   0x6   :  { %7894 = vset.pattern.permute.xlu0 %v7906_v24  ;;  %v15613_v25 = vand.u32 4294901760, %v7973_v16  ;;  %v15612_v26 = vand.u32 4294901760, %v7976_v17  ;;  %v7998_v27 = vsub.f32 %v330_v13, %v7978_v18  ;;  %v8001_v28 = vsub.f32 %v329_v14, %v7980_v19  ;;  %565 = vmatprep.subr.mxu0 %v7957_v10  ;;  %v321_v55 = vld [vmem:[%s15589_s2 + $0x88] sm:$0xff]  ;;  %v320_v60 = vld [vmem:[%s15589_s2 + $0x80] sm:$0xff] }
   0x7   :  { %139 = vperm.xlu0 %7894, %v14_v1   ;;  %v15609_v29 = vand.u32 4294901760, %v7984_v20  ;;  %v15607_v30 = vand.u32 4294901760, %v7987_v21  ;;  %v15604_v31 = vand.u32 4294901760, %v7990_v22  ;;  %v8008_v32 = vsub.f32 %v328_v15, %v7992_v23  ;;  %567 = vmatpush1.msra.mxu0 %v7959_v11 }
   0x8   :  { %v708_v33 = vsub.f32 %v7973_v16, %v15613_v25  ;;  %v714_v34 = vsub.f32 %v7976_v17, %v15612_v26  ;;  %v15603_v35 = vand.u32 4294901760, %v7998_v27  ;;  %v15602_v36 = vand.u32 4294901760, %v8001_v28  ;;  %569 = vmatprep.subr.mxu0 %v7961_v12  ;;  %v309_v26 = vld [vmem:[%s15589_s2 + $0x28] sm:$0xff]  ;;  %v308_v25 = vld [vmem:[%s15589_s2 + $0x20] sm:$0xff] }
   0x9   :  { %v720_v37 = vsub.f32 %v7984_v20, %v15609_v29  ;;  %v726_v38 = vsub.f32 %v7987_v21, %v15607_v30  ;;  %v732_v39 = vsub.f32 %v7990_v22, %v15604_v31  ;;  %v15601_v40 = vand.u32 4294901760, %v8008_v32  ;;  %571 = vmatpush1.msra.mxu0 %v7978_v18  ;;  %v311_v30 = vld [vmem:[%s15589_s2 + $0x38] sm:$0xff] }
   0xa   :  { %v709_v43 = vand.u32 4294901760, %v708_v33  ;;  %v715_v44 = vand.u32 4294901760, %v714_v34  ;;  %v738_v45 = vsub.f32 %v7998_v27, %v15603_v35  ;;  %v744_v46 = vsub.f32 %v8001_v28, %v15602_v36  ;;  %573 = vmatprep.subr.mxu0 %v7980_v19 }
   0xb   :  { %v721_v50 = vand.u32 4294901760, %v720_v37  ;;  %v727_v51 = vand.u32 4294901760, %v726_v38  ;;  %v733_v52 = vand.u32 4294901760, %v732_v39  ;;  %v750_v53 = vsub.f32 %v8008_v32, %v15601_v40  ;;  %575 = vmatpush1.msra.mxu0 %v7992_v23 }
   0xc   :  { %710 = vmatprep.subr.mxu1 %v709_v43  ;;  %v739_v56 = vand.u32 4294901760, %v738_v45  ;;  %v745_v57 = vand.u32 4294901760, %v744_v46  ;;  %v8063_v58 = vand.u32 4294901760, %v327_v41  ;;  %v8065_v59 = vand.u32 4294901760, %v326_v42 }
   0xd   :  { %716 = vmatpush1.msra.mxu1 %v715_v44  ;;  %v751_v61 = vand.u32 4294901760, %v750_v53  ;;  %v8070_v62 = vand.u32 4294901760, %v325_v47  ;;  %v8072_v63 = vand.u32 4294901760, %v324_v48  ;;  %v8074_v0 = vand.u32 4294901760, %v323_v49 }
   0xe   :  { %722 = vmatprep.subr.mxu1 %v721_v50  ;;  %v8077_v1 = vsub.f32 %v327_v41, %v8063_v58  ;;  %v8080_v3 = vsub.f32 %v326_v42, %v8065_v59  ;;  %v8082_v4 = vand.u32 4294901760, %v322_v54  ;;  %v8084_v7 = vand.u32 4294901760, %v321_v55  ;;  %577 = vmatprep.subr.mxu0 %v8063_v58  ;;  %v319_v50 = vld [vmem:[%s15589_s2 + $0x78] sm:$0xff] }
   0xf   :  { %728 = vmatpush1.msra.mxu1 %v727_v51  ;;  %v8088_v8 = vsub.f32 %v325_v47, %v8070_v62  ;;  %v8091_v9 = vsub.f32 %v324_v48, %v8072_v63  ;;  %v8094_v13 = vsub.f32 %v323_v49, %v8074_v0  ;;  %v8096_v14 = vand.u32 4294901760, %v320_v60  ;;  %579 = vmatpush1.msra.mxu0 %v8065_v59  ;;  %v318_v51 = vld [vmem:[%s15589_s2 + $0x70] sm:$0xff] }
  0x10   :  { %734 = vmatprep.subr.mxu1 %v733_v52  ;;  %v15600_v15 = vand.u32 4294901760, %v8077_v1  ;;  %v15599_v24 = vand.u32 4294901760, %v8080_v3  ;;  %v8102_v33 = vsub.f32 %v322_v54, %v8082_v4  ;;  %v8105_v34 = vsub.f32 %v321_v55, %v8084_v7  ;;  %581 = vmatprep.subr.mxu0 %v8070_v62 }
  0x11   :  { %740 = vmatpush1.msra.mxu1 %v739_v56  ;;  %v15598_v37 = vand.u32 4294901760, %v8088_v8  ;;  %v15596_v38 = vand.u32 4294901760, %v8091_v9  ;;  %v15595_v39 = vand.u32 4294901760, %v8094_v13  ;;  %v8112_v41 = vsub.f32 %v320_v60, %v8096_v14  ;;  %583 = vmatpush1.msra.mxu0 %v8072_v63  ;;  %v317_v56 = vld [vmem:[%s15589_s2 + $0x68] sm:$0xff]  ;;  %v315_v60 = vld [vmem:[%s15589_s2 + $0x58] sm:$0xff] }
  0x12   :  { %746 = vmatprep.subr.mxu1 %v745_v57  ;;  %v756_v42 = vsub.f32 %v8077_v1, %v15600_v15  ;;  %v762_v43 = vsub.f32 %v8080_v3, %v15599_v24  ;;  %v15594_v44 = vand.u32 4294901760, %v8102_v33  ;;  %v15593_v45 = vand.u32 4294901760, %v8105_v34  ;;  %585 = vmatprep.subr.mxu0 %v8074_v0  ;;  %v316_v57 = vld [vmem:[%s15589_s2 + $0x60] sm:$0xff] }
  0x13   :  { %16726 = vst [vmem:[#allocation2_spill] sm:$0xff] %v8112_v41  ;;  %752 = vmatpush1.msra.mxu1 %v751_v61  ;;  %v768_v46 = vsub.f32 %v8088_v8, %v15598_v37  ;;  %v774_v47 = vsub.f32 %v8091_v9, %v15596_v38  ;;  %v780_v48 = vsub.f32 %v8094_v13, %v15595_v39  ;;  %v15597_v49 = vand.u32 4294901760, %v8112_v41 }
  0x14   :  { %587 = vmatpush1.msra.mxu0 %v8082_v4  ;;  %v757_v52 = vand.u32 4294901760, %v756_v42  ;;  %v763_v53 = vand.u32 4294901760, %v762_v43  ;;  %v786_v54 = vsub.f32 %v8102_v33, %v15594_v44  ;;  %v792_v55 = vsub.f32 %v8105_v34, %v15593_v45  ;;  %v314_v45 = vld [vmem:[%s15589_s2 + $0x50] sm:$0xff]  ;;  %v313_v44 = vld [vmem:[%s15589_s2 + $0x48] sm:$0xff] }
  0x15   :  { %589 = vmatprep.subr.mxu0 %v8084_v7  ;;  %v769_v61 = vand.u32 4294901760, %v768_v46  ;;  %v775_v42 = vand.u32 4294901760, %v774_v47  ;;  %v781_v43 = vand.u32 4294901760, %v780_v48  ;;  %v798_v2 = vsub.f32 %v8112_v41, %v15597_v49  ;;  %v312_v48 = vld [vmem:[%s15589_s2 + $0x40] sm:$0xff] }
  0x16   :  { %591 = vmatpush1.msra.mxu0 %v8096_v14  ;;  %758 = vmatprep.subr.mxu1 %v757_v52  ;;  %v787_v39 = vand.u32 4294901760, %v786_v54  ;;  %v793_v38 = vand.u32 4294901760, %v792_v55  ;;  %v8167_v46 = vand.u32 4294901760, %v319_v50  ;;  %v8169_v47 = vand.u32 4294901760, %v318_v51 }
  0x17   :  { %764 = vmatpush1.msra.mxu1 %v763_v53  ;;  %v799_v49 = vand.u32 4294901760, %v798_v2  ;;  %v8174_v37 = vand.u32 4294901760, %v317_v56  ;;  %v8176_v24 = vand.u32 4294901760, %v316_v57  ;;  %v8178_v15 = vand.u32 4294901760, %v315_v60 }
  0x18   :  { %770 = vmatprep.subr.mxu1 %v769_v61  ;;  %v8181_v52 = vsub.f32 %v319_v50, %v8167_v46  ;;  %v8184_v54 = vsub.f32 %v318_v51, %v8169_v47  ;;  %v8186_v55 = vand.u32 4294901760, %v314_v45  ;;  %v8188_v40 = vand.u32 4294901760, %v313_v44  ;;  %593 = vmatprep.subr.mxu0 %v8167_v46 }
  0x19   :  { %776 = vmatpush1.msra.mxu1 %v775_v42  ;;  %v8192_v2 = vsub.f32 %v317_v56, %v8174_v37  ;;  %v8195_v53 = vsub.f32 %v316_v57, %v8176_v24  ;;  %v8198_v61 = vsub.f32 %v315_v60, %v8178_v15  ;;  %v8200_v50 = vand.u32 4294901760, %v312_v48  ;;  %595 = vmatpush1.msra.mxu0 %v8169_v47 }
  0x1a   :  { %16727 = vst [vmem:[#allocation3_spill] sm:$0xff] %v8181_v52  ;;  %16728 = vst [vmem:[#allocation4_spill] sm:$0xff] %v8184_v54  ;;  %782 = vmatprep.subr.mxu1 %v781_v43  ;;  %v15605_v51 = vand.u32 4294901760, %v8181_v52  ;;  %v15606_v36 = vand.u32 4294901760, %v8184_v54  ;;  %v8206_v42 = vsub.f32 %v314_v45, %v8186_v55  ;;  %v8209_v56 = vsub.f32 %v313_v44, %v8188_v40 }
  0x1b   :  { %16729 = vst [vmem:[#allocation5_spill] sm:$0xff] %v8192_v2  ;;  %16730 = vst [vmem:[#allocation6_spill] sm:$0xff] %v8195_v53  ;;  %597 = vmatprep.subr.mxu0 %v8174_v37  ;;  %788 = vmatpush1.msra.mxu1 %v787_v39  ;;  %v15608_v57 = vand.u32 4294901760, %v8192_v2  ;;  %v15610_v60 = vand.u32 4294901760, %v8195_v53  ;;  %v15611_v35 = vand.u32 4294901760, %v8198_v61  ;;  %v8216_v43 = vsub.f32 %v312_v48, %v8200_v50 }
  0x1c   :  { %16731 = vst [vmem:[#allocation7_spill] sm:$0xff] %v8198_v61  ;;  %16732 = vst [vmem:[#allocation8_spill] sm:$0xff] %v8200_v50  ;;  %599 = vmatpush1.msra.mxu0 %v8176_v24  ;;  %794 = vmatprep.subr.mxu1 %v793_v38  ;;  %v804_v44 = vsub.f32 %v8181_v52, %v15605_v51  ;;  %v810_v39 = vsub.f32 %v8184_v54, %v15606_v36  ;;  %v15614_v45 = vand.u32 4294901760, %v8206_v42 }
  0x1d   :  { %16733 = vst [vmem:[#allocation9_spill] sm:$0xff] %v8206_v42  ;;  %16734 = vst [vmem:[#allocation10_spill] sm:$0xff] %v8209_v56  ;;  %v15617_v31 = vand.u32 4294901760, %v8209_v56  ;;  %601 = vmatprep.subr.mxu0 %v8178_v15  ;;  %800 = vmatpush1.msra.mxu1 %v799_v49  ;;  %v816_v48 = vsub.f32 %v8192_v2, %v15608_v57  ;;  %v822_v38 = vsub.f32 %v8195_v53, %v15610_v60  ;;  %v310_v49 = vld [vmem:[%s15589_s2 + $0x30] sm:$0xff] }
  0x1e   :  { %16735 = vst [vmem:[#allocation11_spill] sm:$0xff] %v8216_v43  ;;  %v828_v51 = vsub.f32 %v8198_v61, %v15611_v35  ;;  %603 = vmatpush1.msra.mxu0 %v8186_v55  ;;  %v805_v57 = vand.u32 4294901760, %v804_v44  ;;  %v811_v29 = vand.u32 4294901760, %v810_v39  ;;  %v834_v60 = vsub.f32 %v8206_v42, %v15614_v45  ;;  %v307_v44 = vld [vmem:[%s15589_s2 + $0x18] sm:$0xff]  ;;  %v305_v61 = vld [vmem:[%s15589_s2 + $0x8] sm:$0xff] }
  0x1f   :  { %v840_v35 = vsub.f32 %v8209_v56, %v15617_v31  ;;  %605 = vmatprep.subr.mxu0 %v8188_v40  ;;  %v817_v39 = vand.u32 4294901760, %v816_v48  ;;  %v823_v45 = vand.u32 4294901760, %v822_v38  ;;  %v16736_v42 = vand.u32 4294901760, %v8216_v43  ;;  %v306_v56 = vld [vmem:[%s15589_s2 + $0x10] sm:$0xff] }
  0x20   :  { %v829_v36 = vand.u32 4294901760, %v828_v51  ;;  %607 = vmatpush1.msra.mxu0 %v8200_v50  ;;  %806 = vmatprep.subr.mxu1 %v805_v57  ;;  %v835_v53 = vand.u32 4294901760, %v834_v60  ;;  %v8271_v48 = vand.u32 4294901760, %v311_v30  ;;  %v8273_v51 = vand.u32 4294901760, %v310_v49 }
  0x21   :  { %v846_v31 = vsub.f32 %v8216_v43, %v16736_v42  ;;  %v841_v2 = vand.u32 4294901760, %v840_v35  ;;  %v304_v42 = vld [vmem:[%s15589_s2] sm:$0xff]  ;;  %812 = vmatpush1.msra.mxu1 %v811_v29  ;;  %v8278_v43 = vand.u32 4294901760, %v309_v26  ;;  %v8280_v54 = vand.u32 4294901760, %v308_v25 }
  0x22   :  { %16737 = vst [vmem:[#allocation12_spill] sm:$0xff] %v8271_v48  ;;  %16738 = vst [vmem:[#allocation13_spill] sm:$0xff] %v8273_v51  ;;  %v8282_v52 = vand.u32 4294901760, %v307_v44  ;;  %818 = vmatprep.subr.mxu1 %v817_v39  ;;  %v8285_v57 = vsub.f32 %v311_v30, %v8271_v48  ;;  %v8288_v35 = vsub.f32 %v310_v49, %v8273_v51  ;;  %v8290_v60 = vand.u32 4294901760, %v306_v56 }
  0x23   :  { %v847_v38 = vand.u32 4294901760, %v846_v31  ;;  %16739 = vst [vmem:[#allocation14_spill] sm:$0xff] %v8278_v43  ;;  %16740 = vst [vmem:[#allocation15_spill] sm:$0xff] %v8280_v54  ;;  %v8292_v50 = vand.u32 4294901760, %v305_v61  ;;  %609 = vmatprep.subr.mxu0 %v8271_v48  ;;  %824 = vmatpush1.msra.mxu1 %v823_v45  ;;  %v8296_v29 = vsub.f32 %v309_v26, %v8278_v43  ;;  %v8304_v30 = vand.u32 4294901760, %v304_v42 }
  0x24   :  { %16741 = vst [vmem:[#allocation16_spill] sm:$0xff] %v8282_v52  ;;  %16742 = vst [vmem:[#allocation17_spill] sm:$0xff] %v8285_v57  ;;  %v8299_v31 = vsub.f32 %v308_v25, %v8280_v54  ;;  %v8302_v39 = vsub.f32 %v307_v44, %v8282_v52  ;;  %611 = vmatpush1.msra.mxu0 %v8273_v51  ;;  %830 = vmatprep.subr.mxu1 %v829_v36  ;;  %v15638_v49 = vand.u32 4294901760, %v8285_v57  ;;  %v367_v44 = vld [vmem:[%s15589_s2 + $0x1f8] sm:$0xff] }
  0x25   :  { %16743 = vst [vmem:[#allocation18_spill] sm:$0xff] %v8288_v35  ;;  %16744 = vst [vmem:[#allocation19_spill] sm:$0xff] %v8290_v60  ;;  %v15641_v41 = vand.u32 4294901760, %v8288_v35  ;;  %v8310_v45 = vsub.f32 %v306_v56, %v8290_v60  ;;  %v8313_v26 = vsub.f32 %v305_v61, %v8292_v50  ;;  %613 = vmatprep.subr.mxu0 %v8278_v43  ;;  %836 = vmatpush1.msra.mxu1 %v835_v53 }
  0x26   :  { %16745 = vst [vmem:[#allocation20_spill] sm:$0xff] %v8292_v50  ;;  %16746 = vst [vmem:[#allocation21_spill] sm:$0xff] %v8296_v29  ;;  %v15642_v25 = vand.u32 4294901760, %v8296_v29  ;;  %v8320_v36 = vsub.f32 %v304_v42, %v8304_v30  ;;  %615 = vmatpush1.msra.mxu0 %v8280_v54  ;;  %842 = vmatprep.subr.mxu1 %v841_v2  ;;  %v852_v61 = vsub.f32 %v8285_v57, %v15638_v49 }
  0x27   :  { %16747 = vst [vmem:[#allocation22_spill] sm:$0xff] %v8299_v31  ;;  %16748 = vst [vmem:[#allocation23_spill] sm:$0xff] %v8302_v39  ;;  %v858_v53 = vsub.f32 %v8288_v35, %v15641_v41  ;;  %617 = vmatprep.subr.mxu0 %v8282_v52  ;;  %848 = vmatpush1.msra.mxu1 %v847_v38  ;;  %v16753_v2 = vand.u32 4294901760, %v8299_v31  ;;  %v16754_v49 = vand.u32 4294901760, %v8302_v39  ;;  %v366_v38 = vld [vmem:[%s15589_s2 + $0x1f0] sm:$0xff] }
  0x28   :  { %16749 = vst [vmem:[#allocation24_spill] sm:$0xff] %v8304_v30  ;;  %16750 = vst [vmem:[#allocation25_spill] sm:$0xff] %v8310_v45  ;;  %v864_v42 = vsub.f32 %v8296_v29, %v15642_v25  ;;  %619 = vmatpush1.msra.mxu0 %v8290_v60  ;;  %v853_v25 = vand.u32 4294901760, %v852_v61  ;;  %v364_v29 = vld [vmem:[%s15589_s2 + $0x1e0] sm:$0xff]  ;;  %v363_v61 = vld [vmem:[%s15589_s2 + $0x1d8] sm:$0xff]  ;;  %v16757_v35 = vand.u32 4294901760, %v8320_v36 }
  0x29   :  { %16751 = vst [vmem:[#allocation26_spill] sm:$0xff] %v8313_v26  ;;  %16752 = vst [vmem:[#allocation27_spill] sm:$0xff] %v8320_v36  ;;  %v870_v51 = vsub.f32 %v8299_v31, %v16753_v2  ;;  %v876_v57 = vsub.f32 %v8302_v39, %v16754_v49  ;;  %v859_v56 = vand.u32 4294901760, %v858_v53  ;;  %v16755_v2 = vand.u32 4294901760, %v8310_v45  ;;  %v365_v39 = vld [vmem:[%s15589_s2 + $0x1e8] sm:$0xff]  ;;  %621 = vmatprep.subr.mxu0 %v8292_v50 }
  0x2a   :  { %v16756_v49 = vand.u32 4294901760, %v8313_v26  ;;  %v865_v53 = vand.u32 4294901760, %v864_v42  ;;  %v361_v60 = vld [vmem:[%s15589_s2 + $0x1c8] sm:$0xff]  ;;  %623 = vmatpush1.msra.mxu0 %v8304_v30  ;;  %854 = vmatprep.subr.mxu1 %v853_v25  ;;  %v8375_v42 = vand.u32 4294901760, %v367_v44  ;;  %v8384_v54 = vand.u32 4294901760, %v364_v29 }
  0x2b   :  { %v882_v31 = vsub.f32 %v8310_v45, %v16755_v2  ;;  %v871_v2 = vand.u32 4294901760, %v870_v51  ;;  %v877_v45 = vand.u32 4294901760, %v876_v57  ;;  %v8377_v51 = vand.u32 4294901760, %v366_v38  ;;  %v360_v57 = vld [vmem:[%s15589_s2 + $0x1c0] sm:$0xff]  ;;  %860 = vmatpush1.msra.mxu1 %v859_v56 }
  0x2c   :  { %v888_v41 = vsub.f32 %v8313_v26, %v16756_v49  ;;  %v894_v49 = vsub.f32 %v8320_v36, %v16757_v35  ;;  %v362_v26 = vld [vmem:[%s15589_s2 + $0x1d0] sm:$0xff]  ;;  %16758 = vst [vmem:[#allocation28_spill] sm:$0xff] %v8375_v42  ;;  %v8382_v36 = vand.u32 4294901760, %v365_v39  ;;  %16761 = vst [vmem:[#allocation31_spill] sm:$0xff] %v8384_v54  ;;  %v8386_v43 = vand.u32 4294901760, %v363_v61  ;;  %866 = vmatprep.subr.mxu1 %v865_v53 }
  0x2d   :  { %v883_v52 = vand.u32 4294901760, %v882_v31  ;;  %16759 = vst [vmem:[#allocation29_spill] sm:$0xff] %v8377_v51  ;;  %v8389_v31 = vsub.f32 %v367_v44, %v8375_v42  ;;  %v8394_v25 = vand.u32 4294901760, %v362_v26  ;;  %v8396_v30 = vand.u32 4294901760, %v361_v60  ;;  %625 = vmatprep.subr.mxu0 %v8375_v42  ;;  %872 = vmatpush1.msra.mxu1 %v871_v2 }
  0x2e   :  { %v889_v50 = vand.u32 4294901760, %v888_v41  ;;  %v895_v35 = vand.u32 4294901760, %v894_v49  ;;  %16760 = vst [vmem:[#allocation30_spill] sm:$0xff] %v8382_v36  ;;  %16762 = vst [vmem:[#allocation32_spill] sm:$0xff] %v8386_v43  ;;  %v8392_v41 = vsub.f32 %v366_v38, %v8377_v51  ;;  %v8400_v56 = vsub.f32 %v365_v39, %v8382_v36  ;;  %627 = vmatpush2.msra.mxu0 %v8377_v51 }
  0x2f   :  { %16763 = vst [vmem:[#allocation33_spill] sm:$0xff] %v8389_v31  ;;  %16765 = vst [vmem:[#allocation35_spill] sm:$0xff] %v8394_v25  ;;  %v8403_v49 = vsub.f32 %v364_v29, %v8384_v54  ;;  %v8406_v53 = vsub.f32 %v363_v61, %v8386_v43  ;;  %v8408_v44 = vand.u32 4294901760, %v360_v57  ;;  %878 = vmatprep.subr.mxu1 %v877_v45  ;;  %v15673_v38 = vand.u32 4294901760, %v8389_v31  ;;  %v359_v61 = vld [vmem:[%s15589_s2 + $0x1b8] sm:$0xff] }
  0x30   :  { %16764 = vst [vmem:[#allocation34_spill] sm:$0xff] %v8392_v41  ;;  %16766 = vst [vmem:[#allocation36_spill] sm:$0xff] %v8396_v30  ;;  %v15676_v48 = vand.u32 4294901760, %v8392_v41  ;;  %v8414_v2 = vsub.f32 %v362_v26, %v8394_v25  ;;  %v8417_v39 = vsub.f32 %v361_v60, %v8396_v30  ;;  %629 = vmatprep.subr.mxu0 %v8382_v36  ;;  %884 = vmatpush1.msra.mxu1 %v883_v52 }
  0x31   :  { %16767 = vst [vmem:[#allocation37_spill] sm:$0xff] %v8400_v56  ;;  %16768 = vst [vmem:[#allocation38_spill] sm:$0xff] %v8403_v49  ;;  %v15677_v29 = vand.u32 4294901760, %v8400_v56  ;;  %v8424_v45 = vsub.f32 %v360_v57, %v8408_v44  ;;  %631 = vmatpush2.msra.mxu0 %v8384_v54  ;;  %890 = vmatprep.subr.mxu1 %v889_v50  ;;  %v900_v60 = vsub.f32 %v8389_v31, %v15673_v38 }
  0x32   :  { %16769 = vst [vmem:[#allocation39_spill] sm:$0xff] %v8406_v53  ;;  %16770 = vst [vmem:[#allocation40_spill] sm:$0xff] %v8408_v44  ;;  %v906_v52 = vsub.f32 %v8392_v41, %v15676_v48  ;;  %633 = vmatprep.subr.mxu0 %v8386_v43  ;;  %896 = vmatpush1.msra.mxu1 %v895_v35  ;;  %v16774_v50 = vand.u32 4294901760, %v8403_v49  ;;  %v16775_v38 = vand.u32 4294901760, %v8406_v53  ;;  %v358_v35 = vld [vmem:[%s15589_s2 + $0x1b0] sm:$0xff] }
  0x33   :  { %16771 = vst [vmem:[#allocation41_spill] sm:$0xff] %v8414_v2  ;;  %16772 = vst [vmem:[#allocation42_spill] sm:$0xff] %v8417_v39  ;;  %v912_v57 = vsub.f32 %v8400_v56, %v15677_v29  ;;  %635 = vmatpush2.msra.mxu0 %v8394_v25  ;;  %v901_v29 = vand.u32 4294901760, %v900_v60  ;;  %v356_v56 = vld [vmem:[%s15589_s2 + $0x1a0] sm:$0xff]  ;;  %v355_v60 = vld [vmem:[%s15589_s2 + $0x198] sm:$0xff]  ;;  %v16778_v41 = vand.u32 4294901760, %v8424_v45 }
  0x34   :  { %16773 = vst [vmem:[#allocation43_spill] sm:$0xff] %v8424_v45  ;;  %v918_v51 = vsub.f32 %v8403_v49, %v16774_v50  ;;  %v924_v31 = vsub.f32 %v8406_v53, %v16775_v38  ;;  %v907_v26 = vand.u32 4294901760, %v906_v52  ;;  %v16776_v50 = vand.u32 4294901760, %v8414_v2  ;;  %v357_v53 = vld [vmem:[%s15589_s2 + $0x1a8] sm:$0xff]  ;;  %637 = vmatprep.subr.mxu0 %v8396_v30 }
  0x35   :  { %v16777_v38 = vand.u32 4294901760, %v8417_v39  ;;  %v913_v52 = vand.u32 4294901760, %v912_v57  ;;  %v353_v25 = vld [vmem:[%s15589_s2 + $0x188] sm:$0xff]  ;;  %639 = vmatpush2.msra.mxu0 %v8408_v44  ;;  %902 = vmatprep.subr.mxu1 %v901_v29  ;;  %v8479_v57 = vand.u32 4294901760, %v359_v61  ;;  %v8488_v54 = vand.u32 4294901760, %v356_v56 }
  0x36   :  { %v930_v49 = vsub.f32 %v8414_v2, %v16776_v50  ;;  %v919_v50 = vand.u32 4294901760, %v918_v51  ;;  %v925_v2 = vand.u32 4294901760, %v924_v31  ;;  %v8481_v51 = vand.u32 4294901760, %v358_v35  ;;  %v352_v31 = vld [vmem:[%s15589_s2 + $0x180] sm:$0xff]  ;;  %908 = vmatpush2.msra.mxu1 %v907_v26 }
  0x37   :  { %v936_v48 = vsub.f32 %v8417_v39, %v16777_v38  ;;  %v942_v38 = vsub.f32 %v8424_v45, %v16778_v41  ;;  %v354_v39 = vld [vmem:[%s15589_s2 + $0x190] sm:$0xff]  ;;  %16779 = vst [vmem:[#allocation44_spill] sm:$0xff] %v8479_v57  ;;  %v8486_v45 = vand.u32 4294901760, %v357_v53  ;;  %16782 = vst [vmem:[#allocation47_spill] sm:$0xff] %v8488_v54  ;;  %v8490_v36 = vand.u32 4294901760, %v355_v60  ;;  %914 = vmatprep.subr.mxu1 %v913_v52 }
  0x38   :  { %v931_v43 = vand.u32 4294901760, %v930_v49  ;;  %16780 = vst [vmem:[#allocation45_spill] sm:$0xff] %v8481_v51  ;;  %v8493_v49 = vsub.f32 %v359_v61, %v8479_v57  ;;  %v8498_v29 = vand.u32 4294901760, %v354_v39  ;;  %v8500_v44 = vand.u32 4294901760, %v353_v25  ;;  %641 = vmatprep.subr.mxu0 %v8479_v57  ;;  %920 = vmatpush2.msra.mxu1 %v919_v50 }
  0x39   :  { %v937_v30 = vand.u32 4294901760, %v936_v48  ;;  %v943_v41 = vand.u32 4294901760, %v942_v38  ;;  %16781 = vst [vmem:[#allocation46_spill] sm:$0xff] %v8486_v45  ;;  %16783 = vst [vmem:[#allocation48_spill] sm:$0xff] %v8490_v36  ;;  %v8496_v48 = vsub.f32 %v358_v35, %v8481_v51  ;;  %v8504_v26 = vsub.f32 %v357_v53, %v8486_v45  ;;  %643 = vmatpush2.msra.mxu0 %v8481_v51 }
  0x3a   :  { %16784 = vst [vmem:[#allocation49_spill] sm:$0xff] %v8493_v49  ;;  %16786 = vst [vmem:[#allocation51_spill] sm:$0xff] %v8498_v29  ;;  %v8507_v38 = vsub.f32 %v356_v56, %v8488_v54  ;;  %v8510_v52 = vsub.f32 %v355_v60, %v8490_v36  ;;  %v8512_v61 = vand.u32 4294901760, %v352_v31  ;;  %926 = vmatprep.subr.mxu1 %v925_v2  ;;  %v15708_v35 = vand.u32 4294901760, %v8493_v49  ;;  %v351_v60 = vld [vmem:[%s15589_s2 + $0x178] sm:$0xff] }
  0x3b   :  { %16785 = vst [vmem:[#allocation50_spill] sm:$0xff] %v8496_v48  ;;  %16787 = vst [vmem:[#allocation52_spill] sm:$0xff] %v8500_v44  ;;  %v15711_v42 = vand.u32 4294901760, %v8496_v48  ;;  %v8518_v50 = vsub.f32 %v354_v39, %v8498_v29  ;;  %v8521_v53 = vsub.f32 %v353_v25, %v8500_v44  ;;  %645 = vmatprep.subr.mxu0 %v8486_v45  ;;  %932 = vmatpush2.msra.mxu1 %v931_v43 }
  0x3c   :  { %16788 = vst [vmem:[#allocation53_spill] sm:$0xff] %v8504_v26  ;;  %16789 = vst [vmem:[#allocation54_spill] sm:$0xff] %v8507_v38  ;;  %v15712_v56 = vand.u32 4294901760, %v8504_v26  ;;  %v8528_v2 = vsub.f32 %v352_v31, %v8512_v61  ;;  %647 = vmatpush2.msra.mxu0 %v8488_v54  ;;  %938 = vmatprep.subr.mxu1 %v937_v30  ;;  %v948_v25 = vsub.f32 %v8493_v49, %v15708_v35 }
  0x3d   :  { %16790 = vst [vmem:[#allocation55_spill] sm:$0xff] %v8510_v52  ;;  %16791 = vst [vmem:[#allocation56_spill] sm:$0xff] %v8512_v61  ;;  %v954_v43 = vsub.f32 %v8496_v48, %v15711_v42  ;;  %649 = vmatprep.subr.mxu0 %v8490_v36  ;;  %944 = vmatpush2.msra.mxu1 %v943_v41  ;;  %v16795_v30 = vand.u32 4294901760, %v8507_v38  ;;  %v16796_v35 = vand.u32 4294901760, %v8510_v52  ;;  %v350_v41 = vld [vmem:[%s15589_s2 + $0x170] sm:$0xff] }
  0x3e   :  { %16792 = vst [vmem:[#allocation57_spill] sm:$0xff] %v8518_v50  ;;  %16793 = vst [vmem:[#allocation58_spill] sm:$0xff] %v8521_v53  ;;  %v960_v31 = vsub.f32 %v8504_v26, %v15712_v56  ;;  %651 = vmatpush2.msra.mxu0 %v8498_v29  ;;  %v949_v56 = vand.u32 4294901760, %v948_v25  ;;  %v348_v26 = vld [vmem:[%s15589_s2 + $0x160] sm:$0xff]  ;;  %v347_v25 = vld [vmem:[%s15589_s2 + $0x158] sm:$0xff]  ;;  %v16799_v48 = vand.u32 4294901760, %v8528_v2 }
  0x3f   :  { %16794 = vst [vmem:[#allocation59_spill] sm:$0xff] %v8528_v2  ;;  %v966_v51 = vsub.f32 %v8507_v38, %v16795_v30  ;;  %v972_v49 = vsub.f32 %v8510_v52, %v16796_v35  ;;  %v955_v39 = vand.u32 4294901760, %v954_v43  ;;  %v16797_v30 = vand.u32 4294901760, %v8518_v50  ;;  %v349_v52 = vld [vmem:[%s15589_s2 + $0x168] sm:$0xff]  ;;  %653 = vmatprep.subr.mxu0 %v8500_v44 }
  0x40   :  { %v16798_v35 = vand.u32 4294901760, %v8521_v53  ;;  %v961_v43 = vand.u32 4294901760, %v960_v31  ;;  %v345_v29 = vld [vmem:[%s15589_s2 + $0x148] sm:$0xff]  ;;  %655 = vmatpush2.msra.mxu0 %v8512_v61  ;;  %950 = vmatprep.subr.mxu1 %v949_v56  ;;  %v8583_v31 = vand.u32 4294901760, %v351_v60  ;;  %v8592_v54 = vand.u32 4294901760, %v348_v26 }
  0x41   :  { %v978_v38 = vsub.f32 %v8518_v50, %v16797_v30  ;;  %v967_v30 = vand.u32 4294901760, %v966_v51  ;;  %v973_v50 = vand.u32 4294901760, %v972_v49  ;;  %v8585_v51 = vand.u32 4294901760, %v350_v41  ;;  %v344_v49 = vld [vmem:[%s15589_s2 + $0x140] sm:$0xff]  ;;  %956 = vmatpush2.msra.mxu1 %v955_v39 }
  0x42   :  { %v984_v42 = vsub.f32 %v8521_v53, %v16798_v35  ;;  %v990_v35 = vsub.f32 %v8528_v2, %v16799_v48  ;;  %v346_v53 = vld [vmem:[%s15589_s2 + $0x150] sm:$0xff]  ;;  %16800 = vst [vmem:[#allocation60_spill] sm:$0xff] %v8583_v31  ;;  %v8590_v2 = vand.u32 4294901760, %v349_v52  ;;  %16803 = vst [vmem:[#allocation63_spill] sm:$0xff] %v8592_v54  ;;  %v8594_v45 = vand.u32 4294901760, %v347_v25  ;;  %962 = vmatprep.subr.mxu1 %v961_v43 }
  0x43   :  { %v979_v36 = vand.u32 4294901760, %v978_v38  ;;  %16801 = vst [vmem:[#allocation61_spill] sm:$0xff] %v8585_v51  ;;  %v8597_v38 = vsub.f32 %v351_v60, %v8583_v31  ;;  %v8602_v56 = vand.u32 4294901760, %v346_v53  ;;  %v8604_v61 = vand.u32 4294901760, %v345_v29  ;;  %657 = vmatprep.subr.mxu0 %v8583_v31  ;;  %968 = vmatpush2.msra.mxu1 %v967_v30 }
  0x44   :  { %v985_v44 = vand.u32 4294901760, %v984_v42  ;;  %v991_v48 = vand.u32 4294901760, %v990_v35  ;;  %16802 = vst [vmem:[#allocation62_spill] sm:$0xff] %v8590_v2  ;;  %16804 = vst [vmem:[#allocation64_spill] sm:$0xff] %v8594_v45  ;;  %v8600_v42 = vsub.f32 %v350_v41, %v8585_v51  ;;  %v8608_v39 = vsub.f32 %v349_v52, %v8590_v2  ;;  %659 = vmatpush2.msra.mxu0 %v8585_v51 }
  0x45   :  { %16805 = vst [vmem:[#allocation65_spill] sm:$0xff] %v8597_v38  ;;  %16807 = vst [vmem:[#allocation67_spill] sm:$0xff] %v8602_v56  ;;  %v8611_v35 = vsub.f32 %v348_v26, %v8592_v54  ;;  %v8614_v43 = vsub.f32 %v347_v25, %v8594_v45  ;;  %v8616_v60 = vand.u32 4294901760, %v344_v49  ;;  %974 = vmatprep.subr.mxu1 %v973_v50  ;;  %v15743_v41 = vand.u32 4294901760, %v8597_v38  ;;  %v343_v25 = vld [vmem:[%s15589_s2 + $0x138] sm:$0xff] }
  0x46   :  { %16806 = vst [vmem:[#allocation66_spill] sm:$0xff] %v8600_v42  ;;  %16808 = vst [vmem:[#allocation68_spill] sm:$0xff] %v8604_v61  ;;  %v15746_v57 = vand.u32 4294901760, %v8600_v42  ;;  %v8622_v30 = vsub.f32 %v346_v53, %v8602_v56  ;;  %v8625_v52 = vsub.f32 %v345_v29, %v8604_v61  ;;  %661 = vmatprep.subr.mxu0 %v8590_v2  ;;  %980 = vmatpush2.msra.mxu1 %v979_v36 }
  0x47   :  { %16809 = vst [vmem:[#allocation69_spill] sm:$0xff] %v8608_v39  ;;  %16810 = vst [vmem:[#allocation70_spill] sm:$0xff] %v8611_v35  ;;  %v15747_v26 = vand.u32 4294901760, %v8608_v39  ;;  %v8632_v50 = vsub.f32 %v344_v49, %v8616_v60  ;;  %663 = vmatpush2.msra.mxu0 %v8592_v54  ;;  %986 = vmatprep.subr.mxu1 %v985_v44  ;;  %v996_v29 = vsub.f32 %v8597_v38, %v15743_v41 }
  0x48   :  { %16811 = vst [vmem:[#allocation71_spill] sm:$0xff] %v8614_v43  ;;  %16812 = vst [vmem:[#allocation72_spill] sm:$0xff] %v8616_v60  ;;  %v1002_v36 = vsub.f32 %v8600_v42, %v15746_v57  ;;  %665 = vmatprep.subr.mxu0 %v8594_v45  ;;  %992 = vmatpush2.msra.mxu1 %v991_v48  ;;  %v16816_v44 = vand.u32 4294901760, %v8611_v35  ;;  %v16817_v41 = vand.u32 4294901760, %v8614_v43  ;;  %v342_v48 = vld [vmem:[%s15589_s2 + $0x130] sm:$0xff] }
  0x49   :  { %16813 = vst [vmem:[#allocation73_spill] sm:$0xff] %v8622_v30  ;;  %16814 = vst [vmem:[#allocation74_spill] sm:$0xff] %v8625_v52  ;;  %v1008_v49 = vsub.f32 %v8608_v39, %v15747_v26  ;;  %667 = vmatpush2.msra.mxu0 %v8602_v56  ;;  %v997_v26 = vand.u32 4294901760, %v996_v29  ;;  %v340_v39 = vld [vmem:[%s15589_s2 + $0x120] sm:$0xff]  ;;  %v339_v29 = vld [vmem:[%s15589_s2 + $0x118] sm:$0xff]  ;;  %v16820_v42 = vand.u32 4294901760, %v8632_v50 }
  0x4a   :  { %16815 = vst [vmem:[#allocation75_spill] sm:$0xff] %v8632_v50  ;;  %v1014_v51 = vsub.f32 %v8611_v35, %v16816_v44  ;;  %v1020_v38 = vsub.f32 %v8614_v43, %v16817_v41  ;;  %v1003_v53 = vand.u32 4294901760, %v1002_v36  ;;  %v16818_v44 = vand.u32 4294901760, %v8622_v30  ;;  %v341_v43 = vld [vmem:[%s15589_s2 + $0x128] sm:$0xff]  ;;  %669 = vmatprep.subr.mxu0 %v8604_v61 }
  0x4b   :  { %v16819_v41 = vand.u32 4294901760, %v8625_v52  ;;  %v1009_v36 = vand.u32 4294901760, %v1008_v49  ;;  %v337_v56 = vld [vmem:[%s15589_s2 + $0x108] sm:$0xff]  ;;  %671 = vmatpush2.msra.mxu0 %v8616_v60  ;;  %998 = vmatprep.subr.mxu1 %v997_v26  ;;  %v8687_v49 = vand.u32 4294901760, %v343_v25  ;;  %v8696_v54 = vand.u32 4294901760, %v340_v39 }
  0x4c   :  { %v1026_v35 = vsub.f32 %v8622_v30, %v16818_v44  ;;  %v1015_v44 = vand.u32 4294901760, %v1014_v51  ;;  %v1021_v30 = vand.u32 4294901760, %v1020_v38  ;;  %v8689_v51 = vand.u32 4294901760, %v342_v48  ;;  %v336_v38 = vld [vmem:[%s15589_s2 + $0x100] sm:$0xff]  ;;  %1004 = vmatpush2.msra.mxu1 %v1003_v53 }
  0x4d   :  { %v1032_v57 = vsub.f32 %v8625_v52, %v16819_v41  ;;  %v1038_v41 = vsub.f32 %v8632_v50, %v16820_v42  ;;  %v338_v52 = vld [vmem:[%s15589_s2 + $0x110] sm:$0xff]  ;;  %16821 = vst [vmem:[#allocation76_spill] sm:$0xff] %v8687_v49  ;;  %v8694_v50 = vand.u32 4294901760, %v341_v43  ;;  %16824 = vst [vmem:[#allocation79_spill] sm:$0xff] %v8696_v54  ;;  %v8698_v2 = vand.u32 4294901760, %v339_v29  ;;  %1010 = vmatprep.subr.mxu1 %v1009_v36 }
  0x4e   :  { %v1027_v45 = vand.u32 4294901760, %v1026_v35  ;;  %16822 = vst [vmem:[#allocation77_spill] sm:$0xff] %v8689_v51  ;;  %v8701_v35 = vsub.f32 %v343_v25, %v8687_v49  ;;  %v8706_v26 = vand.u32 4294901760, %v338_v52  ;;  %v8708_v60 = vand.u32 4294901760, %v337_v56  ;;  %673 = vmatprep.subr.mxu0 %v8687_v49  ;;  %1016 = vmatpush2.msra.mxu1 %v1015_v44 }
  0x4f   :  { %v1033_v61 = vand.u32 4294901760, %v1032_v57  ;;  %v1039_v42 = vand.u32 4294901760, %v1038_v41  ;;  %16823 = vst [vmem:[#allocation78_spill] sm:$0xff] %v8694_v50  ;;  %16825 = vst [vmem:[#allocation80_spill] sm:$0xff] %v8698_v2  ;;  %v8704_v57 = vsub.f32 %v342_v48, %v8689_v51  ;;  %v8712_v53 = vsub.f32 %v341_v43, %v8694_v50  ;;  %675 = vmatpush2.msra.mxu0 %v8689_v51 }
  0x50   :  { %16826 = vst [vmem:[#allocation81_spill] sm:$0xff] %v8701_v35  ;;  %v8715_v41 = vsub.f32 %v340_v39, %v8696_v54  ;;  %v8718_v36 = vsub.f32 %v339_v29, %v8698_v2  ;;  %v8720_v25 = vand.u32 4294901760, %v336_v38  ;;  %1022 = vmatprep.subr.mxu1 %v1021_v30  ;;  %v15778_v48 = vand.u32 4294901760, %v8701_v35  ;;  %677 = vmatprep.subr.mxu0 %v8694_v50 }
  0x51   :  { %16827 = vst [vmem:[#allocation82_spill] sm:$0xff] %v8704_v57  ;;  %16828 = vst [vmem:[#allocation83_spill] sm:$0xff] %v8712_v53  ;;  %v15781_v31 = vand.u32 4294901760, %v8704_v57  ;;  %v8726_v44 = vsub.f32 %v338_v52, %v8706_v26  ;;  %v8729_v43 = vsub.f32 %v337_v56, %v8708_v60  ;;  %1028 = vmatpush2.msra.mxu1 %v1027_v45  ;;  %v15784_v39 = vand.u32 4294901760, %v8712_v53 }
  0x52   :  { %16829 = vst [vmem:[#allocation84_spill] sm:$0xff] %v8715_v41  ;;  %v8736_v30 = vsub.f32 %v336_v38, %v8720_v25  ;;  %679 = vmatpush2.msra.mxu0 %v8696_v54  ;;  %1034 = vmatprep.subr.mxu1 %v1033_v61  ;;  %v1044_v56 = vsub.f32 %v8701_v35, %v15778_v48  ;;  %v16830_v61 = vand.u32 4294901760, %v8715_v41  ;;  %v16831_v48 = vand.u32 4294901760, %v8718_v36 }
  0x53   :  { %v1050_v45 = vsub.f32 %v8704_v57, %v15781_v31  ;;  %681 = vmatprep.subr.mxu0 %v8698_v2  ;;  %1040 = vmatpush2.msra.mxu1 %v1039_v42  ;;  %v1056_v38 = vsub.f32 %v8712_v53, %v15784_v39  ;;  %v16832_v42 = vand.u32 4294901760, %v8726_v44  ;;  %v16833_v39 = vand.u32 4294901760, %v8729_v43 }
  0x54   :  { %v1062_v51 = vsub.f32 %v8715_v41, %v16830_v61  ;;  %v1068_v35 = vsub.f32 %v8718_v36, %v16831_v48  ;;  %v15789_v31 = vand.u32 4294901760, %v8736_v30  ;;  %683 = vmatpush2.msra.mxu0 %v8706_v26  ;;  %v1045_v29 = vand.u32 4294901760, %v1044_v56 }
  0x55   :  { %v1051_v52 = vand.u32 4294901760, %v1050_v45  ;;  %v1074_v57 = vsub.f32 %v8726_v44, %v16832_v42  ;;  %v1080_v53 = vsub.f32 %v8729_v43, %v16833_v39  ;;  %685 = vmatprep.subr.mxu0 %v8708_v60  ;;  %v1057_v61 = vand.u32 4294901760, %v1056_v38 }
  0x56   :  { %v1063_v41 = vand.u32 4294901760, %v1062_v51  ;;  %v1086_v48 = vsub.f32 %v8736_v30, %v15789_v31  ;;  %687 = vmatpush2.msra.mxu0 %v8720_v25  ;;  %1046 = vmatprep.subr.mxu1 %v1045_v29  ;;  %v1069_v56 = vand.u32 4294901760, %v1068_v35  ;;  %v15_v51 = vlaneseq }
  0x57   :  { %1100 = vmatprep.subr.mxu0 %v7973_v16  ;;  %1052 = vmatpush2.msra.mxu1 %v1051_v52  ;;  %v1075_v45 = vand.u32 4294901760, %v1074_v57  ;;  %v1081_v42 = vand.u32 4294901760, %v1080_v53  ;;  %v15800_v53 = vmov 0.0  }
  0x58   :  { %1058 = vmatprep.subr.mxu1 %v1057_v61  ;;  %v1087_v39 = vand.u32 4294901760, %v1086_v48  ;;  %v8772_v38 = vand.u32 127, %v15_v51 }
  0x59   :  { %1064 = vmatpush2.msra.mxu1 %v1063_v41 }
  0x5a   :  { %1070 = vmatprep.subr.mxu1 %v1069_v56  ;;  %16834 = vst [vmem:[#allocation85_spill] sm:$0xff] %v8772_v38  ;;  %v8775_v29 = vadd.s32 128, %v8772_v38 }
  0x5b   :  { %1076 = vmatpush2.msra.mxu1 %v1075_v45 }
  0x5c   :  { %1082 = vmatprep.subr.mxu1 %v1081_v42  ;;  %16835 = vst [vmem:[#allocation86_spill] sm:$0xff] %v8775_v29 }
  0x5d   :  { %1088 = vmatpush2.msra.mxu1 %v1087_v39 }
  0x5e   :  { %1302 = vmatprep.subr.mxu1 %v7944_v5 }
  0x7d   :  { %v8777_v35 = vpop.permute.xlu0 %112  ;;  %v8779_v52 = vpop.permute.xlu1 %174 }
  0x7e   :  { %16836 = vst [vmem:[#allocation87_spill] sm:$0xff] %v8777_v35  ;;  %16837 = vst [vmem:[#allocation88_spill] sm:$0xff] %v8779_v52  ;;  %vm115_vm0 = vcmp.eq.s32.totalorder %v8777_v35, %v8775_v29  ;;  %vm177_vm1 = vcmp.eq.s32.totalorder %v8779_v52, %v8775_v29  ;;  %vm114_vm2 = vcmp.eq.s32.totalorder %v8777_v35, %v8772_v38 }
  0x7f   :  { %vm176_vm3 = vcmp.eq.s32.totalorder %v8779_v52, %v8772_v38  ;;  %v7860_v41 = vsel %vm115_vm0, 1.0, %v15800_v53  ;;  %v7876_v61 = vsel %vm177_vm1, 1.0, %v15800_v53  ;;  %v7859_v56 = vsel %vm114_vm2, 1.0, %v15800_v53 }
  0x80   :  { %v7875_v42 = vsel %vm176_vm3, 1.0, %v15800_v53 }
  0x82   :  { %v8789_v57 = vpop.permute.xlu0 %139 }
  0x83   :  { %16838 = vst [vmem:[#allocation89_spill] sm:$0xff] %v8789_v57  ;;  %vm142_vm4 = vcmp.eq.s32.totalorder %v8789_v57, %v8775_v29  ;;  %vm141_vm5 = vcmp.eq.s32.totalorder %v8789_v57, %v8772_v38 }
  0x84   :  { %v7868_v48 = vsel %vm142_vm4, 1.0, %v15800_v53  ;;  %v7867_v45 = vsel %vm141_vm5, 1.0, %v15800_v53 }
  0x85   :  { %v166_v39 = vadd.f32 %v7868_v48, %v7860_v41  ;;  %v165_v51 = vadd.f32 %v7867_v45, %v7859_v56  ;;  %v16842_v56 = vld [vmem:[#allocation3_spill] sm:$0xff]  ;;  %v16843_v45 = vld [vmem:[#allocation12_spill] sm:$0xff] }
  0x87   :  { %v201_v31 = vadd.f32 %v7876_v61, %v166_v39  ;;  %v200_v52 = vadd.f32 %v7875_v42, %v165_v51  ;;  %v16844_v42 = vld [vmem:[#allocation4_spill] sm:$0xff]  ;;  %v16845_v39 = vld [vmem:[#allocation13_spill] sm:$0xff] }
  0x88   :  { %v16846_v51 = vld [vmem:[#allocation5_spill] sm:$0xff] }
  0x89   :  { %v8801_v35 = vand.u32 4294901760, %v201_v31  ;;  %v8803_v29 = vand.u32 4294901760, %v200_v52 }
  0x8b   :  { %16839 = vst [vmem:[#allocation90_spill] sm:$0xff] %v8803_v29  ;;  %1090 = vmatprep.mubr.f32.mxu1 %v8801_v35  ;;  %v689_v57 = vsub.f32 %v201_v31, %v8801_v35  ;;  %v8808_v38 = vsub.f32 %v200_v52, %v8803_v29 }
  0x8c   :  { %1092 = vmatmul.mubr.f32.vlgmr.msra.gmra.mxu1 %v8803_v29  ;;  %v16852_v29 = vld [vmem:[#allocation9_spill] sm:$0xff] }
  0x8d   :  { %1304 = vmatpush1.msra.mxu1 %v7946_v6  ;;  %v690_v53 = vand.u32 4294901760, %v689_v57  ;;  %v15802_v41 = vand.u32 4294901760, %v8808_v38 }
  0x8e   :  { %1306 = vmatprep.subr.mxu1 %v7957_v10 }
  0x8f   :  { %1308 = vmatpush1.msra.mxu1 %v7959_v11  ;;  %1432 = vmatprep.mubr.f32.mxu1 %v690_v53  ;;  %v691_v61 = vsub.f32 %v689_v57, %v690_v53  ;;  %v697_v31 = vsub.f32 %v8808_v38, %v15802_v41  ;;  %v16841_v53 = vld [vmem:[#allocation8_spill] sm:$0xff] }
  0x90   :  { %1310 = vmatprep.subr.mxu1 %v7961_v12  ;;  %v16851_v41 = vld [vmem:[#allocation16_spill] sm:$0xff] }
  0x91   :  { %1312 = vmatpush1.msra.mxu1 %v7978_v18  ;;  %v692_v52 = vand.u32 4294901760, %v691_v61  ;;  %v698_v48 = vand.u32 4294901760, %v697_v31  ;;  %v16847_v61 = vld [vmem:[#allocation14_spill] sm:$0xff] }
  0x92   :  { %1314 = vmatprep.subr.mxu1 %v7980_v19  ;;  %v16848_v31 = vld [vmem:[#allocation6_spill] sm:$0xff] }
  0x93   :  { %1316 = vmatpush1.msra.mxu1 %v7992_v23  ;;  %693 = vmatprep.mubr.f32.mxu0 %v692_v52  ;;  %v16849_v52 = vld [vmem:[#allocation15_spill] sm:$0xff] }
  0x94   :  { %1318 = vmatprep.subr.mxu1 %v8063_v58  ;;  %699 = vmatmul.mubr.f32.vlgmr.msra.gmra.mxu0 %v698_v48  ;;  %v16850_v48 = vld [vmem:[#allocation7_spill] sm:$0xff] }
  0x95   :  { %1103 = vmatpush1.msra.mxu0 %v7976_v17  ;;  %1320 = vmatpush1.msra.mxu1 %v8065_v59 }
  0x96   :  { %1106 = vmatprep.subr.mxu0 %v7984_v20  ;;  %1292 = vmatprep.mubr.f32.mxu0 %v689_v57  ;;  %v16840_v57 = vld [vmem:[#allocation2_spill] sm:$0xff] }
  0x97   :  { %1322 = vmatprep.subr.mxu1 %v8070_v62  ;;  %1109 = vmatpush1.msra.mxu0 %v7987_v21 }
  0x98   :  { %1324 = vmatpush1.msra.mxu1 %v8072_v63  ;;  %1112 = vmatprep.subr.mxu0 %v7990_v22 }
  0x99   :  { %1326 = vmatprep.subr.mxu1 %v8074_v0  ;;  %1115 = vmatpush1.msra.mxu0 %v7998_v27 }
  0x9a   :  { %1328 = vmatpush1.msra.mxu1 %v8082_v4  ;;  %1118 = vmatprep.subr.mxu0 %v8001_v28 }
  0x9b   :  { %1330 = vmatprep.subr.mxu1 %v8084_v7  ;;  %1121 = vmatpush1.msra.mxu0 %v8008_v32 }
  0x9c   :  { %1332 = vmatpush1.msra.mxu1 %v8096_v14  ;;  %1124 = vmatprep.subr.mxu0 %v8077_v1 }
  0x9d   :  { %1334 = vmatprep.subr.mxu1 %v8167_v46  ;;  %1127 = vmatpush1.msra.mxu0 %v8080_v3 }
  0x9e   :  { %1336 = vmatpush1.msra.mxu1 %v8169_v47  ;;  %1130 = vmatprep.subr.mxu0 %v8088_v8 }
  0x9f   :  { %1338 = vmatprep.subr.mxu1 %v8174_v37  ;;  %1133 = vmatpush1.msra.mxu0 %v8091_v9 }
  0xa0   :  { %1340 = vmatpush1.msra.mxu1 %v8176_v24  ;;  %1136 = vmatprep.subr.mxu0 %v8094_v13 }
  0xa1   :  { %1342 = vmatprep.subr.mxu1 %v8178_v15  ;;  %1139 = vmatpush1.msra.mxu0 %v8102_v33 }
  0xa2   :  { %1344 = vmatpush1.msra.mxu1 %v8186_v55  ;;  %1142 = vmatprep.subr.mxu0 %v8105_v34 }
  0xa3   :  { %1346 = vmatprep.subr.mxu1 %v8188_v40  ;;  %1145 = vmatpush1.msra.mxu0 %v16840_v57 }
  0xa4   :  { %1348 = vmatpush1.msra.mxu1 %v16841_v53  ;;  %1148 = vmatprep.subr.mxu0 %v16842_v56  ;;  %v16853_v56 = vld [vmem:[#allocation19_spill] sm:$0xff] }
  0xa5   :  { %1350 = vmatprep.subr.mxu1 %v16843_v45  ;;  %1151 = vmatpush1.msra.mxu0 %v16844_v42  ;;  %v16854_v45 = vld [vmem:[#allocation10_spill] sm:$0xff]  ;;  %v16855_v42 = vld [vmem:[#allocation20_spill] sm:$0xff] }
  0xa6   :  { %1352 = vmatpush1.msra.mxu1 %v16845_v39  ;;  %1154 = vmatprep.subr.mxu0 %v16846_v51  ;;  %v16856_v39 = vld [vmem:[#allocation11_spill] sm:$0xff]  ;;  %v16857_v51 = vld [vmem:[#allocation24_spill] sm:$0xff] }
  0xa7   :  { %1354 = vmatprep.subr.mxu1 %v16847_v61  ;;  %1157 = vmatpush1.msra.mxu0 %v16848_v31  ;;  %v16858_v61 = vld [vmem:[#allocation17_spill] sm:$0xff]  ;;  %v16859_v31 = vld [vmem:[#allocation28_spill] sm:$0xff] }
  0xa8   :  { %1356 = vmatpush1.msra.mxu1 %v16849_v52  ;;  %1160 = vmatprep.subr.mxu0 %v16850_v48  ;;  %v16860_v52 = vld [vmem:[#allocation18_spill] sm:$0xff]  ;;  %v16861_v48 = vld [vmem:[#allocation29_spill] sm:$0xff] }
  0xa9   :  { %1358 = vmatprep.subr.mxu1 %v16851_v41  ;;  %1163 = vmatpush1.msra.mxu0 %v16852_v29  ;;  %v16862_v41 = vld [vmem:[#allocation21_spill] sm:$0xff]  ;;  %v16863_v29 = vld [vmem:[#allocation30_spill] sm:$0xff] }
  0xaa   :  { %1360 = vmatpush1.msra.mxu1 %v16853_v56  ;;  %1166 = vmatprep.subr.mxu0 %v16854_v45  ;;  %v16864_v56 = vld [vmem:[#allocation22_spill] sm:$0xff]  ;;  %v16865_v45 = vld [vmem:[#allocation31_spill] sm:$0xff] }
  0xab   :  { %1362 = vmatprep.subr.mxu1 %v16855_v42  ;;  %1169 = vmatpush1.msra.mxu0 %v16856_v39  ;;  %v16866_v42 = vld [vmem:[#allocation23_spill] sm:$0xff]  ;;  %v16867_v39 = vld [vmem:[#allocation32_spill] sm:$0xff] }
  0xac   :  { %1364 = vmatpush1.msra.mxu1 %v16857_v51  ;;  %1172 = vmatprep.subr.mxu0 %v16858_v61  ;;  %v16868_v51 = vld [vmem:[#allocation25_spill] sm:$0xff]  ;;  %v16869_v61 = vld [vmem:[#allocation35_spill] sm:$0xff] }
  0xad   :  { %1366 = vmatprep.subr.mxu1 %v16859_v31  ;;  %1175 = vmatpush1.msra.mxu0 %v16860_v52  ;;  %v16870_v31 = vld [vmem:[#allocation26_spill] sm:$0xff]  ;;  %v16871_v52 = vld [vmem:[#allocation36_spill] sm:$0xff] }
  0xae   :  { %1368 = vmatpush2.msra.mxu1 %v16861_v48  ;;  %1178 = vmatprep.subr.mxu0 %v16862_v41  ;;  %v16872_v48 = vld [vmem:[#allocation27_spill] sm:$0xff]  ;;  %v16873_v41 = vld [vmem:[#allocation40_spill] sm:$0xff] }
  0xaf   :  { %1370 = vmatprep.subr.mxu1 %v16863_v29  ;;  %1181 = vmatpush1.msra.mxu0 %v16864_v56  ;;  %v16874_v29 = vld [vmem:[#allocation33_spill] sm:$0xff]  ;;  %v16875_v56 = vld [vmem:[#allocation44_spill] sm:$0xff] }
  0xb0   :  { %1372 = vmatpush2.msra.mxu1 %v16865_v45  ;;  %1184 = vmatprep.subr.mxu0 %v16866_v42  ;;  %v16876_v45 = vld [vmem:[#allocation34_spill] sm:$0xff]  ;;  %v16877_v42 = vld [vmem:[#allocation45_spill] sm:$0xff] }
  0xb1   :  { %1374 = vmatprep.subr.mxu1 %v16867_v39  ;;  %1187 = vmatpush1.msra.mxu0 %v16868_v51  ;;  %v16878_v39 = vld [vmem:[#allocation37_spill] sm:$0xff]  ;;  %v16879_v51 = vld [vmem:[#allocation46_spill] sm:$0xff] }
  0xb2   :  { %1376 = vmatpush2.msra.mxu1 %v16869_v61  ;;  %1190 = vmatprep.subr.mxu0 %v16870_v31  ;;  %v16880_v61 = vld [vmem:[#allocation38_spill] sm:$0xff]  ;;  %v16881_v31 = vld [vmem:[#allocation47_spill] sm:$0xff] }
  0xb3   :  { %1378 = vmatprep.subr.mxu1 %v16871_v52  ;;  %1193 = vmatpush1.msra.mxu0 %v16872_v48  ;;  %v16882_v52 = vld [vmem:[#allocation39_spill] sm:$0xff]  ;;  %v16883_v48 = vld [vmem:[#allocation48_spill] sm:$0xff] }
  0xb4   :  { %1380 = vmatpush2.msra.mxu1 %v16873_v41  ;;  %1196 = vmatprep.subr.mxu0 %v16874_v29  ;;  %v16884_v41 = vld [vmem:[#allocation41_spill] sm:$0xff]  ;;  %v16885_v29 = vld [vmem:[#allocation51_spill] sm:$0xff] }
  0xb5   :  { %1382 = vmatprep.subr.mxu1 %v16875_v56  ;;  %1199 = vmatpush2.msra.mxu0 %v16876_v45  ;;  %v16886_v56 = vld [vmem:[#allocation42_spill] sm:$0xff]  ;;  %v16887_v45 = vld [vmem:[#allocation52_spill] sm:$0xff] }
  0xb6   :  { %1384 = vmatpush2.msra.mxu1 %v16877_v42  ;;  %1202 = vmatprep.subr.mxu0 %v16878_v39  ;;  %v16888_v42 = vld [vmem:[#allocation43_spill] sm:$0xff]  ;;  %v16889_v39 = vld [vmem:[#allocation56_spill] sm:$0xff] }
  0xb7   :  { %1386 = vmatprep.subr.mxu1 %v16879_v51  ;;  %1205 = vmatpush2.msra.mxu0 %v16880_v61  ;;  %v16890_v51 = vld [vmem:[#allocation49_spill] sm:$0xff]  ;;  %v16891_v61 = vld [vmem:[#allocation60_spill] sm:$0xff] }
  0xb8   :  { %1388 = vmatpush2.msra.mxu1 %v16881_v31  ;;  %1208 = vmatprep.subr.mxu0 %v16882_v52  ;;  %v16892_v31 = vld [vmem:[#allocation50_spill] sm:$0xff]  ;;  %v16893_v52 = vld [vmem:[#allocation61_spill] sm:$0xff] }
  0xb9   :  { %1390 = vmatprep.subr.mxu1 %v16883_v48  ;;  %1211 = vmatpush2.msra.mxu0 %v16884_v41  ;;  %v16894_v48 = vld [vmem:[#allocation53_spill] sm:$0xff]  ;;  %v16895_v41 = vld [vmem:[#allocation62_spill] sm:$0xff] }
  0xba   :  { %1392 = vmatpush2.msra.mxu1 %v16885_v29  ;;  %1214 = vmatprep.subr.mxu0 %v16886_v56  ;;  %v16896_v29 = vld [vmem:[#allocation54_spill] sm:$0xff]  ;;  %v16897_v56 = vld [vmem:[#allocation63_spill] sm:$0xff] }
  0xbb   :  { %1394 = vmatprep.subr.mxu1 %v16887_v45  ;;  %1217 = vmatpush2.msra.mxu0 %v16888_v42  ;;  %v16898_v45 = vld [vmem:[#allocation55_spill] sm:$0xff]  ;;  %v16899_v42 = vld [vmem:[#allocation64_spill] sm:$0xff] }
  0xbc   :  { %1396 = vmatpush2.msra.mxu1 %v16889_v39  ;;  %1220 = vmatprep.subr.mxu0 %v16890_v51  ;;  %v16900_v39 = vld [vmem:[#allocation57_spill] sm:$0xff]  ;;  %v16901_v51 = vld [vmem:[#allocation67_spill] sm:$0xff] }
  0xbd   :  { %1398 = vmatprep.subr.mxu1 %v16891_v61  ;;  %1223 = vmatpush2.msra.mxu0 %v16892_v31  ;;  %v16902_v61 = vld [vmem:[#allocation58_spill] sm:$0xff]  ;;  %v16903_v31 = vld [vmem:[#allocation68_spill] sm:$0xff] }
  0xbe   :  { %1400 = vmatpush2.msra.mxu1 %v16893_v52  ;;  %1226 = vmatprep.subr.mxu0 %v16894_v48  ;;  %v16904_v52 = vld [vmem:[#allocation59_spill] sm:$0xff]  ;;  %v16905_v48 = vld [vmem:[#allocation72_spill] sm:$0xff] }
  0xbf   :  { %1402 = vmatprep.subr.mxu1 %v16895_v41  ;;  %1229 = vmatpush2.msra.mxu0 %v16896_v29  ;;  %v16906_v41 = vld [vmem:[#allocation65_spill] sm:$0xff] }
  0xc0   :  { %1404 = vmatpush2.msra.mxu1 %v16897_v56  ;;  %1232 = vmatprep.subr.mxu0 %v16898_v45  ;;  %v16907_v56 = vld [vmem:[#allocation66_spill] sm:$0xff]  ;;  %v16908_v45 = vld [vmem:[#allocation77_spill] sm:$0xff] }
  0xc1   :  { %1406 = vmatprep.subr.mxu1 %v16899_v42  ;;  %1235 = vmatpush2.msra.mxu0 %v16900_v39  ;;  %v16909_v42 = vld [vmem:[#allocation69_spill] sm:$0xff] }
  0xc2   :  { %1408 = vmatpush2.msra.mxu1 %v16901_v51  ;;  %1238 = vmatprep.subr.mxu0 %v16902_v61  ;;  %v16910_v51 = vld [vmem:[#allocation70_spill] sm:$0xff] }
  0xc3   :  { %1410 = vmatprep.subr.mxu1 %v16903_v31  ;;  %1241 = vmatpush2.msra.mxu0 %v16904_v52  ;;  %v16911_v31 = vld [vmem:[#allocation71_spill] sm:$0xff] }
  0xc4   :  { %1412 = vmatpush2.msra.mxu1 %v16905_v48  ;;  %1244 = vmatprep.subr.mxu0 %v16906_v41  ;;  %v16912_v48 = vld [vmem:[#allocation73_spill] sm:$0xff] }
  0xc5   :  { %1414 = vmatprep.subr.mxu1 %v8687_v49  ;;  %1247 = vmatpush2.msra.mxu0 %v16907_v56  ;;  %v16913_v49 = vld [vmem:[#allocation74_spill] sm:$0xff] }
  0xc6   :  { %1416 = vmatpush2.msra.mxu1 %v16908_v45  ;;  %1250 = vmatprep.subr.mxu0 %v16909_v42  ;;  %v16914_v45 = vld [vmem:[#allocation75_spill] sm:$0xff] }
  0xc7   :  { %1418 = vmatprep.subr.mxu1 %v8694_v50  ;;  %1253 = vmatpush2.msra.mxu0 %v16910_v51  ;;  %v16915_v50 = vld [vmem:[#allocation81_spill] sm:$0xff] }
  0xc8   :  { %1420 = vmatpush2.msra.mxu1 %v8696_v54  ;;  %1256 = vmatprep.subr.mxu0 %v16911_v31  ;;  %v16916_v54 = vand.u32 4294901760, %v8808_v38 }
  0xc9   :  { %1422 = vmatprep.subr.mxu1 %v8698_v2  ;;  %1259 = vmatpush2.msra.mxu0 %v16912_v48  ;;  %v16917_v2 = vld [vmem:[#allocation82_spill] sm:$0xff] }
  0xca   :  { %1424 = vmatpush2.msra.mxu1 %v8706_v26  ;;  %1262 = vmatprep.subr.mxu0 %v16913_v49  ;;  %v16918_v49 = vld [vmem:[#allocation83_spill] sm:$0xff] }
  0xcb   :  { %1426 = vmatprep.subr.mxu1 %v8708_v60  ;;  %1265 = vmatpush2.msra.mxu0 %v16914_v45  ;;  %v16919_v45 = vld [vmem:[#allocation84_spill] sm:$0xff] }
  0xcc   :  { %1428 = vmatpush2.msra.mxu1 %v8720_v25  ;;  %1268 = vmatprep.subr.mxu0 %v16915_v50 }
  0xcd   :  { %1436 = vmatmul.mubr.f32.vlgmr.msra.gmra.mxu1 %v16916_v54  ;;  %1708 = vmatprep.subr.mxu1 %v7944_v5  ;;  %v16920_v5 = vand.u32 4294901760, %v7973_v16  ;;  %v16925_v16 = vand.u32 4294901760, %v7998_v27  ;;  %v16933_v27 = vand.u32 4294901760, %v8102_v33  ;;  %v399_v33 = vld [vmem:[%s15589_s2 + $0x2f8] sm:$0xff]  ;;  %v16955_v54 = vld [vmem:[#allocation19_spill] sm:$0xff] }
  0xce   :  { %1271 = vmatpush2.msra.mxu0 %v16917_v2  ;;  %1710 = vmatpush1.msra.mxu1 %v7946_v6  ;;  %v16921_v6 = vand.u32 4294901760, %v7976_v17  ;;  %v16926_v17 = vand.u32 4294901760, %v8001_v28  ;;  %v16934_v28 = vand.u32 4294901760, %v8105_v34  ;;  %v16951_v34 = vld [vmem:[#allocation89_spill] sm:$0xff] }
  0xcf   :  { %1836 = vmatprep.mubr.f32.mxu1 %v8801_v35  ;;  %1274 = vmatprep.subr.mxu0 %v16918_v49 }
  0xd0   :  { %1712 = vmatprep.subr.mxu1 %v7957_v10  ;;  %1277 = vmatpush2.msra.mxu0 %v16919_v45  ;;  %v16922_v10 = vand.u32 4294901760, %v7984_v20  ;;  %v16929_v20 = vand.u32 4294901760, %v8080_v3  ;;  %v16942_v3 = vld [vmem:[#allocation5_spill] sm:$0xff] }
  0xd1   :  { %1714 = vmatpush1.msra.mxu1 %v7959_v11  ;;  %1280 = vmatprep.subr.mxu0 %v8718_v36  ;;  %v16923_v11 = vand.u32 4294901760, %v7987_v21  ;;  %v16930_v21 = vand.u32 4294901760, %v8088_v8  ;;  %v16945_v8 = vld [vmem:[#allocation14_spill] sm:$0xff] }
  0xd2   :  { %1716 = vmatprep.subr.mxu1 %v7961_v12  ;;  %1283 = vmatpush2.msra.mxu0 %v8726_v44  ;;  %v16924_v12 = vand.u32 4294901760, %v7990_v22  ;;  %v16931_v22 = vand.u32 4294901760, %v8091_v9  ;;  %v16946_v9 = vld [vmem:[#allocation6_spill] sm:$0xff] }
  0xd3   :  { %1718 = vmatpush1.msra.mxu1 %v7978_v18  ;;  %1286 = vmatprep.subr.mxu0 %v8729_v43  ;;  %v16927_v18 = vand.u32 4294901760, %v8008_v32  ;;  %v16935_v32 = vand.u32 4294901760, %v16840_v57  ;;  %v16959_v57 = vld [vmem:[#allocation20_spill] sm:$0xff] }
  0xd4   :  { %1720 = vmatprep.subr.mxu1 %v7980_v19  ;;  %1289 = vmatpush2.msra.mxu0 %v8736_v30  ;;  %v16928_v19 = vand.u32 4294901760, %v8077_v1  ;;  %v16941_v1 = vld [vmem:[#allocation13_spill] sm:$0xff] }
  0xd5   :  { %1722 = vmatpush1.msra.mxu1 %v7992_v23  ;;  %1295 = vmatmul.mubr.f32.vlgmr.msra.gmra.mxu0 %v8808_v38  ;;  %v16932_v23 = vand.u32 4294901760, %v8094_v13  ;;  %v16947_v13 = vand.u32 4294901760, %v16946_v9  ;;  %v16977_v9 = vld [vmem:[#allocation31_spill] sm:$0xff] }
  0xd6   :  { %1445 = vmatprep.subr.mxu0 %v16920_v5  ;;  %1724 = vmatprep.subr.mxu1 %v8063_v58  ;;  %v16936_v58 = vld [vmem:[#allocation3_spill] sm:$0xff] }
  0xd7   :  { %1449 = vmatpush1.msra.mxu0 %v16921_v6  ;;  %1699 = vmatprep.mubr.f32.mxu0 %v8801_v35  ;;  %v16958_v35 = vld [vmem:[#allocation87_spill] sm:$0xff]  ;;  %v9031_v6 = vand.u32 4294901760, %v399_v33 }
  0xd8   :  { %1726 = vmatpush1.msra.mxu1 %v8065_v59  ;;  %1453 = vmatprep.subr.mxu0 %v16922_v10  ;;  %v16937_v59 = vand.u32 4294901760, %v16936_v58  ;;  %v398_v10 = vld [vmem:[%s15589_s2 + $0x2f0] sm:$0xff] }
  0xd9   :  { %1728 = vmatprep.subr.mxu1 %v8070_v62  ;;  %1457 = vmatpush1.msra.mxu0 %v16923_v11  ;;  %v16938_v62 = vld [vmem:[#allocation12_spill] sm:$0xff]  ;;  %v16962_v11 = vmov 0.0  }
  0xda   :  { %1730 = vmatpush1.msra.mxu1 %v8072_v63  ;;  %1461 = vmatprep.subr.mxu0 %v16924_v12  ;;  %v16939_v63 = vld [vmem:[#allocation4_spill] sm:$0xff] }
  0xdb   :  { %1732 = vmatprep.subr.mxu1 %v8074_v0  ;;  %1465 = vmatpush1.msra.mxu0 %v16925_v16  ;;  %v16940_v0 = vand.u32 4294901760, %v16939_v63  ;;  %v16963_v16 = vld [vmem:[#allocation24_spill] sm:$0xff]  ;;  %v396_v63 = vld [vmem:[%s15589_s2 + $0x2e0] sm:$0xff] }
  0xdc   :  { %1734 = vmatpush1.msra.mxu1 %v8082_v4  ;;  %1469 = vmatprep.subr.mxu0 %v16926_v17  ;;  %v16943_v4 = vand.u32 4294901760, %v16942_v3  ;;  %v16964_v17 = vld [vmem:[#allocation17_spill] sm:$0xff] }
  0xdd   :  { %1736 = vmatprep.subr.mxu1 %v8084_v7  ;;  %1473 = vmatpush1.msra.mxu0 %v16927_v18  ;;  %v16944_v7 = vld [vmem:[#allocation85_spill] sm:$0xff]  ;;  %v16965_v18 = vand.u32 4294901760, %v16964_v17  ;;  %v392_v17 = vld [vmem:[%s15589_s2 + $0x2c0] sm:$0xff] }
  0xde   :  { %1738 = vmatpush1.msra.mxu1 %v8096_v14  ;;  %1477 = vmatprep.subr.mxu0 %v16928_v19  ;;  %v16948_v14 = vld [vmem:[#allocation15_spill] sm:$0xff]  ;;  %v16966_v19 = vld [vmem:[#allocation88_spill] sm:$0xff] }
  0xdf   :  { %1740 = vmatprep.subr.mxu1 %v8167_v46  ;;  %1481 = vmatpush1.msra.mxu0 %v16929_v20  ;;  %v16953_v46 = vld [vmem:[#allocation9_spill] sm:$0xff]  ;;  %v16967_v20 = vld [vmem:[#allocation28_spill] sm:$0xff] }
  0xe0   :  { %1742 = vmatpush1.msra.mxu1 %v8169_v47  ;;  %1485 = vmatprep.subr.mxu0 %v16930_v21  ;;  %v16954_v47 = vand.u32 4294901760, %v16953_v46  ;;  %v16968_v21 = vld [vmem:[#allocation18_spill] sm:$0xff]  ;;  %v16982_v46 = vld [vmem:[#allocation25_spill] sm:$0xff] }
  0xe1   :  { %1744 = vmatprep.subr.mxu1 %v8174_v37  ;;  %1489 = vmatpush1.msra.mxu0 %v16931_v22  ;;  %v16952_v37 = vld [vmem:[#allocation16_spill] sm:$0xff]  ;;  %v16969_v22 = vand.u32 4294901760, %v16968_v21 }
  0xe2   :  { %1746 = vmatpush1.msra.mxu1 %v8176_v24  ;;  %1493 = vmatprep.subr.mxu0 %v16932_v23 }
  0xe3   :  { %1748 = vmatprep.subr.mxu1 %v8178_v15  ;;  %1497 = vmatpush1.msra.mxu0 %v16933_v27  ;;  %v16949_v15 = vld [vmem:[#allocation7_spill] sm:$0xff] }
  0xe4   :  { %1750 = vmatpush1.msra.mxu1 %v8186_v55  ;;  %1501 = vmatprep.subr.mxu0 %v16934_v28  ;;  %v16950_v24 = vand.u32 4294901760, %v16949_v15  ;;  %v16956_v55 = vld [vmem:[#allocation10_spill] sm:$0xff]  ;;  %v397_v27 = vld [vmem:[%s15589_s2 + $0x2e8] sm:$0xff]  ;;  %v16970_v28 = vld [vmem:[#allocation29_spill] sm:$0xff] }
  0xe5   :  { %1752 = vmatprep.subr.mxu1 %v8188_v40  ;;  %1505 = vmatpush1.msra.mxu0 %v16935_v32  ;;  %v106_v40 = vadd.s32 384, %v16944_v7  ;;  %v16957_v38 = vand.u32 4294901760, %v16956_v55  ;;  %v16971_v32 = vld [vmem:[#allocation21_spill] sm:$0xff]  ;;  %v9069_v15 = vand.u32 4294901760, %v397_v27  ;;  %v393_v55 = vld [vmem:[%s15589_s2 + $0x2c8] sm:$0xff] }
  0xe6   :  { %1754 = vmatpush1.msra.mxu1 %v16841_v53  ;;  %1509 = vmatprep.subr.mxu0 %v16937_v59  ;;  %v16960_v53 = vld [vmem:[#allocation11_spill] sm:$0xff]  ;;  %v16972_v58 = vand.u32 4294901760, %v16971_v32  ;;  %v9051_v59 = vand.u32 4294901760, %v398_v10 }
  0xe7   :  { %1756 = vmatprep.subr.mxu1 %v16938_v62  ;;  %1513 = vmatpush1.msra.mxu0 %v16940_v0  ;;  %vm144_vm6 = vcmp.eq.s32.totalorder %v16951_v34, %v106_v40  ;;  %vm117_vm7 = vcmp.eq.s32.totalorder %v16958_v35, %v106_v40  ;;  %v16961_v5 = vand.u32 4294901760, %v16960_v53  ;;  %vm179_vm8 = vcmp.eq.s32.totalorder %v16966_v19, %v106_v40  ;;  %v16973_v0 = vld [vmem:[#allocation30_spill] sm:$0xff] }
  0xe8   :  { %1758 = vmatpush1.msra.mxu1 %v16941_v1  ;;  %1517 = vmatprep.subr.mxu0 %v16943_v4  ;;  %v7870_v12 = vsel %vm144_vm6, 1.0, %v16962_v11  ;;  %v7862_v23 = vsel %vm117_vm7, 1.0, %v16962_v11  ;;  %v16974_v1 = vld [vmem:[#allocation22_spill] sm:$0xff]  ;;  %v9060_v4 = vsub.f32 %v399_v33, %v9031_v6  ;;  %v7878_v40 = vsel %vm179_vm8, 1.0, %v16962_v11 }
  0xe9   :  { %1760 = vmatprep.subr.mxu1 %v16945_v8  ;;  %1521 = vmatpush1.msra.mxu0 %v16947_v13  ;;  %v168_v62 = vadd.f32 %v7870_v12, %v7862_v23  ;;  %v16975_v3 = vand.u32 4294901760, %v16974_v1  ;;  %v395_v8 = vld [vmem:[%s15589_s2 + $0x2d8] sm:$0xff]  ;;  %v16978_v13 = vld [vmem:[#allocation23_spill] sm:$0xff]  ;;  %v9075_v33 = vadd.s32 256, %v16944_v7  ;;  %v16997_v1 = vld [vmem:[#allocation44_spill] sm:$0xff] }
  0xea   :  { %1762 = vmatpush1.msra.mxu1 %v16948_v14  ;;  %1525 = vmatprep.subr.mxu0 %v16950_v24  ;;  %16976 = vst [vmem:[#allocation2_spill] sm:$0xff] %v9060_v4  ;;  %v16979_v14 = vand.u32 4294901760, %v16978_v13  ;;  %v394_v24 = vld [vmem:[%s15589_s2 + $0x2d0] sm:$0xff]  ;;  %v9123_v13 = vand.u32 4294901760, %v392_v17 }
  0xeb   :  { %1764 = vmatprep.subr.mxu1 %v16952_v37  ;;  %1529 = vmatpush1.msra.mxu0 %v16954_v47  ;;  %16980 = vst [vmem:[#allocation8_spill] sm:$0xff] %v9075_v33  ;;  %v16981_v37 = vld [vmem:[#allocation32_spill] sm:$0xff]  ;;  %v16983_v47 = vand.u32 4294901760, %v16982_v46  ;;  %v203_v12 = vadd.f32 %v7878_v40, %v168_v62  ;;  %v9100_v23 = vand.u32 4294901760, %v394_v24  ;;  %vm143_vm9 = vcmp.eq.s32.totalorder %v16951_v34, %v9075_v33  ;;  %v17036_v34 = vld [vmem:[#allocation49_spill] sm:$0xff] }
  0xec   :  { %1766 = vmatpush1.msra.mxu1 %v16955_v54  ;;  %1533 = vmatprep.subr.mxu0 %v16957_v38  ;;  %v9080_v54 = vand.u32 4294901760, %v396_v63  ;;  %v16984_v38 = vld [vmem:[#allocation35_spill] sm:$0xff]  ;;  %v9110_v62 = vand.u32 4294901760, %v393_v55  ;;  %vm116_vm10 = vcmp.eq.s32.totalorder %v16958_v35, %v9075_v33  ;;  %17001 = vst [vmem:[#allocation66_spill] sm:$0xff] %v9123_v13  ;;  %vm178_vm11 = vcmp.eq.s32.totalorder %v16966_v19, %v9075_v33  ;;  %v17025_v19 = vld [vmem:[#allocation42_spill] sm:$0xff]  ;;  %v17035_v35 = vld [vmem:[#allocation56_spill] sm:$0xff] }
  0xed   :  { %1768 = vmatprep.subr.mxu1 %v16959_v57  ;;  %1537 = vmatpush1.msra.mxu0 %v16961_v5  ;;  %v16985_v57 = vld [vmem:[#allocation26_spill] sm:$0xff]  ;;  %v9089_v5 = vsub.f32 %v398_v10, %v9051_v59  ;;  %16991 = vst [vmem:[#allocation57_spill] sm:$0xff] %v9100_v23  ;;  %v16992_v10 = vld [vmem:[#allocation40_spill] sm:$0xff]  ;;  %v17024_v33 = vld [vmem:[#allocation51_spill] sm:$0xff]  ;;  %v17037_v7 = vand.u32 4294901760, %v17036_v34 }
  0xee   :  { %1770 = vmatpush1.msra.mxu1 %v16963_v16  ;;  %1541 = vmatprep.subr.mxu0 %v16965_v18  ;;  %v16986_v53 = vand.u32 4294901760, %v16985_v57  ;;  %v9091_v16 = vand.u32 4294901760, %v395_v8  ;;  %v16988_v18 = vld [vmem:[#allocation36_spill] sm:$0xff]  ;;  %16996 = vst [vmem:[#allocation59_spill] sm:$0xff] %v9110_v62  ;;  %v389_v57 = vld [vmem:[%s15589_s2 + $0x2a8] sm:$0xff]  ;;  %v17042_v34 = vld [vmem:[#allocation50_spill] sm:$0xff] }
  0xef   :  { %1772 = vmatprep.subr.mxu1 %v16967_v20  ;;  %1545 = vmatpush1.msra.mxu0 %v16969_v22  ;;  %16987 = vst [vmem:[#allocation54_spill] sm:$0xff] %v9089_v5  ;;  %v16989_v20 = vld [vmem:[#allocation27_spill] sm:$0xff]  ;;  %v15809_v22 = vand.u32 4294901760, %v9060_v4 }
  0xf0   :  { %1774 = vmatpush2.msra.mxu1 %v16970_v28  ;;  %1549 = vmatprep.subr.mxu0 %v16972_v58  ;;  %v16990_v21 = vand.u32 4294901760, %v16989_v20  ;;  %v16993_v28 = vld [vmem:[#allocation33_spill] sm:$0xff]  ;;  %v9108_v58 = vsub.f32 %v397_v27, %v9069_v15  ;;  %v390_v27 = vld [vmem:[%s15589_s2 + $0x2b0] sm:$0xff]  ;;  %v17008_v20 = vld [vmem:[#allocation38_spill] sm:$0xff] }
  0xf1   :  { %1776 = vmatprep.subr.mxu1 %v16973_v0  ;;  %1553 = vmatpush1.msra.mxu0 %v16975_v3  ;;  %v16994_v32 = vand.u32 4294901760, %v16993_v28  ;;  %v391_v0 = vld [vmem:[%s15589_s2 + $0x2b8] sm:$0xff]  ;;  %v16998_v3 = vld [vmem:[#allocation34_spill] sm:$0xff] }
  0xf2   :  { %1778 = vmatpush2.msra.mxu1 %v16977_v9  ;;  %1557 = vmatprep.subr.mxu0 %v16979_v14  ;;  %16995 = vst [vmem:[#allocation58_spill] sm:$0xff] %v9108_v58  ;;  %v16999_v40 = vand.u32 4294901760, %v16998_v3  ;;  %v9121_v9 = vsub.f32 %v396_v63, %v9080_v54  ;;  %v17002_v14 = vld [vmem:[#allocation45_spill] sm:$0xff]  ;;  %v9137_v63 = vsub.f32 %v395_v8, %v9091_v16  ;;  %v9157_v28 = vand.u32 4294901760, %v391_v0  ;;  %v17012_v3 = vld [vmem:[#allocation47_spill] sm:$0xff] }
  0xf3   :  { %1780 = vmatprep.subr.mxu1 %v16981_v37  ;;  %1561 = vmatpush1.msra.mxu0 %v16983_v47  ;;  %v17003_v37 = vld [vmem:[#allocation37_spill] sm:$0xff]  ;;  %v9155_v8 = vsub.f32 %v394_v24, %v9100_v23  ;;  %v9171_v24 = vsub.f32 %v393_v55, %v9110_v62 }
  0xf4   :  { %1782 = vmatpush2.msra.mxu1 %v16984_v38  ;;  %1565 = vmatprep.subr.mxu0 %v16986_v53  ;;  %17000 = vst [vmem:[#allocation65_spill] sm:$0xff] %v9121_v9  ;;  %v17004_v46 = vand.u32 4294901760, %v17003_v37  ;;  %v9134_v38 = vand.u32 4294901760, %v203_v12  ;;  %17006 = vst [vmem:[#allocation70_spill] sm:$0xff] %v9137_v63  ;;  %v7869_v53 = vsel %vm143_vm9, 1.0, %v16962_v11  ;;  %v386_v37 = vld [vmem:[%s15589_s2 + $0x290] sm:$0xff] }
  0xf5   :  { %1784 = vmatprep.subr.mxu1 %v16988_v18  ;;  %1569 = vmatpush1.msra.mxu0 %v16990_v21  ;;  %v17007_v18 = vld [vmem:[#allocation46_spill] sm:$0xff]  ;;  %v17009_v21 = vand.u32 4294901760, %v17008_v20  ;;  %17010 = vst [vmem:[#allocation71_spill] sm:$0xff] %v9155_v8  ;;  %17011 = vst [vmem:[#allocation73_spill] sm:$0xff] %v9157_v28  ;;  %v9182_v20 = vsel %vm178_vm11, 1.0, %v16962_v11 }
  0xf6   :  { %1786 = vmatpush2.msra.mxu1 %v16992_v10  ;;  %1573 = vmatprep.subr.mxu0 %v16994_v32  ;;  %17005 = vst [vmem:[#allocation69_spill] sm:$0xff] %v9134_v38  ;;  %v9152_v10 = vsub.f32 %v9060_v4, %v15809_v22  ;;  %v388_v32 = vld [vmem:[%s15589_s2 + $0x2a0] sm:$0xff]  ;;  %17015 = vst [vmem:[#allocation81_spill] sm:$0xff] %v9171_v24  ;;  %v9191_v22 = vand.u32 4294901760, %v389_v57  ;;  %v9208_v55 = vsub.f32 %v203_v12, %v9134_v38  ;;  %v17047_v4 = vld [vmem:[#allocation61_spill] sm:$0xff] }
  0xf7   :  { %1788 = vmatprep.subr.mxu1 %v16997_v1  ;;  %1577 = vmatpush2.msra.mxu0 %v16999_v40  ;;  %v7861_v1 = vsel %vm116_vm10, 1.0, %v16962_v11  ;;  %v17013_v40 = vld [vmem:[#allocation39_spill] sm:$0xff]  ;;  %17017 = vst [vmem:[#allocation83_spill] sm:$0xff] %v9182_v20  ;;  %v9210_v11 = vand.u32 4294901760, %v388_v32  ;;  %v17048_v20 = vld [vmem:[#allocation53_spill] sm:$0xff] }
  0xf8   :  { %1790 = vmatpush2.msra.mxu1 %v17002_v14  ;;  %1581 = vmatprep.subr.mxu0 %v17004_v46  ;;  %v17014_v14 = vand.u32 4294901760, %v17013_v40  ;;  %v9173_v46 = vand.u32 4294901760, %v390_v27  ;;  %17022 = vst [vmem:[#allocation3_spill] sm:$0xff] %v9191_v22  ;;  %v9196_v47 = vadd.f32 %v7869_v53, %v7861_v1  ;;  %17028 = vst [vmem:[#allocation4_spill] sm:$0xff] %v9208_v55  ;;  %v385_v53 = vld [vmem:[%s15589_s2 + $0x288] sm:$0xff] }
  0xf9   :  { %1792 = vmatprep.subr.mxu1 %v17007_v18  ;;  %1585 = vmatpush2.msra.mxu0 %v17009_v21  ;;  %v387_v18 = vld [vmem:[%s15589_s2 + $0x298] sm:$0xff]  ;;  %v17018_v21 = vld [vmem:[#allocation48_spill] sm:$0xff]  ;;  %17029 = vst [vmem:[#allocation13_spill] sm:$0xff] %v9210_v11 }
  0xfa   :  { %1794 = vmatpush2.msra.mxu1 %v17012_v3  ;;  %1589 = vmatprep.subr.mxu0 %v17014_v14  ;;  %17016 = vst [vmem:[#allocation82_spill] sm:$0xff] %v9173_v46  ;;  %v17019_v3 = vld [vmem:[#allocation41_spill] sm:$0xff]  ;;  %v9189_v14 = vsub.f32 %v392_v17, %v9123_v13  ;;  %17023 = vst [vmem:[#allocation12_spill] sm:$0xff] %v9196_v47  ;;  %v9221_v17 = vsub.f32 %v391_v0, %v9157_v28  ;;  %v9223_v12 = vand.u32 4294901760, %v387_v18  ;;  %v384_v0 = vld [vmem:[%s15589_s2 + $0x280] sm:$0xff] }
  0xfb   :  { %1796 = vmatprep.subr.mxu1 %v17018_v21  ;;  %v17020_v40 = vand.u32 4294901760, %v17019_v3  ;;  %v17026_v21 = vand.u32 4294901760, %v17025_v19  ;;  %v17027_v3 = vand.u32 4294901760, %v9089_v5  ;;  %v17031_v19 = vld [vmem:[#allocation43_spill] sm:$0xff]  ;;  %v17049_v47 = vand.u32 4294901760, %v17048_v20 }
  0xfc   :  { %17021 = vst [vmem:[#allocation84_spill] sm:$0xff] %v9189_v14  ;;  %1798 = vmatpush2.msra.mxu1 %v17024_v33  ;;  %v17030_v33 = vld [vmem:[#allocation52_spill] sm:$0xff]  ;;  %v17032_v1 = vand.u32 4294901760, %v17031_v19  ;;  %17033 = vst [vmem:[#allocation5_spill] sm:$0xff] %v9221_v17  ;;  %v9267_v19 = vsub.f32 %v388_v32, %v9210_v11  ;;  %v383_v32 = vld [vmem:[%s15589_s2 + $0x278] sm:$0xff] }
  0xfd   :  { %1593 = vmatpush2.msra.mxu0 %v17020_v40  ;;  %v9204_v40 = vsub.f32 %v9089_v5, %v17027_v3  ;;  %1800 = vmatprep.subr.mxu1 %v17030_v33  ;;  %17034 = vst [vmem:[#allocation14_spill] sm:$0xff] %v9223_v12  ;;  %v17038_v5 = vand.u32 4294901760, %v9108_v58  ;;  %v17044_v3 = vand.u32 4294901760, %v9121_v9 }
  0xfe   :  { %1597 = vmatprep.subr.mxu0 %v17026_v21  ;;  %1802 = vmatpush2.msra.mxu1 %v17035_v35  ;;  %v9237_v21 = vand.u32 4294901760, %v386_v37  ;;  %v17041_v35 = vld [vmem:[#allocation60_spill] sm:$0xff]  ;;  %17051 = vst [vmem:[#allocation9_spill] sm:$0xff] %v9267_v19 }
  0xff   :  { %1601 = vmatpush2.msra.mxu0 %v17032_v1  ;;  %v9231_v33 = vsub.f32 %v9108_v58, %v17038_v5  ;;  %v9235_v1 = vsub.f32 %v390_v27, %v9173_v46  ;;  %1804 = vmatprep.subr.mxu1 %v17041_v35  ;;  %v9248_v5 = vsub.f32 %v9121_v9, %v17044_v3  ;;  %v9254_v58 = vand.u32 4294901760, %v385_v53 }
 0x100   :  { %1605 = vmatprep.subr.mxu0 %v17037_v7  ;;  %17040 = vst [vmem:[#allocation15_spill] sm:$0xff] %v9237_v21  ;;  %v17043_v7 = vand.u32 4294901760, %v17042_v34  ;;  %v9252_v27 = vsub.f32 %v389_v57, %v9191_v22  ;;  %1806 = vmatpush2.msra.mxu1 %v17047_v4  ;;  %v17050_v34 = vand.u32 4294901760, %v9137_v63  ;;  %v17052_v57 = vld [vmem:[#allocation62_spill] sm:$0xff]  ;;  %v17053_v9 = vand.u32 4294901760, %v16896_v29  ;;  %v17058_v29 = vld [vmem:[#allocation55_spill] sm:$0xff] }
 0x101   :  { %17039 = vst [vmem:[#allocation6_spill] sm:$0xff] %v9235_v1  ;;  %17046 = vst [vmem:[#allocation16_spill] sm:$0xff] %v9254_v58  ;;  %1808 = vmatprep.subr.mxu1 %v17052_v57  ;;  %v17054_v4 = vand.u32 4294901760, %v9155_v8  ;;  %v9281_v35 = vand.u32 4294901760, %v384_v0  ;;  %v17057_v57 = vld [vmem:[#allocation63_spill] sm:$0xff]  ;;  %v9310_v3 = vsub.f32 %v385_v53, %v9254_v58  ;;  %v9325_v53 = vand.u32 4294901760, %v383_v32 }
 0x102   :  { %1609 = vmatpush2.msra.mxu0 %v17043_v7  ;;  %17045 = vst [vmem:[#allocation7_spill] sm:$0xff] %v9252_v27  ;;  %v9263_v7 = vsub.f32 %v9137_v63, %v17050_v34  ;;  %v9279_v34 = vsub.f32 %v387_v18, %v9223_v12  ;;  %1810 = vmatpush2.msra.mxu1 %v17057_v57  ;;  %v17062_v63 = vld [vmem:[#allocation64_spill] sm:$0xff]  ;;  %v17063_v12 = vand.u32 4294901760, %v16900_v39  ;;  %v17067_v39 = vand.u32 4294901760, %v16902_v61  ;;  %v381_v18 = vld [vmem:[%s15589_s2 + $0x268] sm:$0xff] }
 0x103   :  { %1613 = vmatprep.subr.mxu0 %v17049_v47  ;;  %v9275_v47 = vsub.f32 %v9155_v8, %v17054_v4  ;;  %17056 = vst [vmem:[#allocation10_spill] sm:$0xff] %v9281_v35  ;;  %v17060_v4 = vand.u32 4294901760, %v9171_v24  ;;  %v9297_v8 = vsub.f32 %v386_v37, %v9237_v21  ;;  %1812 = vmatprep.subr.mxu1 %v17062_v63  ;;  %17065 = vst [vmem:[#allocation11_spill] sm:$0xff] %v9310_v3  ;;  %v382_v37 = vld [vmem:[%s15589_s2 + $0x270] sm:$0xff]  ;;  %v17066_v63 = vld [vmem:[#allocation67_spill] sm:$0xff] }
 0x104   :  { %1617 = vmatpush2.msra.mxu0 %v17053_v9  ;;  %17055 = vst [vmem:[#allocation19_spill] sm:$0xff] %v9279_v34  ;;  %v17059_v9 = vand.u32 4294901760, %v17058_v29  ;;  %v17064_v29 = vand.u32 4294901760, %v9189_v14  ;;  %1814 = vmatpush2.msra.mxu1 %v17066_v63  ;;  %v17068_v57 = vand.u32 4294901760, %v9208_v55  ;;  %17069 = vst [vmem:[#allocation24_spill] sm:$0xff] %v9325_v53  ;;  %v17071_v61 = vand.u32 4294901760, %v16904_v52 }
 0x105   :  { %v9293_v20 = vsub.f32 %v9171_v24, %v17060_v4  ;;  %17061 = vst [vmem:[#allocation20_spill] sm:$0xff] %v9297_v8  ;;  %v9341_v4 = vsub.f32 %v384_v0, %v9281_v35  ;;  %v380_v24 = vld [vmem:[%s15589_s2 + $0x260] sm:$0xff]  ;;  %v17075_v52 = vand.u32 4294901760, %v16906_v41  ;;  %v17076_v63 = vand.u32 4294901760, %v9235_v1  ;;  %v17082_v35 = vld [vmem:[#allocation77_spill] sm:$0xff]  ;;  %v17091_v58 = vld [vmem:[#allocation79_spill] sm:$0xff] }
 0x106   :  { %1621 = vmatprep.subr.mxu0 %v17059_v9  ;;  %v9306_v9 = vsub.f32 %v9189_v14, %v17064_v29  ;;  %v9322_v29 = vsub.f32 %v9208_v55, %v17068_v57  ;;  %v17070_v14 = vld [vmem:[#allocation68_spill] sm:$0xff]  ;;  %v9356_v0 = vand.u32 4294901760, %v382_v37  ;;  %v17079_v41 = vand.u32 4294901760, %v16907_v56 }
 0x107   :  { %1625 = vmatpush2.msra.mxu0 %v17063_v12  ;;  %1816 = vmatprep.subr.mxu1 %v17070_v14  ;;  %17073 = vst [vmem:[#allocation17_spill] sm:$0xff] %v9341_v4  ;;  %v17074_v14 = vld [vmem:[#allocation72_spill] sm:$0xff]  ;;  %v9371_v12 = vand.u32 4294901760, %v381_v18  ;;  %v17083_v56 = vand.u32 4294901760, %v16909_v42  ;;  %v17088_v42 = vand.u32 4294901760, %v16910_v51  ;;  %v17092_v51 = vand.u32 4294901760, %v16911_v31 }
 0x108   :  { %1629 = vmatprep.subr.mxu0 %v17067_v39  ;;  %v17072_v39 = vand.u32 4294901760, %v9221_v17  ;;  %1818 = vmatpush2.msra.mxu1 %v17074_v14  ;;  %17077 = vst [vmem:[#allocation28_spill] sm:$0xff] %v9356_v0  ;;  %v17078_v55 = vld [vmem:[#allocation76_spill] sm:$0xff]  ;;  %v9386_v14 = vsub.f32 %v383_v32, %v9325_v53  ;;  %v376_v53 = vld [vmem:[%s15589_s2 + $0x240] sm:$0xff]  ;;  %v17097_v31 = vand.u32 4294901760, %v16912_v48 }
 0x109   :  { %1633 = vmatpush2.msra.mxu0 %v17071_v61  ;;  %1820 = vmatprep.subr.mxu1 %v17078_v55  ;;  %17081 = vst [vmem:[#allocation18_spill] sm:$0xff] %v9371_v12  ;;  %v9388_v61 = vand.u32 4294901760, %v380_v24  ;;  %v17089_v55 = vand.u32 4294901760, %v9279_v34  ;;  %v17101_v48 = vld [vmem:[#allocation74_spill] sm:$0xff] }
 0x10a   :  { %v9337_v57 = vsub.f32 %v9221_v17, %v17072_v39  ;;  %1637 = vmatprep.subr.mxu0 %v17075_v52  ;;  %v9353_v39 = vsub.f32 %v9235_v1, %v17076_v63  ;;  %v379_v17 = vld [vmem:[%s15589_s2 + $0x258] sm:$0xff]  ;;  %v17080_v52 = vand.u32 4294901760, %v9252_v27  ;;  %v378_v1 = vld [vmem:[%s15589_s2 + $0x250] sm:$0xff]  ;;  %1822 = vmatpush2.msra.mxu1 %v17082_v35  ;;  %17085 = vst [vmem:[#allocation29_spill] sm:$0xff] %v9386_v14  ;;  %v17087_v35 = vld [vmem:[#allocation78_spill] sm:$0xff] }
 0x10b   :  { %1641 = vmatpush2.msra.mxu0 %v17079_v41  ;;  %v17084_v41 = vand.u32 4294901760, %v9267_v19  ;;  %17086 = vst [vmem:[#allocation21_spill] sm:$0xff] %v9388_v61  ;;  %1824 = vmatprep.subr.mxu1 %v17087_v35  ;;  %v9420_v32 = vand.u32 4294901760, %v378_v1  ;;  %v17098_v35 = vand.u32 4294901760, %v9310_v3 }
 0x10c   :  { %v9368_v63 = vsub.f32 %v9252_v27, %v17080_v52  ;;  %1645 = vmatprep.subr.mxu0 %v17083_v56  ;;  %v377_v27 = vld [vmem:[%s15589_s2 + $0x248] sm:$0xff]  ;;  %1826 = vmatpush2.msra.mxu1 %v17091_v58  ;;  %v9418_v56 = vsub.f32 %v382_v37, %v9356_v0  ;;  %v17096_v58 = vld [vmem:[#allocation80_spill] sm:$0xff]  ;;  %v9435_v37 = vsub.f32 %v381_v18, %v9371_v12  ;;  %v9450_v18 = vand.u32 4294901760, %v376_v53 }
 0x10d   :  { %v9383_v52 = vsub.f32 %v9267_v19, %v17084_v41  ;;  %1649 = vmatpush2.msra.mxu0 %v17088_v42  ;;  %v9400_v41 = vsub.f32 %v9279_v34, %v17089_v55  ;;  %v9403_v19 = vand.u32 4294901760, %v379_v17  ;;  %v17093_v42 = vand.u32 4294901760, %v9297_v8  ;;  %17095 = vst [vmem:[#allocation31_spill] sm:$0xff] %v9420_v32  ;;  %v375_v34 = vld [vmem:[%s15589_s2 + $0x238] sm:$0xff]  ;;  %1828 = vmatprep.subr.mxu1 %v17096_v58  ;;  %v374_v0 = vld [vmem:[%s15589_s2 + $0x230] sm:$0xff]  ;;  %v17105_v12 = vld [vmem:[#allocation75_spill] sm:$0xff] }
 0x10e   :  { %1653 = vmatprep.subr.mxu0 %v17092_v51  ;;  %17094 = vst [vmem:[#allocation22_spill] sm:$0xff] %v9418_v56  ;;  %17099 = vst [vmem:[#allocation23_spill] sm:$0xff] %v9435_v37  ;;  %1830 = vmatpush2.msra.mxu1 %v8706_v26  ;;  %v17102_v58 = vand.u32 4294901760, %v17101_v48  ;;  %v17106_v26 = vand.u32 4294901760, %v17105_v12  ;;  %v9467_v51 = vand.u32 4294901760, %v375_v34  ;;  %v371_v48 = vld [vmem:[%s15589_s2 + $0x218] sm:$0xff] }
 0x10f   :  { %17090 = vst [vmem:[#allocation30_spill] sm:$0xff] %v9403_v19  ;;  %v9415_v55 = vsub.f32 %v9297_v8, %v17093_v42  ;;  %1657 = vmatpush2.msra.mxu0 %v17097_v31  ;;  %v9432_v42 = vsub.f32 %v9310_v3, %v17098_v35  ;;  %v9437_v8 = vand.u32 4294901760, %v377_v27  ;;  %v9448_v35 = vsub.f32 %v380_v24, %v9388_v61  ;;  %v373_v3 = vld [vmem:[%s15589_s2 + $0x228] sm:$0xff]  ;;  %v372_v61 = vld [vmem:[%s15589_s2 + $0x220] sm:$0xff] }
 0x110   :  { %1661 = vmatprep.subr.mxu0 %v17102_v58  ;;  %17104 = vst [vmem:[#allocation35_spill] sm:$0xff] %v9450_v18  ;;  %1832 = vmatprep.subr.mxu1 %v8708_v60  ;;  %v17107_v58 = vand.u32 4294901760, %v9341_v4  ;;  %v9465_v24 = vsub.f32 %v379_v17, %v9403_v19  ;;  %17109 = vst [vmem:[#allocation36_spill] sm:$0xff] %v9467_v51  ;;  %v17110_v60 = vand.u32 4294901760, %v16915_v50  ;;  %v9480_v17 = vand.u32 4294901760, %v374_v0 }
 0x111   :  { %17100 = vst [vmem:[#allocation32_spill] sm:$0xff] %v9437_v8  ;;  %17103 = vst [vmem:[#allocation25_spill] sm:$0xff] %v9448_v35  ;;  %1665 = vmatpush2.msra.mxu0 %v17106_v26  ;;  %1834 = vmatpush2.msra.mxu1 %v8720_v25  ;;  %v17114_v25 = vand.u32 4294901760, %v9152_v10  ;;  %v9491_v12 = vsub.f32 %v377_v27, %v9437_v8  ;;  %v370_v26 = vld [vmem:[%s15589_s2 + $0x210] sm:$0xff]  ;;  %v17118_v19 = vand.u32 4294901760, %v9204_v40  ;;  %v17119_v10 = vand.u32 4294901760, %v9386_v14 }
 0x112   :  { %v9462_v31 = vsub.f32 %v9341_v4, %v17107_v58  ;;  %17108 = vst [vmem:[#allocation26_spill] sm:$0xff] %v9465_v24  ;;  %1669 = vmatprep.subr.mxu0 %v17110_v60  ;;  %v9478_v58 = vsub.f32 %v378_v1, %v9420_v32  ;;  %17112 = vst [vmem:[#allocation40_spill] sm:$0xff] %v9480_v17  ;;  %v17113_v4 = vld [vmem:[#allocation90_spill] sm:$0xff]  ;;  %v9493_v1 = vand.u32 4294901760, %v373_v3  ;;  %v17117_v32 = vand.u32 4294901760, %v16917_v2  ;;  %v369_v2 = vld [vmem:[%s15589_s2 + $0x208] sm:$0xff] }
 0x113   :  { %1838 = vmatmul.mubr.f32.vlgmr.msra.gmra.mxu1 %v17113_v4  ;;  %1994 = vmatprep.subr.mxu1 %v17114_v25  ;;  %17115 = vst [vmem:[#allocation33_spill] sm:$0xff] %v9491_v12  ;;  %v9505_v25 = vsub.f32 %v9386_v14, %v17119_v10  ;;  %v9509_v50 = vsub.f32 %v376_v53, %v9450_v18  ;;  %v9511_v60 = vand.u32 4294901760, %v372_v61  ;;  %v17122_v40 = vand.u32 4294901760, %v16918_v49 }
 0x114   :  { %17111 = vst [vmem:[#allocation27_spill] sm:$0xff] %v9478_v58  ;;  %17116 = vst [vmem:[#allocation44_spill] sm:$0xff] %v9493_v1  ;;  %1673 = vmatpush2.msra.mxu0 %v17117_v32  ;;  %2000 = vmatpush1.msra.mxu1 %v17118_v19  ;;  %v9522_v10 = vsub.f32 %v375_v34, %v9467_v51  ;;  %v9524_v53 = vand.u32 4294901760, %v371_v48  ;;  %v17125_v27 = vand.u32 4294901760, %v9231_v33  ;;  %v17126_v14 = vand.u32 4294901760, %v16919_v45  ;;  %v368_v33 = vld [vmem:[%s15589_s2 + $0x200] sm:$0xff] }
 0x115   :  { %17120 = vst [vmem:[#allocation34_spill] sm:$0xff] %v9509_v50  ;;  %17121 = vst [vmem:[#allocation45_spill] sm:$0xff] %v9511_v60  ;;  %2374 = vmatprep.mubr.f32.mxu1 %v9134_v38  ;;  %1677 = vmatprep.subr.mxu0 %v17122_v40  ;;  %v17127_v38 = vand.u32 4294901760, %v9418_v56  ;;  %v9537_v19 = vsub.f32 %v374_v0, %v9480_v17  ;;  %v9539_v34 = vand.u32 4294901760, %v370_v26  ;;  %v17131_v45 = vand.u32 4294901760, %v8718_v36 }
 0x116   :  { %17123 = vst [vmem:[#allocation37_spill] sm:$0xff] %v9522_v10  ;;  %17124 = vst [vmem:[#allocation46_spill] sm:$0xff] %v9524_v53  ;;  %2006 = vmatprep.subr.mxu1 %v17125_v27  ;;  %1681 = vmatpush2.msra.mxu0 %v17126_v14  ;;  %v17130_v27 = vand.u32 4294901760, %v9248_v5  ;;  %v9555_v40 = vsub.f32 %v373_v3, %v9493_v1  ;;  %v9557_v32 = vand.u32 4294901760, %v369_v2  ;;  %v17136_v5 = vand.u32 4294901760, %v8726_v44 }
 0x117   :  { %v9533_v49 = vsub.f32 %v9418_v56, %v17127_v38  ;;  %17128 = vst [vmem:[#allocation38_spill] sm:$0xff] %v9537_v19  ;;  %17129 = vst [vmem:[#allocation47_spill] sm:$0xff] %v9539_v34  ;;  %1685 = vmatprep.subr.mxu0 %v17131_v45  ;;  %v17132_v38 = vand.u32 4294901760, %v9435_v37  ;;  %v17135_v56 = vand.u32 4294901760, %v9263_v7  ;;  %v9571_v3 = vsub.f32 %v372_v61, %v9511_v60 }
 0x118   :  { %2012 = vmatpush1.msra.mxu1 %v17130_v27  ;;  %17133 = vst [vmem:[#allocation39_spill] sm:$0xff] %v9555_v40  ;;  %17134 = vst [vmem:[#allocation48_spill] sm:$0xff] %v9557_v32  ;;  %1689 = vmatpush2.msra.mxu0 %v17136_v5  ;;  %v17137_v27 = vand.u32 4294901760, %v9448_v35  ;;  %v17139_v0 = vand.u32 4294901760, %v9275_v47  ;;  %v17140_v7 = vand.u32 4294901760, %v8729_v43  ;;  %v17141_v44 = vand.u32 4294901760, %v9465_v24 }
 0x119   :  { %v9551_v14 = vsub.f32 %v9435_v37, %v17132_v38  ;;  %2018 = vmatprep.subr.mxu1 %v17135_v56  ;;  %17138 = vst [vmem:[#allocation41_spill] sm:$0xff] %v9571_v3  ;;  %v9586_v36 = vand.u32 4294901760, %v368_v33  ;;  %v431_v47 = vld [vmem:[%s15589_s2 + $0x3f8] sm:$0xff]  ;;  %v17144_v61 = vand.u32 4294901760, %v9293_v20  ;;  %v17145_v43 = vand.u32 4294901760, %v8736_v30 }
 0x11a   :  { %v9567_v45 = vsub.f32 %v9448_v35, %v17137_v27  ;;  %2024 = vmatpush1.msra.mxu1 %v17139_v0  ;;  %1693 = vmatprep.subr.mxu0 %v17140_v7  ;;  %v9580_v56 = vsub.f32 %v9465_v24, %v17141_v44  ;;  %v9584_v27 = vsub.f32 %v371_v48, %v9524_v53  ;;  %v17146_v7 = vand.u32 4294901760, %v9478_v58  ;;  %v429_v0 = vld [vmem:[%s15589_s2 + $0x3e8] sm:$0xff]  ;;  %v428_v48 = vld [vmem:[%s15589_s2 + $0x3e0] sm:$0xff]  ;;  %v427_v30 = vld [vmem:[%s15589_s2 + $0x3d8] sm:$0xff] }
 0x11b   :  { %17143 = vst [vmem:[#allocation42_spill] sm:$0xff] %v9586_v36  ;;  %2030 = vmatprep.subr.mxu1 %v17144_v61  ;;  %1697 = vmatpush2.msra.mxu0 %v17145_v43  ;;  %v9603_v5 = vsub.f32 %v370_v26, %v9539_v34  ;;  %v17148_v38 = vand.u32 4294901760, %v9306_v9  ;;  %v17149_v20 = vand.u32 4294901760, %v9491_v12  ;;  %v430_v26 = vld [vmem:[%s15589_s2 + $0x3f0] sm:$0xff]  ;;  %v17151_v9 = vand.u32 4294901760, %v9337_v57  ;;  %v423_v24 = vld [vmem:[%s15589_s2 + $0x3b8] sm:$0xff] }
 0x11c   :  { %17142 = vst [vmem:[#allocation51_spill] sm:$0xff] %v9584_v27  ;;  %v9599_v44 = vsub.f32 %v9478_v58, %v17146_v7  ;;  %1701 = vmatmul.mubr.f32.vlgmr.msra.gmra.mxu0 %v17113_v4  ;;  %v9616_v7 = vsub.f32 %v369_v2, %v9557_v32  ;;  %1845 = vmatprep.subr.mxu0 %v9031_v6  ;;  %v9631_v2 = vand.u32 4294901760, %v431_v47  ;;  %v17154_v57 = vand.u32 4294901760, %v9322_v29  ;;  %v424_v58 = vld [vmem:[%s15589_s2 + $0x3c0] sm:$0xff]  ;;  %v422_v35 = vld [vmem:[%s15589_s2 + $0x3b0] sm:$0xff] }
 0x11d   :  { %17147 = vst [vmem:[#allocation52_spill] sm:$0xff] %v9603_v5  ;;  %2036 = vmatpush1.msra.mxu1 %v17148_v38  ;;  %v9612_v61 = vsub.f32 %v9491_v12, %v17149_v20  ;;  %v17152_v38 = vand.u32 4294901760, %v9509_v50  ;;  %1847 = vmatpush1.msra.mxu0 %v9051_v59  ;;  %v17155_v4 = vand.u32 4294901760, %v9522_v10  ;;  %v9647_v43 = vsub.f32 %v368_v33, %v9586_v36  ;;  %v425_v12 = vld [vmem:[%s15589_s2 + $0x3c8] sm:$0xff] }
 0x11e   :  { %17150 = vst [vmem:[#allocation43_spill] sm:$0xff] %v9616_v7  ;;  %2042 = vmatprep.subr.mxu1 %v17151_v9  ;;  %17153 = vst [vmem:[#allocation56_spill] sm:$0xff] %v9631_v2  ;;  %1977 = vmatprep.mubr.f32.mxu0 %v17154_v57  ;;  %v17158_v57 = vand.u32 4294901760, %v9537_v19  ;;  %v9662_v33 = vand.u32 4294901760, %v430_v26  ;;  %v17161_v29 = vand.u32 4294901760, %v9555_v40  ;;  %v9692_v9 = vsub.f32 %v431_v47, %v9631_v2 }
 0x11f   :  { %v9628_v20 = vsub.f32 %v9509_v50, %v17152_v38  ;;  %v9643_v38 = vsub.f32 %v9522_v10, %v17155_v4  ;;  %17156 = vst [vmem:[#allocation49_spill] sm:$0xff] %v9647_v43  ;;  %v17157_v50 = vand.u32 4294901760, %v9353_v39  ;;  %1849 = vmatprep.subr.mxu0 %v9069_v15  ;;  %v17160_v39 = vand.u32 4294901760, %v9368_v63  ;;  %v426_v10 = vld [vmem:[%s15589_s2 + $0x3d0] sm:$0xff] }
 0x120   :  { %v9659_v4 = vsub.f32 %v9537_v19, %v17158_v57  ;;  %17159 = vst [vmem:[#allocation60_spill] sm:$0xff] %v9662_v33  ;;  %1851 = vmatpush1.msra.mxu0 %v9080_v54  ;;  %v9674_v57 = vsub.f32 %v9555_v40, %v17161_v29  ;;  %v9677_v19 = vand.u32 4294901760, %v429_v0  ;;  %v17163_v63 = vand.u32 4294901760, %v9383_v52  ;;  %17165 = vst [vmem:[#allocation61_spill] sm:$0xff] %v9692_v9 }
 0x121   :  { %2048 = vmatpush1.msra.mxu1 %v17157_v50  ;;  %1853 = vmatprep.subr.mxu0 %v9091_v16  ;;  %v17164_v50 = vand.u32 4294901760, %v9571_v3  ;;  %v9694_v40 = vand.u32 4294901760, %v428_v48  ;;  %v17167_v52 = vand.u32 4294901760, %v9400_v41  ;;  %v17170_v41 = vand.u32 4294901760, %v9415_v55 }
 0x122   :  { %2054 = vmatprep.subr.mxu1 %v17160_v39  ;;  %17162 = vst [vmem:[#allocation50_spill] sm:$0xff] %v9677_v19  ;;  %1855 = vmatpush1.msra.mxu0 %v9100_v23  ;;  %v17168_v39 = vand.u32 4294901760, %v9584_v27  ;;  %v9724_v47 = vsub.f32 %v430_v26, %v9662_v33  ;;  %v17174_v55 = vand.u32 4294901760, %v9432_v42  ;;  %v9741_v26 = vsub.f32 %v429_v0, %v9677_v19  ;;  %v17210_v23 = vld [vmem:[#allocation24_spill] sm:$0xff] }
 0x123   :  { %2060 = vmatpush1.msra.mxu1 %v17163_v63  ;;  %v9689_v29 = vsub.f32 %v9571_v3, %v17164_v50  ;;  %17166 = vst [vmem:[#allocation53_spill] sm:$0xff] %v9694_v40  ;;  %v9709_v3 = vand.u32 4294901760, %v427_v30  ;;  %1857 = vmatprep.subr.mxu0 %v9110_v62  ;;  %v17171_v63 = vand.u32 4294901760, %v9603_v5  ;;  %v17178_v42 = vand.u32 4294901760, %v9462_v31  ;;  %v418_v31 = vld [vmem:[%s15589_s2 + $0x390] sm:$0xff] }
 0x124   :  { %2066 = vmatprep.subr.mxu1 %v17167_v52  ;;  %v9706_v50 = vsub.f32 %v9584_v27, %v17168_v39  ;;  %17172 = vst [vmem:[#allocation63_spill] sm:$0xff] %v9724_v47  ;;  %v9726_v27 = vand.u32 4294901760, %v426_v10  ;;  %1859 = vmatpush1.msra.mxu0 %v9123_v13  ;;  %v17175_v52 = vand.u32 4294901760, %v9616_v7  ;;  %17176 = vst [vmem:[#allocation64_spill] sm:$0xff] %v9741_v26  ;;  %v9756_v0 = vand.u32 4294901760, %v424_v58  ;;  %v417_v13 = vld [vmem:[%s15589_s2 + $0x388] sm:$0xff] }
 0x125   :  { %17169 = vst [vmem:[#allocation62_spill] sm:$0xff] %v9709_v3  ;;  %2072 = vmatpush1.msra.mxu1 %v17170_v41  ;;  %v9721_v39 = vsub.f32 %v9603_v5, %v17171_v63  ;;  %v9743_v5 = vand.u32 4294901760, %v425_v12  ;;  %1861 = vmatprep.subr.mxu0 %v9157_v28  ;;  %v17181_v37 = vand.u32 4294901760, %v9505_v25  ;;  %v9773_v41 = vand.u32 4294901760, %v423_v24  ;;  %v420_v28 = vld [vmem:[%s15589_s2 + $0x3a0] sm:$0xff] }
 0x126   :  { %17173 = vst [vmem:[#allocation55_spill] sm:$0xff] %v9726_v27  ;;  %2078 = vmatprep.subr.mxu1 %v17174_v55  ;;  %v9738_v63 = vsub.f32 %v9616_v7, %v17175_v52  ;;  %v9754_v52 = vsub.f32 %v428_v48, %v9694_v40  ;;  %17180 = vst [vmem:[#allocation72_spill] sm:$0xff] %v9756_v0  ;;  %v421_v7 = vld [vmem:[%s15589_s2 + $0x3a8] sm:$0xff]  ;;  %1863 = vmatpush1.msra.mxu0 %v9173_v46  ;;  %v17188_v46 = vand.u32 4294901760, %v9551_v14  ;;  %v17192_v14 = vld [vmem:[#allocation14_spill] sm:$0xff] }
 0x127   :  { %17177 = vst [vmem:[#allocation67_spill] sm:$0xff] %v9743_v5  ;;  %2084 = vmatpush1.msra.mxu1 %v17178_v42  ;;  %v17182_v42 = vand.u32 4294901760, %v9647_v43  ;;  %v9771_v48 = vsub.f32 %v427_v30, %v9709_v3  ;;  %17184 = vst [vmem:[#allocation77_spill] sm:$0xff] %v9773_v41  ;;  %1865 = vmatprep.subr.mxu0 %v9191_v22  ;;  %v9786_v30 = vand.u32 4294901760, %v422_v35  ;;  %v17191_v22 = vand.u32 4294901760, %v9567_v45 }
 0x128   :  { %17179 = vst [vmem:[#allocation68_spill] sm:$0xff] %v9754_v52  ;;  %2090 = vmatprep.subr.mxu1 %v17181_v37  ;;  %v17185_v37 = vand.u32 4294901760, %v9533_v49  ;;  %1867 = vmatpush1.msra.mxu0 %v9210_v11  ;;  %v9797_v25 = vsub.f32 %v425_v12, %v9743_v5  ;;  %v9814_v12 = vsub.f32 %v424_v58, %v9756_v0  ;;  %v9816_v11 = vand.u32 4294901760, %v420_v28 }
 0x129   :  { %v9768_v55 = vsub.f32 %v9647_v43, %v17182_v42  ;;  %17183 = vst [vmem:[#allocation76_spill] sm:$0xff] %v9771_v48  ;;  %v9784_v42 = vsub.f32 %v426_v10, %v9726_v27  ;;  %17187 = vst [vmem:[#allocation79_spill] sm:$0xff] %v9786_v30  ;;  %v419_v43 = vld [vmem:[%s15589_s2 + $0x398] sm:$0xff]  ;;  %v9799_v10 = vand.u32 4294901760, %v421_v7  ;;  %1869 = vmatprep.subr.mxu0 %v17192_v14  ;;  %v17200_v14 = vld [vmem:[#allocation16_spill] sm:$0xff]  ;;  %v17201_v62 = vand.u32 4294901760, %v9724_v47 }
 0x12a   :  { %2096 = vmatpush1.msra.mxu1 %v17185_v37  ;;  %17189 = vst [vmem:[#allocation80_spill] sm:$0xff] %v9797_v25  ;;  %17194 = vst [vmem:[#allocation75_spill] sm:$0xff] %v9814_v12  ;;  %1871 = vmatpush1.msra.mxu0 %v9237_v21  ;;  %v9827_v37 = vsub.f32 %v423_v24, %v9773_v41  ;;  %v9829_v58 = vand.u32 4294901760, %v419_v43  ;;  %v9841_v45 = vsub.f32 %v422_v35, %v9786_v30  ;;  %v416_v24 = vld [vmem:[%s15589_s2 + $0x380] sm:$0xff] }
 0x12b   :  { %17186 = vst [vmem:[#allocation78_spill] sm:$0xff] %v9784_v42  ;;  %2102 = vmatprep.subr.mxu1 %v17188_v46  ;;  %17190 = vst [vmem:[#allocation74_spill] sm:$0xff] %v9799_v10  ;;  %v17193_v46 = vand.u32 4294901760, %v9692_v9  ;;  %1873 = vmatprep.subr.mxu0 %v17200_v14  ;;  %v17206_v14 = vand.u32 4294901760, %v9741_v26  ;;  %v9858_v35 = vsub.f32 %v421_v7, %v9799_v10  ;;  %v17209_v21 = vand.u32 4294901760, %v9628_v20 }
 0x12c   :  { %2108 = vmatpush1.msra.mxu1 %v17191_v22  ;;  %17195 = vst [vmem:[#allocation90_spill] sm:$0xff] %v9816_v11  ;;  %v17196_v22 = vand.u32 4294901760, %v9580_v56  ;;  %17197 = vst [vmem:[#allocation91_spill] sm:$0xff] %v9827_v37  ;;  %v9837_v56 = vsub.f32 %v9724_v47, %v17201_v62  ;;  %v9860_v47 = vand.u32 4294901760, %v417_v13  ;;  %v17213_v7 = vand.u32 4294901760, %v9643_v38 }
 0x12d   :  { %v9810_v49 = vsub.f32 %v9692_v9, %v17193_v46  ;;  %17198 = vst [vmem:[#allocation92_spill] sm:$0xff] %v9829_v58  ;;  %v17199_v9 = vand.u32 4294901760, %v9599_v44  ;;  %17202 = vst [vmem:[#allocation93_spill] sm:$0xff] %v9841_v45  ;;  %v9843_v46 = vand.u32 4294901760, %v418_v31  ;;  %v17204_v44 = vand.u32 4294901760, %v9612_v61 }
 0x12e   :  { %2114 = vmatprep.subr.mxu1 %v17196_v22  ;;  %v9854_v62 = vsub.f32 %v9741_v26, %v17206_v14  ;;  %17207 = vst [vmem:[#allocation95_spill] sm:$0xff] %v9858_v35  ;;  %17208 = vst [vmem:[#allocation96_spill] sm:$0xff] %v9860_v47  ;;  %v9873_v22 = vsub.f32 %v420_v28, %v9816_v11  ;;  %v17214_v26 = vld [vmem:[#allocation28_spill] sm:$0xff]  ;;  %v415_v28 = vld [vmem:[%s15589_s2 + $0x378] sm:$0xff]  ;;  %v17218_v38 = vand.u32 4294901760, %v9659_v4  ;;  %v2191_v14 = vand.u32 4294901760, %v9837_v56 }
 0x12f   :  { %2120 = vmatpush1.msra.mxu1 %v17199_v9  ;;  %17203 = vst [vmem:[#allocation94_spill] sm:$0xff] %v9843_v46  ;;  %v17205_v9 = vld [vmem:[#allocation10_spill] sm:$0xff]  ;;  %v2185_v61 = vand.u32 4294901760, %v9810_v49 }
 0x130   :  { %2126 = vmatprep.subr.mxu1 %v17204_v44  ;;  %1875 = vmatpush1.msra.mxu0 %v17205_v9  ;;  %v17211_v44 = vand.u32 4294901760, %v9754_v52  ;;  %17212 = vst [vmem:[#allocation97_spill] sm:$0xff] %v9873_v22  ;;  %v2197_v4 = vand.u32 4294901760, %v9854_v62 }
 0x131   :  { %2132 = vmatpush1.msra.mxu1 %v17209_v21  ;;  %1877 = vmatprep.subr.mxu0 %v17210_v23  ;;  %v17215_v21 = vand.u32 4294901760, %v9771_v48  ;;  %v17223_v23 = vld [vmem:[#allocation21_spill] sm:$0xff] }
 0x132   :  { %v9869_v9 = vsub.f32 %v9754_v52, %v17211_v44  ;;  %2138 = vmatprep.subr.mxu1 %v17213_v7  ;;  %1879 = vmatpush1.msra.mxu0 %v17214_v26  ;;  %v9885_v44 = vsub.f32 %v419_v43, %v9829_v58  ;;  %v9887_v52 = vand.u32 4294901760, %v416_v24  ;;  %v17219_v7 = vld [vmem:[#allocation18_spill] sm:$0xff]  ;;  %v17222_v26 = vand.u32 4294901760, %v9674_v57 }
 0x133   :  { %v9881_v20 = vsub.f32 %v9771_v48, %v17215_v21  ;;  %2144 = vmatpush1.msra.mxu1 %v17218_v38  ;;  %1881 = vmatprep.subr.mxu0 %v17219_v7  ;;  %v17220_v21 = vand.u32 4294901760, %v9784_v42  ;;  %v9903_v48 = vsub.f32 %v418_v31, %v9843_v46  ;;  %v17224_v38 = vand.u32 4294901760, %v9797_v25  ;;  %v414_v31 = vld [vmem:[%s15589_s2 + $0x370] sm:$0xff] }
 0x134   :  { %17216 = vst [vmem:[#allocation98_spill] sm:$0xff] %v9885_v44  ;;  %17217 = vst [vmem:[#allocation99_spill] sm:$0xff] %v9887_v52  ;;  %2150 = vmatprep.subr.mxu1 %v17222_v26  ;;  %1883 = vmatpush1.msra.mxu0 %v17223_v23  ;;  %v17226_v57 = vand.u32 4294901760, %v9689_v29  ;;  %v17227_v26 = vld [vmem:[#allocation30_spill] sm:$0xff]  ;;  %v2203_v62 = vand.u32 4294901760, %v9869_v9  ;;  %v17228_v43 = vand.u32 4294901760, %v9814_v12 }
 0x135   :  { %v9899_v49 = vsub.f32 %v9784_v42, %v17220_v21  ;;  %17221 = vst [vmem:[#allocation100_spill] sm:$0xff] %v9903_v48  ;;  %v9912_v56 = vsub.f32 %v9797_v25, %v17224_v38  ;;  %v9916_v42 = vsub.f32 %v417_v13, %v9860_v47  ;;  %1885 = vmatprep.subr.mxu0 %v17227_v26  ;;  %v9931_v13 = vand.u32 4294901760, %v415_v28  ;;  %v413_v25 = vld [vmem:[%s15589_s2 + $0x368] sm:$0xff]  ;;  %v412_v23 = vld [vmem:[%s15589_s2 + $0x360] sm:$0xff] }
 0x136   :  { %2156 = vmatpush1.msra.mxu1 %v17226_v57  ;;  %v9928_v38 = vsub.f32 %v9814_v12, %v17228_v43  ;;  %v17230_v29 = vand.u32 4294901760, %v9706_v50  ;;  %v17231_v57 = vld [vmem:[#allocation31_spill] sm:$0xff]  ;;  %v2209_v9 = vand.u32 4294901760, %v9881_v20  ;;  %v17232_v26 = vand.u32 4294901760, %v9827_v37 }
 0x137   :  { %17225 = vst [vmem:[#allocation101_spill] sm:$0xff] %v9916_v42  ;;  %17229 = vst [vmem:[#allocation102_spill] sm:$0xff] %v9931_v13  ;;  %1887 = vmatpush1.msra.mxu0 %v17231_v57  ;;  %v9947_v12 = vsub.f32 %v416_v24, %v9887_v52  ;;  %v17234_v50 = vand.u32 4294901760, %v9721_v39  ;;  %v2215_v20 = vand.u32 4294901760, %v9899_v49  ;;  %v9962_v24 = vand.u32 4294901760, %v414_v31 }
 0x138   :  { %2162 = vmatprep.subr.mxu1 %v17230_v29  ;;  %v9943_v43 = vsub.f32 %v9827_v37, %v17232_v26  ;;  %1889 = vmatprep.subr.mxu0 %v9437_v8  ;;  %v17235_v29 = vand.u32 4294901760, %v9841_v45  ;;  %v411_v37 = vld [vmem:[%s15589_s2 + $0x358] sm:$0xff]  ;;  %v17237_v39 = vand.u32 4294901760, %v9738_v63  ;;  %v2221_v49 = vand.u32 4294901760, %v9912_v56  ;;  %v410_v8 = vld [vmem:[%s15589_s2 + $0x350] sm:$0xff] }
 0x139   :  { %17233 = vst [vmem:[#allocation103_spill] sm:$0xff] %v9947_v12  ;;  %2168 = vmatpush1.msra.mxu1 %v17234_v50  ;;  %17236 = vst [vmem:[#allocation104_spill] sm:$0xff] %v9962_v24  ;;  %1891 = vmatpush1.msra.mxu0 %v9450_v18  ;;  %v17238_v50 = vand.u32 4294901760, %v9858_v35  ;;  %v17240_v63 = vand.u32 4294901760, %v9768_v55  ;;  %v2227_v56 = vand.u32 4294901760, %v9928_v38  ;;  %v9992_v21 = vsub.f32 %v415_v28, %v9931_v13  ;;  %v409_v18 = vld [vmem:[%s15589_s2 + $0x348] sm:$0xff] }
 0x13a   :  { %v9959_v26 = vsub.f32 %v9841_v45, %v17235_v29  ;;  %2174 = vmatprep.subr.mxu1 %v17237_v39  ;;  %v9977_v45 = vand.u32 4294901760, %v413_v25  ;;  %1893 = vmatprep.subr.mxu0 %v9467_v51  ;;  %v17241_v39 = vand.u32 4294901760, %v9873_v22  ;;  %v2233_v55 = vand.u32 4294901760, %v9943_v43 }
 0x13b   :  { %v9974_v29 = vsub.f32 %v9858_v35, %v17238_v50  ;;  %2180 = vmatpush1.msra.mxu1 %v17240_v63  ;;  %17242 = vst [vmem:[#allocation106_spill] sm:$0xff] %v9992_v21  ;;  %v9994_v35 = vand.u32 4294901760, %v412_v23  ;;  %1895 = vmatpush1.msra.mxu0 %v9480_v17  ;;  %v17244_v38 = vand.u32 4294901760, %v9885_v44  ;;  %v10007_v28 = vand.u32 4294901760, %v411_v37 }
 0x13c   :  { %17239 = vst [vmem:[#allocation105_spill] sm:$0xff] %v9977_v45  ;;  %v9989_v50 = vsub.f32 %v9873_v22, %v17241_v39  ;;  %2186 = vmatprep.subr.mxu1 %v2185_v61  ;;  %v408_v22 = vld [vmem:[%s15589_s2 + $0x340] sm:$0xff]  ;;  %1897 = vmatprep.subr.mxu0 %v9493_v1  ;;  %v2239_v61 = vand.u32 4294901760, %v9959_v26  ;;  %v17246_v43 = vand.u32 4294901760, %v9903_v48  ;;  %v10022_v39 = vand.u32 4294901760, %v410_v8 }
 0x13d   :  { %17243 = vst [vmem:[#allocation107_spill] sm:$0xff] %v9994_v35  ;;  %v10004_v63 = vsub.f32 %v9885_v44, %v17244_v38  ;;  %17245 = vst [vmem:[#allocation108_spill] sm:$0xff] %v10007_v28  ;;  %2192 = vmatpush2.msra.mxu1 %v2191_v14  ;;  %v10020_v38 = vsub.f32 %v414_v31, %v9962_v24  ;;  %v407_v44 = vld [vmem:[%s15589_s2 + $0x338] sm:$0xff]  ;;  %1899 = vmatpush1.msra.mxu0 %v9511_v60  ;;  %v2245_v14 = vand.u32 4294901760, %v9974_v29 }
 0x13e   :  { %v10017_v17 = vsub.f32 %v9903_v48, %v17246_v43  ;;  %2198 = vmatprep.subr.mxu1 %v2197_v4  ;;  %v17248_v26 = vand.u32 4294901760, %v9916_v42  ;;  %v10035_v43 = vsub.f32 %v413_v25, %v9977_v45  ;;  %v10037_v31 = vand.u32 4294901760, %v409_v18  ;;  %v406_v48 = vld [vmem:[%s15589_s2 + $0x330] sm:$0xff]  ;;  %1901 = vmatprep.subr.mxu0 %v9524_v53  ;;  %v405_v25 = vld [vmem:[%s15589_s2 + $0x328] sm:$0xff]  ;;  %v404_v53 = vld [vmem:[%s15589_s2 + $0x320] sm:$0xff] }
 0x13f   :  { %17247 = vst [vmem:[#allocation109_spill] sm:$0xff] %v10020_v38  ;;  %2204 = vmatpush2.msra.mxu1 %v2203_v62  ;;  %v2251_v4 = vand.u32 4294901760, %v9989_v50  ;;  %v10046_v60 = vsub.f32 %v412_v23, %v9994_v35  ;;  %1903 = vmatpush1.msra.mxu0 %v9539_v34  ;;  %v2257_v62 = vand.u32 4294901760, %v10004_v63  ;;  %v10061_v29 = vsub.f32 %v411_v37, %v10007_v28  ;;  %v403_v37 = vld [vmem:[%s15589_s2 + $0x318] sm:$0xff] }
 0x140   :  { %v10032_v1 = vsub.f32 %v9916_v42, %v17248_v26  ;;  %17249 = vst [vmem:[#allocation110_spill] sm:$0xff] %v10035_v43  ;;  %v10048_v26 = vand.u32 4294901760, %v408_v22  ;;  %2210 = vmatprep.subr.mxu1 %v2209_v9  ;;  %v17250_v42 = vand.u32 4294901760, %v9947_v12  ;;  %v10063_v23 = vand.u32 4294901760, %v407_v44  ;;  %1905 = vmatprep.subr.mxu0 %v9557_v32  ;;  %v401_v32 = vld [vmem:[%s15589_s2 + $0x308] sm:$0xff] }
 0x141   :  { %2216 = vmatpush2.msra.mxu1 %v2215_v20  ;;  %v2263_v9 = vand.u32 4294901760, %v10017_v17  ;;  %v10072_v34 = vsub.f32 %v410_v8, %v10022_v39  ;;  %1907 = vmatpush1.msra.mxu0 %v9586_v36  ;;  %v10083_v17 = vsub.f32 %v409_v18, %v10037_v31  ;;  %v10085_v63 = vand.u32 4294901760, %v405_v25  ;;  %v402_v8 = vld [vmem:[%s15589_s2 + $0x310] sm:$0xff] }
 0x142   :  { %v10058_v50 = vsub.f32 %v9947_v12, %v17250_v42  ;;  %v10074_v42 = vand.u32 4294901760, %v406_v48  ;;  %2222 = vmatprep.subr.mxu1 %v2221_v49  ;;  %v2269_v20 = vand.u32 4294901760, %v10032_v1  ;;  %1909 = vmatprep.subr.mxu0 %v9631_v2  ;;  %v17253_v49 = vand.u32 4294901760, %v9992_v21 }
 0x143   :  { %17252 = vst [vmem:[#allocation112_spill] sm:$0xff] %v10085_v63  ;;  %2228 = vmatpush2.msra.mxu1 %v2227_v56  ;;  %v10096_v12 = vsub.f32 %v408_v22, %v10048_v26  ;;  %v10098_v18 = vand.u32 4294901760, %v404_v53  ;;  %1911 = vmatpush2.msra.mxu0 %v9662_v33  ;;  %v10109_v1 = vand.u32 4294901760, %v403_v37  ;;  %v400_v22 = vld [vmem:[%s15589_s2 + $0x300] sm:$0xff]  ;;  %v17259_v33 = vand.u32 4294901760, %v10035_v43 }
 0x144   :  { %17251 = vst [vmem:[#allocation111_spill] sm:$0xff] %v10074_v42  ;;  %v2280_v36 = vsub.f32 %v9992_v21, %v17253_v49  ;;  %2234 = vmatprep.subr.mxu1 %v2233_v55  ;;  %v2275_v56 = vand.u32 4294901760, %v10058_v50  ;;  %v10107_v49 = vsub.f32 %v407_v44, %v10063_v23  ;;  %1913 = vmatprep.subr.mxu0 %v9677_v19  ;;  %v17257_v55 = vand.u32 4294901760, %v10020_v38 }
 0x145   :  { %17254 = vst [vmem:[#allocation113_spill] sm:$0xff] %v10096_v12  ;;  %17255 = vst [vmem:[#allocation114_spill] sm:$0xff] %v10098_v18  ;;  %2240 = vmatpush2.msra.mxu1 %v2239_v61  ;;  %v10120_v2 = vsub.f32 %v406_v48, %v10074_v42  ;;  %v10122_v44 = vand.u32 4294901760, %v402_v8  ;;  %1915 = vmatpush2.msra.mxu0 %v9694_v40  ;;  %v2292_v61 = vsub.f32 %v10035_v43, %v17259_v33 }
 0x146   :  { %17256 = vst [vmem:[#allocation115_spill] sm:$0xff] %v10107_v49  ;;  %v2286_v21 = vsub.f32 %v10020_v38, %v17257_v55  ;;  %2246 = vmatprep.subr.mxu1 %v2245_v14  ;;  %v10130_v51 = vsub.f32 %v405_v25, %v10085_v63  ;;  %v10132_v55 = vand.u32 4294901760, %v401_v32  ;;  %1917 = vmatprep.subr.mxu0 %v9709_v3  ;;  %v17260_v48 = vand.u32 4294901760, %v10046_v60 }
 0x147   :  { %17258 = vst [vmem:[#allocation116_spill] sm:$0xff] %v10122_v44  ;;  %2252 = vmatpush2.msra.mxu1 %v2251_v4  ;;  %v10140_v38 = vsub.f32 %v404_v53, %v10098_v18  ;;  %v10142_v33 = vand.u32 4294901760, %v400_v22  ;;  %1919 = vmatpush2.msra.mxu0 %v9726_v27  ;;  %v2281_v25 = vand.u32 4294901760, %v2280_v36  ;;  %v17261_v19 = vand.u32 4294901760, %v10061_v29 }
 0x148   :  { %v2298_v14 = vsub.f32 %v10046_v60, %v17260_v48  ;;  %2258 = vmatprep.subr.mxu1 %v2257_v62  ;;  %v10150_v3 = vsub.f32 %v403_v37, %v10109_v1  ;;  %1921 = vmatprep.subr.mxu0 %v9743_v5  ;;  %v2287_v53 = vand.u32 4294901760, %v2286_v21  ;;  %v17263_v48 = vand.u32 4294901760, %v10072_v34 }
 0x149   :  { %v2304_v4 = vsub.f32 %v10061_v29, %v17261_v19  ;;  %2264 = vmatpush2.msra.mxu1 %v2263_v9  ;;  %v10158_v36 = vsub.f32 %v402_v8, %v10122_v44  ;;  %1923 = vmatpush2.msra.mxu0 %v9756_v0  ;;  %v2293_v19 = vand.u32 4294901760, %v2292_v61  ;;  %v17265_v37 = vand.u32 4294901760, %v10083_v17 }
 0x14a   :  { %17262 = vst [vmem:[#allocation117_spill] sm:$0xff] %v10150_v3  ;;  %v2310_v62 = vsub.f32 %v10072_v34, %v17263_v48  ;;  %2270 = vmatprep.subr.mxu1 %v2269_v20  ;;  %v10166_v21 = vsub.f32 %v401_v32, %v10132_v55  ;;  %1925 = vmatprep.subr.mxu0 %v9773_v41  ;;  %v2299_v48 = vand.u32 4294901760, %v2298_v14  ;;  %v17267_v8 = vand.u32 4294901760, %v10096_v12 }
 0x14b   :  { %17264 = vst [vmem:[#allocation118_spill] sm:$0xff] %v10158_v36  ;;  %v2316_v9 = vsub.f32 %v10083_v17, %v17265_v37  ;;  %2276 = vmatpush2.msra.mxu1 %v2275_v56  ;;  %v10174_v61 = vsub.f32 %v400_v22, %v10142_v33  ;;  %1927 = vmatpush2.msra.mxu0 %v9786_v30  ;;  %v2305_v37 = vand.u32 4294901760, %v2304_v4  ;;  %v17269_v32 = vand.u32 4294901760, %v10107_v49 }
 0x14c   :  { %17266 = vst [vmem:[#allocation119_spill] sm:$0xff] %v10166_v21  ;;  %v2322_v20 = vsub.f32 %v10096_v12, %v17267_v8  ;;  %2282 = vmatprep.subr.mxu1 %v2281_v25  ;;  %1929 = vmatprep.subr.mxu0 %v9799_v10  ;;  %v2311_v14 = vand.u32 4294901760, %v2310_v62  ;;  %v17270_v8 = vand.u32 4294901760, %v10120_v2  ;;  %v17271_v4 = vand.u32 4294901760, %v10130_v51 }
 0x14d   :  { %17268 = vst [vmem:[#allocation120_spill] sm:$0xff] %v10174_v61  ;;  %v2328_v56 = vsub.f32 %v10107_v49, %v17269_v32  ;;  %2288 = vmatpush2.msra.mxu1 %v2287_v53  ;;  %1931 = vmatpush2.msra.mxu0 %v9816_v11  ;;  %v2317_v25 = vand.u32 4294901760, %v2316_v9  ;;  %v17272_v53 = vld [vmem:[#allocation12_spill] sm:$0xff]  ;;  %v17273_v49 = vld [vmem:[#allocation83_spill] sm:$0xff]  ;;  %v15989_v22 = vand.u32 4294901760, %v10174_v61 }
 0x14e   :  { %v2334_v50 = vsub.f32 %v10120_v2, %v17270_v8  ;;  %2294 = vmatprep.subr.mxu1 %v2293_v19  ;;  %v2340_v32 = vsub.f32 %v10130_v51, %v17271_v4  ;;  %v202_v12 = vadd.f32 %v17273_v49, %v17272_v53  ;;  %1933 = vmatprep.subr.mxu0 %v9829_v58  ;;  %v2323_v62 = vand.u32 4294901760, %v2322_v20 }
 0x14f   :  { %2300 = vmatpush2.msra.mxu1 %v2299_v48  ;;  %v17274_v8 = vand.u32 4294901760, %v10140_v38  ;;  %1935 = vmatpush2.msra.mxu0 %v9843_v46  ;;  %v2329_v9 = vand.u32 4294901760, %v2328_v56  ;;  %v17275_v4 = vand.u32 4294901760, %v10150_v3  ;;  %v17276_v48 = vand.u32 4294901760, %v10158_v36 }
 0x150   :  { %2306 = vmatprep.subr.mxu1 %v2305_v37  ;;  %1937 = vmatprep.subr.mxu0 %v9860_v47  ;;  %v2335_v49 = vand.u32 4294901760, %v2334_v50  ;;  %v2341_v53 = vand.u32 4294901760, %v2340_v32  ;;  %v17277_v37 = vand.u32 4294901760, %v10166_v21  ;;  %v2370_v50 = vsub.f32 %v10174_v61, %v15989_v22  ;;  %v17294_v22 = vld [vmem:[#allocation71_spill] sm:$0xff] }
 0x151   :  { %v2346_v19 = vsub.f32 %v10140_v38, %v17274_v8  ;;  %v2352_v43 = vsub.f32 %v10150_v3, %v17275_v4  ;;  %2312 = vmatpush2.msra.mxu1 %v2311_v14  ;;  %v2358_v20 = vsub.f32 %v10158_v36, %v17276_v48  ;;  %1939 = vmatpush2.msra.mxu0 %v9887_v52  ;;  %v10210_v8 = vand.u32 4294901760, %v202_v12  ;;  %v17281_v48 = vld [vmem:[#allocation57_spill] sm:$0xff] }
 0x152   :  { %2318 = vmatprep.subr.mxu1 %v2317_v25  ;;  %v2364_v56 = vsub.f32 %v10166_v21, %v17277_v37  ;;  %1941 = vmatprep.subr.mxu0 %v9931_v13  ;;  %v17283_v37 = vld [vmem:[#allocation66_spill] sm:$0xff] }
 0x153   :  { %17278 = vst [vmem:[#allocation12_spill] sm:$0xff] %v10210_v8  ;;  %2324 = vmatpush2.msra.mxu1 %v2323_v62  ;;  %v2347_v14 = vand.u32 4294901760, %v2346_v19  ;;  %1943 = vmatpush2.msra.mxu0 %v9962_v24  ;;  %v2353_v25 = vand.u32 4294901760, %v2352_v43  ;;  %v2359_v32 = vand.u32 4294901760, %v2358_v20  ;;  %v10220_v62 = vsub.f32 %v202_v12, %v10210_v8  ;;  %v17279_v12 = vld [vmem:[#allocation4_spill] sm:$0xff] }
 0x154   :  { %2330 = vmatprep.subr.mxu1 %v2329_v9  ;;  %1945 = vmatprep.subr.mxu0 %v9977_v45  ;;  %v2365_v4 = vand.u32 4294901760, %v2364_v56  ;;  %v2371_v19 = vand.u32 4294901760, %v2370_v50  ;;  %v17280_v9 = vand.u32 4294901760, %v17279_v12  ;;  %v17284_v56 = vld [vmem:[#allocation2_spill] sm:$0xff] }
 0x155   :  { %2336 = vmatpush2.msra.mxu1 %v2335_v49  ;;  %1947 = vmatpush2.msra.mxu0 %v9994_v35  ;;  %v15990_v43 = vand.u32 4294901760, %v10220_v62  ;;  %v17286_v50 = vld [vmem:[#allocation54_spill] sm:$0xff] }
 0x156   :  { %2342 = vmatprep.subr.mxu1 %v2341_v53  ;;  %1949 = vmatprep.subr.mxu0 %v10007_v28  ;;  %v17282_v53 = vld [vmem:[#allocation59_spill] sm:$0xff] }
 0x157   :  { %2348 = vmatpush2.msra.mxu1 %v2347_v14  ;;  %1951 = vmatpush2.msra.mxu0 %v10022_v39  ;;  %v1981_v49 = vsub.f32 %v10220_v62, %v15990_v43  ;;  %v17285_v14 = vld [vmem:[#allocation73_spill] sm:$0xff]  ;;  %v17295_v43 = vld [vmem:[#allocation15_spill] sm:$0xff] }
 0x158   :  { %2354 = vmatprep.subr.mxu1 %v2353_v25  ;;  %1953 = vmatprep.subr.mxu0 %v10037_v31  ;;  %v17287_v25 = vld [vmem:[#allocation82_spill] sm:$0xff] }
 0x159   :  { %2360 = vmatpush2.msra.mxu1 %v2359_v32  ;;  %1955 = vmatpush2.msra.mxu0 %v10048_v26  ;;  %v1982_v20 = vand.u32 4294901760, %v1981_v49  ;;  %v17288_v32 = vld [vmem:[#allocation58_spill] sm:$0xff] }
 0x15a   :  { %2366 = vmatprep.subr.mxu1 %v2365_v4  ;;  %1957 = vmatprep.subr.mxu0 %v10063_v23  ;;  %v17289_v4 = vld [vmem:[#allocation3_spill] sm:$0xff]  ;;  %v17292_v49 = vld [vmem:[#allocation70_spill] sm:$0xff] }
 0x15b   :  { %2372 = vmatpush2.msra.mxu1 %v2371_v19  ;;  %1959 = vmatpush2.msra.mxu0 %v10074_v42  ;;  %v17290_v19 = vld [vmem:[#allocation65_spill] sm:$0xff] }
 0x15c   :  { %2376 = vmatmul.mubr.f32.vlgmr.msra.gmra.mxu1 %v10210_v8  ;;  %2586 = vmatprep.subr.mxu1 %v9031_v6  ;;  %v17296_v8 = vld [vmem:[#allocation81_spill] sm:$0xff] }
 0x15d   :  { %2588 = vmatpush1.msra.mxu1 %v9051_v59  ;;  %2716 = vmatprep.mubr.f32.mxu1 %v17280_v9  ;;  %v17291_v9 = vld [vmem:[#allocation13_spill] sm:$0xff] }
 0x15e   :  { %1961 = vmatprep.subr.mxu0 %v10085_v63  ;;  %2590 = vmatprep.subr.mxu1 %v9069_v15 }
 0x15f   :  { %1963 = vmatpush2.msra.mxu0 %v10098_v18  ;;  %2592 = vmatpush1.msra.mxu1 %v9080_v54 }
 0x160   :  { %1965 = vmatprep.subr.mxu0 %v10109_v1  ;;  %2594 = vmatprep.subr.mxu1 %v9091_v16 }
 0x161   :  { %1967 = vmatpush2.msra.mxu0 %v10122_v44  ;;  %2596 = vmatpush1.msra.mxu1 %v17281_v48 }
 0x162   :  { %1969 = vmatprep.subr.mxu0 %v10132_v55  ;;  %2598 = vmatprep.subr.mxu1 %v17282_v53 }
 0x163   :  { %1971 = vmatpush2.msra.mxu0 %v10142_v33  ;;  %2600 = vmatpush1.msra.mxu1 %v17283_v37 }
 0x164   :  { %1983 = vmatmul.mubr.f32.vlgmr.msra.gmra.mxu0 %v1982_v20  ;;  %2384 = vmatprep.subr.mxu0 %v17284_v56  ;;  %v17293_v20 = vld [vmem:[#allocation14_spill] sm:$0xff] }
 0x165   :  { %2602 = vmatprep.subr.mxu1 %v17285_v14  ;;  %2387 = vmatpush1.msra.mxu0 %v17286_v50 }
 0x166   :  { %2576 = vmatprep.mubr.f32.mxu0 %v17279_v12  ;;  %2604 = vmatpush1.msra.mxu1 %v17287_v25  ;;  %v17297_v12 = vld [vmem:[#allocation16_spill] sm:$0xff] }
 0x167   :  { %2390 = vmatprep.subr.mxu0 %v17288_v32  ;;  %2606 = vmatprep.subr.mxu1 %v17289_v4  ;;  %v17298_v25 = vld [vmem:[#allocation84_spill] sm:$0xff]  ;;  %v17299_v32 = vld [vmem:[#allocation10_spill] sm:$0xff]  ;;  %v17300_v4 = vld [vmem:[#allocation5_spill] sm:$0xff] }
 0x168   :  { %2393 = vmatpush1.msra.mxu0 %v17290_v19  ;;  %2608 = vmatpush1.msra.mxu1 %v17291_v9  ;;  %v17301_v19 = vld [vmem:[#allocation24_spill] sm:$0xff]  ;;  %v17302_v9 = vld [vmem:[#allocation6_spill] sm:$0xff] }
 0x169   :  { %2396 = vmatprep.subr.mxu0 %v17292_v49  ;;  %2610 = vmatprep.subr.mxu1 %v17293_v20  ;;  %v17303_v49 = vld [vmem:[#allocation28_spill] sm:$0xff]  ;;  %v17304_v20 = vld [vmem:[#allocation7_spill] sm:$0xff] }
 0x16a   :  { %2399 = vmatpush1.msra.mxu0 %v17294_v22  ;;  %2612 = vmatpush1.msra.mxu1 %v17295_v43  ;;  %v17305_v43 = vld [vmem:[#allocation9_spill] sm:$0xff] }
 0x16b   :  { %2402 = vmatprep.subr.mxu0 %v17296_v8  ;;  %2614 = vmatprep.subr.mxu1 %v17297_v12  ;;  %v17306_v8 = vld [vmem:[#allocation21_spill] sm:$0xff]  ;;  %v17307_v12 = vld [vmem:[#allocation19_spill] sm:$0xff] }
 0x16c   :  { %2405 = vmatpush1.msra.mxu0 %v17298_v25  ;;  %2616 = vmatpush1.msra.mxu1 %v17299_v32  ;;  %v17308_v25 = vld [vmem:[#allocation30_spill] sm:$0xff]  ;;  %v17309_v32 = vld [vmem:[#allocation20_spill] sm:$0xff] }
 0x16d   :  { %2408 = vmatprep.subr.mxu0 %v17300_v4  ;;  %2618 = vmatprep.subr.mxu1 %v17301_v19  ;;  %v17310_v19 = vld [vmem:[#allocation11_spill] sm:$0xff] }
 0x16e   :  { %2411 = vmatpush1.msra.mxu0 %v17302_v9  ;;  %2620 = vmatpush1.msra.mxu1 %v17303_v49  ;;  %v17311_v9 = vld [vmem:[#allocation32_spill] sm:$0xff]  ;;  %v17312_v49 = vld [vmem:[#allocation17_spill] sm:$0xff] }
 0x16f   :  { %2414 = vmatprep.subr.mxu0 %v17304_v20  ;;  %2622 = vmatprep.subr.mxu1 %v17219_v7  ;;  %v17313_v20 = vld [vmem:[#allocation35_spill] sm:$0xff]  ;;  %v17314_v7 = vld [vmem:[#allocation29_spill] sm:$0xff] }
 0x170   :  { %2417 = vmatpush1.msra.mxu0 %v17305_v43  ;;  %2624 = vmatpush1.msra.mxu1 %v17306_v8  ;;  %v17315_v43 = vld [vmem:[#allocation36_spill] sm:$0xff]  ;;  %v17316_v8 = vld [vmem:[#allocation22_spill] sm:$0xff] }
 0x171   :  { %2420 = vmatprep.subr.mxu0 %v17307_v12  ;;  %2626 = vmatprep.subr.mxu1 %v17308_v25  ;;  %v17317_v12 = vld [vmem:[#allocation40_spill] sm:$0xff]  ;;  %v17318_v25 = vld [vmem:[#allocation23_spill] sm:$0xff] }
 0x172   :  { %2423 = vmatpush1.msra.mxu0 %v17309_v32  ;;  %2628 = vmatpush1.msra.mxu1 %v17231_v57  ;;  %v17319_v32 = vld [vmem:[#allocation44_spill] sm:$0xff]  ;;  %v17320_v57 = vld [vmem:[#allocation25_spill] sm:$0xff] }
 0x173   :  { %2426 = vmatprep.subr.mxu0 %v17310_v19  ;;  %2630 = vmatprep.subr.mxu1 %v17311_v9  ;;  %v17321_v19 = vld [vmem:[#allocation45_spill] sm:$0xff]  ;;  %v17322_v9 = vld [vmem:[#allocation26_spill] sm:$0xff] }
 0x174   :  { %2429 = vmatpush1.msra.mxu0 %v17312_v49  ;;  %2632 = vmatpush1.msra.mxu1 %v17313_v20  ;;  %v17323_v49 = vld [vmem:[#allocation46_spill] sm:$0xff]  ;;  %v17324_v20 = vld [vmem:[#allocation27_spill] sm:$0xff] }
 0x175   :  { %2432 = vmatprep.subr.mxu0 %v17314_v7  ;;  %2634 = vmatprep.subr.mxu1 %v17315_v43  ;;  %v17325_v7 = vld [vmem:[#allocation47_spill] sm:$0xff]  ;;  %v17326_v43 = vld [vmem:[#allocation33_spill] sm:$0xff] }
 0x176   :  { %2435 = vmatpush1.msra.mxu0 %v17316_v8  ;;  %2636 = vmatpush1.msra.mxu1 %v17317_v12  ;;  %v17327_v8 = vld [vmem:[#allocation48_spill] sm:$0xff]  ;;  %v17328_v12 = vld [vmem:[#allocation34_spill] sm:$0xff] }
 0x177   :  { %2438 = vmatprep.subr.mxu0 %v17318_v25  ;;  %2638 = vmatprep.subr.mxu1 %v17319_v32  ;;  %v17329_v25 = vld [vmem:[#allocation42_spill] sm:$0xff]  ;;  %v17330_v32 = vld [vmem:[#allocation37_spill] sm:$0xff] }
 0x178   :  { %2441 = vmatpush1.msra.mxu0 %v17320_v57  ;;  %2640 = vmatpush1.msra.mxu1 %v17321_v19  ;;  %v17331_v57 = vld [vmem:[#allocation56_spill] sm:$0xff]  ;;  %v17332_v19 = vld [vmem:[#allocation38_spill] sm:$0xff] }
 0x179   :  { %2444 = vmatprep.subr.mxu0 %v17322_v9  ;;  %2642 = vmatprep.subr.mxu1 %v17323_v49  ;;  %v17333_v9 = vld [vmem:[#allocation60_spill] sm:$0xff]  ;;  %v17334_v49 = vld [vmem:[#allocation39_spill] sm:$0xff] }
 0x17a   :  { %2447 = vmatpush1.msra.mxu0 %v17324_v20  ;;  %2644 = vmatpush1.msra.mxu1 %v17325_v7  ;;  %v17335_v20 = vld [vmem:[#allocation50_spill] sm:$0xff]  ;;  %v17336_v7 = vld [vmem:[#allocation41_spill] sm:$0xff] }
 0x17b   :  { %2450 = vmatprep.subr.mxu0 %v17326_v43  ;;  %2646 = vmatprep.subr.mxu1 %v17327_v8  ;;  %v17337_v8 = vld [vmem:[#allocation51_spill] sm:$0xff] }
 0x17c   :  { %2453 = vmatpush1.msra.mxu0 %v17328_v12  ;;  %2648 = vmatpush1.msra.mxu1 %v17329_v25  ;;  %v17338_v12 = vld [vmem:[#allocation62_spill] sm:$0xff]  ;;  %v17339_v25 = vld [vmem:[#allocation52_spill] sm:$0xff] }
 0x17d   :  { %2456 = vmatprep.subr.mxu0 %v17330_v32  ;;  %2650 = vmatprep.subr.mxu1 %v17331_v57  ;;  %v17340_v57 = vld [vmem:[#allocation43_spill] sm:$0xff] }
 0x17e   :  { %2459 = vmatpush1.msra.mxu0 %v17332_v19  ;;  %2652 = vmatpush2.msra.mxu1 %v17333_v9  ;;  %v17341_v9 = vld [vmem:[#allocation49_spill] sm:$0xff] }
 0x17f   :  { %2462 = vmatprep.subr.mxu0 %v17334_v49  ;;  %2654 = vmatprep.subr.mxu1 %v17335_v20  ;;  %v17342_v20 = vld [vmem:[#allocation61_spill] sm:$0xff] }
 0x180   :  { %2465 = vmatpush1.msra.mxu0 %v17336_v7  ;;  %2656 = vmatpush2.msra.mxu1 %v9694_v40  ;;  %v17343_v40 = vld [vmem:[#allocation63_spill] sm:$0xff] }
 0x181   :  { %2468 = vmatprep.subr.mxu0 %v17337_v8  ;;  %2658 = vmatprep.subr.mxu1 %v17338_v12  ;;  %v17344_v12 = vld [vmem:[#allocation64_spill] sm:$0xff] }
 0x182   :  { %2471 = vmatpush1.msra.mxu0 %v17339_v25  ;;  %2660 = vmatpush2.msra.mxu1 %v9726_v27  ;;  %v17345_v27 = vld [vmem:[#allocation68_spill] sm:$0xff] }
 0x183   :  { %2474 = vmatprep.subr.mxu0 %v17340_v57  ;;  %2662 = vmatprep.subr.mxu1 %v9743_v5  ;;  %v17346_v5 = vld [vmem:[#allocation76_spill] sm:$0xff] }
 0x184   :  { %2477 = vmatpush1.msra.mxu0 %v17341_v9  ;;  %2664 = vmatpush2.msra.mxu1 %v9756_v0  ;;  %v17347_v0 = vld [vmem:[#allocation78_spill] sm:$0xff] }
 0x185   :  { %2480 = vmatprep.subr.mxu0 %v17342_v20  ;;  %2666 = vmatprep.subr.mxu1 %v9773_v41  ;;  %v17348_v41 = vld [vmem:[#allocation80_spill] sm:$0xff] }
 0x186   :  { %2483 = vmatpush2.msra.mxu0 %v17343_v40  ;;  %2668 = vmatpush2.msra.mxu1 %v9786_v30  ;;  %v17349_v30 = vld [vmem:[#allocation75_spill] sm:$0xff] }
 0x187   :  { %2486 = vmatprep.subr.mxu0 %v17344_v12  ;;  %2670 = vmatprep.subr.mxu1 %v9799_v10  ;;  %v17350_v10 = vld [vmem:[#allocation91_spill] sm:$0xff] }
 0x188   :  { %2489 = vmatpush2.msra.mxu0 %v17345_v27  ;;  %2672 = vmatpush2.msra.mxu1 %v9816_v11  ;;  %v17351_v11 = vld [vmem:[#allocation93_spill] sm:$0xff] }
 0x189   :  { %2492 = vmatprep.subr.mxu0 %v17346_v5  ;;  %2674 = vmatprep.subr.mxu1 %v9829_v58  ;;  %v17352_v58 = vld [vmem:[#allocation95_spill] sm:$0xff] }
 0x18a   :  { %2495 = vmatpush2.msra.mxu0 %v17347_v0  ;;  %2676 = vmatpush2.msra.mxu1 %v9843_v46  ;;  %v17353_v46 = vld [vmem:[#allocation97_spill] sm:$0xff] }
 0x18b   :  { %2498 = vmatprep.subr.mxu0 %v17348_v41  ;;  %2678 = vmatprep.subr.mxu1 %v9860_v47  ;;  %v17354_v47 = vld [vmem:[#allocation98_spill] sm:$0xff] }
 0x18c   :  { %2501 = vmatpush2.msra.mxu0 %v17349_v30  ;;  %2680 = vmatpush2.msra.mxu1 %v9887_v52  ;;  %v17355_v52 = vld [vmem:[#allocation100_spill] sm:$0xff] }
 0x18d   :  { %2504 = vmatprep.subr.mxu0 %v17350_v10  ;;  %2682 = vmatprep.subr.mxu1 %v9931_v13  ;;  %v17356_v13 = vld [vmem:[#allocation101_spill] sm:$0xff] }
 0x18e   :  { %2507 = vmatpush2.msra.mxu0 %v17351_v11  ;;  %2684 = vmatpush2.msra.mxu1 %v9962_v24  ;;  %v17357_v24 = vld [vmem:[#allocation103_spill] sm:$0xff] }
 0x18f   :  { %2510 = vmatprep.subr.mxu0 %v17352_v58  ;;  %2686 = vmatprep.subr.mxu1 %v9977_v45  ;;  %v17358_v45 = vld [vmem:[#allocation106_spill] sm:$0xff] }
 0x190   :  { %2513 = vmatpush2.msra.mxu0 %v17353_v46  ;;  %2688 = vmatpush2.msra.mxu1 %v9994_v35  ;;  %v17359_v35 = vld [vmem:[#allocation109_spill] sm:$0xff] }
 0x191   :  { %2516 = vmatprep.subr.mxu0 %v17354_v47  ;;  %2690 = vmatprep.subr.mxu1 %v10007_v28  ;;  %v17360_v28 = vld [vmem:[#allocation110_spill] sm:$0xff] }
 0x192   :  { %2519 = vmatpush2.msra.mxu0 %v17355_v52  ;;  %2692 = vmatpush2.msra.mxu1 %v10022_v39 }
 0x193   :  { %2522 = vmatprep.subr.mxu0 %v17356_v13  ;;  %2694 = vmatprep.subr.mxu1 %v10037_v31 }
 0x194   :  { %2525 = vmatpush2.msra.mxu0 %v17357_v24  ;;  %2696 = vmatpush2.msra.mxu1 %v10048_v26 }
 0x195   :  { %2528 = vmatprep.subr.mxu0 %v17358_v45  ;;  %2698 = vmatprep.subr.mxu1 %v10063_v23 }
 0x196   :  { %2531 = vmatpush2.msra.mxu0 %v17359_v35  ;;  %2700 = vmatpush2.msra.mxu1 %v10074_v42  ;;  %v17361_v42 = vld [vmem:[#allocation113_spill] sm:$0xff] }
 0x197   :  { %2534 = vmatprep.subr.mxu0 %v17360_v28  ;;  %2702 = vmatprep.subr.mxu1 %v10085_v63  ;;  %v17362_v63 = vld [vmem:[#allocation115_spill] sm:$0xff] }
 0x198   :  { %2537 = vmatpush2.msra.mxu0 %v10046_v60  ;;  %2704 = vmatpush2.msra.mxu1 %v10098_v18  ;;  %v17363_v18 = vand.u32 4294901760, %v10220_v62 }
 0x199   :  { %2540 = vmatprep.subr.mxu0 %v10061_v29  ;;  %2706 = vmatprep.subr.mxu1 %v10109_v1 }
 0x19a   :  { %2543 = vmatpush2.msra.mxu0 %v10072_v34  ;;  %2708 = vmatpush2.msra.mxu1 %v10122_v44  ;;  %v17364_v44 = vld [vmem:[#allocation69_spill] sm:$0xff] }
 0x19b   :  { %2546 = vmatprep.subr.mxu0 %v10083_v17  ;;  %2710 = vmatprep.subr.mxu1 %v10132_v55 }
 0x19c   :  { %2549 = vmatpush2.msra.mxu0 %v17361_v42  ;;  %2712 = vmatpush2.msra.mxu1 %v10142_v33 }
 0x19d   :  { %2552 = vmatprep.subr.mxu0 %v17362_v63  ;;  %2720 = vmatmul.mubr.f32.vlgmr.msra.gmra.mxu1 %v17363_v18  ;;  %v17370_v18 = vld [vmem:[#allocation3_spill] sm:$0xff] }
 0x19e   :  { %2992 = vmatprep.subr.mxu1 %v9031_v6  ;;  %2555 = vmatpush2.msra.mxu0 %v10120_v2  ;;  %v17365_v6 = vand.u32 4294901760, %v17284_v56 }
 0x19f   :  { %2994 = vmatpush1.msra.mxu1 %v9051_v59  ;;  %3120 = vmatprep.mubr.f32.mxu1 %v17364_v44  ;;  %v17366_v59 = vand.u32 4294901760, %v17286_v50  ;;  %v17377_v50 = vand.u32 4294901760, %v17294_v22  ;;  %v17388_v22 = vld [vmem:[#allocation24_spill] sm:$0xff] }
 0x1a0   :  { %2558 = vmatprep.subr.mxu0 %v10130_v51  ;;  %2996 = vmatprep.subr.mxu1 %v9069_v15  ;;  %v17367_v15 = vld [vmem:[#allocation82_spill] sm:$0xff] }
 0x1a1   :  { %2561 = vmatpush2.msra.mxu0 %v10140_v38  ;;  %2998 = vmatpush1.msra.mxu1 %v9080_v54  ;;  %v17368_v54 = vld [vmem:[#allocation58_spill] sm:$0xff] }
 0x1a2   :  { %2564 = vmatprep.subr.mxu0 %v10150_v3  ;;  %3000 = vmatprep.subr.mxu1 %v9091_v16  ;;  %v17369_v16 = vand.u32 4294901760, %v17368_v54  ;;  %v17416_v3 = vld [vmem:[#allocation22_spill] sm:$0xff] }
 0x1a3   :  { %2567 = vmatpush2.msra.mxu0 %v10158_v36  ;;  %3002 = vmatpush1.msra.mxu1 %v17281_v48  ;;  %v17371_v48 = vld [vmem:[#allocation65_spill] sm:$0xff]  ;;  %v17409_v36 = vld [vmem:[#allocation32_spill] sm:$0xff] }
 0x1a4   :  { %2570 = vmatprep.subr.mxu0 %v10166_v21  ;;  %3004 = vmatprep.subr.mxu1 %v17282_v53  ;;  %v17372_v53 = vand.u32 4294901760, %v17371_v48 }
 0x1a5   :  { %2573 = vmatpush2.msra.mxu0 %v10174_v61  ;;  %3006 = vmatpush1.msra.mxu1 %v17283_v37  ;;  %v17374_v37 = vld [vmem:[#allocation70_spill] sm:$0xff] }
 0x1a6   :  { %2579 = vmatmul.mubr.f32.vlgmr.msra.gmra.mxu0 %v10220_v62  ;;  %2729 = vmatprep.subr.mxu0 %v17365_v6  ;;  %v17373_v62 = vld [vmem:[#allocation13_spill] sm:$0xff]  ;;  %v17375_v56 = vand.u32 4294901760, %v17374_v37 }
 0x1a7   :  { %3008 = vmatprep.subr.mxu1 %v17285_v14  ;;  %2733 = vmatpush1.msra.mxu0 %v17366_v59  ;;  %v17376_v14 = vld [vmem:[#allocation14_spill] sm:$0xff]  ;;  %v17379_v6 = vld [vmem:[#allocation81_spill] sm:$0xff] }
 0x1a8   :  { %2983 = vmatprep.mubr.f32.mxu0 %v17364_v44  ;;  %3010 = vmatpush1.msra.mxu1 %v17367_v15  ;;  %v17378_v44 = vld [vmem:[#allocation15_spill] sm:$0xff]  ;;  %v17380_v59 = vand.u32 4294901760, %v17379_v6  ;;  %v17381_v15 = vld [vmem:[#allocation85_spill] sm:$0xff] }
 0x1a9   :  { %2737 = vmatprep.subr.mxu0 %v17369_v16  ;;  %3012 = vmatprep.subr.mxu1 %v17370_v18  ;;  %v108_v54 = vadd.s32 640, %v17381_v15  ;;  %v17382_v16 = vld [vmem:[#allocation16_spill] sm:$0xff]  ;;  %v17387_v37 = vld [vmem:[#allocation89_spill] sm:$0xff] }
 0x1aa   :  { %2741 = vmatpush1.msra.mxu0 %v17372_v53  ;;  %3014 = vmatpush1.msra.mxu1 %v17373_v62  ;;  %v17383_v18 = vld [vmem:[#allocation84_spill] sm:$0xff]  ;;  %v17385_v53 = vld [vmem:[#allocation10_spill] sm:$0xff]  ;;  %v17386_v62 = vand.u32 4294901760, %v17300_v4  ;;  %v17398_v4 = vmov 0.0  }
 0x1ab   :  { %2745 = vmatprep.subr.mxu0 %v17375_v56  ;;  %3016 = vmatprep.subr.mxu1 %v17376_v14  ;;  %v17384_v48 = vand.u32 4294901760, %v17383_v18  ;;  %vm146_vm12 = vcmp.eq.s32.totalorder %v17387_v37, %v108_v54  ;;  %v17389_v56 = vld [vmem:[#allocation6_spill] sm:$0xff]  ;;  %v17396_v18 = vld [vmem:[#allocation9_spill] sm:$0xff] }
 0x1ac   :  { %2749 = vmatpush1.msra.mxu0 %v17377_v50  ;;  %3018 = vmatpush1.msra.mxu1 %v17378_v44  ;;  %v17390_v14 = vand.u32 4294901760, %v17389_v56  ;;  %v17391_v50 = vld [vmem:[#allocation28_spill] sm:$0xff]  ;;  %v17392_v44 = vld [vmem:[#allocation7_spill] sm:$0xff] }
 0x1ad   :  { %2753 = vmatprep.subr.mxu0 %v17380_v59  ;;  %3020 = vmatprep.subr.mxu1 %v17382_v16  ;;  %v17393_v6 = vand.u32 4294901760, %v17392_v44  ;;  %v17394_v59 = vld [vmem:[#allocation87_spill] sm:$0xff]  ;;  %v17395_v16 = vld [vmem:[#allocation18_spill] sm:$0xff]  ;;  %v17402_v56 = vld [vmem:[#allocation88_spill] sm:$0xff] }
 0x1ae   :  { %2757 = vmatpush1.msra.mxu0 %v17384_v48  ;;  %3022 = vmatpush1.msra.mxu1 %v17385_v53  ;;  %vm119_vm13 = vcmp.eq.s32.totalorder %v17394_v59, %v108_v54  ;;  %v17397_v48 = vand.u32 4294901760, %v17396_v18  ;;  %v7872_v53 = vsel %vm146_vm12, 1.0, %v17398_v4  ;;  %vm181_vm14 = vcmp.eq.s32.totalorder %v17402_v56, %v108_v54  ;;  %v17407_v18 = vld [vmem:[#allocation11_spill] sm:$0xff] }
 0x1af   :  { %2761 = vmatprep.subr.mxu0 %v17386_v62  ;;  %3024 = vmatprep.subr.mxu1 %v17388_v22  ;;  %v17399_v62 = vld [vmem:[#allocation21_spill] sm:$0xff]  ;;  %v17400_v22 = vld [vmem:[#allocation19_spill] sm:$0xff] }
 0x1b0   :  { %2765 = vmatpush1.msra.mxu0 %v17390_v14  ;;  %3026 = vmatpush1.msra.mxu1 %v17391_v50  ;;  %v17401_v61 = vand.u32 4294901760, %v17400_v22  ;;  %v17403_v14 = vld [vmem:[#allocation30_spill] sm:$0xff]  ;;  %v17404_v50 = vld [vmem:[#allocation20_spill] sm:$0xff]  ;;  %v17412_v54 = vld [vmem:[#allocation35_spill] sm:$0xff] }
 0x1b1   :  { %2769 = vmatprep.subr.mxu0 %v17393_v6  ;;  %3028 = vmatprep.subr.mxu1 %v17395_v16  ;;  %v17405_v44 = vand.u32 4294901760, %v17404_v50  ;;  %v7864_v6 = vsel %vm119_vm13, 1.0, %v17398_v4  ;;  %v17406_v16 = vld [vmem:[#allocation31_spill] sm:$0xff] }
 0x1b2   :  { %2773 = vmatpush1.msra.mxu0 %v17397_v48  ;;  %3030 = vmatpush1.msra.mxu1 %v17399_v62  ;;  %v17408_v48 = vand.u32 4294901760, %v17407_v18  ;;  %v170_v21 = vadd.f32 %v7872_v53, %v7864_v6  ;;  %v17410_v62 = vld [vmem:[#allocation17_spill] sm:$0xff]  ;;  %v17418_v18 = vld [vmem:[#allocation40_spill] sm:$0xff]  ;;  %v17419_v53 = vld [vmem:[#allocation23_spill] sm:$0xff] }
 0x1b3   :  { %2777 = vmatprep.subr.mxu0 %v17401_v61  ;;  %3032 = vmatprep.subr.mxu1 %v17403_v14  ;;  %v17411_v22 = vand.u32 4294901760, %v17410_v62  ;;  %v7880_v61 = vsel %vm181_vm14, 1.0, %v17398_v4  ;;  %v17413_v14 = vld [vmem:[#allocation29_spill] sm:$0xff]  ;;  %v17420_v6 = vand.u32 4294901760, %v17419_v53  ;;  %v17431_v53 = vand.u32 4294901760, %v17326_v43 }
 0x1b4   :  { %2781 = vmatpush1.msra.mxu0 %v17405_v44  ;;  %3034 = vmatpush1.msra.mxu1 %v17406_v16  ;;  %v17414_v50 = vand.u32 4294901760, %v17413_v14  ;;  %v17415_v44 = vld [vmem:[#allocation36_spill] sm:$0xff]  ;;  %v17417_v16 = vand.u32 4294901760, %v17416_v3  ;;  %v17422_v62 = vld [vmem:[#allocation25_spill] sm:$0xff]  ;;  %v17425_v14 = vld [vmem:[#allocation26_spill] sm:$0xff]  ;;  %v17439_v43 = vand.u32 4294901760, %v17332_v19 }
 0x1b5   :  { %2785 = vmatprep.subr.mxu0 %v17408_v48  ;;  %3036 = vmatprep.subr.mxu1 %v17409_v36  ;;  %v205_v36 = vadd.f32 %v7880_v61, %v170_v21  ;;  %v17421_v48 = vld [vmem:[#allocation44_spill] sm:$0xff]  ;;  %v17428_v3 = vld [vmem:[#allocation27_spill] sm:$0xff]  ;;  %v17444_v19 = vand.u32 4294901760, %v17336_v7  ;;  %v107_v7 = vadd.s32 512, %v17381_v15 }
 0x1b6   :  { %2789 = vmatpush1.msra.mxu0 %v17411_v22  ;;  %3038 = vmatpush1.msra.mxu1 %v17412_v54  ;;  %v17423_v22 = vand.u32 4294901760, %v17422_v62  ;;  %v17424_v54 = vld [vmem:[#allocation45_spill] sm:$0xff]  ;;  %v17433_v61 = vld [vmem:[#allocation48_spill] sm:$0xff]  ;;  %v17436_v62 = vld [vmem:[#allocation42_spill] sm:$0xff] }
 0x1b7   :  { %2793 = vmatprep.subr.mxu0 %v17414_v50  ;;  %3040 = vmatprep.subr.mxu1 %v17415_v44  ;;  %v17426_v50 = vand.u32 4294901760, %v17425_v14  ;;  %v17427_v44 = vld [vmem:[#allocation46_spill] sm:$0xff]  ;;  %v10458_v21 = vand.u32 4294901760, %v205_v36  ;;  %v17438_v14 = vld [vmem:[#allocation56_spill] sm:$0xff]  ;;  %vm145_vm15 = vcmp.eq.s32.totalorder %v17387_v37, %v107_v7  ;;  %vm118_vm0 = vcmp.eq.s32.totalorder %v17394_v59, %v107_v7  ;;  %v453_v15 = vld [vmem:[%s15589_s2 + $0x4a8] sm:$0xff] }
 0x1b8   :  { %2797 = vmatpush1.msra.mxu0 %v17417_v16  ;;  %3042 = vmatpush1.msra.mxu1 %v17418_v18  ;;  %v17429_v16 = vand.u32 4294901760, %v17428_v3  ;;  %v17430_v18 = vld [vmem:[#allocation47_spill] sm:$0xff]  ;;  %v17441_v3 = vand.u32 4294901760, %v17334_v49  ;;  %v17445_v49 = vld [vmem:[#allocation53_spill] sm:$0xff]  ;;  %vm180_vm1 = vcmp.eq.s32.totalorder %v17402_v56, %v107_v7  ;;  %v7863_v37 = vsel %vm118_vm0, 1.0, %v17398_v4  ;;  %v17485_v7 = vld [vmem:[#allocation94_spill] sm:$0xff] }
 0x1b9   :  { %2801 = vmatprep.subr.mxu0 %v17420_v6  ;;  %3044 = vmatprep.subr.mxu1 %v17421_v48  ;;  %17432 = vst [vmem:[#allocation83_spill] sm:$0xff] %v10458_v21  ;;  %v17434_v6 = vld [vmem:[#allocation34_spill] sm:$0xff]  ;;  %v10603_v59 = vsel %vm180_vm1, 1.0, %v17398_v4  ;;  %v449_v56 = vld [vmem:[%s15589_s2 + $0x488] sm:$0xff] }
 0x1ba   :  { %2805 = vmatpush1.msra.mxu0 %v17423_v22  ;;  %3046 = vmatpush1.msra.mxu1 %v17424_v54  ;;  %v17435_v48 = vand.u32 4294901760, %v17434_v6  ;;  %v17437_v22 = vand.u32 4294901760, %v17330_v32  ;;  %v463_v54 = vld [vmem:[%s15589_s2 + $0x4f8] sm:$0xff]  ;;  %v461_v32 = vld [vmem:[%s15589_s2 + $0x4e8] sm:$0xff]  ;;  %v17446_v6 = vand.u32 4294901760, %v17337_v8  ;;  %v458_v8 = vld [vmem:[%s15589_s2 + $0x4d0] sm:$0xff] }
 0x1bb   :  { %2809 = vmatprep.subr.mxu0 %v17426_v50  ;;  %3048 = vmatprep.subr.mxu1 %v17427_v44  ;;  %v462_v50 = vld [vmem:[%s15589_s2 + $0x4f0] sm:$0xff]  ;;  %17479 = vst [vmem:[#allocation43_spill] sm:$0xff] %v10603_v59  ;;  %v17500_v59 = vand.u32 4294901760, %v17351_v11 }
 0x1bc   :  { %2813 = vmatpush1.msra.mxu0 %v17429_v16  ;;  %3050 = vmatpush1.msra.mxu1 %v17430_v18  ;;  %v17440_v44 = vld [vmem:[#allocation60_spill] sm:$0xff]  ;;  %v10482_v16 = vsub.f32 %v205_v36, %v10458_v21  ;;  %v17443_v18 = vld [vmem:[#allocation50_spill] sm:$0xff]  ;;  %v459_v36 = vld [vmem:[%s15589_s2 + $0x4d8] sm:$0xff] }
 0x1bd   :  { %2817 = vmatprep.subr.mxu0 %v17431_v53  ;;  %3052 = vmatprep.subr.mxu1 %v17433_v61  ;;  %v10487_v53 = vand.u32 4294901760, %v463_v54  ;;  %v460_v61 = vld [vmem:[%s15589_s2 + $0x4e0] sm:$0xff] }
 0x1be   :  { %2821 = vmatpush1.msra.mxu0 %v17435_v48  ;;  %3054 = vmatpush1.msra.mxu1 %v17436_v62  ;;  %17442 = vst [vmem:[#allocation4_spill] sm:$0xff] %v10482_v16  ;;  %v10495_v48 = vand.u32 4294901760, %v462_v50  ;;  %v17448_v62 = vld [vmem:[#allocation62_spill] sm:$0xff] }
 0x1bf   :  { %2825 = vmatprep.subr.mxu0 %v17437_v22  ;;  %3056 = vmatprep.subr.mxu1 %v17438_v14  ;;  %v17449_v22 = vand.u32 4294901760, %v17339_v25  ;;  %v10504_v14 = vand.u32 4294901760, %v461_v32  ;;  %v17467_v25 = vand.u32 4294901760, %v17344_v12  ;;  %v17471_v12 = vld [vmem:[#allocation74_spill] sm:$0xff] }
 0x1c0   :  { %2829 = vmatpush1.msra.mxu0 %v17439_v43  ;;  %3058 = vmatpush2.msra.mxu1 %v17440_v44  ;;  %17447 = vst [vmem:[#allocation57_spill] sm:$0xff] %v10495_v48  ;;  %v17451_v43 = vld [vmem:[#allocation55_spill] sm:$0xff]  ;;  %v17452_v44 = vand.u32 4294901760, %v17340_v57  ;;  %v456_v57 = vld [vmem:[%s15589_s2 + $0x4c0] sm:$0xff] }
 0x1c1   :  { %2833 = vmatprep.subr.mxu0 %v17441_v3  ;;  %3060 = vmatprep.subr.mxu1 %v17443_v18  ;;  %17450 = vst [vmem:[#allocation59_spill] sm:$0xff] %v10504_v14  ;;  %v10512_v3 = vand.u32 4294901760, %v460_v61  ;;  %v457_v18 = vld [vmem:[%s15589_s2 + $0x4c8] sm:$0xff] }
 0x1c2   :  { %2837 = vmatpush1.msra.mxu0 %v17444_v19  ;;  %3062 = vmatpush2.msra.mxu1 %v17445_v49  ;;  %v17454_v19 = vld [vmem:[#allocation67_spill] sm:$0xff]  ;;  %v17455_v49 = vand.u32 4294901760, %v17341_v9  ;;  %v10536_v9 = vand.u32 4294901760, %v458_v8 }
 0x1c3   :  { %2841 = vmatprep.subr.mxu0 %v17446_v6  ;;  %3064 = vmatprep.subr.mxu1 %v17448_v62  ;;  %17453 = vst [vmem:[#allocation66_spill] sm:$0xff] %v10512_v3  ;;  %v10522_v6 = vsub.f32 %v463_v54, %v10487_v53  ;;  %v10524_v62 = vand.u32 4294901760, %v459_v36  ;;  %v455_v54 = vld [vmem:[%s15589_s2 + $0x4b8] sm:$0xff] }
 0x1c4   :  { %2845 = vmatpush1.msra.mxu0 %v17449_v22  ;;  %3066 = vmatpush2.msra.mxu1 %v17451_v43  ;;  %v17458_v22 = vld [vmem:[#allocation72_spill] sm:$0xff]  ;;  %v17459_v43 = vand.u32 4294901760, %v17342_v20  ;;  %17461 = vst [vmem:[#allocation71_spill] sm:$0xff] %v10536_v9  ;;  %v10548_v20 = vand.u32 4294901760, %v457_v18 }
 0x1c5   :  { %2849 = vmatprep.subr.mxu0 %v17452_v44  ;;  %3068 = vmatprep.subr.mxu1 %v17454_v19  ;;  %17456 = vst [vmem:[#allocation2_spill] sm:$0xff] %v10522_v6  ;;  %17457 = vst [vmem:[#allocation73_spill] sm:$0xff] %v10524_v62  ;;  %v10534_v44 = vsub.f32 %v462_v50, %v10495_v48  ;;  %v17462_v19 = vld [vmem:[#allocation77_spill] sm:$0xff]  ;;  %v454_v50 = vld [vmem:[%s15589_s2 + $0x4b0] sm:$0xff] }
 0x1c6   :  { %2853 = vmatpush1.msra.mxu0 %v17455_v49  ;;  %3070 = vmatpush2.msra.mxu1 %v17458_v22  ;;  %v17463_v49 = vand.u32 4294901760, %v17343_v40  ;;  %v10546_v22 = vsub.f32 %v461_v32, %v10504_v14  ;;  %17465 = vst [vmem:[#allocation33_spill] sm:$0xff] %v10548_v20  ;;  %v10560_v40 = vand.u32 4294901760, %v456_v57  ;;  %v17470_v32 = vand.u32 4294901760, %v10482_v16  ;;  %v17475_v14 = vld [vmem:[#allocation90_spill] sm:$0xff] }
 0x1c7   :  { %2857 = vmatprep.subr.mxu0 %v17459_v43  ;;  %17460 = vst [vmem:[#allocation54_spill] sm:$0xff] %v10534_v44  ;;  %3072 = vmatprep.subr.mxu1 %v17462_v19  ;;  %v17466_v43 = vld [vmem:[#allocation79_spill] sm:$0xff]  ;;  %v10558_v19 = vsub.f32 %v460_v61, %v10512_v3  ;;  %v17472_v61 = vand.u32 4294901760, %v17345_v27  ;;  %v10578_v3 = vsub.f32 %v459_v36, %v10524_v62  ;;  %v17476_v27 = vand.u32 4294901760, %v17346_v5 }
 0x1c8   :  { %2861 = vmatpush2.msra.mxu0 %v17463_v49  ;;  %17464 = vst [vmem:[#allocation5_spill] sm:$0xff] %v10546_v22  ;;  %3074 = vmatpush2.msra.mxu1 %v17466_v43  ;;  %17469 = vst [vmem:[#allocation38_spill] sm:$0xff] %v10560_v40  ;;  %v10565_v49 = vsub.f32 %v10482_v16, %v17470_v32  ;;  %v7871_v43 = vsel %vm145_vm15, 1.0, %v17398_v4  ;;  %v10580_v32 = vand.u32 4294901760, %v455_v54  ;;  %v452_v16 = vld [vmem:[%s15589_s2 + $0x4a0] sm:$0xff]  ;;  %v17481_v5 = vand.u32 4294901760, %v17347_v0 }
 0x1c9   :  { %2865 = vmatprep.subr.mxu0 %v17467_v25  ;;  %17468 = vst [vmem:[#allocation37_spill] sm:$0xff] %v10558_v19  ;;  %3076 = vmatprep.subr.mxu1 %v17471_v12  ;;  %17473 = vst [vmem:[#allocation39_spill] sm:$0xff] %v10578_v3  ;;  %v10593_v36 = vsub.f32 %v458_v8, %v10536_v9  ;;  %v451_v25 = vld [vmem:[%s15589_s2 + $0x498] sm:$0xff]  ;;  %v10610_v8 = vsub.f32 %v457_v18, %v10548_v20  ;;  %v10612_v12 = vand.u32 4294901760, %v453_v15  ;;  %v450_v9 = vld [vmem:[%s15589_s2 + $0x490] sm:$0xff] }
 0x1ca   :  { %2869 = vmatpush2.msra.mxu0 %v17472_v61  ;;  %17474 = vst [vmem:[#allocation41_spill] sm:$0xff] %v10580_v32  ;;  %3078 = vmatpush2.msra.mxu1 %v17475_v14  ;;  %v10595_v61 = vand.u32 4294901760, %v454_v50  ;;  %v17480_v14 = vld [vmem:[#allocation92_spill] sm:$0xff]  ;;  %v10617_v62 = vadd.f32 %v7871_v43, %v7863_v37  ;;  %v17490_v43 = vand.u32 4294901760, %v17349_v30  ;;  %v10644_v18 = vand.u32 4294901760, %v451_v25  ;;  %v448_v0 = vld [vmem:[%s15589_s2 + $0x480] sm:$0xff] }
 0x1cb   :  { %2873 = vmatprep.subr.mxu0 %v17476_v27  ;;  %17477 = vst [vmem:[#allocation51_spill] sm:$0xff] %v10593_v36  ;;  %3080 = vmatprep.subr.mxu1 %v17480_v14  ;;  %17482 = vst [vmem:[#allocation49_spill] sm:$0xff] %v10610_v8  ;;  %v17486_v14 = vand.u32 4294901760, %v17348_v41  ;;  %v10627_v27 = vand.u32 4294901760, %v452_v16  ;;  %v17489_v37 = vld [vmem:[#allocation96_spill] sm:$0xff]  ;;  %v17491_v41 = vand.u32 4294901760, %v10522_v6 }
 0x1cc   :  { %17478 = vst [vmem:[#allocation52_spill] sm:$0xff] %v10595_v61  ;;  %2877 = vmatpush2.msra.mxu0 %v17481_v5  ;;  %17483 = vst [vmem:[#allocation61_spill] sm:$0xff] %v10612_v12  ;;  %3082 = vmatpush2.msra.mxu1 %v17485_v7  ;;  %v10624_v5 = vsub.f32 %v456_v57, %v10560_v40  ;;  %v17495_v30 = vand.u32 4294901760, %v17350_v10  ;;  %v10661_v4 = vand.u32 4294901760, %v450_v9  ;;  %v17501_v10 = vand.u32 4294901760, %v10546_v22 }
 0x1cd   :  { %17484 = vst [vmem:[#allocation63_spill] sm:$0xff] %v10617_v62  ;;  %2881 = vmatprep.subr.mxu0 %v17486_v14  ;;  %17488 = vst [vmem:[#allocation68_spill] sm:$0xff] %v10627_v27  ;;  %3084 = vmatprep.subr.mxu1 %v17489_v37  ;;  %v10638_v7 = vsub.f32 %v10522_v6, %v17491_v41  ;;  %v10642_v14 = vsub.f32 %v455_v54, %v10580_v32  ;;  %v17494_v37 = vld [vmem:[#allocation99_spill] sm:$0xff]  ;;  %v17499_v6 = vld [vmem:[#allocation102_spill] sm:$0xff]  ;;  %v10675_v57 = vand.u32 4294901760, %v449_v56 }
 0x1ce   :  { %17487 = vst [vmem:[#allocation64_spill] sm:$0xff] %v10624_v5  ;;  %2885 = vmatpush2.msra.mxu0 %v17490_v43  ;;  %17493 = vst [vmem:[#allocation78_spill] sm:$0xff] %v10644_v18  ;;  %3086 = vmatpush2.msra.mxu1 %v17494_v37  ;;  %v17496_v43 = vand.u32 4294901760, %v10534_v44  ;;  %v10659_v54 = vsub.f32 %v454_v50, %v10595_v61  ;;  %v10669_v37 = vsub.f32 %v10546_v22, %v17501_v10  ;;  %v17504_v50 = vld [vmem:[#allocation104_spill] sm:$0xff] }
 0x1cf   :  { %17492 = vst [vmem:[#allocation76_spill] sm:$0xff] %v10642_v14  ;;  %2889 = vmatprep.subr.mxu0 %v17495_v30  ;;  %17498 = vst [vmem:[#allocation75_spill] sm:$0xff] %v10661_v4  ;;  %3088 = vmatprep.subr.mxu1 %v17499_v6  ;;  %v17506_v11 = vand.u32 4294901760, %v10558_v19  ;;  %v10687_v10 = vsub.f32 %v452_v16, %v10627_v27  ;;  %v10689_v30 = vand.u32 4294901760, %v448_v0  ;;  %v17510_v22 = vand.u32 4294901760, %v17353_v46  ;;  %v17513_v16 = vld [vmem:[#allocation107_spill] sm:$0xff] }
 0x1d0   :  { %v10655_v41 = vsub.f32 %v10534_v44, %v17496_v43  ;;  %17497 = vst [vmem:[#allocation80_spill] sm:$0xff] %v10659_v54  ;;  %2893 = vmatpush2.msra.mxu0 %v17500_v59  ;;  %v10673_v43 = vsub.f32 %v453_v15, %v10612_v12  ;;  %17503 = vst [vmem:[#allocation93_spill] sm:$0xff] %v10675_v57  ;;  %3090 = vmatpush2.msra.mxu1 %v17504_v50  ;;  %v17505_v44 = vand.u32 4294901760, %v17352_v58  ;;  %v17509_v15 = vld [vmem:[#allocation105_spill] sm:$0xff] }
 0x1d1   :  { %v10683_v59 = vsub.f32 %v10558_v19, %v17506_v11  ;;  %17507 = vst [vmem:[#allocation95_spill] sm:$0xff] %v10687_v10  ;;  %17508 = vst [vmem:[#allocation97_spill] sm:$0xff] %v10689_v30  ;;  %3092 = vmatprep.subr.mxu1 %v17509_v15  ;;  %v10702_v6 = vsub.f32 %v451_v25, %v10644_v18  ;;  %v17514_v19 = vand.u32 4294901760, %v17354_v47  ;;  %v447_v25 = vld [vmem:[%s15589_s2 + $0x478] sm:$0xff]  ;;  %v17518_v47 = vand.u32 4294901760, %v17355_v52  ;;  %v446_v11 = vld [vmem:[%s15589_s2 + $0x470] sm:$0xff] }
 0x1d2   :  { %17502 = vst [vmem:[#allocation91_spill] sm:$0xff] %v10673_v43  ;;  %2897 = vmatprep.subr.mxu0 %v17505_v44  ;;  %v17511_v44 = vand.u32 4294901760, %v10578_v3  ;;  %3094 = vmatpush2.msra.mxu1 %v17513_v16  ;;  %v10715_v58 = vsub.f32 %v450_v9, %v10661_v4  ;;  %v17517_v16 = vld [vmem:[#allocation108_spill] sm:$0xff]  ;;  %v17519_v46 = vand.u32 4294901760, %v10610_v8  ;;  %v10731_v9 = vsub.f32 %v449_v56, %v10675_v57 }
 0x1d3   :  { %2901 = vmatpush2.msra.mxu0 %v17510_v22  ;;  %17512 = vst [vmem:[#allocation98_spill] sm:$0xff] %v10702_v6  ;;  %v17515_v22 = vand.u32 4294901760, %v10593_v36  ;;  %3096 = vmatprep.subr.mxu1 %v17517_v16  ;;  %v17521_v52 = vand.u32 4294901760, %v17356_v13  ;;  %v10747_v56 = vsub.f32 %v448_v0, %v10689_v30  ;;  %v17524_v13 = vand.u32 4294901760, %v17357_v24 }
 0x1d4   :  { %v10698_v50 = vsub.f32 %v10578_v3, %v17511_v44  ;;  %2905 = vmatprep.subr.mxu0 %v17514_v19  ;;  %17516 = vst [vmem:[#allocation100_spill] sm:$0xff] %v10715_v58  ;;  %17520 = vst [vmem:[#allocation101_spill] sm:$0xff] %v10731_v9  ;;  %3098 = vmatpush2.msra.mxu1 %v10022_v39  ;;  %v445_v44 = vld [vmem:[%s15589_s2 + $0x468] sm:$0xff]  ;;  %v10762_v0 = vand.u32 4294901760, %v447_v25  ;;  %v444_v19 = vld [vmem:[%s15589_s2 + $0x460] sm:$0xff]  ;;  %v17527_v24 = vand.u32 4294901760, %v17358_v45 }
 0x1d5   :  { %v10711_v15 = vsub.f32 %v10593_v36, %v17515_v22  ;;  %2909 = vmatpush2.msra.mxu0 %v17518_v47  ;;  %v10727_v22 = vsub.f32 %v10610_v8, %v17519_v46  ;;  %v17522_v47 = vand.u32 4294901760, %v10624_v5  ;;  %17523 = vst [vmem:[#allocation103_spill] sm:$0xff] %v10747_v56  ;;  %3100 = vmatprep.subr.mxu1 %v10037_v31  ;;  %v10777_v16 = vand.u32 4294901760, %v446_v11  ;;  %v17537_v8 = vld [vmem:[#allocation112_spill] sm:$0xff]  ;;  %v439_v36 = vld [vmem:[%s15589_s2 + $0x438] sm:$0xff]  ;;  %v437_v3 = vld [vmem:[%s15589_s2 + $0x428] sm:$0xff] }
 0x1d6   :  { %2913 = vmatprep.subr.mxu0 %v17521_v52  ;;  %v17525_v52 = vand.u32 4294901760, %v10642_v14  ;;  %17526 = vst [vmem:[#allocation106_spill] sm:$0xff] %v10762_v0  ;;  %3102 = vmatpush2.msra.mxu1 %v10048_v26  ;;  %v17530_v45 = vand.u32 4294901760, %v17359_v35  ;;  %v10792_v39 = vand.u32 4294901760, %v445_v44  ;;  %v17534_v35 = vand.u32 4294901760, %v17360_v28 }
 0x1d7   :  { %v10743_v46 = vsub.f32 %v10624_v5, %v17522_v47  ;;  %2917 = vmatpush2.msra.mxu0 %v17524_v13  ;;  %v17528_v13 = vand.u32 4294901760, %v10659_v54  ;;  %17529 = vst [vmem:[#allocation109_spill] sm:$0xff] %v10777_v16  ;;  %3104 = vmatprep.subr.mxu1 %v10063_v23  ;;  %v17533_v5 = vld [vmem:[#allocation111_spill] sm:$0xff]  ;;  %v10807_v31 = vand.u32 4294901760, %v444_v19  ;;  %v17538_v28 = vand.u32 4294901760, %v10046_v60 }
 0x1d8   :  { %v10759_v47 = vsub.f32 %v10642_v14, %v17525_v52  ;;  %2921 = vmatprep.subr.mxu0 %v17527_v24  ;;  %v443_v14 = vld [vmem:[%s15589_s2 + $0x458] sm:$0xff]  ;;  %v17531_v24 = vand.u32 4294901760, %v10673_v43  ;;  %17532 = vst [vmem:[#allocation110_spill] sm:$0xff] %v10792_v39  ;;  %3106 = vmatpush2.msra.mxu1 %v17533_v5  ;;  %v10822_v23 = vsub.f32 %v447_v25, %v10762_v0  ;;  %v17543_v60 = vand.u32 4294901760, %v10061_v29 }
 0x1d9   :  { %v10774_v52 = vsub.f32 %v10659_v54, %v17528_v13  ;;  %2925 = vmatpush2.msra.mxu0 %v17530_v45  ;;  %v442_v54 = vld [vmem:[%s15589_s2 + $0x450] sm:$0xff]  ;;  %v17535_v45 = vand.u32 4294901760, %v10687_v10  ;;  %17536 = vst [vmem:[#allocation113_spill] sm:$0xff] %v10807_v31  ;;  %3108 = vmatprep.subr.mxu1 %v17537_v8  ;;  %v10824_v26 = vand.u32 4294901760, %v443_v14  ;;  %v17542_v8 = vld [vmem:[#allocation114_spill] sm:$0xff]  ;;  %v17544_v5 = vand.u32 4294901760, %v10715_v58 }
 0x1da   :  { %v10789_v13 = vsub.f32 %v10673_v43, %v17531_v24  ;;  %2929 = vmatprep.subr.mxu0 %v17534_v35  ;;  %v441_v43 = vld [vmem:[%s15589_s2 + $0x448] sm:$0xff]  ;;  %v17539_v35 = vand.u32 4294901760, %v10702_v6  ;;  %17540 = vst [vmem:[#allocation115_spill] sm:$0xff] %v10822_v23  ;;  %3110 = vmatpush2.msra.mxu1 %v17542_v8  ;;  %v10839_v25 = vsub.f32 %v446_v11, %v10777_v16  ;;  %v17547_v29 = vand.u32 4294901760, %v10072_v34 }
 0x1db   :  { %v10804_v24 = vsub.f32 %v10687_v10, %v17535_v45  ;;  %2933 = vmatpush2.msra.mxu0 %v17538_v28  ;;  %17541 = vst [vmem:[#allocation69_spill] sm:$0xff] %v10824_v26  ;;  %v440_v10 = vld [vmem:[%s15589_s2 + $0x440] sm:$0xff]  ;;  %3112 = vmatprep.subr.mxu1 %v10109_v1  ;;  %v10856_v11 = vsub.f32 %v445_v44, %v10792_v39  ;;  %v10858_v28 = vand.u32 4294901760, %v441_v43  ;;  %v17551_v1 = vld [vmem:[#allocation116_spill] sm:$0xff]  ;;  %v17552_v34 = vand.u32 4294901760, %v10083_v17 }
 0x1dc   :  { %v10819_v45 = vsub.f32 %v10702_v6, %v17539_v35  ;;  %2937 = vmatprep.subr.mxu0 %v17543_v60  ;;  %v10836_v35 = vsub.f32 %v10715_v58, %v17544_v5  ;;  %17545 = vst [vmem:[#allocation82_spill] sm:$0xff] %v10839_v25  ;;  %v10841_v6 = vand.u32 4294901760, %v442_v54  ;;  %v17548_v60 = vand.u32 4294901760, %v10731_v9  ;;  %v438_v58 = vld [vmem:[%s15589_s2 + $0x430] sm:$0xff]  ;;  %3114 = vmatpush2.msra.mxu1 %v17551_v1 }
 0x1dd   :  { %2941 = vmatpush2.msra.mxu0 %v17547_v29  ;;  %17549 = vst [vmem:[#allocation3_spill] sm:$0xff] %v10856_v11  ;;  %17550 = vst [vmem:[#allocation65_spill] sm:$0xff] %v10858_v28  ;;  %v17553_v8 = vand.u32 4294901760, %v10747_v56  ;;  %v10873_v44 = vsub.f32 %v444_v19, %v10807_v31  ;;  %3116 = vmatprep.subr.mxu1 %v10132_v55  ;;  %v17556_v17 = vand.u32 4294901760, %v17361_v42  ;;  %v10888_v19 = vand.u32 4294901760, %v439_v36  ;;  %v436_v29 = vld [vmem:[%s15589_s2 + $0x420] sm:$0xff] }
 0x1de   :  { %17546 = vst [vmem:[#allocation58_spill] sm:$0xff] %v10841_v6  ;;  %v10853_v5 = vsub.f32 %v10731_v9, %v17548_v60  ;;  %2945 = vmatprep.subr.mxu0 %v17552_v34  ;;  %v10875_v9 = vand.u32 4294901760, %v440_v10  ;;  %3118 = vmatpush2.msra.mxu1 %v10142_v33  ;;  %v17559_v55 = vand.u32 4294901760, %v17362_v63  ;;  %v10899_v1 = vsub.f32 %v442_v54, %v10841_v6  ;;  %v435_v34 = vld [vmem:[%s15589_s2 + $0x418] sm:$0xff] }
 0x1df   :  { %v10870_v60 = vsub.f32 %v10747_v56, %v17553_v8  ;;  %17554 = vst [vmem:[#allocation13_spill] sm:$0xff] %v10873_v44  ;;  %2949 = vmatpush2.msra.mxu0 %v17556_v17  ;;  %v10886_v8 = vsub.f32 %v443_v14, %v10824_v26  ;;  %17558 = vst [vmem:[#allocation15_spill] sm:$0xff] %v10888_v19  ;;  %v10901_v14 = vand.u32 4294901760, %v438_v58  ;;  %v17562_v56 = vld [vmem:[#allocation12_spill] sm:$0xff]  ;;  %v17563_v33 = vand.u32 4294901760, %v10638_v7 }
 0x1e0   :  { %17555 = vst [vmem:[#allocation70_spill] sm:$0xff] %v10875_v9  ;;  %2953 = vmatprep.subr.mxu0 %v17559_v55  ;;  %17560 = vst [vmem:[#allocation81_spill] sm:$0xff] %v10899_v1  ;;  %3122 = vmatmul.mubr.f32.vlgmr.msra.gmra.mxu1 %v17562_v56  ;;  %v10912_v42 = vsub.f32 %v441_v43, %v10858_v28  ;;  %v10914_v54 = vand.u32 4294901760, %v437_v3  ;;  %v434_v17 = vld [vmem:[%s15589_s2 + $0x410] sm:$0xff]  ;;  %v17566_v62 = vand.u32 4294901760, %v10120_v2  ;;  %v17567_v6 = vand.u32 4294901760, %v10655_v41 }
 0x1e1   :  { %17557 = vst [vmem:[#allocation14_spill] sm:$0xff] %v10886_v8  ;;  %17561 = vst [vmem:[#allocation16_spill] sm:$0xff] %v10901_v14  ;;  %3278 = vmatprep.subr.mxu1 %v17563_v33  ;;  %v10926_v63 = vsub.f32 %v440_v10, %v10875_v9  ;;  %v10928_v43 = vand.u32 4294901760, %v436_v29  ;;  %v433_v55 = vld [vmem:[%s15589_s2 + $0x408] sm:$0xff]  ;;  %3658 = vmatprep.mubr.f32.mxu1 %v10458_v21  ;;  %v17570_v2 = vand.u32 4294901760, %v10130_v51  ;;  %v10945_v7 = vand.u32 4294901760, %v435_v34 }
 0x1e2   :  { %17564 = vst [vmem:[#allocation84_spill] sm:$0xff] %v10912_v42  ;;  %17565 = vst [vmem:[#allocation10_spill] sm:$0xff] %v10914_v54  ;;  %2957 = vmatpush2.msra.mxu0 %v17566_v62  ;;  %3284 = vmatpush1.msra.mxu1 %v17567_v6  ;;  %v17571_v62 = vand.u32 4294901760, %v10822_v23  ;;  %v10943_v10 = vsub.f32 %v439_v36, %v10888_v19  ;;  %v432_v33 = vld [vmem:[%s15589_s2 + $0x400] sm:$0xff]  ;;  %v17574_v21 = vand.u32 4294901760, %v10669_v37  ;;  %v17575_v51 = vand.u32 4294901760, %v10140_v38 }
 0x1e3   :  { %17568 = vst [vmem:[#allocation24_spill] sm:$0xff] %v10926_v63  ;;  %17569 = vst [vmem:[#allocation6_spill] sm:$0xff] %v10928_v43  ;;  %2961 = vmatprep.subr.mxu0 %v17570_v2  ;;  %v17576_v2 = vand.u32 4294901760, %v10839_v25  ;;  %v10961_v6 = vsub.f32 %v438_v58, %v10901_v14  ;;  %v17579_v19 = vand.u32 4294901760, %v10683_v59  ;;  %v17580_v37 = vld [vmem:[#allocation117_spill] sm:$0xff]  ;;  %v17582_v38 = vand.u32 4294901760, %v10856_v11 }
 0x1e4   :  { %v10939_v41 = vsub.f32 %v10822_v23, %v17571_v62  ;;  %17572 = vst [vmem:[#allocation28_spill] sm:$0xff] %v10943_v10  ;;  %17573 = vst [vmem:[#allocation7_spill] sm:$0xff] %v10945_v7  ;;  %3290 = vmatprep.subr.mxu1 %v17574_v21  ;;  %2965 = vmatpush2.msra.mxu0 %v17575_v51  ;;  %v10963_v23 = vand.u32 4294901760, %v434_v17  ;;  %v17581_v21 = vand.u32 4294901760, %v17580_v37  ;;  %v10978_v58 = vand.u32 4294901760, %v433_v55  ;;  %v17586_v59 = vld [vmem:[#allocation118_spill] sm:$0xff] }
 0x1e5   :  { %v10957_v62 = vsub.f32 %v10839_v25, %v17576_v2  ;;  %17577 = vst [vmem:[#allocation18_spill] sm:$0xff] %v10961_v6  ;;  %3296 = vmatpush1.msra.mxu1 %v17579_v19  ;;  %v10972_v51 = vsub.f32 %v10856_v11, %v17582_v38  ;;  %v10976_v36 = vsub.f32 %v437_v3, %v10914_v54  ;;  %v17585_v25 = vand.u32 4294901760, %v10698_v50  ;;  %v17592_v50 = vld [vmem:[#allocation119_spill] sm:$0xff] }
 0x1e6   :  { %17578 = vst [vmem:[#allocation9_spill] sm:$0xff] %v10963_v23  ;;  %2969 = vmatprep.subr.mxu0 %v17581_v21  ;;  %17584 = vst [vmem:[#allocation19_spill] sm:$0xff] %v10978_v58  ;;  %v17587_v19 = vand.u32 4294901760, %v17586_v59  ;;  %v17588_v37 = vand.u32 4294901760, %v10873_v44  ;;  %v10991_v2 = vsub.f32 %v436_v29, %v10928_v43  ;;  %v10993_v3 = vand.u32 4294901760, %v432_v33 }
 0x1e7   :  { %17583 = vst [vmem:[#allocation21_spill] sm:$0xff] %v10976_v36  ;;  %3302 = vmatprep.subr.mxu1 %v17585_v25  ;;  %v17591_v11 = vand.u32 4294901760, %v10711_v15  ;;  %v17593_v25 = vand.u32 4294901760, %v17592_v50  ;;  %v11007_v29 = vsub.f32 %v435_v34, %v10945_v7  ;;  %v17597_v15 = vld [vmem:[#allocation120_spill] sm:$0xff]  ;;  %v11021_v38 = vsub.f32 %v434_v17, %v10963_v23 }
 0x1e8   :  { %2973 = vmatpush2.msra.mxu0 %v17587_v19  ;;  %v10987_v21 = vsub.f32 %v10873_v44, %v17588_v37  ;;  %17589 = vst [vmem:[#allocation30_spill] sm:$0xff] %v10991_v2  ;;  %17590 = vst [vmem:[#allocation20_spill] sm:$0xff] %v10993_v3  ;;  %v17594_v19 = vand.u32 4294901760, %v10886_v8  ;;  %v17596_v44 = vand.u32 4294901760, %v10727_v22  ;;  %v495_v22 = vld [vmem:[%s15589_s2 + $0x5f8] sm:$0xff]  ;;  %v11037_v17 = vsub.f32 %v433_v55, %v10978_v58  ;;  %v494_v50 = vld [vmem:[%s15589_s2 + $0x5f0] sm:$0xff] }
 0x1e9   :  { %3308 = vmatpush1.msra.mxu1 %v17591_v11  ;;  %2977 = vmatprep.subr.mxu0 %v17593_v25  ;;  %17595 = vst [vmem:[#allocation31_spill] sm:$0xff] %v11007_v29  ;;  %v17598_v11 = vand.u32 4294901760, %v17597_v15  ;;  %v17599_v25 = vand.u32 4294901760, %v10899_v1  ;;  %17600 = vst [vmem:[#allocation11_spill] sm:$0xff] %v11021_v38  ;;  %v17602_v15 = vand.u32 4294901760, %v10912_v42  ;;  %v11053_v55 = vsub.f32 %v432_v33, %v10993_v3 }
 0x1ea   :  { %v11003_v37 = vsub.f32 %v10886_v8, %v17594_v19  ;;  %3314 = vmatprep.subr.mxu1 %v17596_v44  ;;  %v17601_v44 = vand.u32 4294901760, %v10743_v46  ;;  %17603 = vst [vmem:[#allocation32_spill] sm:$0xff] %v11037_v17  ;;  %v17604_v46 = vand.u32 4294901760, %v10759_v47  ;;  %v17607_v47 = vand.u32 4294901760, %v10565_v49  ;;  %v492_v19 = vld [vmem:[%s15589_s2 + $0x5e0] sm:$0xff]  ;;  %v17611_v49 = vld [vmem:[#allocation59_spill] sm:$0xff] }
 0x1eb   :  { %2981 = vmatpush2.msra.mxu0 %v17598_v11  ;;  %v11017_v59 = vsub.f32 %v10899_v1, %v17599_v25  ;;  %v11033_v11 = vsub.f32 %v10912_v42, %v17602_v15  ;;  %17606 = vst [vmem:[#allocation17_spill] sm:$0xff] %v11053_v55  ;;  %v493_v25 = vld [vmem:[%s15589_s2 + $0x5e8] sm:$0xff]  ;;  %v11068_v33 = vand.u32 4294901760, %v495_v22  ;;  %v491_v42 = vld [vmem:[%s15589_s2 + $0x5d8] sm:$0xff]  ;;  %v17616_v1 = vand.u32 4294901760, %v10976_v36  ;;  %v490_v8 = vld [vmem:[%s15589_s2 + $0x5d0] sm:$0xff] }
 0x1ec   :  { %3320 = vmatpush1.msra.mxu1 %v17601_v44  ;;  %2985 = vmatmul.mubr.f32.vlgmr.msra.gmra.mxu0 %v17562_v56  ;;  %v17605_v44 = vand.u32 4294901760, %v10926_v63  ;;  %v17608_v56 = vand.u32 4294901760, %v10943_v10 }
 0x1ed   :  { %3129 = vmatprep.subr.mxu0 %v10487_v53  ;;  %3326 = vmatprep.subr.mxu1 %v17604_v46  ;;  %17609 = vst [vmem:[#allocation35_spill] sm:$0xff] %v11068_v33  ;;  %v17612_v46 = vand.u32 4294901760, %v10961_v6  ;;  %v11128_v34 = vsub.f32 %v495_v22, %v11068_v33 }
 0x1ee   :  { %v11049_v15 = vsub.f32 %v10926_v63, %v17605_v44  ;;  %3131 = vmatpush1.msra.mxu0 %v10495_v48  ;;  %3261 = vmatprep.mubr.f32.mxu0 %v17607_v47  ;;  %v11065_v44 = vsub.f32 %v10943_v10, %v17608_v56  ;;  %v17610_v63 = vand.u32 4294901760, %v10774_v52  ;;  %v11083_v10 = vand.u32 4294901760, %v494_v50  ;;  %v488_v48 = vld [vmem:[%s15589_s2 + $0x5c0] sm:$0xff] }
 0x1ef   :  { %3133 = vmatprep.subr.mxu0 %v17611_v49  ;;  %v11080_v56 = vsub.f32 %v10961_v6, %v17612_v46  ;;  %v17614_v52 = vand.u32 4294901760, %v10789_v13  ;;  %v11095_v46 = vsub.f32 %v10976_v36, %v17616_v1  ;;  %v11098_v6 = vand.u32 4294901760, %v493_v25  ;;  %v489_v49 = vld [vmem:[%s15589_s2 + $0x5c8] sm:$0xff]  ;;  %17625 = vst [vmem:[#allocation40_spill] sm:$0xff] %v11128_v34 }
 0x1f0   :  { %3332 = vmatpush1.msra.mxu1 %v17610_v63  ;;  %17613 = vst [vmem:[#allocation29_spill] sm:$0xff] %v11083_v10  ;;  %v17615_v63 = vld [vmem:[#allocation66_spill] sm:$0xff]  ;;  %v17618_v13 = vand.u32 4294901760, %v10804_v24  ;;  %v11113_v36 = vand.u32 4294901760, %v492_v19  ;;  %v17622_v24 = vand.u32 4294901760, %v10819_v45  ;;  %v17627_v45 = vand.u32 4294901760, %v10836_v35 }
 0x1f1   :  { %3338 = vmatprep.subr.mxu1 %v17614_v52  ;;  %3135 = vmatpush1.msra.mxu0 %v17615_v63  ;;  %17617 = vst [vmem:[#allocation36_spill] sm:$0xff] %v11098_v6  ;;  %v17619_v52 = vld [vmem:[#allocation73_spill] sm:$0xff]  ;;  %v17620_v63 = vand.u32 4294901760, %v10991_v2  ;;  %v17628_v47 = vand.u32 4294901760, %v11021_v38  ;;  %v11145_v22 = vsub.f32 %v494_v50, %v11083_v10  ;;  %v17631_v35 = vand.u32 4294901760, %v10853_v5 }
 0x1f2   :  { %3344 = vmatpush1.msra.mxu1 %v17618_v13  ;;  %3137 = vmatprep.subr.mxu0 %v17619_v52  ;;  %17621 = vst [vmem:[#allocation22_spill] sm:$0xff] %v11113_v36  ;;  %v17623_v13 = vld [vmem:[#allocation71_spill] sm:$0xff]  ;;  %v17624_v52 = vand.u32 4294901760, %v11007_v29  ;;  %v11162_v50 = vsub.f32 %v493_v25, %v11098_v6  ;;  %v17635_v5 = vand.u32 4294901760, %v10870_v60  ;;  %v11179_v25 = vsub.f32 %v492_v19, %v11113_v36 }
 0x1f3   :  { %v11110_v1 = vsub.f32 %v10991_v2, %v17620_v63  ;;  %3350 = vmatprep.subr.mxu1 %v17622_v24  ;;  %3139 = vmatpush1.msra.mxu0 %v17623_v13  ;;  %v11130_v2 = vand.u32 4294901760, %v491_v42  ;;  %17629 = vst [vmem:[#allocation44_spill] sm:$0xff] %v11145_v22  ;;  %v487_v13 = vld [vmem:[%s15589_s2 + $0x5b8] sm:$0xff]  ;;  %v17632_v24 = vand.u32 4294901760, %v11037_v17  ;;  %v17639_v60 = vand.u32 4294901760, %v10939_v41 }
 0x1f4   :  { %v11125_v63 = vsub.f32 %v11007_v29, %v17624_v52  ;;  %3356 = vmatpush1.msra.mxu1 %v17627_v45  ;;  %3141 = vmatprep.subr.mxu0 %v10548_v20  ;;  %v11142_v52 = vsub.f32 %v11021_v38, %v17628_v47  ;;  %v11147_v29 = vand.u32 4294901760, %v490_v8  ;;  %17633 = vst [vmem:[#allocation45_spill] sm:$0xff] %v11162_v50  ;;  %v11164_v38 = vand.u32 4294901760, %v489_v49  ;;  %v486_v20 = vld [vmem:[%s15589_s2 + $0x5b0] sm:$0xff] }
 0x1f5   :  { %17626 = vst [vmem:[#allocation23_spill] sm:$0xff] %v11130_v2  ;;  %3362 = vmatprep.subr.mxu1 %v17631_v35  ;;  %3143 = vmatpush1.msra.mxu0 %v10560_v40  ;;  %v11159_v47 = vsub.f32 %v11037_v17, %v17632_v24  ;;  %v17636_v45 = vand.u32 4294901760, %v11053_v55  ;;  %17637 = vst [vmem:[#allocation46_spill] sm:$0xff] %v11179_v25  ;;  %v11181_v17 = vand.u32 4294901760, %v488_v48  ;;  %v485_v40 = vld [vmem:[%s15589_s2 + $0x5a8] sm:$0xff]  ;;  %v11194_v19 = vand.u32 4294901760, %v487_v13 }
 0x1f6   :  { %17630 = vst [vmem:[#allocation25_spill] sm:$0xff] %v11147_v29  ;;  %17634 = vst [vmem:[#allocation26_spill] sm:$0xff] %v11164_v38  ;;  %3368 = vmatpush1.msra.mxu1 %v17635_v5  ;;  %3145 = vmatprep.subr.mxu0 %v10580_v32  ;;  %v17642_v32 = vand.u32 4294901760, %v10957_v62  ;;  %v11205_v5 = vsub.f32 %v490_v8, %v11147_v29  ;;  %v483_v35 = vld [vmem:[%s15589_s2 + $0x598] sm:$0xff]  ;;  %v11218_v41 = vsub.f32 %v489_v49, %v11164_v38  ;;  %v481_v62 = vld [vmem:[%s15589_s2 + $0x588] sm:$0xff] }
 0x1f7   :  { %v11176_v24 = vsub.f32 %v11053_v55, %v17636_v45  ;;  %17638 = vst [vmem:[#allocation27_spill] sm:$0xff] %v11181_v17  ;;  %3374 = vmatprep.subr.mxu1 %v17639_v60  ;;  %3147 = vmatpush1.msra.mxu0 %v10595_v61  ;;  %v11192_v45 = vsub.f32 %v491_v42, %v11130_v2  ;;  %17641 = vst [vmem:[#allocation48_spill] sm:$0xff] %v11194_v19  ;;  %v484_v55 = vld [vmem:[%s15589_s2 + $0x5a0] sm:$0xff]  ;;  %v11207_v42 = vand.u32 4294901760, %v486_v20  ;;  %v482_v60 = vld [vmem:[%s15589_s2 + $0x590] sm:$0xff] }
 0x1f8   :  { %3380 = vmatpush1.msra.mxu1 %v17642_v32  ;;  %3149 = vmatprep.subr.mxu0 %v10612_v12  ;;  %17643 = vst [vmem:[#allocation34_spill] sm:$0xff] %v11205_v5  ;;  %v17645_v61 = vand.u32 4294901760, %v10972_v51  ;;  %17646 = vst [vmem:[#allocation56_spill] sm:$0xff] %v11218_v41  ;;  %v11220_v8 = vand.u32 4294901760, %v485_v40  ;;  %v17648_v12 = vand.u32 4294901760, %v10987_v21  ;;  %v11231_v32 = vsub.f32 %v488_v48, %v11181_v17 }
 0x1f9   :  { %17640 = vst [vmem:[#allocation47_spill] sm:$0xff] %v11192_v45  ;;  %17644 = vst [vmem:[#allocation42_spill] sm:$0xff] %v11207_v42  ;;  %3151 = vmatpush1.msra.mxu0 %v10627_v27  ;;  %v11233_v49 = vand.u32 4294901760, %v484_v55  ;;  %v17651_v27 = vand.u32 4294901760, %v11003_v37  ;;  %v11248_v48 = vsub.f32 %v487_v13, %v11194_v19  ;;  %v11250_v51 = vand.u32 4294901760, %v483_v35 }
 0x1fa   :  { %3386 = vmatprep.subr.mxu1 %v17645_v61  ;;  %17647 = vst [vmem:[#allocation60_spill] sm:$0xff] %v11220_v8  ;;  %3153 = vmatprep.subr.mxu0 %v10644_v18  ;;  %17649 = vst [vmem:[#allocation50_spill] sm:$0xff] %v11231_v32  ;;  %v480_v18 = vld [vmem:[%s15589_s2 + $0x580] sm:$0xff]  ;;  %v17656_v37 = vand.u32 4294901760, %v11145_v22  ;;  %v11265_v13 = vsub.f32 %v486_v20, %v11207_v42  ;;  %v11281_v61 = vand.u32 4294901760, %v481_v62  ;;  %v17663_v20 = vand.u32 4294901760, %v11049_v15 }
 0x1fb   :  { %3392 = vmatpush1.msra.mxu1 %v17648_v12  ;;  %17650 = vst [vmem:[#allocation53_spill] sm:$0xff] %v11233_v49  ;;  %3155 = vmatpush1.msra.mxu0 %v10661_v4  ;;  %v17652_v12 = vand.u32 4294901760, %v11128_v34  ;;  %17653 = vst [vmem:[#allocation62_spill] sm:$0xff] %v11248_v48  ;;  %v17659_v4 = vand.u32 4294901760, %v11033_v11 }
 0x1fc   :  { %3398 = vmatprep.subr.mxu1 %v17651_v27  ;;  %17654 = vst [vmem:[#allocation55_spill] sm:$0xff] %v11250_v51  ;;  %v17655_v27 = vand.u32 4294901760, %v11017_v59  ;;  %3157 = vmatprep.subr.mxu0 %v10675_v57  ;;  %17657 = vst [vmem:[#allocation67_spill] sm:$0xff] %v11265_v13  ;;  %v17660_v59 = vand.u32 4294901760, %v11162_v50 }
 0x1fd   :  { %v11244_v21 = vsub.f32 %v11128_v34, %v17652_v12  ;;  %v11261_v12 = vsub.f32 %v11145_v22, %v17656_v37  ;;  %v11267_v34 = vand.u32 4294901760, %v482_v60  ;;  %3159 = vmatpush1.msra.mxu0 %v10689_v30  ;;  %v11279_v22 = vsub.f32 %v485_v40, %v11220_v8  ;;  %17662 = vst [vmem:[#allocation79_spill] sm:$0xff] %v11281_v61 }
 0x1fe   :  { %3404 = vmatpush1.msra.mxu1 %v17655_v27  ;;  %v11275_v27 = vsub.f32 %v11162_v50, %v17660_v59  ;;  %3161 = vmatprep.subr.mxu0 %v10762_v0  ;;  %v11293_v50 = vsub.f32 %v484_v55, %v11233_v49  ;;  %v11295_v37 = vand.u32 4294901760, %v480_v18  ;;  %v17667_v40 = vand.u32 4294901760, %v11065_v44 }
 0x1ff   :  { %17658 = vst [vmem:[#allocation72_spill] sm:$0xff] %v11267_v34  ;;  %3410 = vmatprep.subr.mxu1 %v17659_v4  ;;  %17661 = vst [vmem:[#allocation77_spill] sm:$0xff] %v11279_v22  ;;  %v17664_v4 = vand.u32 4294901760, %v11179_v25  ;;  %3163 = vmatpush1.msra.mxu0 %v10777_v16  ;;  %v3469_v15 = vand.u32 4294901760, %v11244_v21  ;;  %v11308_v59 = vsub.f32 %v483_v35, %v11250_v51  ;;  %v17670_v55 = vand.u32 4294901760, %v11080_v56  ;;  %v479_v35 = vld [vmem:[%s15589_s2 + $0x578] sm:$0xff] }
 0x200   :  { %3416 = vmatpush1.msra.mxu1 %v17663_v20  ;;  %17665 = vst [vmem:[#allocation74_spill] sm:$0xff] %v11293_v50  ;;  %17666 = vst [vmem:[#allocation90_spill] sm:$0xff] %v11295_v37  ;;  %v17668_v20 = vand.u32 4294901760, %v11192_v45  ;;  %3165 = vmatprep.subr.mxu0 %v10792_v39  ;;  %v3475_v44 = vand.u32 4294901760, %v11261_v12  ;;  %v17673_v56 = vand.u32 4294901760, %v11095_v46  ;;  %v3481_v12 = vand.u32 4294901760, %v11275_v27 }
 0x201   :  { %v11289_v11 = vsub.f32 %v11179_v25, %v17664_v4  ;;  %3422 = vmatprep.subr.mxu1 %v17667_v40  ;;  %17669 = vst [vmem:[#allocation92_spill] sm:$0xff] %v11308_v59  ;;  %v17671_v40 = vand.u32 4294901760, %v11205_v5  ;;  %3167 = vmatpush1.msra.mxu0 %v10807_v31  ;;  %v478_v4 = vld [vmem:[%s15589_s2 + $0x570] sm:$0xff]  ;;  %v17676_v46 = vand.u32 4294901760, %v11110_v1  ;;  %v17679_v1 = vand.u32 4294901760, %v11125_v63  ;;  %v475_v25 = vld [vmem:[%s15589_s2 + $0x558] sm:$0xff] }
 0x202   :  { %v11304_v0 = vsub.f32 %v11192_v45, %v17668_v20  ;;  %3428 = vmatpush1.msra.mxu1 %v17670_v55  ;;  %v11321_v45 = vsub.f32 %v482_v60, %v11267_v34  ;;  %v17674_v55 = vand.u32 4294901760, %v11218_v41  ;;  %v11337_v60 = vsub.f32 %v481_v62, %v11281_v61  ;;  %3169 = vmatprep.subr.mxu0 %v10824_v26 }
 0x203   :  { %v11317_v21 = vsub.f32 %v11205_v5, %v17671_v40  ;;  %3434 = vmatprep.subr.mxu1 %v17673_v56  ;;  %v3487_v27 = vand.u32 4294901760, %v11289_v11  ;;  %v17677_v56 = vand.u32 4294901760, %v11231_v32  ;;  %v11353_v62 = vsub.f32 %v480_v18, %v11295_v37 }
 0x204   :  { %17672 = vst [vmem:[#allocation94_spill] sm:$0xff] %v11321_v45  ;;  %v11333_v40 = vsub.f32 %v11218_v41, %v17674_v55  ;;  %17675 = vst [vmem:[#allocation96_spill] sm:$0xff] %v11337_v60  ;;  %3440 = vmatpush1.msra.mxu1 %v17676_v46  ;;  %v477_v41 = vld [vmem:[%s15589_s2 + $0x568] sm:$0xff]  ;;  %v17680_v46 = vld [vmem:[#allocation58_spill] sm:$0xff]  ;;  %v3493_v11 = vand.u32 4294901760, %v11304_v0  ;;  %v17681_v5 = vand.u32 4294901760, %v11248_v48 }
 0x205   :  { %v11349_v55 = vsub.f32 %v11231_v32, %v17677_v56  ;;  %17678 = vst [vmem:[#allocation99_spill] sm:$0xff] %v11353_v62  ;;  %3446 = vmatprep.subr.mxu1 %v17679_v1  ;;  %3171 = vmatpush1.msra.mxu0 %v17680_v46  ;;  %v11368_v18 = vand.u32 4294901760, %v479_v35  ;;  %v476_v32 = vld [vmem:[%s15589_s2 + $0x560] sm:$0xff]  ;;  %v17683_v63 = vand.u32 4294901760, %v11142_v52  ;;  %v3499_v0 = vand.u32 4294901760, %v11317_v21  ;;  %v473_v46 = vld [vmem:[%s15589_s2 + $0x548] sm:$0xff] }
 0x206   :  { %v11365_v56 = vsub.f32 %v11248_v48, %v17681_v5  ;;  %3173 = vmatprep.subr.mxu0 %v10858_v28  ;;  %v17684_v1 = vand.u32 4294901760, %v11265_v13  ;;  %v11383_v48 = vand.u32 4294901760, %v478_v4  ;;  %v17686_v52 = vand.u32 4294901760, %v11159_v47  ;;  %v474_v28 = vld [vmem:[%s15589_s2 + $0x550] sm:$0xff] }
 0x207   :  { %17682 = vst [vmem:[#allocation102_spill] sm:$0xff] %v11368_v18  ;;  %3452 = vmatpush1.msra.mxu1 %v17683_v63  ;;  %3175 = vmatpush1.msra.mxu0 %v10875_v9  ;;  %v3505_v21 = vand.u32 4294901760, %v11333_v40  ;;  %v17687_v63 = vand.u32 4294901760, %v11279_v22  ;;  %v17689_v47 = vand.u32 4294901760, %v11176_v24  ;;  %v3511_v40 = vand.u32 4294901760, %v11349_v55 }
 0x208   :  { %v11380_v5 = vsub.f32 %v11265_v13, %v17684_v1  ;;  %17685 = vst [vmem:[#allocation104_spill] sm:$0xff] %v11383_v48  ;;  %3458 = vmatprep.subr.mxu1 %v17686_v52  ;;  %v11398_v13 = vand.u32 4294901760, %v477_v41  ;;  %v17690_v52 = vld [vmem:[#allocation15_spill] sm:$0xff]  ;;  %v17691_v9 = vand.u32 4294901760, %v11293_v50  ;;  %v3517_v24 = vand.u32 4294901760, %v11365_v56 }
 0x209   :  { %v11395_v1 = vsub.f32 %v11279_v22, %v17687_v63  ;;  %3464 = vmatpush1.msra.mxu1 %v17689_v47  ;;  %3177 = vmatprep.subr.mxu0 %v17690_v52  ;;  %v11413_v22 = vand.u32 4294901760, %v476_v32  ;;  %v17693_v55 = vand.u32 4294901760, %v11308_v59  ;;  %v11428_v20 = vand.u32 4294901760, %v475_v25 }
 0x20a   :  { %17688 = vst [vmem:[#allocation105_spill] sm:$0xff] %v11398_v13  ;;  %v11410_v63 = vsub.f32 %v11293_v50, %v17691_v9  ;;  %3470 = vmatprep.subr.mxu1 %v3469_v15  ;;  %3179 = vmatpush1.msra.mxu0 %v10901_v14  ;;  %v11426_v9 = vsub.f32 %v479_v35, %v11368_v18  ;;  %v472_v50 = vld [vmem:[%s15589_s2 + $0x540] sm:$0xff]  ;;  %v3523_v15 = vand.u32 4294901760, %v11380_v5  ;;  %v17696_v56 = vand.u32 4294901760, %v11321_v45 }
 0x20b   :  { %17692 = vst [vmem:[#allocation107_spill] sm:$0xff] %v11413_v22  ;;  %v11423_v47 = vsub.f32 %v11308_v59, %v17693_v55  ;;  %17695 = vst [vmem:[#allocation111_spill] sm:$0xff] %v11428_v20  ;;  %3476 = vmatpush2.msra.mxu1 %v3475_v44  ;;  %3181 = vmatprep.subr.mxu0 %v10914_v54  ;;  %v11441_v55 = vsub.f32 %v478_v4, %v11383_v48  ;;  %v11443_v35 = vand.u32 4294901760, %v474_v28  ;;  %v471_v59 = vld [vmem:[%s15589_s2 + $0x538] sm:$0xff] }
 0x20c   :  { %17694 = vst [vmem:[#allocation108_spill] sm:$0xff] %v11426_v9  ;;  %v11438_v14 = vsub.f32 %v11321_v45, %v17696_v56  ;;  %3482 = vmatprep.subr.mxu1 %v3481_v12  ;;  %3183 = vmatpush1.msra.mxu0 %v10928_v43  ;;  %v3529_v44 = vand.u32 4294901760, %v11395_v1  ;;  %v17698_v5 = vand.u32 4294901760, %v11337_v60  ;;  %v11456_v56 = vsub.f32 %v477_v41, %v11398_v13  ;;  %v470_v45 = vld [vmem:[%s15589_s2 + $0x530] sm:$0xff] }
 0x20d   :  { %17697 = vst [vmem:[#allocation112_spill] sm:$0xff] %v11441_v55  ;;  %v11458_v4 = vand.u32 4294901760, %v473_v46  ;;  %3488 = vmatpush2.msra.mxu1 %v3487_v27  ;;  %3185 = vmatprep.subr.mxu0 %v10945_v7  ;;  %v3535_v12 = vand.u32 4294901760, %v11410_v63  ;;  %v17700_v1 = vand.u32 4294901760, %v11353_v62  ;;  %v11473_v41 = vand.u32 4294901760, %v472_v50 }
 0x20e   :  { %v11453_v54 = vsub.f32 %v11337_v60, %v17698_v5  ;;  %17699 = vst [vmem:[#allocation114_spill] sm:$0xff] %v11456_v56  ;;  %v11471_v5 = vsub.f32 %v476_v32, %v11413_v22  ;;  %v469_v60 = vld [vmem:[%s15589_s2 + $0x528] sm:$0xff]  ;;  %3494 = vmatprep.subr.mxu1 %v3493_v11  ;;  %3187 = vmatpush1.msra.mxu0 %v10963_v23  ;;  %v3541_v27 = vand.u32 4294901760, %v11423_v47  ;;  %v468_v32 = vld [vmem:[%s15589_s2 + $0x520] sm:$0xff]  ;;  %v3547_v11 = vand.u32 4294901760, %v11438_v14 }
 0x20f   :  { %v11468_v43 = vsub.f32 %v11353_v62, %v17700_v1  ;;  %v11482_v7 = vsub.f32 %v475_v25, %v11428_v20  ;;  %v11484_v1 = vand.u32 4294901760, %v471_v59  ;;  %3500 = vmatpush2.msra.mxu1 %v3499_v0  ;;  %3189 = vmatprep.subr.mxu0 %v10978_v58  ;;  %v11493_v47 = vsub.f32 %v474_v28, %v11443_v35  ;;  %v467_v25 = vld [vmem:[%s15589_s2 + $0x518] sm:$0xff]  ;;  %v466_v28 = vld [vmem:[%s15589_s2 + $0x510] sm:$0xff]  ;;  %v464_v23 = vld [vmem:[%s15589_s2 + $0x500] sm:$0xff] }
 0x210   :  { %v11495_v63 = vand.u32 4294901760, %v470_v45  ;;  %3506 = vmatprep.subr.mxu1 %v3505_v21  ;;  %3191 = vmatpush1.msra.mxu0 %v10993_v3  ;;  %v3553_v0 = vand.u32 4294901760, %v11453_v54  ;;  %v11504_v14 = vsub.f32 %v473_v46, %v11458_v4  ;;  %v11506_v62 = vand.u32 4294901760, %v469_v60  ;;  %v465_v46 = vld [vmem:[%s15589_s2 + $0x508] sm:$0xff] }
 0x211   :  { %3512 = vmatpush2.msra.mxu1 %v3511_v40  ;;  %3193 = vmatprep.subr.mxu0 %v11068_v33  ;;  %v3559_v21 = vand.u32 4294901760, %v11468_v43  ;;  %v11515_v54 = vsub.f32 %v472_v50, %v11473_v41  ;;  %v11517_v58 = vand.u32 4294901760, %v468_v32  ;;  %v17705_v40 = vand.u32 4294901760, %v11426_v9 }
 0x212   :  { %17701 = vst [vmem:[#allocation116_spill] sm:$0xff] %v11495_v63  ;;  %17702 = vst [vmem:[#allocation12_spill] sm:$0xff] %v11506_v62  ;;  %3518 = vmatprep.subr.mxu1 %v3517_v24  ;;  %3195 = vmatpush2.msra.mxu0 %v11083_v10  ;;  %v11528_v3 = vsub.f32 %v471_v59, %v11484_v1  ;;  %v11530_v50 = vand.u32 4294901760, %v467_v25  ;;  %v17707_v24 = vand.u32 4294901760, %v11441_v55  ;;  %v11543_v59 = vand.u32 4294901760, %v466_v28 }
 0x213   :  { %17703 = vst [vmem:[#allocation117_spill] sm:$0xff] %v11515_v54  ;;  %17704 = vst [vmem:[#allocation118_spill] sm:$0xff] %v11517_v58  ;;  %v3564_v33 = vsub.f32 %v11426_v9, %v17705_v40  ;;  %3524 = vmatpush2.msra.mxu1 %v3523_v15  ;;  %3197 = vmatprep.subr.mxu0 %v11098_v6  ;;  %v11541_v43 = vsub.f32 %v470_v45, %v11495_v63  ;;  %v17709_v9 = vand.u32 4294901760, %v11456_v56 }
 0x214   :  { %17706 = vst [vmem:[#allocation119_spill] sm:$0xff] %v11528_v3  ;;  %v3570_v10 = vsub.f32 %v11441_v55, %v17707_v24  ;;  %17708 = vst [vmem:[#allocation120_spill] sm:$0xff] %v11543_v59  ;;  %3530 = vmatprep.subr.mxu1 %v3529_v44  ;;  %3199 = vmatpush2.msra.mxu0 %v11113_v36  ;;  %v11551_v52 = vsub.f32 %v469_v60, %v11506_v62  ;;  %v11553_v24 = vand.u32 4294901760, %v465_v46 }
 0x215   :  { %v3576_v15 = vsub.f32 %v11456_v56, %v17709_v9  ;;  %3536 = vmatpush2.msra.mxu1 %v3535_v12  ;;  %3201 = vmatprep.subr.mxu0 %v11130_v2  ;;  %v17710_v45 = vand.u32 4294901760, %v11471_v5  ;;  %v11561_v55 = vsub.f32 %v468_v32, %v11517_v58  ;;  %v11563_v9 = vand.u32 4294901760, %v464_v23 }
 0x216   :  { %3542 = vmatprep.subr.mxu1 %v3541_v27  ;;  %3203 = vmatpush2.msra.mxu0 %v11147_v29  ;;  %v3565_v60 = vand.u32 4294901760, %v3564_v33  ;;  %v17711_v6 = vand.u32 4294901760, %v11482_v7  ;;  %v11571_v2 = vsub.f32 %v467_v25, %v11530_v50  ;;  %v3571_v32 = vand.u32 4294901760, %v3570_v10 }
 0x217   :  { %v3582_v44 = vsub.f32 %v11471_v5, %v17710_v45  ;;  %3548 = vmatpush2.msra.mxu1 %v3547_v11  ;;  %3205 = vmatprep.subr.mxu0 %v11164_v38  ;;  %v17713_v45 = vand.u32 4294901760, %v11493_v47  ;;  %v11579_v33 = vsub.f32 %v466_v28, %v11543_v59  ;;  %v17715_v25 = vand.u32 4294901760, %v11504_v14 }
 0x218   :  { %v3588_v12 = vsub.f32 %v11482_v7, %v17711_v6  ;;  %17712 = vst [vmem:[#allocation121_spill] sm:$0xff] %v11571_v2  ;;  %3554 = vmatprep.subr.mxu1 %v3553_v0  ;;  %3207 = vmatpush2.msra.mxu0 %v11181_v17  ;;  %v3577_v6 = vand.u32 4294901760, %v3576_v15  ;;  %v11587_v10 = vsub.f32 %v465_v46, %v11553_v24  ;;  %v17717_v28 = vand.u32 4294901760, %v11515_v54 }
 0x219   :  { %v3594_v27 = vsub.f32 %v11493_v47, %v17713_v45  ;;  %17714 = vst [vmem:[#allocation122_spill] sm:$0xff] %v11579_v33  ;;  %v3600_v11 = vsub.f32 %v11504_v14, %v17715_v25  ;;  %3560 = vmatpush2.msra.mxu1 %v3559_v21  ;;  %3209 = vmatprep.subr.mxu0 %v11194_v19  ;;  %v3583_v45 = vand.u32 4294901760, %v3582_v44  ;;  %v17719_v46 = vand.u32 4294901760, %v11528_v3 }
 0x21a   :  { %17716 = vst [vmem:[#allocation123_spill] sm:$0xff] %v11587_v10  ;;  %v3606_v0 = vsub.f32 %v11515_v54, %v17717_v28  ;;  %v11595_v15 = vsub.f32 %v464_v23, %v11563_v9  ;;  %3566 = vmatprep.subr.mxu1 %v3565_v60  ;;  %3211 = vmatpush2.msra.mxu0 %v11207_v42  ;;  %v3589_v25 = vand.u32 4294901760, %v3588_v12  ;;  %v17720_v28 = vand.u32 4294901760, %v11541_v43 }
 0x21b   :  { %v3612_v21 = vsub.f32 %v11528_v3, %v17719_v46  ;;  %3572 = vmatpush2.msra.mxu1 %v3571_v32  ;;  %3213 = vmatprep.subr.mxu0 %v11220_v8  ;;  %v3595_v44 = vand.u32 4294901760, %v3594_v27  ;;  %v3601_v60 = vand.u32 4294901760, %v3600_v11  ;;  %v17721_v12 = vand.u32 4294901760, %v11551_v52  ;;  %v17722_v32 = vld [vmem:[#allocation63_spill] sm:$0xff] }
 0x21c   :  { %17718 = vst [vmem:[#allocation124_spill] sm:$0xff] %v11595_v15  ;;  %v3618_v40 = vsub.f32 %v11541_v43, %v17720_v28  ;;  %3578 = vmatprep.subr.mxu1 %v3577_v6  ;;  %3215 = vmatpush2.msra.mxu0 %v11233_v49  ;;  %v17723_v3 = vld [vmem:[#allocation43_spill] sm:$0xff]  ;;  %v3607_v27 = vand.u32 4294901760, %v3606_v0  ;;  %v17724_v28 = vand.u32 4294901760, %v11561_v55  ;;  %v16193_v23 = vand.u32 4294901760, %v11595_v15 }
 0x21d   :  { %v3624_v46 = vsub.f32 %v11551_v52, %v17721_v12  ;;  %v204_v54 = vadd.f32 %v17723_v3, %v17722_v32  ;;  %3584 = vmatpush2.msra.mxu1 %v3583_v45  ;;  %3217 = vmatprep.subr.mxu0 %v11250_v51  ;;  %v3613_v11 = vand.u32 4294901760, %v3612_v21  ;;  %v17725_v12 = vand.u32 4294901760, %v11571_v2 }
 0x21e   :  { %v3630_v6 = vsub.f32 %v11561_v55, %v17724_v28  ;;  %3590 = vmatprep.subr.mxu1 %v3589_v25  ;;  %3219 = vmatpush2.msra.mxu0 %v11267_v34  ;;  %v3619_v3 = vand.u32 4294901760, %v3618_v40  ;;  %v17726_v45 = vand.u32 4294901760, %v11579_v33  ;;  %v17727_v25 = vand.u32 4294901760, %v11587_v10 }
 0x21f   :  { %v3636_v56 = vsub.f32 %v11571_v2, %v17725_v12  ;;  %3596 = vmatpush2.msra.mxu1 %v3595_v44  ;;  %3221 = vmatprep.subr.mxu0 %v11281_v61  ;;  %v3625_v32 = vand.u32 4294901760, %v3624_v46  ;;  %v11631_v28 = vand.u32 4294901760, %v204_v54  ;;  %v3654_v40 = vsub.f32 %v11595_v15, %v16193_v23  ;;  %v17742_v23 = vld [vmem:[#allocation5_spill] sm:$0xff] }
 0x220   :  { %v3642_v0 = vsub.f32 %v11579_v33, %v17726_v45  ;;  %3602 = vmatprep.subr.mxu1 %v3601_v60  ;;  %3223 = vmatpush2.msra.mxu0 %v11295_v37  ;;  %v3648_v21 = vsub.f32 %v11587_v10, %v17727_v25  ;;  %v3631_v44 = vand.u32 4294901760, %v3630_v6  ;;  %v17734_v25 = vld [vmem:[#allocation73_spill] sm:$0xff] }
 0x221   :  { %17728 = vst [vmem:[#allocation63_spill] sm:$0xff] %v11631_v28  ;;  %3608 = vmatpush2.msra.mxu1 %v3607_v27  ;;  %3225 = vmatprep.subr.mxu0 %v11368_v18  ;;  %v3637_v60 = vand.u32 4294901760, %v3636_v56  ;;  %v11641_v27 = vsub.f32 %v204_v54, %v11631_v28  ;;  %v3655_v6 = vand.u32 4294901760, %v3654_v40  ;;  %v17729_v54 = vld [vmem:[#allocation57_spill] sm:$0xff] }
 0x222   :  { %3614 = vmatprep.subr.mxu1 %v3613_v11  ;;  %3227 = vmatpush2.msra.mxu0 %v11383_v48  ;;  %v3643_v46 = vand.u32 4294901760, %v3642_v0  ;;  %v3649_v12 = vand.u32 4294901760, %v3648_v21  ;;  %v17730_v11 = vld [vmem:[#allocation4_spill] sm:$0xff]  ;;  %v17732_v0 = vld [vmem:[#allocation59_spill] sm:$0xff]  ;;  %v17736_v40 = vld [vmem:[#allocation33_spill] sm:$0xff] }
 0x223   :  { %3620 = vmatpush2.msra.mxu1 %v3619_v3  ;;  %3229 = vmatprep.subr.mxu0 %v11398_v13  ;;  %v16194_v56 = vand.u32 4294901760, %v11641_v27  ;;  %v17731_v3 = vand.u32 4294901760, %v17730_v11  ;;  %v17735_v21 = vld [vmem:[#allocation71_spill] sm:$0xff] }
 0x224   :  { %3626 = vmatprep.subr.mxu1 %v3625_v32  ;;  %3231 = vmatpush2.msra.mxu0 %v11413_v22  ;;  %v17733_v32 = vld [vmem:[#allocation66_spill] sm:$0xff] }
 0x225   :  { %3632 = vmatpush2.msra.mxu1 %v3631_v44  ;;  %3233 = vmatprep.subr.mxu0 %v11428_v20  ;;  %v3265_v45 = vsub.f32 %v11641_v27, %v16194_v56  ;;  %v17744_v56 = vld [vmem:[#allocation37_spill] sm:$0xff] }
 0x226   :  { %3638 = vmatprep.subr.mxu1 %v3637_v60  ;;  %3235 = vmatpush2.msra.mxu0 %v11443_v35  ;;  %v17737_v60 = vld [vmem:[#allocation38_spill] sm:$0xff] }
 0x227   :  { %3644 = vmatpush2.msra.mxu1 %v3643_v46  ;;  %3237 = vmatprep.subr.mxu0 %v11458_v4  ;;  %v3266_v44 = vand.u32 4294901760, %v3265_v45  ;;  %v17738_v46 = vld [vmem:[#allocation2_spill] sm:$0xff]  ;;  %v17743_v45 = vld [vmem:[#allocation61_spill] sm:$0xff] }
 0x228   :  { %3650 = vmatprep.subr.mxu1 %v3649_v12  ;;  %3239 = vmatpush2.msra.mxu0 %v11473_v41  ;;  %v17739_v12 = vld [vmem:[#allocation41_spill] sm:$0xff] }
 0x229   :  { %3656 = vmatpush2.msra.mxu1 %v3655_v6  ;;  %3241 = vmatprep.subr.mxu0 %v11484_v1  ;;  %v17740_v6 = vld [vmem:[#allocation54_spill] sm:$0xff] }
 0x22a   :  { %3660 = vmatmul.mubr.f32.vlgmr.msra.gmra.mxu1 %v11631_v28  ;;  %3870 = vmatprep.subr.mxu1 %v10487_v53  ;;  %v17745_v28 = vld [vmem:[#allocation68_spill] sm:$0xff] }
 0x22b   :  { %3243 = vmatpush2.msra.mxu0 %v11495_v63  ;;  %3872 = vmatpush1.msra.mxu1 %v17729_v54 }
 0x22c   :  { %4000 = vmatprep.mubr.f32.mxu1 %v17731_v3  ;;  %3245 = vmatprep.subr.mxu0 %v11506_v62  ;;  %v17741_v3 = vld [vmem:[#allocation52_spill] sm:$0xff] }
 0x22d   :  { %3874 = vmatprep.subr.mxu1 %v17732_v0  ;;  %3247 = vmatpush2.msra.mxu0 %v11517_v58 }
 0x22e   :  { %3876 = vmatpush1.msra.mxu1 %v17733_v32  ;;  %3249 = vmatprep.subr.mxu0 %v11530_v50 }
 0x22f   :  { %3878 = vmatprep.subr.mxu1 %v17734_v25  ;;  %3251 = vmatpush2.msra.mxu0 %v11543_v59 }
 0x230   :  { %3880 = vmatpush1.msra.mxu1 %v17735_v21  ;;  %3253 = vmatprep.subr.mxu0 %v11553_v24 }
 0x231   :  { %3882 = vmatprep.subr.mxu1 %v17736_v40  ;;  %3255 = vmatpush2.msra.mxu0 %v11563_v9 }
 0x232   :  { %3884 = vmatpush1.msra.mxu1 %v17737_v60  ;;  %3267 = vmatmul.mubr.f32.vlgmr.msra.gmra.mxu0 %v3266_v44  ;;  %v17746_v60 = vld [vmem:[#allocation39_spill] sm:$0xff]  ;;  %v17747_v44 = vld [vmem:[#allocation78_spill] sm:$0xff] }
 0x233   :  { %3668 = vmatprep.subr.mxu0 %v17738_v46  ;;  %3886 = vmatprep.subr.mxu1 %v17739_v12  ;;  %v17748_v46 = vld [vmem:[#allocation51_spill] sm:$0xff] }
 0x234   :  { %3671 = vmatpush1.msra.mxu0 %v17740_v6  ;;  %3860 = vmatprep.mubr.f32.mxu0 %v17730_v11  ;;  %v17749_v12 = vld [vmem:[#allocation75_spill] sm:$0xff]  ;;  %v17750_v6 = vld [vmem:[#allocation49_spill] sm:$0xff]  ;;  %v17751_v11 = vld [vmem:[#allocation64_spill] sm:$0xff] }
 0x235   :  { %3888 = vmatpush1.msra.mxu1 %v17741_v3  ;;  %3674 = vmatprep.subr.mxu0 %v17742_v23 }
 0x236   :  { %3890 = vmatprep.subr.mxu1 %v17743_v45  ;;  %3677 = vmatpush1.msra.mxu0 %v17744_v56  ;;  %v17752_v45 = vld [vmem:[#allocation76_spill] sm:$0xff]  ;;  %v17753_v56 = vld [vmem:[#allocation106_spill] sm:$0xff] }
 0x237   :  { %3892 = vmatpush1.msra.mxu1 %v17745_v28  ;;  %3680 = vmatprep.subr.mxu0 %v17746_v60  ;;  %v17754_v28 = vld [vmem:[#allocation80_spill] sm:$0xff] }
 0x238   :  { %3894 = vmatprep.subr.mxu1 %v17747_v44  ;;  %3683 = vmatpush1.msra.mxu0 %v17748_v46  ;;  %v17755_v44 = vld [vmem:[#allocation91_spill] sm:$0xff] }
 0x239   :  { %3896 = vmatpush1.msra.mxu1 %v17749_v12  ;;  %3686 = vmatprep.subr.mxu0 %v17750_v6  ;;  %v17756_v12 = vld [vmem:[#allocation95_spill] sm:$0xff] }
 0x23a   :  { %3898 = vmatprep.subr.mxu1 %v10675_v57  ;;  %3689 = vmatpush1.msra.mxu0 %v17751_v11  ;;  %v17757_v57 = vld [vmem:[#allocation98_spill] sm:$0xff] }
 0x23b   :  { %3900 = vmatpush1.msra.mxu1 %v10689_v30  ;;  %3692 = vmatprep.subr.mxu0 %v17752_v45  ;;  %v17758_v30 = vld [vmem:[#allocation100_spill] sm:$0xff]  ;;  %v17759_v45 = vld [vmem:[#allocation58_spill] sm:$0xff] }
 0x23c   :  { %3902 = vmatprep.subr.mxu1 %v17753_v56  ;;  %3695 = vmatpush1.msra.mxu0 %v17754_v28  ;;  %v17760_v56 = vld [vmem:[#allocation101_spill] sm:$0xff] }
 0x23d   :  { %3904 = vmatpush1.msra.mxu1 %v10777_v16  ;;  %3698 = vmatprep.subr.mxu0 %v17755_v44  ;;  %v17761_v28 = vld [vmem:[#allocation65_spill] sm:$0xff]  ;;  %v17762_v16 = vld [vmem:[#allocation103_spill] sm:$0xff]  ;;  %v17763_v44 = vld [vmem:[#allocation70_spill] sm:$0xff] }
 0x23e   :  { %3906 = vmatprep.subr.mxu1 %v10792_v39  ;;  %3701 = vmatpush1.msra.mxu0 %v17756_v12  ;;  %v17764_v39 = vld [vmem:[#allocation115_spill] sm:$0xff] }
 0x23f   :  { %3908 = vmatpush1.msra.mxu1 %v10807_v31  ;;  %3704 = vmatprep.subr.mxu0 %v17757_v57  ;;  %v17765_v12 = vld [vmem:[#allocation15_spill] sm:$0xff]  ;;  %v17766_v31 = vld [vmem:[#allocation82_spill] sm:$0xff]  ;;  %v17767_v57 = vld [vmem:[#allocation16_spill] sm:$0xff] }
 0x240   :  { %3910 = vmatprep.subr.mxu1 %v10824_v26  ;;  %3707 = vmatpush1.msra.mxu0 %v17758_v30  ;;  %v17768_v26 = vld [vmem:[#allocation3_spill] sm:$0xff]  ;;  %v17769_v30 = vld [vmem:[#allocation10_spill] sm:$0xff] }
 0x241   :  { %3912 = vmatpush1.msra.mxu1 %v17759_v45  ;;  %3710 = vmatprep.subr.mxu0 %v17760_v56  ;;  %v17770_v45 = vld [vmem:[#allocation13_spill] sm:$0xff]  ;;  %v17771_v56 = vld [vmem:[#allocation6_spill] sm:$0xff] }
 0x242   :  { %3914 = vmatprep.subr.mxu1 %v17761_v28  ;;  %3713 = vmatpush1.msra.mxu0 %v17762_v16  ;;  %v17772_v28 = vld [vmem:[#allocation14_spill] sm:$0xff]  ;;  %v17773_v16 = vld [vmem:[#allocation7_spill] sm:$0xff] }
 0x243   :  { %3916 = vmatpush1.msra.mxu1 %v17763_v44  ;;  %3716 = vmatprep.subr.mxu0 %v17764_v39  ;;  %v17774_v44 = vld [vmem:[#allocation81_spill] sm:$0xff] }
 0x244   :  { %3918 = vmatprep.subr.mxu1 %v17765_v12  ;;  %3719 = vmatpush1.msra.mxu0 %v17766_v31  ;;  %v17775_v39 = vld [vmem:[#allocation9_spill] sm:$0xff]  ;;  %v17776_v12 = vld [vmem:[#allocation84_spill] sm:$0xff]  ;;  %v17777_v31 = vld [vmem:[#allocation19_spill] sm:$0xff] }
 0x245   :  { %3920 = vmatpush1.msra.mxu1 %v17767_v57  ;;  %3722 = vmatprep.subr.mxu0 %v17768_v26  ;;  %v17778_v57 = vld [vmem:[#allocation24_spill] sm:$0xff] }
 0x246   :  { %3922 = vmatprep.subr.mxu1 %v17769_v30  ;;  %3725 = vmatpush1.msra.mxu0 %v17770_v45  ;;  %v17779_v26 = vld [vmem:[#allocation20_spill] sm:$0xff]  ;;  %v17781_v45 = vld [vmem:[#allocation35_spill] sm:$0xff] }
 0x247   :  { %3924 = vmatpush1.msra.mxu1 %v17771_v56  ;;  %3728 = vmatprep.subr.mxu0 %v17772_v28  ;;  %v17780_v30 = vld [vmem:[#allocation28_spill] sm:$0xff]  ;;  %v17782_v56 = vld [vmem:[#allocation18_spill] sm:$0xff]  ;;  %v17783_v28 = vld [vmem:[#allocation29_spill] sm:$0xff] }
 0x248   :  { %3926 = vmatprep.subr.mxu1 %v17773_v16  ;;  %3731 = vmatpush1.msra.mxu0 %v17774_v44  ;;  %v17784_v16 = vld [vmem:[#allocation21_spill] sm:$0xff]  ;;  %v17785_v44 = vld [vmem:[#allocation36_spill] sm:$0xff] }
 0x249   :  { %3928 = vmatpush1.msra.mxu1 %v17775_v39  ;;  %3734 = vmatprep.subr.mxu0 %v17776_v12  ;;  %v17786_v39 = vld [vmem:[#allocation30_spill] sm:$0xff] }
 0x24a   :  { %3930 = vmatprep.subr.mxu1 %v17777_v31  ;;  %3737 = vmatpush1.msra.mxu0 %v17778_v57  ;;  %v17787_v31 = vld [vmem:[#allocation31_spill] sm:$0xff] }
 0x24b   :  { %3932 = vmatpush1.msra.mxu1 %v17779_v26  ;;  %3740 = vmatprep.subr.mxu0 %v17780_v30  ;;  %v17788_v57 = vld [vmem:[#allocation23_spill] sm:$0xff] }
 0x24c   :  { %3934 = vmatprep.subr.mxu1 %v17781_v45  ;;  %3743 = vmatpush1.msra.mxu0 %v17782_v56  ;;  %v17789_v26 = vld [vmem:[#allocation11_spill] sm:$0xff]  ;;  %v17790_v45 = vld [vmem:[#allocation32_spill] sm:$0xff] }
 0x24d   :  { %3936 = vmatpush2.msra.mxu1 %v17783_v28  ;;  %3746 = vmatprep.subr.mxu0 %v17784_v16  ;;  %v17791_v28 = vld [vmem:[#allocation17_spill] sm:$0xff] }
 0x24e   :  { %3938 = vmatprep.subr.mxu1 %v17785_v44  ;;  %3749 = vmatpush1.msra.mxu0 %v17786_v39  ;;  %v17792_v44 = vld [vmem:[#allocation40_spill] sm:$0xff] }
 0x24f   :  { %3940 = vmatpush2.msra.mxu1 %v11113_v36  ;;  %3752 = vmatprep.subr.mxu0 %v17787_v31  ;;  %v17793_v36 = vld [vmem:[#allocation44_spill] sm:$0xff] }
 0x250   :  { %3942 = vmatprep.subr.mxu1 %v17788_v57  ;;  %3755 = vmatpush1.msra.mxu0 %v17789_v26  ;;  %v17794_v57 = vld [vmem:[#allocation45_spill] sm:$0xff] }
 0x251   :  { %3944 = vmatpush2.msra.mxu1 %v11147_v29  ;;  %3758 = vmatprep.subr.mxu0 %v17790_v45  ;;  %v17795_v29 = vld [vmem:[#allocation46_spill] sm:$0xff] }
 0x252   :  { %3946 = vmatprep.subr.mxu1 %v11164_v38  ;;  %3761 = vmatpush1.msra.mxu0 %v17791_v28  ;;  %v17796_v38 = vld [vmem:[#allocation47_spill] sm:$0xff] }
 0x253   :  { %3948 = vmatpush2.msra.mxu1 %v11181_v17  ;;  %3764 = vmatprep.subr.mxu0 %v17792_v44  ;;  %v17797_v17 = vld [vmem:[#allocation34_spill] sm:$0xff] }
 0x254   :  { %3950 = vmatprep.subr.mxu1 %v11194_v19  ;;  %3767 = vmatpush2.msra.mxu0 %v17793_v36  ;;  %v17798_v19 = vld [vmem:[#allocation56_spill] sm:$0xff] }
 0x255   :  { %3952 = vmatpush2.msra.mxu1 %v11207_v42  ;;  %3770 = vmatprep.subr.mxu0 %v17794_v57  ;;  %v17799_v42 = vld [vmem:[#allocation50_spill] sm:$0xff] }
 0x256   :  { %3954 = vmatprep.subr.mxu1 %v11220_v8  ;;  %3773 = vmatpush2.msra.mxu0 %v17795_v29  ;;  %v17800_v8 = vld [vmem:[#allocation62_spill] sm:$0xff] }
 0x257   :  { %3956 = vmatpush2.msra.mxu1 %v11233_v49  ;;  %3776 = vmatprep.subr.mxu0 %v17796_v38  ;;  %v17801_v49 = vld [vmem:[#allocation67_spill] sm:$0xff] }
 0x258   :  { %3958 = vmatprep.subr.mxu1 %v11250_v51  ;;  %3779 = vmatpush2.msra.mxu0 %v17797_v17  ;;  %v17802_v51 = vld [vmem:[#allocation77_spill] sm:$0xff] }
 0x259   :  { %3960 = vmatpush2.msra.mxu1 %v11267_v34  ;;  %3782 = vmatprep.subr.mxu0 %v17798_v19  ;;  %v17803_v34 = vld [vmem:[#allocation74_spill] sm:$0xff] }
 0x25a   :  { %3962 = vmatprep.subr.mxu1 %v11281_v61  ;;  %3785 = vmatpush2.msra.mxu0 %v17799_v42  ;;  %v17804_v61 = vld [vmem:[#allocation92_spill] sm:$0xff] }
 0x25b   :  { %3964 = vmatpush2.msra.mxu1 %v11295_v37  ;;  %3788 = vmatprep.subr.mxu0 %v17800_v8  ;;  %v17805_v37 = vld [vmem:[#allocation94_spill] sm:$0xff] }
 0x25c   :  { %3966 = vmatprep.subr.mxu1 %v11368_v18  ;;  %3791 = vmatpush2.msra.mxu0 %v17801_v49  ;;  %v17806_v18 = vld [vmem:[#allocation96_spill] sm:$0xff] }
 0x25d   :  { %3968 = vmatpush2.msra.mxu1 %v11383_v48  ;;  %3794 = vmatprep.subr.mxu0 %v17802_v51  ;;  %v17807_v48 = vld [vmem:[#allocation99_spill] sm:$0xff] }
 0x25e   :  { %3970 = vmatprep.subr.mxu1 %v11398_v13  ;;  %3797 = vmatpush2.msra.mxu0 %v17803_v34  ;;  %v17808_v13 = vld [vmem:[#allocation108_spill] sm:$0xff] }
 0x25f   :  { %3972 = vmatpush2.msra.mxu1 %v11413_v22  ;;  %3800 = vmatprep.subr.mxu0 %v17804_v61  ;;  %v17809_v22 = vld [vmem:[#allocation112_spill] sm:$0xff] }
 0x260   :  { %3974 = vmatprep.subr.mxu1 %v11428_v20  ;;  %3803 = vmatpush2.msra.mxu0 %v17805_v37  ;;  %v17810_v20 = vld [vmem:[#allocation114_spill] sm:$0xff] }
 0x261   :  { %3976 = vmatpush2.msra.mxu1 %v11443_v35  ;;  %3806 = vmatprep.subr.mxu0 %v17806_v18 }
 0x262   :  { %3978 = vmatprep.subr.mxu1 %v11458_v4  ;;  %3809 = vmatpush2.msra.mxu0 %v17807_v48 }
 0x263   :  { %3980 = vmatpush2.msra.mxu1 %v11473_v41  ;;  %3812 = vmatprep.subr.mxu0 %v17808_v13 }
 0x264   :  { %3982 = vmatprep.subr.mxu1 %v11484_v1  ;;  %3815 = vmatpush2.msra.mxu0 %v17809_v22 }
 0x265   :  { %3984 = vmatpush2.msra.mxu1 %v11495_v63  ;;  %3818 = vmatprep.subr.mxu0 %v17810_v20  ;;  %v17811_v63 = vld [vmem:[#allocation117_spill] sm:$0xff] }
 0x266   :  { %3986 = vmatprep.subr.mxu1 %v11506_v62  ;;  %3821 = vmatpush2.msra.mxu0 %v11471_v5  ;;  %v17812_v62 = vld [vmem:[#allocation119_spill] sm:$0xff] }
 0x267   :  { %3988 = vmatpush2.msra.mxu1 %v11517_v58  ;;  %3824 = vmatprep.subr.mxu0 %v11482_v7  ;;  %v17813_v58 = vand.u32 4294901760, %v11641_v27 }
 0x268   :  { %3990 = vmatprep.subr.mxu1 %v11530_v50  ;;  %3827 = vmatpush2.msra.mxu0 %v11493_v47 }
 0x269   :  { %3992 = vmatpush2.msra.mxu1 %v11543_v59  ;;  %3830 = vmatprep.subr.mxu0 %v11504_v14  ;;  %v17814_v59 = vld [vmem:[#allocation83_spill] sm:$0xff] }
 0x26a   :  { %3994 = vmatprep.subr.mxu1 %v11553_v24  ;;  %3833 = vmatpush2.msra.mxu0 %v17811_v63 }
 0x26b   :  { %3996 = vmatpush2.msra.mxu1 %v11563_v9  ;;  %3836 = vmatprep.subr.mxu0 %v17812_v62 }
 0x26c   :  { %4004 = vmatmul.mubr.f32.vlgmr.msra.gmra.mxu1 %v17813_v58  ;;  %4276 = vmatprep.subr.mxu1 %v10487_v53  ;;  %v17815_v53 = vld [vmem:[#allocation38_spill] sm:$0xff] }
 0x26d   :  { %3839 = vmatpush2.msra.mxu0 %v11541_v43  ;;  %4278 = vmatpush1.msra.mxu1 %v17729_v54  ;;  %v17816_v58 = vld [vmem:[#allocation2_spill] sm:$0xff] }
 0x26e   :  { %4404 = vmatprep.mubr.f32.mxu1 %v17814_v59  ;;  %3842 = vmatprep.subr.mxu0 %v11551_v52  ;;  %v17817_v54 = vand.u32 4294901760, %v17816_v58  ;;  %v17826_v58 = vand.u32 4294901760, %v17746_v60  ;;  %v17835_v60 = vld [vmem:[#allocation76_spill] sm:$0xff] }
 0x26f   :  { %4280 = vmatprep.subr.mxu1 %v17732_v0  ;;  %3845 = vmatpush2.msra.mxu0 %v11561_v55  ;;  %v17818_v0 = vld [vmem:[#allocation41_spill] sm:$0xff] }
 0x270   :  { %4282 = vmatpush1.msra.mxu1 %v17733_v32  ;;  %3848 = vmatprep.subr.mxu0 %v11571_v2  ;;  %v17819_v32 = vld [vmem:[#allocation54_spill] sm:$0xff] }
 0x271   :  { %4284 = vmatprep.subr.mxu1 %v17734_v25  ;;  %3851 = vmatpush2.msra.mxu0 %v11579_v33  ;;  %v17820_v25 = vand.u32 4294901760, %v17819_v32  ;;  %v17859_v33 = vld [vmem:[#allocation65_spill] sm:$0xff]  ;;  %v17866_v2 = vld [vmem:[#allocation82_spill] sm:$0xff] }
 0x272   :  { %4286 = vmatpush1.msra.mxu1 %v17735_v21  ;;  %3854 = vmatprep.subr.mxu0 %v11587_v10  ;;  %v17821_v21 = vand.u32 4294901760, %v17742_v23  ;;  %v17830_v23 = vand.u32 4294901760, %v17750_v6  ;;  %v17841_v6 = vld [vmem:[#allocation109_spill] sm:$0xff] }
 0x273   :  { %4288 = vmatprep.subr.mxu1 %v17736_v40  ;;  %3857 = vmatpush2.msra.mxu0 %v11595_v15  ;;  %v17822_v40 = vld [vmem:[#allocation61_spill] sm:$0xff] }
 0x274   :  { %4290 = vmatpush1.msra.mxu1 %v17815_v53  ;;  %3863 = vmatmul.mubr.f32.vlgmr.msra.gmra.mxu0 %v11641_v27  ;;  %v17823_v53 = vld [vmem:[#allocation37_spill] sm:$0xff]  ;;  %v17825_v27 = vld [vmem:[#allocation68_spill] sm:$0xff] }
 0x275   :  { %4013 = vmatprep.subr.mxu0 %v17817_v54  ;;  %4292 = vmatprep.subr.mxu1 %v17818_v0  ;;  %v17824_v15 = vand.u32 4294901760, %v17823_v53  ;;  %v17827_v54 = vld [vmem:[#allocation78_spill] sm:$0xff]  ;;  %v17828_v0 = vand.u32 4294901760, %v17748_v46  ;;  %v17837_v53 = vld [vmem:[#allocation89_spill] sm:$0xff] }
 0x276   :  { %4017 = vmatpush1.msra.mxu0 %v17820_v25  ;;  %4267 = vmatprep.mubr.f32.mxu0 %v17814_v59  ;;  %v17829_v59 = vld [vmem:[#allocation75_spill] sm:$0xff]  ;;  %v17832_v25 = vld [vmem:[#allocation93_spill] sm:$0xff]  ;;  %v17838_v46 = vld [vmem:[#allocation106_spill] sm:$0xff] }
 0x277   :  { %4294 = vmatpush1.msra.mxu1 %v17741_v3  ;;  %4021 = vmatprep.subr.mxu0 %v17821_v21  ;;  %v17831_v3 = vld [vmem:[#allocation85_spill] sm:$0xff] }
 0x278   :  { %4296 = vmatprep.subr.mxu1 %v17822_v40  ;;  %4025 = vmatpush1.msra.mxu0 %v17824_v15  ;;  %v110_v32 = vadd.s32 896, %v17831_v3  ;;  %v17833_v15 = vand.u32 4294901760, %v17751_v11  ;;  %v17834_v21 = vld [vmem:[#allocation97_spill] sm:$0xff]  ;;  %v17836_v40 = vand.u32 4294901760, %v17835_v60  ;;  %v17845_v11 = vld [vmem:[#allocation110_spill] sm:$0xff] }
 0x279   :  { %4298 = vmatpush1.msra.mxu1 %v17825_v27  ;;  %4029 = vmatprep.subr.mxu0 %v17826_v58  ;;  %v17839_v27 = vld [vmem:[#allocation80_spill] sm:$0xff]  ;;  %v17849_v60 = vld [vmem:[#allocation113_spill] sm:$0xff] }
 0x27a   :  { %4300 = vmatprep.subr.mxu1 %v17827_v54  ;;  %4033 = vmatpush1.msra.mxu0 %v17828_v0  ;;  %vm148_vm2 = vcmp.eq.s32.totalorder %v17837_v53, %v110_v32  ;;  %v17840_v58 = vand.u32 4294901760, %v17839_v27  ;;  %v17842_v54 = vld [vmem:[#allocation91_spill] sm:$0xff]  ;;  %v17852_v27 = vld [vmem:[#allocation88_spill] sm:$0xff] }
 0x27b   :  { %4302 = vmatpush1.msra.mxu1 %v17829_v59  ;;  %4037 = vmatprep.subr.mxu0 %v17830_v23  ;;  %v17843_v0 = vand.u32 4294901760, %v17842_v54  ;;  %v17844_v59 = vld [vmem:[#allocation87_spill] sm:$0xff]  ;;  %vm183_vm4 = vcmp.eq.s32.totalorder %v17852_v27, %v110_v32 }
 0x27c   :  { %4304 = vmatprep.subr.mxu1 %v17832_v25  ;;  %4041 = vmatpush1.msra.mxu0 %v17833_v15  ;;  %vm121_vm3 = vcmp.eq.s32.totalorder %v17844_v59, %v110_v32  ;;  %v17846_v23 = vld [vmem:[#allocation95_spill] sm:$0xff]  ;;  %v17848_v15 = vmov 0.0  }
 0x27d   :  { %4306 = vmatpush1.msra.mxu1 %v17834_v21  ;;  %4045 = vmatprep.subr.mxu0 %v17836_v40  ;;  %v17847_v25 = vand.u32 4294901760, %v17846_v23  ;;  %v7874_v21 = vsel %vm148_vm2, 1.0, %v17848_v15  ;;  %v17850_v40 = vld [vmem:[#allocation98_spill] sm:$0xff]  ;;  %v17857_v23 = vld [vmem:[#allocation101_spill] sm:$0xff]  ;;  %v7882_v32 = vsel %vm183_vm4, 1.0, %v17848_v15 }
 0x27e   :  { %4308 = vmatprep.subr.mxu1 %v17838_v46  ;;  %4049 = vmatpush1.msra.mxu0 %v17840_v58  ;;  %v17851_v46 = vand.u32 4294901760, %v17850_v40  ;;  %v17853_v58 = vld [vmem:[#allocation69_spill] sm:$0xff] }
 0x27f   :  { %4310 = vmatpush1.msra.mxu1 %v17841_v6  ;;  %4053 = vmatprep.subr.mxu0 %v17843_v0  ;;  %v17854_v6 = vld [vmem:[#allocation100_spill] sm:$0xff]  ;;  %v7866_v0 = vsel %vm121_vm3, 1.0, %v17848_v15 }
 0x280   :  { %4312 = vmatprep.subr.mxu1 %v17845_v11  ;;  %4057 = vmatpush1.msra.mxu0 %v17847_v25  ;;  %v17855_v54 = vand.u32 4294901760, %v17854_v6  ;;  %v17856_v11 = vld [vmem:[#allocation58_spill] sm:$0xff]  ;;  %v17858_v25 = vand.u32 4294901760, %v17857_v23  ;;  %v172_v10 = vadd.f32 %v7874_v21, %v7866_v0  ;;  %v17868_v23 = vld [vmem:[#allocation16_spill] sm:$0xff]  ;;  %v17869_v21 = vld [vmem:[#allocation3_spill] sm:$0xff] }
 0x281   :  { %4314 = vmatpush1.msra.mxu1 %v17849_v60  ;;  %4061 = vmatprep.subr.mxu0 %v17851_v46  ;;  %v17860_v60 = vld [vmem:[#allocation103_spill] sm:$0xff]  ;;  %v17862_v46 = vld [vmem:[#allocation70_spill] sm:$0xff]  ;;  %v17870_v0 = vand.u32 4294901760, %v17869_v21  ;;  %v17881_v21 = vand.u32 4294901760, %v17776_v12  ;;  %v17889_v12 = vand.u32 4294901760, %v17782_v56  ;;  %v17894_v56 = vand.u32 4294901760, %v17786_v39 }
 0x282   :  { %4316 = vmatprep.subr.mxu1 %v17853_v58  ;;  %4065 = vmatpush1.msra.mxu0 %v17855_v54  ;;  %v17861_v40 = vand.u32 4294901760, %v17860_v60  ;;  %v17863_v58 = vld [vmem:[#allocation115_spill] sm:$0xff]  ;;  %v17872_v60 = vld [vmem:[#allocation13_spill] sm:$0xff]  ;;  %v109_v39 = vadd.s32 768, %v17831_v3 }
 0x283   :  { %4318 = vmatpush1.msra.mxu1 %v17856_v11  ;;  %4069 = vmatprep.subr.mxu0 %v17858_v25  ;;  %v17864_v6 = vand.u32 4294901760, %v17863_v58  ;;  %v17865_v54 = vld [vmem:[#allocation15_spill] sm:$0xff]  ;;  %v17867_v11 = vand.u32 4294901760, %v17866_v2  ;;  %v17871_v25 = vld [vmem:[#allocation10_spill] sm:$0xff]  ;;  %v17878_v2 = vld [vmem:[#allocation81_spill] sm:$0xff] }
 0x284   :  { %4320 = vmatprep.subr.mxu1 %v17859_v33  ;;  %4073 = vmatpush1.msra.mxu0 %v17861_v40  ;;  %v207_v33 = vadd.f32 %v7882_v32, %v172_v10  ;;  %v17873_v40 = vand.u32 4294901760, %v17872_v60  ;;  %v17875_v58 = vld [vmem:[#allocation14_spill] sm:$0xff]  ;;  %v17883_v32 = vld [vmem:[#allocation19_spill] sm:$0xff]  ;;  %v17886_v60 = vld [vmem:[#allocation20_spill] sm:$0xff]  ;;  %vm147_vm5 = vcmp.eq.s32.totalorder %v17837_v53, %v109_v39  ;;  %vm120_vm6 = vcmp.eq.s32.totalorder %v17844_v59, %v109_v39 }
 0x285   :  { %4322 = vmatpush1.msra.mxu1 %v17862_v46  ;;  %4077 = vmatprep.subr.mxu0 %v17864_v6  ;;  %v17874_v46 = vld [vmem:[#allocation6_spill] sm:$0xff]  ;;  %v17876_v6 = vand.u32 4294901760, %v17875_v58  ;;  %v17888_v58 = vld [vmem:[#allocation35_spill] sm:$0xff]  ;;  %vm182_vm7 = vcmp.eq.s32.totalorder %v17852_v27, %v109_v39 }
 0x286   :  { %4324 = vmatprep.subr.mxu1 %v17865_v54  ;;  %4081 = vmatpush1.msra.mxu0 %v17867_v11  ;;  %v17877_v54 = vld [vmem:[#allocation7_spill] sm:$0xff]  ;;  %v17879_v11 = vand.u32 4294901760, %v17878_v2  ;;  %v11879_v10 = vand.u32 4294901760, %v207_v33  ;;  %v17891_v2 = vand.u32 4294901760, %v17784_v16  ;;  %v17895_v16 = vld [vmem:[#allocation22_spill] sm:$0xff] }
 0x287   :  { %4326 = vmatpush1.msra.mxu1 %v17868_v23  ;;  %4085 = vmatprep.subr.mxu0 %v17870_v0  ;;  %v17880_v23 = vld [vmem:[#allocation9_spill] sm:$0xff]  ;;  %v17884_v0 = vld [vmem:[#allocation24_spill] sm:$0xff]  ;;  %v517_v53 = vld [vmem:[%s15589_s2 + $0x6a8] sm:$0xff] }
 0x288   :  { %4328 = vmatprep.subr.mxu1 %v17871_v25  ;;  %4089 = vmatpush1.msra.mxu0 %v17873_v40  ;;  %17882 = vst [vmem:[#allocation43_spill] sm:$0xff] %v11879_v10  ;;  %v17885_v25 = vand.u32 4294901760, %v17884_v0  ;;  %v17887_v40 = vand.u32 4294901760, %v17780_v30  ;;  %v525_v30 = vld [vmem:[%s15589_s2 + $0x6e8] sm:$0xff]  ;;  %v17896_v0 = vand.u32 4294901760, %v17787_v31  ;;  %v522_v31 = vld [vmem:[%s15589_s2 + $0x6d0] sm:$0xff] }
 0x289   :  { %4330 = vmatpush1.msra.mxu1 %v17874_v46  ;;  %4093 = vmatprep.subr.mxu0 %v17876_v6  ;;  %v527_v46 = vld [vmem:[%s15589_s2 + $0x6f8] sm:$0xff]  ;;  %v526_v6 = vld [vmem:[%s15589_s2 + $0x6f0] sm:$0xff]  ;;  %v17929_v59 = vld [vmem:[#allocation55_spill] sm:$0xff] }
 0x28a   :  { %4332 = vmatprep.subr.mxu1 %v17877_v54  ;;  %4097 = vmatpush1.msra.mxu0 %v17879_v11  ;;  %v17890_v54 = vld [vmem:[#allocation29_spill] sm:$0xff]  ;;  %v11903_v11 = vsub.f32 %v207_v33, %v11879_v10  ;;  %v513_v27 = vld [vmem:[%s15589_s2 + $0x688] sm:$0xff] }
 0x28b   :  { %4334 = vmatpush1.msra.mxu1 %v17880_v23  ;;  %4101 = vmatprep.subr.mxu0 %v17881_v21  ;;  %v17893_v23 = vld [vmem:[#allocation36_spill] sm:$0xff]  ;;  %v11908_v21 = vand.u32 4294901760, %v527_v46  ;;  %v523_v33 = vld [vmem:[%s15589_s2 + $0x6d8] sm:$0xff]  ;;  %v17938_v39 = vld [vmem:[#allocation79_spill] sm:$0xff] }
 0x28c   :  { %4336 = vmatprep.subr.mxu1 %v17883_v32  ;;  %4105 = vmatpush1.msra.mxu0 %v17885_v25  ;;  %17892 = vst [vmem:[#allocation57_spill] sm:$0xff] %v11903_v11  ;;  %v524_v32 = vld [vmem:[%s15589_s2 + $0x6e0] sm:$0xff]  ;;  %v11916_v25 = vand.u32 4294901760, %v526_v6 }
 0x28d   :  { %4338 = vmatpush1.msra.mxu1 %v17886_v60  ;;  %4109 = vmatprep.subr.mxu0 %v17887_v40  ;;  %v17897_v60 = vld [vmem:[#allocation23_spill] sm:$0xff]  ;;  %v17898_v40 = vand.u32 4294901760, %v17789_v26  ;;  %v17915_v26 = vld [vmem:[#allocation42_spill] sm:$0xff] }
 0x28e   :  { %4340 = vmatprep.subr.mxu1 %v17888_v58  ;;  %4113 = vmatpush1.msra.mxu0 %v17889_v12  ;;  %v11925_v58 = vand.u32 4294901760, %v525_v30  ;;  %v17900_v12 = vld [vmem:[#allocation25_spill] sm:$0xff] }
 0x28f   :  { %4342 = vmatpush2.msra.mxu1 %v17890_v54  ;;  %4117 = vmatprep.subr.mxu0 %v17891_v2  ;;  %v17901_v54 = vand.u32 4294901760, %v17790_v45  ;;  %v11933_v2 = vand.u32 4294901760, %v524_v32  ;;  %v11946_v45 = vand.u32 4294901760, %v523_v33 }
 0x290   :  { %4344 = vmatprep.subr.mxu1 %v17893_v23  ;;  %4121 = vmatpush1.msra.mxu0 %v17894_v56  ;;  %17899 = vst [vmem:[#allocation4_spill] sm:$0xff] %v11925_v58  ;;  %v521_v23 = vld [vmem:[%s15589_s2 + $0x6c8] sm:$0xff]  ;;  %v17903_v56 = vld [vmem:[#allocation26_spill] sm:$0xff] }
 0x291   :  { %4346 = vmatpush2.msra.mxu1 %v17895_v16  ;;  %4125 = vmatprep.subr.mxu0 %v17896_v0  ;;  %17902 = vst [vmem:[#allocation59_spill] sm:$0xff] %v11933_v2  ;;  %v17904_v16 = vand.u32 4294901760, %v17791_v28  ;;  %v11944_v0 = vsub.f32 %v527_v46, %v11908_v21  ;;  %17906 = vst [vmem:[#allocation73_spill] sm:$0xff] %v11946_v45  ;;  %v519_v28 = vld [vmem:[%s15589_s2 + $0x6b8] sm:$0xff]  ;;  %v17911_v46 = vld [vmem:[#allocation48_spill] sm:$0xff] }
 0x292   :  { %4348 = vmatprep.subr.mxu1 %v17897_v60  ;;  %4129 = vmatpush1.msra.mxu0 %v17898_v40  ;;  %v520_v60 = vld [vmem:[%s15589_s2 + $0x6c0] sm:$0xff]  ;;  %v17907_v40 = vld [vmem:[#allocation27_spill] sm:$0xff] }
 0x293   :  { %4350 = vmatpush2.msra.mxu1 %v17900_v12  ;;  %4133 = vmatprep.subr.mxu0 %v17901_v54  ;;  %17905 = vst [vmem:[#allocation66_spill] sm:$0xff] %v11944_v0  ;;  %v17908_v12 = vand.u32 4294901760, %v17792_v44  ;;  %v11955_v54 = vsub.f32 %v526_v6, %v11916_v25  ;;  %v11969_v44 = vand.u32 4294901760, %v521_v23  ;;  %v518_v6 = vld [vmem:[%s15589_s2 + $0x6b0] sm:$0xff] }
 0x294   :  { %4352 = vmatprep.subr.mxu1 %v17903_v56  ;;  %4137 = vmatpush1.msra.mxu0 %v17904_v16  ;;  %v11957_v56 = vand.u32 4294901760, %v522_v31  ;;  %v17912_v16 = vand.u32 4294901760, %v17793_v36  ;;  %v11981_v36 = vsub.f32 %v524_v32, %v11933_v2  ;;  %v12001_v2 = vand.u32 4294901760, %v519_v28  ;;  %v515_v32 = vld [vmem:[%s15589_s2 + $0x698] sm:$0xff] }
 0x295   :  { %4354 = vmatpush2.msra.mxu1 %v17907_v40  ;;  %4141 = vmatprep.subr.mxu0 %v17908_v12  ;;  %17909 = vst [vmem:[#allocation71_spill] sm:$0xff] %v11955_v54  ;;  %v11967_v40 = vsub.f32 %v525_v30, %v11925_v58  ;;  %17914 = vst [vmem:[#allocation5_spill] sm:$0xff] %v11969_v44  ;;  %v7873_v12 = vsel %vm147_vm5, 1.0, %v17848_v15  ;;  %v11983_v30 = vand.u32 4294901760, %v520_v60  ;;  %v17924_v58 = vld [vmem:[#allocation53_spill] sm:$0xff] }
 0x296   :  { %17910 = vst [vmem:[#allocation33_spill] sm:$0xff] %v11957_v56  ;;  %4356 = vmatprep.subr.mxu1 %v17911_v46  ;;  %4145 = vmatpush2.msra.mxu0 %v17912_v16  ;;  %v17916_v46 = vand.u32 4294901760, %v17794_v57  ;;  %17917 = vst [vmem:[#allocation39_spill] sm:$0xff] %v11981_v36  ;;  %v17919_v16 = vand.u32 4294901760, %v11903_v11  ;;  %v17921_v57 = vand.u32 4294901760, %v17795_v29  ;;  %v17925_v29 = vand.u32 4294901760, %v17796_v38 }
 0x297   :  { %17913 = vst [vmem:[#allocation52_spill] sm:$0xff] %v11967_v40  ;;  %4358 = vmatpush2.msra.mxu1 %v17915_v26  ;;  %17918 = vst [vmem:[#allocation51_spill] sm:$0xff] %v11983_v30  ;;  %v17920_v26 = vld [vmem:[#allocation60_spill] sm:$0xff] }
 0x298   :  { %4149 = vmatprep.subr.mxu0 %v17916_v46  ;;  %v11988_v3 = vsub.f32 %v11903_v11, %v17919_v16  ;;  %4360 = vmatprep.subr.mxu1 %v17920_v26  ;;  %v11999_v46 = vsub.f32 %v523_v33, %v11946_v45  ;;  %17923 = vst [vmem:[#allocation64_spill] sm:$0xff] %v12001_v2  ;;  %v516_v16 = vld [vmem:[%s15589_s2 + $0x6a0] sm:$0xff]  ;;  %v7865_v11 = vsel %vm120_vm6, 1.0, %v17848_v15  ;;  %v514_v26 = vld [vmem:[%s15589_s2 + $0x690] sm:$0xff] }
 0x299   :  { %4153 = vmatpush2.msra.mxu0 %v17921_v57  ;;  %4362 = vmatpush2.msra.mxu1 %v17924_v58  ;;  %v12014_v33 = vsub.f32 %v522_v31, %v11957_v56  ;;  %v12016_v57 = vand.u32 4294901760, %v518_v6  ;;  %v12021_v45 = vadd.f32 %v7873_v12, %v7865_v11  ;;  %v17930_v58 = vand.u32 4294901760, %v17797_v17  ;;  %v17934_v12 = vld [vmem:[#allocation72_spill] sm:$0xff] }
 0x29a   :  { %17922 = vst [vmem:[#allocation49_spill] sm:$0xff] %v11999_v46  ;;  %4157 = vmatprep.subr.mxu0 %v17925_v29  ;;  %4364 = vmatprep.subr.mxu1 %v17929_v59  ;;  %v12028_v29 = vsub.f32 %v521_v23, %v11969_v44  ;;  %v12030_v31 = vand.u32 4294901760, %v517_v53  ;;  %v12038_v11 = vsel %vm182_vm7, 1.0, %v17848_v15  ;;  %v17935_v17 = vand.u32 4294901760, %v17798_v19  ;;  %v512_v15 = vld [vmem:[%s15589_s2 + $0x680] sm:$0xff] }
 0x29b   :  { %17926 = vst [vmem:[#allocation84_spill] sm:$0xff] %v12014_v33  ;;  %17927 = vst [vmem:[#allocation28_spill] sm:$0xff] %v12016_v57  ;;  %4161 = vmatpush2.msra.mxu0 %v17930_v58  ;;  %4366 = vmatpush2.msra.mxu1 %v17934_v12  ;;  %v12045_v23 = vsub.f32 %v520_v60, %v11983_v30  ;;  %v12048_v38 = vand.u32 4294901760, %v516_v16  ;;  %v17939_v12 = vand.u32 4294901760, %v17799_v42  ;;  %v17940_v19 = vand.u32 4294901760, %v11944_v0 }
 0x29c   :  { %17928 = vst [vmem:[#allocation18_spill] sm:$0xff] %v12021_v45  ;;  %17931 = vst [vmem:[#allocation21_spill] sm:$0xff] %v12028_v29  ;;  %4165 = vmatprep.subr.mxu0 %v17935_v17  ;;  %4368 = vmatprep.subr.mxu1 %v17938_v39  ;;  %v12063_v58 = vsub.f32 %v519_v28, %v12001_v2  ;;  %v12065_v59 = vand.u32 4294901760, %v515_v32  ;;  %v17943_v39 = vld [vmem:[#allocation90_spill] sm:$0xff]  ;;  %v17944_v42 = vand.u32 4294901760, %v17800_v8  ;;  %v17949_v45 = vand.u32 4294901760, %v17801_v49 }
 0x29d   :  { %17932 = vst [vmem:[#allocation30_spill] sm:$0xff] %v12030_v31  ;;  %17933 = vst [vmem:[#allocation31_spill] sm:$0xff] %v12038_v11  ;;  %4169 = vmatpush2.msra.mxu0 %v17939_v12  ;;  %v12059_v17 = vsub.f32 %v11944_v0, %v17940_v19  ;;  %4370 = vmatpush2.msra.mxu1 %v17943_v39  ;;  %v17945_v12 = vand.u32 4294901760, %v11955_v54  ;;  %v12080_v28 = vsub.f32 %v518_v6, %v12016_v57  ;;  %v17948_v11 = vld [vmem:[#allocation102_spill] sm:$0xff]  ;;  %v17953_v6 = vld [vmem:[#allocation104_spill] sm:$0xff] }
 0x29e   :  { %17936 = vst [vmem:[#allocation11_spill] sm:$0xff] %v12045_v23  ;;  %17937 = vst [vmem:[#allocation32_spill] sm:$0xff] %v12048_v38  ;;  %4173 = vmatprep.subr.mxu0 %v17944_v42  ;;  %v12082_v0 = vand.u32 4294901760, %v514_v26  ;;  %4372 = vmatprep.subr.mxu1 %v17948_v11  ;;  %v17950_v8 = vand.u32 4294901760, %v11967_v40  ;;  %v12096_v60 = vand.u32 4294901760, %v513_v27  ;;  %v17955_v49 = vand.u32 4294901760, %v11981_v36 }
 0x29f   :  { %17941 = vst [vmem:[#allocation17_spill] sm:$0xff] %v12063_v58  ;;  %17942 = vst [vmem:[#allocation40_spill] sm:$0xff] %v12065_v59  ;;  %v12076_v19 = vsub.f32 %v11955_v54, %v17945_v12  ;;  %4177 = vmatpush2.msra.mxu0 %v17949_v45  ;;  %v12094_v12 = vsub.f32 %v517_v53, %v12030_v31  ;;  %4374 = vmatpush2.msra.mxu1 %v17953_v6  ;;  %v17954_v54 = vand.u32 4294901760, %v17802_v51  ;;  %v17958_v53 = vld [vmem:[#allocation105_spill] sm:$0xff] }
 0x2a0   :  { %17946 = vst [vmem:[#allocation44_spill] sm:$0xff] %v12080_v28  ;;  %17947 = vst [vmem:[#allocation45_spill] sm:$0xff] %v12082_v0  ;;  %v12090_v39 = vsub.f32 %v11967_v40, %v17950_v8  ;;  %v12104_v45 = vsub.f32 %v11981_v36, %v17955_v49  ;;  %v12108_v8 = vsub.f32 %v516_v16, %v12048_v38  ;;  %v12110_v42 = vand.u32 4294901760, %v512_v15  ;;  %v17962_v16 = vld [vmem:[#allocation107_spill] sm:$0xff]  ;;  %v510_v49 = vld [vmem:[%s15589_s2 + $0x670] sm:$0xff] }
 0x2a1   :  { %17951 = vst [vmem:[#allocation46_spill] sm:$0xff] %v12094_v12  ;;  %17952 = vst [vmem:[#allocation47_spill] sm:$0xff] %v12096_v60  ;;  %4181 = vmatprep.subr.mxu0 %v17954_v54  ;;  %4376 = vmatprep.subr.mxu1 %v17958_v53  ;;  %v17959_v40 = vand.u32 4294901760, %v17803_v34  ;;  %v17960_v54 = vand.u32 4294901760, %v11999_v46  ;;  %v12123_v11 = vsub.f32 %v515_v32, %v12065_v59  ;;  %v17963_v36 = vand.u32 4294901760, %v17804_v61  ;;  %v511_v32 = vld [vmem:[%s15589_s2 + $0x678] sm:$0xff] }
 0x2a2   :  { %17956 = vst [vmem:[#allocation34_spill] sm:$0xff] %v12108_v8  ;;  %17957 = vst [vmem:[#allocation56_spill] sm:$0xff] %v12110_v42  ;;  %4378 = vmatpush2.msra.mxu1 %v17962_v16  ;;  %v12136_v51 = vsub.f32 %v514_v26, %v12082_v0  ;;  %v17966_v16 = vld [vmem:[#allocation111_spill] sm:$0xff]  ;;  %v17967_v61 = vand.u32 4294901760, %v17805_v37  ;;  %v17968_v34 = vand.u32 4294901760, %v12028_v29  ;;  %v12152_v26 = vsub.f32 %v513_v27, %v12096_v60 }
 0x2a3   :  { %4185 = vmatpush2.msra.mxu0 %v17959_v40  ;;  %v12119_v6 = vsub.f32 %v11999_v46, %v17960_v54  ;;  %17961 = vst [vmem:[#allocation50_spill] sm:$0xff] %v12123_v11  ;;  %v17964_v40 = vand.u32 4294901760, %v12014_v33  ;;  %4380 = vmatprep.subr.mxu1 %v17966_v16  ;;  %v17970_v37 = vand.u32 4294901760, %v17806_v18  ;;  %v12168_v27 = vsub.f32 %v512_v15, %v12110_v42  ;;  %v509_v54 = vld [vmem:[%s15589_s2 + $0x668] sm:$0xff] }
 0x2a4   :  { %4189 = vmatprep.subr.mxu0 %v17963_v36  ;;  %17965 = vst [vmem:[#allocation62_spill] sm:$0xff] %v12136_v51  ;;  %17969 = vst [vmem:[#allocation67_spill] sm:$0xff] %v12152_v26  ;;  %4382 = vmatpush2.msra.mxu1 %v11443_v35  ;;  %v17973_v18 = vand.u32 4294901760, %v17807_v48  ;;  %v12183_v15 = vand.u32 4294901760, %v511_v32  ;;  %v508_v36 = vld [vmem:[%s15589_s2 + $0x660] sm:$0xff]  ;;  %v17976_v48 = vand.u32 4294901760, %v17808_v13 }
 0x2a5   :  { %v12132_v53 = vsub.f32 %v12014_v33, %v17964_v40  ;;  %4193 = vmatpush2.msra.mxu0 %v17967_v61  ;;  %v12148_v40 = vsub.f32 %v12028_v29, %v17968_v34  ;;  %v17971_v61 = vand.u32 4294901760, %v12045_v23  ;;  %17972 = vst [vmem:[#allocation77_spill] sm:$0xff] %v12168_v27  ;;  %4384 = vmatprep.subr.mxu1 %v11458_v4  ;;  %v12198_v16 = vand.u32 4294901760, %v510_v49  ;;  %v17986_v29 = vld [vmem:[#allocation12_spill] sm:$0xff]  ;;  %v503_v33 = vld [vmem:[%s15589_s2 + $0x638] sm:$0xff]  ;;  %v501_v46 = vld [vmem:[%s15589_s2 + $0x628] sm:$0xff] }
 0x2a6   :  { %4197 = vmatprep.subr.mxu0 %v17970_v37  ;;  %v17974_v37 = vand.u32 4294901760, %v12063_v58  ;;  %17975 = vst [vmem:[#allocation74_spill] sm:$0xff] %v12183_v15  ;;  %4386 = vmatpush2.msra.mxu1 %v11473_v41  ;;  %v17979_v13 = vand.u32 4294901760, %v17809_v22  ;;  %v12213_v35 = vand.u32 4294901760, %v509_v54  ;;  %v17983_v22 = vand.u32 4294901760, %v17810_v20 }
 0x2a7   :  { %v12164_v34 = vsub.f32 %v12045_v23, %v17971_v61  ;;  %4201 = vmatpush2.msra.mxu0 %v17973_v18  ;;  %v17977_v18 = vand.u32 4294901760, %v12080_v28  ;;  %17978 = vst [vmem:[#allocation92_spill] sm:$0xff] %v12198_v16  ;;  %4388 = vmatprep.subr.mxu1 %v11484_v1  ;;  %v17982_v23 = vld [vmem:[#allocation116_spill] sm:$0xff]  ;;  %v12228_v4 = vand.u32 4294901760, %v508_v36  ;;  %v17987_v20 = vand.u32 4294901760, %v11471_v5 }
 0x2a8   :  { %v12180_v61 = vsub.f32 %v12063_v58, %v17974_v37  ;;  %4205 = vmatprep.subr.mxu0 %v17976_v48  ;;  %v507_v58 = vld [vmem:[%s15589_s2 + $0x658] sm:$0xff]  ;;  %v17980_v48 = vand.u32 4294901760, %v12094_v12  ;;  %17981 = vst [vmem:[#allocation94_spill] sm:$0xff] %v12213_v35  ;;  %4390 = vmatpush2.msra.mxu1 %v17982_v23  ;;  %v12243_v1 = vsub.f32 %v511_v32, %v12183_v15  ;;  %v17992_v5 = vand.u32 4294901760, %v11482_v7 }
 0x2a9   :  { %v12195_v37 = vsub.f32 %v12080_v28, %v17977_v18  ;;  %4209 = vmatpush2.msra.mxu0 %v17979_v13  ;;  %v506_v28 = vld [vmem:[%s15589_s2 + $0x650] sm:$0xff]  ;;  %v17984_v13 = vand.u32 4294901760, %v12108_v8  ;;  %17985 = vst [vmem:[#allocation96_spill] sm:$0xff] %v12228_v4  ;;  %4392 = vmatprep.subr.mxu1 %v17986_v29  ;;  %v12245_v41 = vand.u32 4294901760, %v507_v58  ;;  %v17991_v29 = vld [vmem:[#allocation118_spill] sm:$0xff]  ;;  %v17993_v23 = vand.u32 4294901760, %v12136_v51 }
 0x2aa   :  { %v12210_v18 = vsub.f32 %v12094_v12, %v17980_v48  ;;  %4213 = vmatprep.subr.mxu0 %v17983_v22  ;;  %v505_v12 = vld [vmem:[%s15589_s2 + $0x648] sm:$0xff]  ;;  %v17988_v22 = vand.u32 4294901760, %v12123_v11  ;;  %17989 = vst [vmem:[#allocation99_spill] sm:$0xff] %v12243_v1  ;;  %4394 = vmatpush2.msra.mxu1 %v17991_v29  ;;  %v12260_v32 = vsub.f32 %v510_v49, %v12198_v16  ;;  %v17996_v7 = vand.u32 4294901760, %v11493_v47 }
 0x2ab   :  { %v12225_v48 = vsub.f32 %v12108_v8, %v17984_v13  ;;  %4217 = vmatpush2.msra.mxu0 %v17987_v20  ;;  %17990 = vst [vmem:[#allocation108_spill] sm:$0xff] %v12245_v41  ;;  %v504_v8 = vld [vmem:[%s15589_s2 + $0x640] sm:$0xff]  ;;  %4396 = vmatprep.subr.mxu1 %v11530_v50  ;;  %v12277_v49 = vsub.f32 %v509_v54, %v12213_v35  ;;  %v12279_v20 = vand.u32 4294901760, %v505_v12  ;;  %v18000_v50 = vld [vmem:[#allocation120_spill] sm:$0xff]  ;;  %v18001_v47 = vand.u32 4294901760, %v11504_v14 }
 0x2ac   :  { %v12240_v13 = vsub.f32 %v12123_v11, %v17988_v22  ;;  %4221 = vmatprep.subr.mxu0 %v17992_v5  ;;  %v12257_v22 = vsub.f32 %v12136_v51, %v17993_v23  ;;  %17994 = vst [vmem:[#allocation112_spill] sm:$0xff] %v12260_v32  ;;  %v12262_v11 = vand.u32 4294901760, %v506_v28  ;;  %v17997_v5 = vand.u32 4294901760, %v12152_v26  ;;  %v502_v51 = vld [vmem:[%s15589_s2 + $0x630] sm:$0xff]  ;;  %4398 = vmatpush2.msra.mxu1 %v18000_v50 }
 0x2ad   :  { %4225 = vmatpush2.msra.mxu0 %v17996_v7  ;;  %17998 = vst [vmem:[#allocation117_spill] sm:$0xff] %v12277_v49  ;;  %17999 = vst [vmem:[#allocation119_spill] sm:$0xff] %v12279_v20  ;;  %v18002_v29 = vand.u32 4294901760, %v12168_v27  ;;  %v12294_v54 = vsub.f32 %v508_v36, %v12228_v4  ;;  %4400 = vmatprep.subr.mxu1 %v11553_v24  ;;  %v18005_v14 = vand.u32 4294901760, %v17811_v63  ;;  %v12309_v36 = vand.u32 4294901760, %v503_v33  ;;  %v500_v7 = vld [vmem:[%s15589_s2 + $0x620] sm:$0xff] }
 0x2ae   :  { %17995 = vst [vmem:[#allocation114_spill] sm:$0xff] %v12262_v11  ;;  %v12274_v23 = vsub.f32 %v12152_v26, %v17997_v5  ;;  %4229 = vmatprep.subr.mxu0 %v18001_v47  ;;  %v12296_v26 = vand.u32 4294901760, %v504_v8  ;;  %4402 = vmatpush2.msra.mxu1 %v11563_v9  ;;  %v18008_v24 = vand.u32 4294901760, %v17812_v62  ;;  %v12320_v50 = vsub.f32 %v506_v28, %v12262_v11  ;;  %v499_v47 = vld [vmem:[%s15589_s2 + $0x618] sm:$0xff] }
 0x2af   :  { %v12291_v5 = vsub.f32 %v12168_v27, %v18002_v29  ;;  %18003 = vst [vmem:[#allocation83_spill] sm:$0xff] %v12294_v54  ;;  %4233 = vmatpush2.msra.mxu0 %v18005_v14  ;;  %v12307_v29 = vsub.f32 %v507_v58, %v12245_v41  ;;  %18007 = vst [vmem:[#allocation41_spill] sm:$0xff] %v12309_v36  ;;  %v12322_v58 = vand.u32 4294901760, %v502_v51  ;;  %v18011_v27 = vld [vmem:[#allocation63_spill] sm:$0xff]  ;;  %v18012_v9 = vand.u32 4294901760, %v12059_v17  ;;  %v498_v14 = vld [vmem:[%s15589_s2 + $0x610] sm:$0xff] }
 0x2b0   :  { %18004 = vst [vmem:[#allocation38_spill] sm:$0xff] %v12296_v26  ;;  %4237 = vmatprep.subr.mxu0 %v18008_v24  ;;  %18009 = vst [vmem:[#allocation54_spill] sm:$0xff] %v12320_v50  ;;  %4406 = vmatmul.mubr.f32.vlgmr.msra.gmra.mxu1 %v18011_v27  ;;  %v12333_v63 = vsub.f32 %v505_v12, %v12279_v20  ;;  %v12335_v28 = vand.u32 4294901760, %v501_v46  ;;  %v18015_v11 = vand.u32 4294901760, %v11541_v43  ;;  %v18016_v41 = vand.u32 4294901760, %v12076_v19  ;;  %v497_v24 = vld [vmem:[%s15589_s2 + $0x608] sm:$0xff] }
 0x2b1   :  { %18006 = vst [vmem:[#allocation2_spill] sm:$0xff] %v12307_v29  ;;  %18010 = vst [vmem:[#allocation61_spill] sm:$0xff] %v12322_v58  ;;  %4562 = vmatprep.subr.mxu1 %v18012_v9  ;;  %v12347_v62 = vsub.f32 %v504_v8, %v12296_v26  ;;  %v12349_v12 = vand.u32 4294901760, %v500_v7  ;;  %4942 = vmatprep.mubr.f32.mxu1 %v11879_v10  ;;  %v18019_v43 = vand.u32 4294901760, %v11551_v52  ;;  %v18020_v19 = vand.u32 4294901760, %v12243_v1  ;;  %v496_v9 = vld [vmem:[%s15589_s2 + $0x600] sm:$0xff] }
 0x2b2   :  { %18013 = vst [vmem:[#allocation37_spill] sm:$0xff] %v12333_v63  ;;  %18014 = vst [vmem:[#allocation68_spill] sm:$0xff] %v12335_v28  ;;  %4241 = vmatpush2.msra.mxu0 %v18015_v11  ;;  %4568 = vmatpush1.msra.mxu1 %v18016_v41  ;;  %v12364_v8 = vsub.f32 %v503_v33, %v12309_v36  ;;  %v12366_v17 = vand.u32 4294901760, %v499_v47  ;;  %v18023_v10 = vand.u32 4294901760, %v12090_v39  ;;  %v18024_v52 = vand.u32 4294901760, %v11561_v55  ;;  %v18029_v39 = vld [vmem:[#allocation121_spill] sm:$0xff] }
 0x2b3   :  { %18017 = vst [vmem:[#allocation78_spill] sm:$0xff] %v12347_v62  ;;  %18018 = vst [vmem:[#allocation75_spill] sm:$0xff] %v12349_v12  ;;  %4245 = vmatprep.subr.mxu0 %v18019_v43  ;;  %v12360_v11 = vsub.f32 %v12243_v1, %v18020_v19  ;;  %v18025_v43 = vand.u32 4294901760, %v12260_v32  ;;  %v12382_v41 = vsub.f32 %v502_v51, %v12322_v58  ;;  %v12384_v1 = vand.u32 4294901760, %v498_v14 }
 0x2b4   :  { %18021 = vst [vmem:[#allocation93_spill] sm:$0xff] %v12364_v8  ;;  %18022 = vst [vmem:[#allocation97_spill] sm:$0xff] %v12366_v17  ;;  %4574 = vmatprep.subr.mxu1 %v18023_v10  ;;  %4249 = vmatpush2.msra.mxu0 %v18024_v52  ;;  %v18028_v36 = vand.u32 4294901760, %v12104_v45  ;;  %v18030_v10 = vand.u32 4294901760, %v18029_v39  ;;  %v18031_v55 = vand.u32 4294901760, %v12277_v49  ;;  %v12397_v33 = vsub.f32 %v501_v46, %v12335_v28  ;;  %v18035_v45 = vld [vmem:[#allocation122_spill] sm:$0xff] }
 0x2b5   :  { %v12378_v19 = vsub.f32 %v12260_v32, %v18025_v43  ;;  %18026 = vst [vmem:[#allocation76_spill] sm:$0xff] %v12382_v41  ;;  %18027 = vst [vmem:[#allocation89_spill] sm:$0xff] %v12384_v1  ;;  %v12399_v51 = vand.u32 4294901760, %v497_v24  ;;  %v18034_v32 = vand.u32 4294901760, %v12119_v6  ;;  %v18037_v39 = vand.u32 4294901760, %v12294_v54  ;;  %v18041_v6 = vld [vmem:[#allocation123_spill] sm:$0xff] }
 0x2b6   :  { %4580 = vmatpush1.msra.mxu1 %v18028_v36  ;;  %4253 = vmatprep.subr.mxu0 %v18030_v10  ;;  %v12393_v52 = vsub.f32 %v12277_v49, %v18031_v55  ;;  %18032 = vst [vmem:[#allocation106_spill] sm:$0xff] %v12397_v33  ;;  %v18036_v36 = vand.u32 4294901760, %v18035_v45  ;;  %v12412_v43 = vsub.f32 %v500_v7, %v12349_v12  ;;  %v12414_v46 = vand.u32 4294901760, %v496_v9 }
 0x2b7   :  { %18033 = vst [vmem:[#allocation80_spill] sm:$0xff] %v12399_v51  ;;  %4586 = vmatprep.subr.mxu1 %v18034_v32  ;;  %v12408_v10 = vsub.f32 %v12294_v54, %v18037_v39  ;;  %v18040_v49 = vand.u32 4294901760, %v12132_v53  ;;  %v18042_v32 = vand.u32 4294901760, %v18041_v6  ;;  %v12428_v7 = vsub.f32 %v499_v47, %v12366_v17  ;;  %v18046_v53 = vld [vmem:[#allocation124_spill] sm:$0xff] }
 0x2b8   :  { %4257 = vmatpush2.msra.mxu0 %v18036_v36  ;;  %18038 = vst [vmem:[#allocation109_spill] sm:$0xff] %v12412_v43  ;;  %18039 = vst [vmem:[#allocation91_spill] sm:$0xff] %v12414_v46  ;;  %v18043_v36 = vand.u32 4294901760, %v12307_v29  ;;  %v18045_v54 = vand.u32 4294901760, %v12148_v40  ;;  %v12442_v55 = vsub.f32 %v498_v14, %v12384_v1  ;;  %v559_v40 = vld [vmem:[%s15589_s2 + $0x7f8] sm:$0xff]  ;;  %v12458_v14 = vsub.f32 %v497_v24, %v12399_v51  ;;  %v558_v6 = vld [vmem:[%s15589_s2 + $0x7f0] sm:$0xff] }
 0x2b9   :  { %4592 = vmatpush1.msra.mxu1 %v18040_v49  ;;  %4261 = vmatprep.subr.mxu0 %v18042_v32  ;;  %18044 = vst [vmem:[#allocation87_spill] sm:$0xff] %v12428_v7  ;;  %v18047_v49 = vand.u32 4294901760, %v18046_v53  ;;  %v18048_v32 = vand.u32 4294901760, %v12320_v50  ;;  %v18051_v53 = vand.u32 4294901760, %v12333_v63  ;;  %v12474_v24 = vsub.f32 %v496_v9, %v12414_v46 }
 0x2ba   :  { %v12424_v39 = vsub.f32 %v12307_v29, %v18043_v36  ;;  %4598 = vmatprep.subr.mxu1 %v18045_v54  ;;  %18049 = vst [vmem:[#allocation110_spill] sm:$0xff] %v12442_v55  ;;  %v18050_v54 = vand.u32 4294901760, %v12164_v34  ;;  %18052 = vst [vmem:[#allocation95_spill] sm:$0xff] %v12458_v14  ;;  %v18053_v34 = vand.u32 4294901760, %v12180_v61  ;;  %v18056_v61 = vand.u32 4294901760, %v11988_v3  ;;  %v556_v36 = vld [vmem:[%s15589_s2 + $0x7e0] sm:$0xff] }
 0x2bb   :  { %4265 = vmatpush2.msra.mxu0 %v18047_v49  ;;  %v12438_v45 = vsub.f32 %v12320_v50, %v18048_v32  ;;  %v12454_v49 = vsub.f32 %v12333_v63, %v18051_v53  ;;  %18055 = vst [vmem:[#allocation113_spill] sm:$0xff] %v12474_v24  ;;  %v557_v32 = vld [vmem:[%s15589_s2 + $0x7e8] sm:$0xff]  ;;  %v12489_v9 = vand.u32 4294901760, %v559_v40  ;;  %v18060_v3 = vld [vmem:[#allocation4_spill] sm:$0xff]  ;;  %v555_v63 = vld [vmem:[%s15589_s2 + $0x7d8] sm:$0xff]  ;;  %v18065_v50 = vand.u32 4294901760, %v12397_v33 }
 0x2bc   :  { %4604 = vmatpush1.msra.mxu1 %v18050_v54  ;;  %4269 = vmatmul.mubr.f32.vlgmr.msra.gmra.mxu0 %v18011_v27  ;;  %v18054_v54 = vand.u32 4294901760, %v12347_v62  ;;  %v18057_v27 = vand.u32 4294901760, %v12364_v8  ;;  %v554_v29 = vld [vmem:[%s15589_s2 + $0x7d0] sm:$0xff] }
 0x2bd   :  { %4413 = vmatprep.subr.mxu0 %v11908_v21  ;;  %4610 = vmatprep.subr.mxu1 %v18053_v34  ;;  %18058 = vst [vmem:[#allocation98_spill] sm:$0xff] %v12489_v9  ;;  %v18061_v34 = vand.u32 4294901760, %v12382_v41  ;;  %v12549_v47 = vsub.f32 %v559_v40, %v12489_v9 }
 0x2be   :  { %v12470_v53 = vsub.f32 %v12347_v62, %v18054_v54  ;;  %4415 = vmatpush1.msra.mxu0 %v11916_v25  ;;  %4545 = vmatprep.mubr.f32.mxu0 %v18056_v61  ;;  %v12486_v54 = vsub.f32 %v12364_v8, %v18057_v27  ;;  %v18059_v62 = vand.u32 4294901760, %v12195_v37  ;;  %v12504_v8 = vand.u32 4294901760, %v558_v6 }
 0x2bf   :  { %4417 = vmatprep.subr.mxu0 %v18060_v3  ;;  %v12501_v27 = vsub.f32 %v12382_v41, %v18061_v34  ;;  %v18063_v37 = vand.u32 4294901760, %v12210_v18  ;;  %v12516_v34 = vsub.f32 %v12397_v33, %v18065_v50  ;;  %v12519_v41 = vand.u32 4294901760, %v557_v32  ;;  %v553_v3 = vld [vmem:[%s15589_s2 + $0x7c8] sm:$0xff]  ;;  %18073 = vst [vmem:[#allocation58_spill] sm:$0xff] %v12549_v47 }
 0x2c0   :  { %4616 = vmatpush1.msra.mxu1 %v18059_v62  ;;  %18062 = vst [vmem:[#allocation88_spill] sm:$0xff] %v12504_v8  ;;  %v18064_v62 = vld [vmem:[#allocation59_spill] sm:$0xff]  ;;  %v18067_v18 = vand.u32 4294901760, %v12225_v48  ;;  %v12534_v33 = vand.u32 4294901760, %v556_v36  ;;  %v18071_v48 = vand.u32 4294901760, %v12240_v13  ;;  %v18072_v61 = vand.u32 4294901760, %v12428_v7 }
 0x2c1   :  { %4622 = vmatprep.subr.mxu1 %v18063_v37  ;;  %4419 = vmatpush1.msra.mxu0 %v18064_v62  ;;  %18066 = vst [vmem:[#allocation69_spill] sm:$0xff] %v12519_v41  ;;  %v18068_v37 = vld [vmem:[#allocation73_spill] sm:$0xff]  ;;  %v18069_v62 = vand.u32 4294901760, %v12412_v43  ;;  %v18075_v13 = vand.u32 4294901760, %v12257_v22  ;;  %v12566_v40 = vsub.f32 %v558_v6, %v12504_v8  ;;  %v18079_v22 = vand.u32 4294901760, %v12274_v23 }
 0x2c2   :  { %4628 = vmatpush1.msra.mxu1 %v18067_v18  ;;  %4421 = vmatprep.subr.mxu0 %v18068_v37  ;;  %18070 = vst [vmem:[#allocation100_spill] sm:$0xff] %v12534_v33  ;;  %v552_v37 = vld [vmem:[%s15589_s2 + $0x7c0] sm:$0xff]  ;;  %v18076_v18 = vand.u32 4294901760, %v12442_v55  ;;  %v12583_v6 = vsub.f32 %v557_v32, %v12519_v41  ;;  %v18082_v23 = vand.u32 4294901760, %v12291_v5  ;;  %v12600_v32 = vsub.f32 %v556_v36, %v12534_v33 }
 0x2c3   :  { %v12531_v50 = vsub.f32 %v12412_v43, %v18069_v62  ;;  %4634 = vmatprep.subr.mxu1 %v18071_v48  ;;  %4423 = vmatpush1.msra.mxu0 %v11957_v56  ;;  %v12546_v62 = vsub.f32 %v12428_v7, %v18072_v61  ;;  %v12551_v43 = vand.u32 4294901760, %v555_v63  ;;  %18077 = vst [vmem:[#allocation65_spill] sm:$0xff] %v12566_v40  ;;  %v12568_v7 = vand.u32 4294901760, %v554_v29  ;;  %v551_v56 = vld [vmem:[%s15589_s2 + $0x7b8] sm:$0xff] }
 0x2c4   :  { %4640 = vmatpush1.msra.mxu1 %v18075_v13  ;;  %4425 = vmatprep.subr.mxu0 %v11969_v44  ;;  %v12563_v61 = vsub.f32 %v12442_v55, %v18076_v18  ;;  %v18080_v48 = vand.u32 4294901760, %v12458_v14  ;;  %18081 = vst [vmem:[#allocation70_spill] sm:$0xff] %v12583_v6  ;;  %v12585_v55 = vand.u32 4294901760, %v553_v3  ;;  %v550_v44 = vld [vmem:[%s15589_s2 + $0x7b0] sm:$0xff]  ;;  %v18083_v13 = vand.u32 4294901760, %v12474_v24  ;;  %18084 = vst [vmem:[#allocation115_spill] sm:$0xff] %v12600_v32 }
 0x2c5   :  { %18074 = vst [vmem:[#allocation101_spill] sm:$0xff] %v12551_v43  ;;  %18078 = vst [vmem:[#allocation103_spill] sm:$0xff] %v12568_v7  ;;  %4646 = vmatprep.subr.mxu1 %v18079_v22  ;;  %4427 = vmatpush1.msra.mxu0 %v11983_v30  ;;  %v549_v30 = vld [vmem:[%s15589_s2 + $0x7a8] sm:$0xff]  ;;  %v18085_v5 = vand.u32 4294901760, %v12360_v11  ;;  %v12615_v36 = vand.u32 4294901760, %v551_v56  ;;  %v547_v22 = vld [vmem:[%s15589_s2 + $0x798] sm:$0xff] }
 0x2c6   :  { %v12580_v18 = vsub.f32 %v12458_v14, %v18080_v48  ;;  %4652 = vmatpush1.msra.mxu1 %v18082_v23  ;;  %4429 = vmatprep.subr.mxu0 %v12001_v2  ;;  %v12597_v48 = vsub.f32 %v12474_v24, %v18083_v13  ;;  %v12602_v14 = vand.u32 4294901760, %v552_v37  ;;  %v12613_v13 = vsub.f32 %v555_v63, %v12551_v43  ;;  %v548_v24 = vld [vmem:[%s15589_s2 + $0x7a0] sm:$0xff] }
 0x2c7   :  { %4658 = vmatprep.subr.mxu1 %v18085_v5  ;;  %4431 = vmatpush1.msra.mxu0 %v12016_v57  ;;  %v18087_v2 = vand.u32 4294901760, %v12378_v19  ;;  %v12626_v23 = vsub.f32 %v554_v29, %v12568_v7  ;;  %v12628_v63 = vand.u32 4294901760, %v550_v44  ;;  %v18090_v57 = vand.u32 4294901760, %v12393_v52  ;;  %v546_v5 = vld [vmem:[%s15589_s2 + $0x790] sm:$0xff]  ;;  %v545_v19 = vld [vmem:[%s15589_s2 + $0x788] sm:$0xff] }
 0x2c8   :  { %18086 = vst [vmem:[#allocation15_spill] sm:$0xff] %v12613_v13  ;;  %4433 = vmatprep.subr.mxu0 %v12030_v31  ;;  %v12639_v11 = vsub.f32 %v553_v3, %v12585_v55  ;;  %v12641_v29 = vand.u32 4294901760, %v549_v30  ;;  %v18093_v31 = vand.u32 4294901760, %v12408_v10  ;;  %v12654_v3 = vand.u32 4294901760, %v548_v24 }
 0x2c9   :  { %4664 = vmatpush1.msra.mxu1 %v18087_v2  ;;  %18088 = vst [vmem:[#allocation82_spill] sm:$0xff] %v12626_v23  ;;  %18089 = vst [vmem:[#allocation16_spill] sm:$0xff] %v12628_v63  ;;  %4435 = vmatpush1.msra.mxu0 %v12048_v38  ;;  %v12652_v2 = vsub.f32 %v552_v37, %v12602_v14  ;;  %v18096_v38 = vand.u32 4294901760, %v12424_v39  ;;  %v12669_v37 = vsub.f32 %v551_v56, %v12615_v36 }
 0x2ca   :  { %4670 = vmatprep.subr.mxu1 %v18090_v57  ;;  %18091 = vst [vmem:[#allocation3_spill] sm:$0xff] %v12639_v11  ;;  %18092 = vst [vmem:[#allocation10_spill] sm:$0xff] %v12641_v29  ;;  %4437 = vmatprep.subr.mxu0 %v12065_v59  ;;  %v12671_v52 = vand.u32 4294901760, %v547_v22  ;;  %v544_v59 = vld [vmem:[%s15589_s2 + $0x780] sm:$0xff]  ;;  %v18100_v39 = vand.u32 4294901760, %v12566_v40  ;;  %v12686_v56 = vsub.f32 %v550_v44, %v12628_v63  ;;  %v12702_v57 = vand.u32 4294901760, %v545_v19 }
 0x2cb   :  { %4676 = vmatpush1.msra.mxu1 %v18093_v31  ;;  %18094 = vst [vmem:[#allocation13_spill] sm:$0xff] %v12652_v2  ;;  %18095 = vst [vmem:[#allocation6_spill] sm:$0xff] %v12654_v3  ;;  %4439 = vmatpush1.msra.mxu0 %v12082_v0  ;;  %v18097_v31 = vand.u32 4294901760, %v12549_v47  ;;  %v18102_v0 = vand.u32 4294901760, %v12454_v49  ;;  %v18106_v44 = vand.u32 4294901760, %v12470_v53 }
 0x2cc   :  { %4682 = vmatprep.subr.mxu1 %v18096_v38  ;;  %18098 = vst [vmem:[#allocation14_spill] sm:$0xff] %v12669_v37  ;;  %v18099_v38 = vand.u32 4294901760, %v12438_v45  ;;  %4441 = vmatprep.subr.mxu0 %v12096_v60  ;;  %18101 = vst [vmem:[#allocation7_spill] sm:$0xff] %v12686_v56  ;;  %v18103_v45 = vand.u32 4294901760, %v12583_v6 }
 0x2cd   :  { %v12665_v10 = vsub.f32 %v12549_v47, %v18097_v31  ;;  %v12682_v31 = vsub.f32 %v12566_v40, %v18100_v39  ;;  %v12688_v47 = vand.u32 4294901760, %v546_v5  ;;  %4443 = vmatpush1.msra.mxu0 %v12110_v42  ;;  %v12700_v40 = vsub.f32 %v549_v30, %v12641_v29  ;;  %18105 = vst [vmem:[#allocation9_spill] sm:$0xff] %v12702_v57 }
 0x2ce   :  { %4688 = vmatpush1.msra.mxu1 %v18099_v38  ;;  %v12696_v38 = vsub.f32 %v12583_v6, %v18103_v45  ;;  %4445 = vmatprep.subr.mxu0 %v12183_v15  ;;  %v12714_v6 = vsub.f32 %v548_v24, %v12654_v3  ;;  %v12716_v39 = vand.u32 4294901760, %v544_v59  ;;  %v18110_v30 = vand.u32 4294901760, %v12486_v54 }
 0x2cf   :  { %4694 = vmatprep.subr.mxu1 %v18102_v0  ;;  %18104 = vst [vmem:[#allocation81_spill] sm:$0xff] %v12700_v40  ;;  %v18107_v0 = vand.u32 4294901760, %v12600_v32  ;;  %4447 = vmatpush1.msra.mxu0 %v12198_v16  ;;  %v4753_v53 = vand.u32 4294901760, %v12665_v10  ;;  %v12729_v45 = vsub.f32 %v547_v22, %v12671_v52  ;;  %v18113_v24 = vand.u32 4294901760, %v12501_v27  ;;  %v543_v22 = vld [vmem:[%s15589_s2 + $0x778] sm:$0xff] }
 0x2d0   :  { %4700 = vmatpush1.msra.mxu1 %v18106_v44  ;;  %18108 = vst [vmem:[#allocation19_spill] sm:$0xff] %v12714_v6  ;;  %18109 = vst [vmem:[#allocation24_spill] sm:$0xff] %v12716_v39  ;;  %v18111_v44 = vand.u32 4294901760, %v12613_v13  ;;  %4449 = vmatprep.subr.mxu0 %v12213_v35  ;;  %v4759_v54 = vand.u32 4294901760, %v12682_v31  ;;  %v18116_v27 = vand.u32 4294901760, %v12516_v34  ;;  %v4765_v31 = vand.u32 4294901760, %v12696_v38 }
 0x2d1   :  { %v12710_v49 = vsub.f32 %v12600_v32, %v18107_v0  ;;  %4706 = vmatprep.subr.mxu1 %v18110_v30  ;;  %18112 = vst [vmem:[#allocation20_spill] sm:$0xff] %v12729_v45  ;;  %v18114_v30 = vand.u32 4294901760, %v12626_v23  ;;  %4451 = vmatpush1.msra.mxu0 %v12228_v4  ;;  %v542_v0 = vld [vmem:[%s15589_s2 + $0x770] sm:$0xff]  ;;  %v18119_v34 = vand.u32 4294901760, %v12531_v50  ;;  %v18123_v50 = vand.u32 4294901760, %v12546_v62 }
 0x2d2   :  { %v12725_v15 = vsub.f32 %v12613_v13, %v18111_v44  ;;  %4712 = vmatpush1.msra.mxu1 %v18113_v24  ;;  %v12742_v13 = vsub.f32 %v546_v5, %v12688_v47  ;;  %v18117_v24 = vand.u32 4294901760, %v12639_v11  ;;  %v12758_v5 = vsub.f32 %v545_v19, %v12702_v57 }
 0x2d3   :  { %v12738_v10 = vsub.f32 %v12626_v23, %v18114_v30  ;;  %4718 = vmatprep.subr.mxu1 %v18116_v27  ;;  %v18120_v27 = vld [vmem:[#allocation108_spill] sm:$0xff]  ;;  %v4771_v38 = vand.u32 4294901760, %v12710_v49  ;;  %v18121_v23 = vand.u32 4294901760, %v12652_v2  ;;  %v12774_v19 = vsub.f32 %v544_v59, %v12716_v39 }
 0x2d4   :  { %18115 = vst [vmem:[#allocation35_spill] sm:$0xff] %v12742_v13  ;;  %v12754_v30 = vsub.f32 %v12639_v11, %v18117_v24  ;;  %18118 = vst [vmem:[#allocation29_spill] sm:$0xff] %v12758_v5  ;;  %4724 = vmatpush1.msra.mxu1 %v18119_v34  ;;  %4453 = vmatprep.subr.mxu0 %v18120_v27  ;;  %v541_v11 = vld [vmem:[%s15589_s2 + $0x768] sm:$0xff]  ;;  %v18124_v34 = vld [vmem:[#allocation114_spill] sm:$0xff]  ;;  %v4777_v49 = vand.u32 4294901760, %v12725_v15  ;;  %v18125_v32 = vand.u32 4294901760, %v12669_v37 }
 0x2d5   :  { %v12770_v24 = vsub.f32 %v12652_v2, %v18121_v23  ;;  %18122 = vst [vmem:[#allocation36_spill] sm:$0xff] %v12774_v19  ;;  %4730 = vmatprep.subr.mxu1 %v18123_v50  ;;  %4455 = vmatpush1.msra.mxu0 %v18124_v34  ;;  %v12789_v59 = vand.u32 4294901760, %v543_v22  ;;  %v540_v2 = vld [vmem:[%s15589_s2 + $0x760] sm:$0xff]  ;;  %v18126_v62 = vand.u32 4294901760, %v12563_v61  ;;  %v4783_v15 = vand.u32 4294901760, %v12738_v10  ;;  %v539_v34 = vld [vmem:[%s15589_s2 + $0x758] sm:$0xff] }
 0x2d6   :  { %v12786_v23 = vsub.f32 %v12669_v37, %v18125_v32  ;;  %4457 = vmatprep.subr.mxu0 %v12279_v20  ;;  %v18127_v50 = vand.u32 4294901760, %v12686_v56  ;;  %v12804_v37 = vand.u32 4294901760, %v542_v0  ;;  %v18129_v61 = vand.u32 4294901760, %v12580_v18  ;;  %v538_v20 = vld [vmem:[%s15589_s2 + $0x750] sm:$0xff]  ;;  %v537_v27 = vld [vmem:[%s15589_s2 + $0x748] sm:$0xff] }
 0x2d7   :  { %4736 = vmatpush1.msra.mxu1 %v18126_v62  ;;  %4459 = vmatpush1.msra.mxu0 %v12296_v26  ;;  %v4789_v10 = vand.u32 4294901760, %v12754_v30  ;;  %v18130_v62 = vand.u32 4294901760, %v12700_v40  ;;  %v18132_v18 = vand.u32 4294901760, %v12597_v48  ;;  %v4795_v30 = vand.u32 4294901760, %v12770_v24 }
 0x2d8   :  { %v12801_v32 = vsub.f32 %v12686_v56, %v18127_v50  ;;  %18128 = vst [vmem:[#allocation22_spill] sm:$0xff] %v12804_v37  ;;  %4742 = vmatprep.subr.mxu1 %v18129_v61  ;;  %v12819_v56 = vand.u32 4294901760, %v541_v11  ;;  %v18133_v61 = vld [vmem:[#allocation41_spill] sm:$0xff]  ;;  %v18134_v26 = vand.u32 4294901760, %v12714_v6  ;;  %v4801_v48 = vand.u32 4294901760, %v12786_v23 }
 0x2d9   :  { %v12816_v50 = vsub.f32 %v12700_v40, %v18130_v62  ;;  %4748 = vmatpush1.msra.mxu1 %v18132_v18  ;;  %4461 = vmatprep.subr.mxu0 %v18133_v61  ;;  %v12834_v40 = vand.u32 4294901760, %v540_v2  ;;  %v18136_v24 = vand.u32 4294901760, %v12729_v45  ;;  %v12849_v44 = vand.u32 4294901760, %v539_v34 }
 0x2da   :  { %18131 = vst [vmem:[#allocation23_spill] sm:$0xff] %v12819_v56  ;;  %v12831_v62 = vsub.f32 %v12714_v6, %v18134_v26  ;;  %4754 = vmatprep.subr.mxu1 %v4753_v53  ;;  %4463 = vmatpush1.msra.mxu0 %v12322_v58  ;;  %v12847_v26 = vsub.f32 %v543_v22, %v12789_v59  ;;  %v536_v6 = vld [vmem:[%s15589_s2 + $0x740] sm:$0xff]  ;;  %v4807_v53 = vand.u32 4294901760, %v12801_v32  ;;  %v18139_v23 = vand.u32 4294901760, %v12742_v13 }
 0x2db   :  { %18135 = vst [vmem:[#allocation25_spill] sm:$0xff] %v12834_v40  ;;  %v12844_v18 = vsub.f32 %v12729_v45, %v18136_v24  ;;  %18138 = vst [vmem:[#allocation27_spill] sm:$0xff] %v12849_v44  ;;  %4760 = vmatpush2.msra.mxu1 %v4759_v54  ;;  %4465 = vmatprep.subr.mxu0 %v12335_v28  ;;  %v12862_v24 = vsub.f32 %v542_v0, %v12804_v37  ;;  %v12864_v22 = vand.u32 4294901760, %v538_v20  ;;  %v535_v45 = vld [vmem:[%s15589_s2 + $0x738] sm:$0xff] }
 0x2dc   :  { %18137 = vst [vmem:[#allocation26_spill] sm:$0xff] %v12847_v26  ;;  %v12859_v58 = vsub.f32 %v12742_v13, %v18139_v23  ;;  %4766 = vmatprep.subr.mxu1 %v4765_v31  ;;  %4467 = vmatpush1.msra.mxu0 %v12349_v12  ;;  %v4813_v54 = vand.u32 4294901760, %v12816_v50  ;;  %v18141_v32 = vand.u32 4294901760, %v12758_v5  ;;  %v12877_v23 = vsub.f32 %v541_v11, %v12819_v56  ;;  %v534_v13 = vld [vmem:[%s15589_s2 + $0x730] sm:$0xff] }
 0x2dd   :  { %18140 = vst [vmem:[#allocation48_spill] sm:$0xff] %v12862_v24  ;;  %v12879_v0 = vand.u32 4294901760, %v537_v27  ;;  %4772 = vmatpush2.msra.mxu1 %v4771_v38  ;;  %4469 = vmatprep.subr.mxu0 %v12366_v17  ;;  %v4819_v31 = vand.u32 4294901760, %v12831_v62  ;;  %v18143_v50 = vand.u32 4294901760, %v12774_v19  ;;  %v12894_v11 = vand.u32 4294901760, %v536_v6 }
 0x2de   :  { %v12874_v28 = vsub.f32 %v12758_v5, %v18141_v32  ;;  %18142 = vst [vmem:[#allocation42_spill] sm:$0xff] %v12877_v23  ;;  %v12892_v32 = vsub.f32 %v540_v2, %v12834_v40  ;;  %v533_v5 = vld [vmem:[%s15589_s2 + $0x728] sm:$0xff]  ;;  %4778 = vmatprep.subr.mxu1 %v4777_v49  ;;  %4471 = vmatpush1.msra.mxu0 %v12384_v1  ;;  %v4825_v38 = vand.u32 4294901760, %v12844_v18  ;;  %v532_v2 = vld [vmem:[%s15589_s2 + $0x720] sm:$0xff]  ;;  %v4831_v49 = vand.u32 4294901760, %v12859_v58 }
 0x2df   :  { %v12889_v12 = vsub.f32 %v12774_v19, %v18143_v50  ;;  %v12903_v17 = vsub.f32 %v539_v34, %v12849_v44  ;;  %v12905_v50 = vand.u32 4294901760, %v535_v45  ;;  %4784 = vmatpush2.msra.mxu1 %v4783_v15  ;;  %4473 = vmatprep.subr.mxu0 %v12399_v51  ;;  %v12914_v18 = vsub.f32 %v538_v20, %v12864_v22  ;;  %v531_v34 = vld [vmem:[%s15589_s2 + $0x718] sm:$0xff]  ;;  %v530_v20 = vld [vmem:[%s15589_s2 + $0x710] sm:$0xff]  ;;  %v528_v1 = vld [vmem:[%s15589_s2 + $0x700] sm:$0xff] }
 0x2e0   :  { %v12916_v62 = vand.u32 4294901760, %v534_v13  ;;  %4790 = vmatprep.subr.mxu1 %v4789_v10  ;;  %4475 = vmatpush1.msra.mxu0 %v12414_v46  ;;  %v4837_v15 = vand.u32 4294901760, %v12874_v28  ;;  %v12925_v58 = vsub.f32 %v537_v27, %v12879_v0  ;;  %v12927_v19 = vand.u32 4294901760, %v533_v5  ;;  %v529_v27 = vld [vmem:[%s15589_s2 + $0x708] sm:$0xff] }
 0x2e1   :  { %4796 = vmatpush2.msra.mxu1 %v4795_v30  ;;  %4477 = vmatprep.subr.mxu0 %v12489_v9  ;;  %v4843_v10 = vand.u32 4294901760, %v12889_v12  ;;  %v12936_v28 = vsub.f32 %v536_v6, %v12894_v11  ;;  %v12938_v51 = vand.u32 4294901760, %v532_v2  ;;  %v18148_v30 = vand.u32 4294901760, %v12847_v26 }
 0x2e2   :  { %18144 = vst [vmem:[#allocation60_spill] sm:$0xff] %v12916_v62  ;;  %18145 = vst [vmem:[#allocation53_spill] sm:$0xff] %v12927_v19  ;;  %4802 = vmatprep.subr.mxu1 %v4801_v48  ;;  %4479 = vmatpush2.msra.mxu0 %v12504_v8  ;;  %v12949_v46 = vsub.f32 %v535_v45, %v12905_v50  ;;  %v12951_v6 = vand.u32 4294901760, %v531_v34  ;;  %v18150_v48 = vand.u32 4294901760, %v12862_v24  ;;  %v12964_v45 = vand.u32 4294901760, %v530_v20 }
 0x2e3   :  { %18146 = vst [vmem:[#allocation55_spill] sm:$0xff] %v12936_v28  ;;  %18147 = vst [vmem:[#allocation72_spill] sm:$0xff] %v12938_v51  ;;  %v4848_v9 = vsub.f32 %v12847_v26, %v18148_v30  ;;  %4808 = vmatpush2.msra.mxu1 %v4807_v53  ;;  %4481 = vmatprep.subr.mxu0 %v12519_v41  ;;  %v12962_v12 = vsub.f32 %v534_v13, %v12916_v62  ;;  %v18153_v26 = vand.u32 4294901760, %v12877_v23 }
 0x2e4   :  { %18149 = vst [vmem:[#allocation79_spill] sm:$0xff] %v12949_v46  ;;  %v4854_v8 = vsub.f32 %v12862_v24, %v18150_v48  ;;  %18152 = vst [vmem:[#allocation102_spill] sm:$0xff] %v12964_v45  ;;  %4814 = vmatprep.subr.mxu1 %v4813_v54  ;;  %4483 = vmatpush2.msra.mxu0 %v12534_v33  ;;  %v12972_v61 = vsub.f32 %v533_v5, %v12927_v19  ;;  %v12974_v48 = vand.u32 4294901760, %v529_v27 }
 0x2e5   :  { %18151 = vst [vmem:[#allocation90_spill] sm:$0xff] %v12962_v12  ;;  %v4860_v53 = vsub.f32 %v12877_v23, %v18153_v26  ;;  %4820 = vmatpush2.msra.mxu1 %v4819_v31  ;;  %4485 = vmatprep.subr.mxu0 %v12551_v43  ;;  %v18155_v13 = vand.u32 4294901760, %v12892_v32  ;;  %v12982_v24 = vsub.f32 %v532_v2, %v12938_v51  ;;  %v12984_v26 = vand.u32 4294901760, %v528_v1 }
 0x2e6   :  { %18154 = vst [vmem:[#allocation104_spill] sm:$0xff] %v12972_v61  ;;  %4826 = vmatprep.subr.mxu1 %v4825_v38  ;;  %4487 = vmatpush2.msra.mxu0 %v12568_v7  ;;  %v4849_v5 = vand.u32 4294901760, %v4848_v9  ;;  %v18158_v41 = vand.u32 4294901760, %v12903_v17  ;;  %v12992_v43 = vsub.f32 %v531_v34, %v12951_v6  ;;  %v4855_v2 = vand.u32 4294901760, %v4854_v8 }
 0x2e7   :  { %v4866_v54 = vsub.f32 %v12892_v32, %v18155_v13  ;;  %18156 = vst [vmem:[#allocation105_spill] sm:$0xff] %v12982_v24  ;;  %18157 = vst [vmem:[#allocation107_spill] sm:$0xff] %v12984_v26  ;;  %4832 = vmatpush2.msra.mxu1 %v4831_v49  ;;  %4489 = vmatprep.subr.mxu0 %v12585_v55  ;;  %v18160_v13 = vand.u32 4294901760, %v12914_v18  ;;  %v13000_v9 = vsub.f32 %v530_v20, %v12964_v45 }
 0x2e8   :  { %v4872_v31 = vsub.f32 %v12903_v17, %v18158_v41  ;;  %18159 = vst [vmem:[#allocation111_spill] sm:$0xff] %v12992_v43  ;;  %4838 = vmatprep.subr.mxu1 %v4837_v15  ;;  %4491 = vmatpush2.msra.mxu0 %v12602_v14  ;;  %v4861_v41 = vand.u32 4294901760, %v4860_v53  ;;  %v18162_v34 = vand.u32 4294901760, %v12925_v58  ;;  %v13008_v8 = vsub.f32 %v529_v27, %v12974_v48 }
 0x2e9   :  { %v4878_v38 = vsub.f32 %v12914_v18, %v18160_v13  ;;  %18161 = vst [vmem:[#allocation116_spill] sm:$0xff] %v13000_v9  ;;  %4844 = vmatpush2.msra.mxu1 %v4843_v10  ;;  %4493 = vmatprep.subr.mxu0 %v12615_v36  ;;  %v4867_v13 = vand.u32 4294901760, %v4866_v54  ;;  %v18164_v20 = vand.u32 4294901760, %v12936_v28  ;;  %v13016_v53 = vsub.f32 %v528_v1, %v12984_v26 }
 0x2ea   :  { %v4884_v49 = vsub.f32 %v12925_v58, %v18162_v34  ;;  %18163 = vst [vmem:[#allocation12_spill] sm:$0xff] %v13008_v8  ;;  %4850 = vmatprep.subr.mxu1 %v4849_v5  ;;  %4495 = vmatpush2.msra.mxu0 %v12628_v63  ;;  %v4873_v34 = vand.u32 4294901760, %v4872_v31  ;;  %v18166_v27 = vand.u32 4294901760, %v12949_v46  ;;  %v18168_v31 = vand.u32 4294901760, %v12972_v61 }
 0x2eb   :  { %v4890_v15 = vsub.f32 %v12936_v28, %v18164_v20  ;;  %18165 = vst [vmem:[#allocation118_spill] sm:$0xff] %v13016_v53  ;;  %4856 = vmatpush2.msra.mxu1 %v4855_v2  ;;  %4497 = vmatprep.subr.mxu0 %v12641_v29  ;;  %v4879_v54 = vand.u32 4294901760, %v4878_v38  ;;  %v18167_v20 = vand.u32 4294901760, %v12962_v12  ;;  %v18169_v2 = vld [vmem:[#allocation18_spill] sm:$0xff]  ;;  %v16398_v1 = vand.u32 4294901760, %v13016_v53 }
 0x2ec   :  { %v4896_v10 = vsub.f32 %v12949_v46, %v18166_v27  ;;  %4862 = vmatprep.subr.mxu1 %v4861_v41  ;;  %4499 = vmatpush2.msra.mxu0 %v12654_v3  ;;  %v4885_v5 = vand.u32 4294901760, %v4884_v49  ;;  %v4908_v27 = vsub.f32 %v12972_v61, %v18168_v31  ;;  %v18170_v46 = vld [vmem:[#allocation31_spill] sm:$0xff]  ;;  %v18172_v31 = vand.u32 4294901760, %v12992_v43 }
 0x2ed   :  { %v4902_v30 = vsub.f32 %v12962_v12, %v18167_v20  ;;  %v206_v28 = vadd.f32 %v18170_v46, %v18169_v2  ;;  %4868 = vmatpush2.msra.mxu1 %v4867_v13  ;;  %4501 = vmatprep.subr.mxu0 %v12671_v52  ;;  %v4891_v38 = vand.u32 4294901760, %v4890_v15  ;;  %v18171_v20 = vand.u32 4294901760, %v12982_v24 }
 0x2ee   :  { %4874 = vmatprep.subr.mxu1 %v4873_v34  ;;  %4503 = vmatpush2.msra.mxu0 %v12688_v47  ;;  %v4897_v49 = vand.u32 4294901760, %v4896_v10  ;;  %v4920_v23 = vsub.f32 %v12992_v43, %v18172_v31  ;;  %v18173_v13 = vand.u32 4294901760, %v13000_v9  ;;  %v4909_v2 = vand.u32 4294901760, %v4908_v27 }
 0x2ef   :  { %v4914_v41 = vsub.f32 %v12982_v24, %v18171_v20  ;;  %4880 = vmatpush2.msra.mxu1 %v4879_v54  ;;  %4505 = vmatprep.subr.mxu0 %v12702_v57  ;;  %v4903_v46 = vand.u32 4294901760, %v4902_v30  ;;  %v18174_v34 = vand.u32 4294901760, %v13008_v8  ;;  %v13052_v20 = vand.u32 4294901760, %v206_v28 }
 0x2f0   :  { %v4926_v15 = vsub.f32 %v13000_v9, %v18173_v13  ;;  %4886 = vmatprep.subr.mxu1 %v4885_v5  ;;  %4507 = vmatpush2.msra.mxu0 %v12716_v39  ;;  %v4938_v30 = vsub.f32 %v13016_v53, %v16398_v1  ;;  %v4921_v5 = vand.u32 4294901760, %v4920_v23  ;;  %v18178_v13 = vld [vmem:[#allocation4_spill] sm:$0xff]  ;;  %v18190_v1 = vld [vmem:[#allocation39_spill] sm:$0xff] }
 0x2f1   :  { %v4932_v10 = vsub.f32 %v13008_v8, %v18174_v34  ;;  %18175 = vst [vmem:[#allocation120_spill] sm:$0xff] %v13052_v20  ;;  %4892 = vmatpush2.msra.mxu1 %v4891_v38  ;;  %4509 = vmatprep.subr.mxu0 %v12789_v59  ;;  %v4915_v54 = vand.u32 4294901760, %v4914_v41  ;;  %v13062_v38 = vsub.f32 %v206_v28, %v13052_v20  ;;  %v18176_v28 = vld [vmem:[#allocation57_spill] sm:$0xff] }
 0x2f2   :  { %4898 = vmatprep.subr.mxu1 %v4897_v49  ;;  %4511 = vmatpush2.msra.mxu0 %v12804_v37  ;;  %v4927_v27 = vand.u32 4294901760, %v4926_v15  ;;  %v4939_v41 = vand.u32 4294901760, %v4938_v30  ;;  %v18177_v49 = vand.u32 4294901760, %v18176_v28  ;;  %v18179_v15 = vld [vmem:[#allocation59_spill] sm:$0xff]  ;;  %v18181_v34 = vld [vmem:[#allocation33_spill] sm:$0xff] }
 0x2f3   :  { %4904 = vmatpush2.msra.mxu1 %v4903_v46  ;;  %4513 = vmatprep.subr.mxu0 %v12819_v56  ;;  %v4933_v31 = vand.u32 4294901760, %v4932_v10  ;;  %v16399_v23 = vand.u32 4294901760, %v13062_v38  ;;  %v18183_v30 = vld [vmem:[#allocation51_spill] sm:$0xff] }
 0x2f4   :  { %4910 = vmatprep.subr.mxu1 %v4909_v2  ;;  %4515 = vmatpush2.msra.mxu0 %v12834_v40  ;;  %v18180_v2 = vld [vmem:[#allocation73_spill] sm:$0xff] }
 0x2f5   :  { %4916 = vmatpush2.msra.mxu1 %v4915_v54  ;;  %4517 = vmatprep.subr.mxu0 %v12849_v44  ;;  %v4549_v46 = vsub.f32 %v13062_v38, %v16399_v23  ;;  %v18182_v54 = vld [vmem:[#allocation5_spill] sm:$0xff]  ;;  %v18191_v23 = vld [vmem:[#allocation32_spill] sm:$0xff] }
 0x2f6   :  { %4922 = vmatprep.subr.mxu1 %v4921_v5  ;;  %4519 = vmatpush2.msra.mxu0 %v12864_v22  ;;  %v18184_v5 = vld [vmem:[#allocation66_spill] sm:$0xff] }
 0x2f7   :  { %4928 = vmatpush2.msra.mxu1 %v4927_v27  ;;  %4521 = vmatprep.subr.mxu0 %v12879_v0  ;;  %v4550_v10 = vand.u32 4294901760, %v4549_v46  ;;  %v18185_v27 = vld [vmem:[#allocation64_spill] sm:$0xff]  ;;  %v18189_v46 = vld [vmem:[#allocation30_spill] sm:$0xff] }
 0x2f8   :  { %4934 = vmatprep.subr.mxu1 %v4933_v31  ;;  %4523 = vmatpush2.msra.mxu0 %v12894_v11  ;;  %v18186_v31 = vld [vmem:[#allocation71_spill] sm:$0xff] }
 0x2f9   :  { %4940 = vmatpush2.msra.mxu1 %v4939_v41  ;;  %4525 = vmatprep.subr.mxu0 %v12905_v50  ;;  %v18187_v41 = vld [vmem:[#allocation28_spill] sm:$0xff] }
 0x2fa   :  { %4944 = vmatmul.mubr.f32.vlgmr.msra.gmra.mxu1 %v13052_v20  ;;  %5154 = vmatprep.subr.mxu1 %v11908_v21  ;;  %v18192_v20 = vld [vmem:[#allocation49_spill] sm:$0xff] }
 0x2fb   :  { %4527 = vmatpush2.msra.mxu0 %v12916_v62  ;;  %5156 = vmatpush1.msra.mxu1 %v11916_v25 }
 0x2fc   :  { %5284 = vmatprep.mubr.f32.mxu1 %v18177_v49  ;;  %4529 = vmatprep.subr.mxu0 %v12927_v19  ;;  %v18188_v49 = vld [vmem:[#allocation52_spill] sm:$0xff] }
 0x2fd   :  { %5158 = vmatprep.subr.mxu1 %v18178_v13  ;;  %4531 = vmatpush2.msra.mxu0 %v12938_v51 }
 0x2fe   :  { %5160 = vmatpush1.msra.mxu1 %v18179_v15  ;;  %4533 = vmatprep.subr.mxu0 %v12951_v6 }
 0x2ff   :  { %5162 = vmatprep.subr.mxu1 %v18180_v2  ;;  %4535 = vmatpush2.msra.mxu0 %v12964_v45 }
 0x300   :  { %5164 = vmatpush1.msra.mxu1 %v18181_v34  ;;  %4537 = vmatprep.subr.mxu0 %v12974_v48 }
 0x301   :  { %5166 = vmatprep.subr.mxu1 %v18182_v54  ;;  %4539 = vmatpush2.msra.mxu0 %v12984_v26 }
 0x302   :  { %5168 = vmatpush1.msra.mxu1 %v18183_v30  ;;  %4551 = vmatmul.mubr.f32.vlgmr.msra.gmra.mxu0 %v4550_v10  ;;  %v18193_v10 = vld [vmem:[#allocation40_spill] sm:$0xff] }
 0x303   :  { %4952 = vmatprep.subr.mxu0 %v18184_v5  ;;  %5170 = vmatprep.subr.mxu1 %v18185_v27  ;;  %v18194_v5 = vld [vmem:[#allocation84_spill] sm:$0xff]  ;;  %v18195_v27 = vld [vmem:[#allocation45_spill] sm:$0xff] }
 0x304   :  { %4955 = vmatpush1.msra.mxu0 %v18186_v31  ;;  %5144 = vmatprep.mubr.f32.mxu0 %v18176_v28  ;;  %v18196_v31 = vld [vmem:[#allocation21_spill] sm:$0xff]  ;;  %v18197_v28 = vld [vmem:[#allocation11_spill] sm:$0xff] }
 0x305   :  { %5172 = vmatpush1.msra.mxu1 %v18187_v41  ;;  %4958 = vmatprep.subr.mxu0 %v18188_v49 }
 0x306   :  { %5174 = vmatprep.subr.mxu1 %v18189_v46  ;;  %4961 = vmatpush1.msra.mxu0 %v18190_v1  ;;  %v18198_v46 = vld [vmem:[#allocation17_spill] sm:$0xff]  ;;  %v18199_v1 = vld [vmem:[#allocation74_spill] sm:$0xff] }
 0x307   :  { %5176 = vmatpush1.msra.mxu1 %v18191_v23  ;;  %4964 = vmatprep.subr.mxu0 %v18192_v20  ;;  %v18200_v23 = vld [vmem:[#allocation44_spill] sm:$0xff] }
 0x308   :  { %5178 = vmatprep.subr.mxu1 %v18193_v10  ;;  %4967 = vmatpush1.msra.mxu0 %v18194_v5  ;;  %v18201_v10 = vld [vmem:[#allocation46_spill] sm:$0xff] }
 0x309   :  { %5180 = vmatpush1.msra.mxu1 %v18195_v27  ;;  %4970 = vmatprep.subr.mxu0 %v18196_v31  ;;  %v18202_v27 = vld [vmem:[#allocation34_spill] sm:$0xff] }
 0x30a   :  { %5182 = vmatprep.subr.mxu1 %v12096_v60  ;;  %4973 = vmatpush1.msra.mxu0 %v18197_v28  ;;  %v18203_v60 = vld [vmem:[#allocation50_spill] sm:$0xff]  ;;  %v18204_v28 = vld [vmem:[#allocation108_spill] sm:$0xff] }
 0x30b   :  { %5184 = vmatpush1.msra.mxu1 %v12110_v42  ;;  %4976 = vmatprep.subr.mxu0 %v18198_v46  ;;  %v18205_v42 = vld [vmem:[#allocation62_spill] sm:$0xff] }
 0x30c   :  { %5186 = vmatprep.subr.mxu1 %v18199_v1  ;;  %4979 = vmatpush1.msra.mxu0 %v18200_v23  ;;  %v18206_v46 = vld [vmem:[#allocation114_spill] sm:$0xff]  ;;  %v18207_v1 = vld [vmem:[#allocation67_spill] sm:$0xff] }
 0x30d   :  { %5188 = vmatpush1.msra.mxu1 %v12198_v16  ;;  %4982 = vmatprep.subr.mxu0 %v18201_v10  ;;  %v18208_v23 = vld [vmem:[#allocation119_spill] sm:$0xff]  ;;  %v18209_v16 = vld [vmem:[#allocation77_spill] sm:$0xff]  ;;  %v18210_v10 = vld [vmem:[#allocation38_spill] sm:$0xff] }
 0x30e   :  { %5190 = vmatprep.subr.mxu1 %v12213_v35  ;;  %4985 = vmatpush1.msra.mxu0 %v18202_v27  ;;  %v18211_v35 = vld [vmem:[#allocation99_spill] sm:$0xff]  ;;  %v18212_v27 = vld [vmem:[#allocation41_spill] sm:$0xff] }
 0x30f   :  { %5192 = vmatpush1.msra.mxu1 %v12228_v4  ;;  %4988 = vmatprep.subr.mxu0 %v18203_v60  ;;  %v18213_v4 = vld [vmem:[#allocation112_spill] sm:$0xff]  ;;  %v18214_v60 = vld [vmem:[#allocation61_spill] sm:$0xff] }
 0x310   :  { %5194 = vmatprep.subr.mxu1 %v18204_v28  ;;  %4991 = vmatpush1.msra.mxu0 %v18205_v42  ;;  %v18215_v28 = vld [vmem:[#allocation117_spill] sm:$0xff]  ;;  %v18216_v42 = vld [vmem:[#allocation68_spill] sm:$0xff] }
 0x311   :  { %5196 = vmatpush1.msra.mxu1 %v18206_v46  ;;  %4994 = vmatprep.subr.mxu0 %v18207_v1  ;;  %v18217_v46 = vld [vmem:[#allocation83_spill] sm:$0xff] }
 0x312   :  { %5198 = vmatprep.subr.mxu1 %v18208_v23  ;;  %4997 = vmatpush1.msra.mxu0 %v18209_v16  ;;  %v18218_v1 = vld [vmem:[#allocation75_spill] sm:$0xff]  ;;  %v18219_v23 = vld [vmem:[#allocation2_spill] sm:$0xff]  ;;  %v18220_v16 = vld [vmem:[#allocation97_spill] sm:$0xff] }
 0x313   :  { %5200 = vmatpush1.msra.mxu1 %v18210_v10  ;;  %5000 = vmatprep.subr.mxu0 %v18211_v35  ;;  %v18221_v10 = vld [vmem:[#allocation54_spill] sm:$0xff]  ;;  %v18222_v35 = vld [vmem:[#allocation89_spill] sm:$0xff] }
 0x314   :  { %5202 = vmatprep.subr.mxu1 %v18212_v27  ;;  %5003 = vmatpush1.msra.mxu0 %v18213_v4  ;;  %v18223_v27 = vld [vmem:[#allocation37_spill] sm:$0xff]  ;;  %v18224_v4 = vld [vmem:[#allocation80_spill] sm:$0xff] }
 0x315   :  { %5204 = vmatpush1.msra.mxu1 %v18214_v60  ;;  %5006 = vmatprep.subr.mxu0 %v18215_v28  ;;  %v7908_v60 = vmov 0   ;;  %v18225_v28 = vld [vmem:[#allocation78_spill] sm:$0xff] }
 0x316   :  { %5206 = vmatprep.subr.mxu1 %v18216_v42  ;;  %5009 = vmatpush1.msra.mxu0 %v18217_v46  ;;  %v18226_v42 = vld [vmem:[#allocation91_spill] sm:$0xff]  ;;  %v18235_v46 = vld [vmem:[#allocation101_spill] sm:$0xff] }
 0x317   :  { %5208 = vmatpush1.msra.mxu1 %v18218_v1  ;;  %5012 = vmatprep.subr.mxu0 %v18219_v23  ;;  %v7903_v23 = vld [vmem:[%s15588_s0] sm:$0xff]  ;;  %v18234_v1 = vld [vmem:[#allocation87_spill] sm:$0xff] }
 0x318   :  { %5210 = vmatprep.subr.mxu1 %v18220_v16  ;;  %5015 = vmatpush1.msra.mxu0 %v18221_v10  ;;  %v18227_v16 = vld [vmem:[#allocation93_spill] sm:$0xff]  ;;  %v18228_v10 = vld [vmem:[#allocation98_spill] sm:$0xff] }
 0x319   :  { %5212 = vmatpush1.msra.mxu1 %v18222_v35  ;;  %5018 = vmatprep.subr.mxu0 %v18223_v27  ;;  %v18229_v35 = vld [vmem:[#allocation76_spill] sm:$0xff] }
 0x31a   :  { %5214 = vmatprep.subr.mxu1 %v18224_v4  ;;  %7896 = vset.pattern.permute.xlu1 %v7908_v60  ;;  %v18230_v27 = vld [vmem:[#allocation88_spill] sm:$0xff]  ;;  %v18231_v4 = vld [vmem:[#allocation106_spill] sm:$0xff]  ;;  %v18232_v60 = vld [vmem:[#allocation69_spill] sm:$0xff] }
 0x31b   :  { %5021 = vmatpush1.msra.mxu0 %v18225_v28  ;;  %5216 = vmatpush1.msra.mxu1 %v18226_v42  ;;  %v18233_v28 = vld [vmem:[#allocation109_spill] sm:$0xff]  ;;  %v7909_v42 = vmov 1  }
 0x31c   :  { %20 = vperm.xlu1 %7896, %v7903_v23   ;;  %5024 = vmatprep.subr.mxu0 %v18227_v16 }
 0x31d   :  { %5218 = vmatprep.subr.mxu1 %v18228_v10  ;;  %5027 = vmatpush1.msra.mxu0 %v18229_v35  ;;  %v18236_v10 = vld [vmem:[#allocation110_spill] sm:$0xff] }
 0x31e   :  { %5220 = vmatpush2.msra.mxu1 %v18230_v27  ;;  %5030 = vmatprep.subr.mxu0 %v18231_v4  ;;  %v18237_v27 = vld [vmem:[#allocation95_spill] sm:$0xff] }
 0x31f   :  { %5222 = vmatprep.subr.mxu1 %v18232_v60  ;;  %5033 = vmatpush1.msra.mxu0 %v18233_v28  ;;  %v18238_v60 = vld [vmem:[#allocation113_spill] sm:$0xff] }
 0x320   :  { %5224 = vmatpush2.msra.mxu1 %v12534_v33  ;;  %7897 = vset.pattern.permute.xlu1 %v7909_v42  ;;  %v18239_v33 = vld [vmem:[#allocation58_spill] sm:$0xff]  ;;  %v7910_v42 = vmov 3  }
 0x321   :  { %5036 = vmatprep.subr.mxu0 %v18234_v1  ;;  %5226 = vmatprep.subr.mxu1 %v18235_v46  ;;  %v18240_v46 = vld [vmem:[#allocation65_spill] sm:$0xff] }
 0x322   :  { %32 = vperm.xlu1 %7897, %v7903_v23   ;;  %5039 = vmatpush1.msra.mxu0 %v18236_v10 }
 0x323   :  { %5228 = vmatpush2.msra.mxu1 %v12568_v7  ;;  %5042 = vmatprep.subr.mxu0 %v18237_v27  ;;  %v7911_v7 = vmov 2   ;;  %v18241_v27 = vld [vmem:[#allocation70_spill] sm:$0xff] }
 0x324   :  { %5230 = vmatprep.subr.mxu1 %v12585_v55  ;;  %5045 = vmatpush1.msra.mxu0 %v18238_v60  ;;  %v18242_v60 = vld [vmem:[#allocation115_spill] sm:$0xff] }
 0x325   :  { %5232 = vmatpush2.msra.mxu1 %v12602_v14  ;;  %5048 = vmatprep.subr.mxu0 %v18239_v33  ;;  %v18243_v33 = vld [vmem:[#allocation15_spill] sm:$0xff] }
 0x326   :  { %5234 = vmatprep.subr.mxu1 %v12615_v36  ;;  %7899 = vset.pattern.permute.xlu1 %v7910_v42  ;;  %v18244_v42 = vld [vmem:[#allocation82_spill] sm:$0xff] }
 0x327   :  { %5051 = vmatpush2.msra.mxu0 %v18240_v46  ;;  %5236 = vmatpush2.msra.mxu1 %v12628_v63  ;;  %v7912_v63 = vmov 4  }
 0x328   :  { %62 = vperm.xlu1 %7899, %v7903_v23   ;;  %7898 = vset.pattern.permute.xlu0 %v7911_v7  ;;  %v18245_v7 = vld [vmem:[#allocation3_spill] sm:$0xff] }
 0x329   :  { %5054 = vmatprep.subr.mxu0 %v18241_v27  ;;  %5238 = vmatprep.subr.mxu1 %v12641_v29  ;;  %v18246_v29 = vld [vmem:[#allocation13_spill] sm:$0xff] }
 0x32a   :  { %47 = vperm.xlu0 %7898, %v7903_v23   ;;  %5057 = vmatpush2.msra.mxu0 %v18242_v60 }
 0x32b   :  { %5240 = vmatpush2.msra.mxu1 %v12654_v3  ;;  %5060 = vmatprep.subr.mxu0 %v18243_v33  ;;  %v7913_v3 = vmov 5   ;;  %v18247_v33 = vld [vmem:[#allocation14_spill] sm:$0xff] }
 0x32c   :  { %5242 = vmatprep.subr.mxu1 %v12671_v52  ;;  %5063 = vmatpush2.msra.mxu0 %v18244_v42  ;;  %v18248_v42 = vld [vmem:[#allocation7_spill] sm:$0xff] }
 0x32d   :  { %5244 = vmatpush2.msra.mxu1 %v12688_v47  ;;  %7900 = vset.pattern.permute.xlu1 %v7912_v63  ;;  %v18249_v63 = vld [vmem:[#allocation81_spill] sm:$0xff] }
 0x32e   :  { %5066 = vmatprep.subr.mxu0 %v18245_v7  ;;  %5246 = vmatprep.subr.mxu1 %v12702_v57  ;;  %v18250_v57 = vld [vmem:[#allocation19_spill] sm:$0xff] }
 0x32f   :  { %77 = vperm.xlu1 %7900, %v7903_v23   ;;  %5069 = vmatpush2.msra.mxu0 %v18246_v29 }
 0x330   :  { %5248 = vmatpush2.msra.mxu1 %v12716_v39  ;;  %7901 = vset.pattern.permute.xlu0 %v7913_v3  ;;  %v18251_v39 = vld [vmem:[#allocation20_spill] sm:$0xff]  ;;  %v18252_v3 = vld [vmem:[#allocation35_spill] sm:$0xff] }
 0x331   :  { %5072 = vmatprep.subr.mxu0 %v18247_v33  ;;  %5250 = vmatprep.subr.mxu1 %v12789_v59 }
 0x332   :  { %92 = vperm.xlu0 %7901, %v7903_v23   ;;  %5075 = vmatpush2.msra.mxu0 %v18248_v42  ;;  %v18253_v23 = vld [vmem:[#allocation29_spill] sm:$0xff] }
 0x333   :  { %5252 = vmatpush2.msra.mxu1 %v12804_v37  ;;  %5078 = vmatprep.subr.mxu0 %v18249_v63  ;;  %v18254_v37 = vld [vmem:[#allocation36_spill] sm:$0xff] }
 0x334   :  { %5254 = vmatprep.subr.mxu1 %v12819_v56  ;;  %5081 = vmatpush2.msra.mxu0 %v18250_v57  ;;  %v18255_v56 = vld [vmem:[#allocation26_spill] sm:$0xff] }
 0x335   :  { %5256 = vmatpush2.msra.mxu1 %v12834_v40  ;;  %5084 = vmatprep.subr.mxu0 %v18251_v39  ;;  %v18256_v40 = vld [vmem:[#allocation48_spill] sm:$0xff] }
 0x336   :  { %5258 = vmatprep.subr.mxu1 %v12849_v44  ;;  %5087 = vmatpush2.msra.mxu0 %v18252_v3  ;;  %v18257_v44 = vld [vmem:[#allocation42_spill] sm:$0xff] }
 0x337   :  { %5260 = vmatpush2.msra.mxu1 %v12864_v22  ;;  %5090 = vmatprep.subr.mxu0 %v18253_v23 }
 0x338   :  { %5262 = vmatprep.subr.mxu1 %v12879_v0  ;;  %5093 = vmatpush2.msra.mxu0 %v18254_v37 }
 0x339   :  { %5264 = vmatpush2.msra.mxu1 %v12894_v11  ;;  %5096 = vmatprep.subr.mxu0 %v18255_v56 }
 0x33a   :  { %5266 = vmatprep.subr.mxu1 %v12905_v50  ;;  %5099 = vmatpush2.msra.mxu0 %v18256_v40 }
 0x33b   :  { %5268 = vmatpush2.msra.mxu1 %v12916_v62  ;;  %5102 = vmatprep.subr.mxu0 %v18257_v44  ;;  %v18258_v62 = vld [vmem:[#allocation55_spill] sm:$0xff] }
 0x33c   :  { %5270 = vmatprep.subr.mxu1 %v12927_v19  ;;  %5105 = vmatpush2.msra.mxu0 %v12892_v32  ;;  %v18259_v19 = vld [vmem:[#allocation79_spill] sm:$0xff] }
 0x33d   :  { %5272 = vmatpush2.msra.mxu1 %v12938_v51  ;;  %5108 = vmatprep.subr.mxu0 %v12903_v17  ;;  %v18260_v51 = vand.u32 4294901760, %v13062_v38 }
 0x33e   :  { %5274 = vmatprep.subr.mxu1 %v12951_v6  ;;  %5111 = vmatpush2.msra.mxu0 %v12914_v18 }
 0x33f   :  { %5276 = vmatpush2.msra.mxu1 %v12964_v45  ;;  %5114 = vmatprep.subr.mxu0 %v12925_v58  ;;  %v18261_v45 = vld [vmem:[#allocation43_spill] sm:$0xff] }
 0x340   :  { %5278 = vmatprep.subr.mxu1 %v12974_v48  ;;  %5117 = vmatpush2.msra.mxu0 %v18258_v62 }
 0x341   :  { %5280 = vmatpush2.msra.mxu1 %v12984_v26  ;;  %5120 = vmatprep.subr.mxu0 %v18259_v19 }
 0x342   :  { %5288 = vmatmul.mubr.f32.vlgmr.msra.gmra.mxu1 %v18260_v51  ;;  %5560 = vmatprep.subr.mxu1 %v11908_v21  ;;  %v18262_v21 = vld [vmem:[#allocation66_spill] sm:$0xff]  ;;  %v18264_v51 = vld [vmem:[#allocation64_spill] sm:$0xff] }
 0x343   :  { %5123 = vmatpush2.msra.mxu0 %v12962_v12  ;;  %5562 = vmatpush1.msra.mxu1 %v11916_v25  ;;  %v18263_v25 = vand.u32 4294901760, %v18262_v21  ;;  %v18272_v21 = vand.u32 4294901760, %v18192_v20 }
 0x344   :  { %5688 = vmatprep.mubr.f32.mxu1 %v18261_v45  ;;  %5126 = vmatprep.subr.mxu0 %v12972_v61  ;;  %v18323_v61 = vld [vmem:[#allocation68_spill] sm:$0xff] }
 0x345   :  { %5564 = vmatprep.subr.mxu1 %v18178_v13  ;;  %5129 = vmatpush2.msra.mxu0 %v12982_v24  ;;  %v18265_v13 = vld [vmem:[#allocation71_spill] sm:$0xff] }
 0x346   :  { %5566 = vmatpush1.msra.mxu1 %v18179_v15  ;;  %5132 = vmatprep.subr.mxu0 %v12992_v43  ;;  %v18266_v15 = vand.u32 4294901760, %v18265_v13  ;;  %v18278_v13 = vld [vmem:[#allocation11_spill] sm:$0xff] }
 0x347   :  { %5568 = vmatprep.subr.mxu1 %v18180_v2  ;;  %5135 = vmatpush2.msra.mxu0 %v13000_v9  ;;  %v18267_v2 = vand.u32 4294901760, %v18188_v49  ;;  %v18277_v49 = vld [vmem:[#allocation47_spill] sm:$0xff] }
 0x348   :  { %5570 = vmatpush1.msra.mxu1 %v18181_v34  ;;  %5138 = vmatprep.subr.mxu0 %v13008_v8  ;;  %v18268_v34 = vld [vmem:[#allocation30_spill] sm:$0xff]  ;;  %v18309_v8 = vld [vmem:[#allocation99_spill] sm:$0xff] }
 0x349   :  { %5572 = vmatprep.subr.mxu1 %v18182_v54  ;;  %5141 = vmatpush2.msra.mxu0 %v13016_v53  ;;  %v18269_v54 = vld [vmem:[#allocation39_spill] sm:$0xff]  ;;  %v18308_v53 = vld [vmem:[#allocation38_spill] sm:$0xff]  ;;  %v18310_v9 = vand.u32 4294901760, %v18309_v8  ;;  %v18319_v8 = vld [vmem:[#allocation117_spill] sm:$0xff] }
 0x34a   :  { %5574 = vmatpush1.msra.mxu1 %v18183_v30  ;;  %5147 = vmatmul.mubr.f32.vlgmr.msra.gmra.mxu0 %v13062_v38  ;;  %v18270_v30 = vand.u32 4294901760, %v18269_v54  ;;  %v18271_v38 = vld [vmem:[#allocation32_spill] sm:$0xff]  ;;  %v18283_v54 = vld [vmem:[#allocation74_spill] sm:$0xff] }
 0x34b   :  { %5297 = vmatprep.subr.mxu0 %v18263_v25  ;;  %5576 = vmatprep.subr.mxu1 %v18264_v51  ;;  %v18273_v25 = vld [vmem:[#allocation40_spill] sm:$0xff]  ;;  %v18274_v51 = vand.u32 4294901760, %v18194_v5 }
 0x34c   :  { %5301 = vmatpush1.msra.mxu0 %v18266_v15  ;;  %5551 = vmatprep.mubr.f32.mxu0 %v18261_v45  ;;  %v18275_v45 = vld [vmem:[#allocation45_spill] sm:$0xff]  ;;  %v18279_v15 = vand.u32 4294901760, %v18278_v13  ;;  %v237_v13 = vld [vmem:[%s15590_s1 + $0xe8] sm:$0xff] }
 0x34d   :  { %5578 = vmatpush1.msra.mxu1 %v18187_v41  ;;  %5305 = vmatprep.subr.mxu0 %v18267_v2  ;;  %v18276_v41 = vand.u32 4294901760, %v18196_v31  ;;  %v18280_v2 = vld [vmem:[#allocation56_spill] sm:$0xff]  ;;  %v239_v31 = vld [vmem:[%s15590_s1 + $0xf8] sm:$0xff] }
 0x34e   :  { %5580 = vmatprep.subr.mxu1 %v18268_v34  ;;  %5309 = vmatpush1.msra.mxu0 %v18270_v30  ;;  %v18281_v34 = vld [vmem:[#allocation17_spill] sm:$0xff]  ;;  %v18284_v30 = vld [vmem:[#allocation44_spill] sm:$0xff] }
 0x34f   :  { %5582 = vmatpush1.msra.mxu1 %v18271_v38  ;;  %5313 = vmatprep.subr.mxu0 %v18272_v21  ;;  %v18282_v20 = vand.u32 4294901760, %v18281_v34  ;;  %v18285_v5 = vand.u32 4294901760, %v18284_v30  ;;  %v18286_v38 = vld [vmem:[#allocation92_spill] sm:$0xff]  ;;  %v18287_v21 = vld [vmem:[#allocation46_spill] sm:$0xff] }
 0x350   :  { %5584 = vmatprep.subr.mxu1 %v18273_v25  ;;  %5317 = vmatpush1.msra.mxu0 %v18274_v51  ;;  %v18288_v25 = vand.u32 4294901760, %v18287_v21  ;;  %v238_v51 = vld [vmem:[%s15590_s1 + $0xf0] sm:$0xff]  ;;  %v18293_v34 = vld [vmem:[#allocation50_spill] sm:$0xff] }
 0x351   :  { %5586 = vmatpush1.msra.mxu1 %v18275_v45  ;;  %5321 = vmatprep.subr.mxu0 %v18276_v41  ;;  %v18289_v45 = vld [vmem:[#allocation94_spill] sm:$0xff]  ;;  %v18296_v30 = vld [vmem:[#allocation108_spill] sm:$0xff]  ;;  %v13283_v21 = vand.u32 4294901760, %v238_v51 }
 0x352   :  { %5588 = vmatprep.subr.mxu1 %v18277_v49  ;;  %5325 = vmatpush1.msra.mxu0 %v18279_v15  ;;  %v18290_v41 = vld [vmem:[#allocation34_spill] sm:$0xff] }
 0x353   :  { %5590 = vmatpush1.msra.mxu1 %v18280_v2  ;;  %5329 = vmatprep.subr.mxu0 %v18282_v20  ;;  %v18291_v49 = vand.u32 4294901760, %v18290_v41  ;;  %v236_v15 = vld [vmem:[%s15590_s1 + $0xe0] sm:$0xff]  ;;  %v18292_v2 = vld [vmem:[#allocation96_spill] sm:$0xff]  ;;  %v18294_v20 = vand.u32 4294901760, %v18293_v34  ;;  %18299 = vst [vmem:[#allocation121_spill] sm:$0xff] %v13283_v21  ;;  %v13294_v34 = vand.u32 4294901760, %v237_v13 }
 0x354   :  { %5592 = vmatprep.subr.mxu1 %v18283_v54  ;;  %5333 = vmatpush1.msra.mxu0 %v18285_v5  ;;  %v13278_v54 = vand.u32 4294901760, %v239_v31  ;;  %v18297_v5 = vld [vmem:[#allocation62_spill] sm:$0xff] }
 0x355   :  { %5594 = vmatpush1.msra.mxu1 %v18286_v38  ;;  %5337 = vmatprep.subr.mxu0 %v18288_v25  ;;  %v18298_v38 = vand.u32 4294901760, %v18297_v5  ;;  %v235_v25 = vld [vmem:[%s15590_s1 + $0xd8] sm:$0xff]  ;;  %v18300_v41 = vld [vmem:[#allocation114_spill] sm:$0xff]  ;;  %18303 = vst [vmem:[#allocation122_spill] sm:$0xff] %v13294_v34 }
 0x356   :  { %5596 = vmatprep.subr.mxu1 %v18289_v45  ;;  %5341 = vmatpush1.msra.mxu0 %v18291_v49  ;;  %18295 = vst [vmem:[#allocation63_spill] sm:$0xff] %v13278_v54  ;;  %v234_v45 = vld [vmem:[%s15590_s1 + $0xd0] sm:$0xff]  ;;  %v18301_v49 = vld [vmem:[#allocation67_spill] sm:$0xff]  ;;  %v18306_v5 = vld [vmem:[#allocation77_spill] sm:$0xff]  ;;  %v13305_v43 = vsub.f32 %v239_v31, %v13278_v54  ;;  %v18320_v31 = vand.u32 4294901760, %v18319_v8  ;;  %v13324_v54 = vsub.f32 %v237_v13, %v13294_v34 }
 0x357   :  { %5598 = vmatpush1.msra.mxu1 %v18292_v2  ;;  %5345 = vmatprep.subr.mxu0 %v18294_v20  ;;  %v18302_v2 = vand.u32 4294901760, %v18301_v49  ;;  %v13296_v20 = vand.u32 4294901760, %v236_v15  ;;  %v13309_v49 = vand.u32 4294901760, %v234_v45  ;;  %v18336_v13 = vld [vmem:[#allocation37_spill] sm:$0xff] }
 0x358   :  { %5600 = vmatprep.subr.mxu1 %v18296_v30  ;;  %5349 = vmatpush1.msra.mxu0 %v18298_v38  ;;  %v18305_v30 = vld [vmem:[#allocation119_spill] sm:$0xff]  ;;  %v18307_v38 = vand.u32 4294901760, %v18306_v5  ;;  %18311 = vst [vmem:[#allocation124_spill] sm:$0xff] %v13305_v43  ;;  %v18315_v5 = vld [vmem:[#allocation112_spill] sm:$0xff]  ;;  %18321 = vst [vmem:[#allocation4_spill] sm:$0xff] %v13324_v54 }
 0x359   :  { %5602 = vmatpush1.msra.mxu1 %v18300_v41  ;;  %5353 = vmatprep.subr.mxu0 %v18302_v2  ;;  %18304 = vst [vmem:[#allocation123_spill] sm:$0xff] %v13296_v20  ;;  %v13307_v41 = vand.u32 4294901760, %v235_v25  ;;  %18313 = vst [vmem:[#allocation31_spill] sm:$0xff] %v13309_v49  ;;  %v233_v2 = vld [vmem:[%s15590_s1 + $0xc8] sm:$0xff]  ;;  %v13327_v24 = vsub.f32 %v236_v15, %v13296_v20  ;;  %v18346_v20 = vand.u32 4294901760, %v18227_v16  ;;  %v18350_v16 = vand.u32 4294901760, %v18229_v35 }
 0x35a   :  { %5604 = vmatprep.subr.mxu1 %v18305_v30  ;;  %5357 = vmatpush1.msra.mxu0 %v18307_v38  ;;  %v18314_v30 = vld [vmem:[#allocation41_spill] sm:$0xff]  ;;  %v18316_v38 = vand.u32 4294901760, %v18315_v5  ;;  %v13332_v5 = vand.u32 4294901760, %v233_v2 }
 0x35b   :  { %5606 = vmatpush1.msra.mxu1 %v18308_v53  ;;  %5361 = vmatprep.subr.mxu0 %v18310_v9  ;;  %18312 = vst [vmem:[#allocation18_spill] sm:$0xff] %v13307_v41  ;;  %v13318_v53 = vsub.f32 %v238_v51, %v13283_v21  ;;  %v18318_v9 = vld [vmem:[#allocation61_spill] sm:$0xff]  ;;  %18322 = vst [vmem:[#allocation59_spill] sm:$0xff] %v13327_v24  ;;  %v232_v51 = vld [vmem:[%s15590_s1 + $0xc0] sm:$0xff]  ;;  %v13342_v15 = vsub.f32 %v235_v25, %v13307_v41  ;;  %v18347_v21 = vand.u32 4294901760, %v13305_v43 }
 0x35c   :  { %5608 = vmatprep.subr.mxu1 %v18314_v30  ;;  %5365 = vmatpush1.msra.mxu0 %v18316_v38  ;;  %v18324_v30 = vld [vmem:[#allocation83_spill] sm:$0xff]  ;;  %18326 = vst [vmem:[#allocation73_spill] sm:$0xff] %v13332_v5  ;;  %v13365_v34 = vand.u32 4294901760, %v232_v51  ;;  %v18356_v35 = vand.u32 4294901760, %v13327_v24 }
 0x35d   :  { %18317 = vst [vmem:[#allocation57_spill] sm:$0xff] %v13318_v53  ;;  %5610 = vmatpush1.msra.mxu1 %v18318_v9  ;;  %5369 = vmatprep.subr.mxu0 %v18320_v31  ;;  %v18325_v12 = vand.u32 4294901760, %v18324_v30  ;;  %v18327_v38 = vld [vmem:[#allocation75_spill] sm:$0xff]  ;;  %v18328_v9 = vld [vmem:[#allocation2_spill] sm:$0xff]  ;;  %18330 = vst [vmem:[#allocation33_spill] sm:$0xff] %v13342_v15  ;;  %v13386_v19 = vsub.f32 %v13305_v43, %v18347_v21  ;;  %v18355_v43 = vand.u32 4294901760, %v13324_v54 }
 0x35e   :  { %5612 = vmatprep.subr.mxu1 %v18323_v61  ;;  %v18329_v8 = vand.u32 4294901760, %v18328_v9  ;;  %v13345_v61 = vsub.f32 %v234_v45, %v13309_v49  ;;  %v230_v31 = vld [vmem:[%s15590_s1 + $0xb0] sm:$0xff]  ;;  %v18332_v30 = vld [vmem:[#allocation97_spill] sm:$0xff]  ;;  %v229_v25 = vld [vmem:[%s15590_s1 + $0xa8] sm:$0xff]  ;;  %v18337_v49 = vand.u32 4294901760, %v18336_v13  ;;  %18338 = vst [vmem:[#allocation51_spill] sm:$0xff] %v13365_v34 }
 0x35f   :  { %5373 = vmatpush1.msra.mxu0 %v18325_v12  ;;  %5614 = vmatpush1.msra.mxu1 %v18327_v38  ;;  %v231_v12 = vld [vmem:[%s15590_s1 + $0xb8] sm:$0xff]  ;;  %v18333_v38 = vld [vmem:[#allocation54_spill] sm:$0xff]  ;;  %v18345_v41 = vld [vmem:[#allocation91_spill] sm:$0xff]  ;;  %v13411_v26 = vsub.f32 %v13324_v54, %v18355_v43  ;;  %v18359_v43 = vand.u32 4294901760, %v18233_v28 }
 0x360   :  { %5377 = vmatprep.subr.mxu0 %v18329_v8  ;;  %18331 = vst [vmem:[#allocation5_spill] sm:$0xff] %v13345_v61  ;;  %5616 = vmatprep.subr.mxu1 %v18332_v30  ;;  %v18334_v9 = vand.u32 4294901760, %v18333_v38  ;;  %v18335_v45 = vld [vmem:[#allocation89_spill] sm:$0xff]  ;;  %v228_v30 = vld [vmem:[%s15590_s1 + $0xa0] sm:$0xff]  ;;  %v18339_v38 = vld [vmem:[#allocation80_spill] sm:$0xff]  ;;  %v13376_v13 = vand.u32 4294901760, %v231_v12 }
 0x361   :  { %5618 = vmatpush1.msra.mxu1 %v18335_v45  ;;  %v13374_v45 = vsub.f32 %v233_v2, %v13332_v5  ;;  %v13390_v2 = vand.u32 4294901760, %v229_v25  ;;  %v18349_v5 = vld [vmem:[#allocation98_spill] sm:$0xff] }
 0x362   :  { %5381 = vmatpush1.msra.mxu0 %v18334_v9  ;;  %5620 = vmatprep.subr.mxu1 %v18339_v38  ;;  %v18340_v9 = vld [vmem:[#allocation78_spill] sm:$0xff]  ;;  %18343 = vst [vmem:[#allocation52_spill] sm:$0xff] %v13376_v13  ;;  %v18353_v38 = vld [vmem:[#allocation88_spill] sm:$0xff] }
 0x363   :  { %5385 = vmatprep.subr.mxu0 %v18337_v49  ;;  %v18341_v8 = vand.u32 4294901760, %v18340_v9  ;;  %18342 = vst [vmem:[#allocation28_spill] sm:$0xff] %v13374_v45  ;;  %v13378_v49 = vand.u32 4294901760, %v230_v31  ;;  %5622 = vmatpush1.msra.mxu1 %v18345_v41  ;;  %18348 = vst [vmem:[#allocation84_spill] sm:$0xff] %v13390_v2  ;;  %v227_v9 = vld [vmem:[%s15590_s1 + $0x98] sm:$0xff]  ;;  %v13403_v41 = vand.u32 4294901760, %v228_v30 }
 0x364   :  { %5624 = vmatprep.subr.mxu1 %v18349_v5  ;;  %v13416_v5 = vsub.f32 %v13327_v24, %v18356_v35  ;;  %v13432_v35 = vsub.f32 %v231_v12, %v13376_v13  ;;  %v13437_v24 = vand.u32 4294901760, %v227_v9  ;;  %v224_v54 = vld [vmem:[%s15590_s1 + $0x80] sm:$0xff]  ;;  %v18368_v13 = vld [vmem:[#allocation101_spill] sm:$0xff] }
 0x365   :  { %5389 = vmatpush1.msra.mxu0 %v18341_v8  ;;  %18344 = vst [vmem:[#allocation49_spill] sm:$0xff] %v13378_v49  ;;  %18352 = vst [vmem:[#allocation21_spill] sm:$0xff] %v13403_v41  ;;  %5626 = vmatpush2.msra.mxu1 %v18353_v38  ;;  %v18354_v8 = vand.u32 4294901760, %v18231_v4  ;;  %v226_v38 = vld [vmem:[%s15590_s1 + $0x90] sm:$0xff]  ;;  %v225_v4 = vld [vmem:[%s15590_s1 + $0x88] sm:$0xff] }
 0x366   :  { %5393 = vmatprep.subr.mxu0 %v18346_v20  ;;  %v18351_v20 = vand.u32 4294901760, %v13318_v53  ;;  %18360 = vst [vmem:[#allocation76_spill] sm:$0xff] %v13432_v35  ;;  %18362 = vst [vmem:[#allocation109_spill] sm:$0xff] %v13437_v24  ;;  %v13468_v28 = vand.u32 4294901760, %v225_v4 }
 0x367   :  { %5397 = vmatpush1.msra.mxu0 %v18350_v16  ;;  %v13419_v16 = vsub.f32 %v232_v51, %v13365_v34  ;;  %v13435_v51 = vsub.f32 %v230_v31, %v13378_v49  ;;  %v18366_v31 = vand.u32 4294901760, %v13345_v61  ;;  %v13457_v49 = vsub.f32 %v229_v25, %v13390_v2  ;;  %v18373_v25 = vld [vmem:[#allocation103_spill] sm:$0xff] }
 0x368   :  { %v13401_v21 = vsub.f32 %v13318_v53, %v18351_v20  ;;  %5401 = vmatprep.subr.mxu0 %v18354_v8  ;;  %v18358_v8 = vld [vmem:[#allocation69_spill] sm:$0xff]  ;;  %v18363_v53 = vld [vmem:[#allocation100_spill] sm:$0xff]  ;;  %18372 = vst [vmem:[#allocation70_spill] sm:$0xff] %v13468_v28 }
 0x369   :  { %18357 = vst [vmem:[#allocation93_spill] sm:$0xff] %v13419_v16  ;;  %5628 = vmatprep.subr.mxu1 %v18358_v8  ;;  %5405 = vmatpush1.msra.mxu0 %v18359_v43  ;;  %18361 = vst [vmem:[#allocation106_spill] sm:$0xff] %v13435_v51  ;;  %v18364_v8 = vand.u32 4294901760, %v18234_v1  ;;  %v18365_v43 = vand.u32 4294901760, %v13342_v15  ;;  %v13454_v20 = vsub.f32 %v13345_v61, %v18366_v31  ;;  %v18369_v1 = vand.u32 4294901760, %v18236_v10  ;;  %v223_v31 = vld [vmem:[%s15590_s1 + $0x78] sm:$0xff] }
 0x36a   :  { %5630 = vmatpush2.msra.mxu1 %v18363_v53  ;;  %18367 = vst [vmem:[#allocation87_spill] sm:$0xff] %v13457_v49  ;;  %v18374_v61 = vld [vmem:[#allocation95_spill] sm:$0xff]  ;;  %v13479_v53 = vand.u32 4294901760, %v224_v54  ;;  %v13495_v10 = vsub.f32 %v227_v9, %v13437_v24 }
 0x36b   :  { %5409 = vmatprep.subr.mxu0 %v18364_v8  ;;  %v13449_v12 = vsub.f32 %v13342_v15, %v18365_v43  ;;  %5632 = vmatprep.subr.mxu1 %v18368_v13  ;;  %v13464_v8 = vsub.f32 %v228_v30, %v13403_v41  ;;  %v13466_v43 = vand.u32 4294901760, %v226_v38  ;;  %v18375_v13 = vand.u32 4294901760, %v18374_v61  ;;  %v222_v15 = vld [vmem:[%s15590_s1 + $0x70] sm:$0xff]  ;;  %v18377_v41 = vld [vmem:[#allocation113_spill] sm:$0xff]  ;;  %v221_v30 = vld [vmem:[%s15590_s1 + $0x68] sm:$0xff] }
 0x36c   :  { %5413 = vmatpush1.msra.mxu0 %v18369_v1  ;;  %5634 = vmatpush2.msra.mxu1 %v18373_v25  ;;  %18376 = vst [vmem:[#allocation115_spill] sm:$0xff] %v13479_v53  ;;  %v18378_v2 = vand.u32 4294901760, %v18377_v41  ;;  %v18379_v61 = vand.u32 4294901760, %v13374_v45  ;;  %18380 = vst [vmem:[#allocation3_spill] sm:$0xff] %v13495_v10  ;;  %v219_v1 = vld [vmem:[%s15590_s1 + $0x58] sm:$0xff]  ;;  %v13540_v24 = vand.u32 4294901760, %v221_v30 }
 0x36d   :  { %18370 = vst [vmem:[#allocation110_spill] sm:$0xff] %v13464_v8  ;;  %18371 = vst [vmem:[#allocation65_spill] sm:$0xff] %v13466_v43  ;;  %5417 = vmatprep.subr.mxu0 %v18375_v13  ;;  %5636 = vmatprep.subr.mxu1 %v12585_v55  ;;  %v220_v55 = vld [vmem:[%s15590_s1 + $0x60] sm:$0xff]  ;;  %v13509_v13 = vand.u32 4294901760, %v223_v31 }
 0x36e   :  { %5421 = vmatpush1.msra.mxu0 %v18378_v2  ;;  %v13490_v25 = vsub.f32 %v13374_v45, %v18379_v61  ;;  %5638 = vmatpush2.msra.mxu1 %v12602_v14  ;;  %v18381_v2 = vld [vmem:[#allocation58_spill] sm:$0xff]  ;;  %v18384_v45 = vand.u32 4294901760, %v18240_v46  ;;  %v13516_v14 = vsub.f32 %v226_v38, %v13466_v43  ;;  %v18388_v46 = vld [vmem:[#allocation16_spill] sm:$0xff]  ;;  %v18390_v38 = vand.u32 4294901760, %v13419_v16  ;;  %18392 = vst [vmem:[#allocation20_spill] sm:$0xff] %v13540_v24 }
 0x36f   :  { %v18382_v41 = vand.u32 4294901760, %v18381_v2  ;;  %18383 = vst [vmem:[#allocation13_spill] sm:$0xff] %v13509_v13  ;;  %5640 = vmatprep.subr.mxu1 %v12615_v36  ;;  %v13519_v2 = vsub.f32 %v225_v4, %v13468_v28  ;;  %v218_v36 = vld [vmem:[%s15590_s1 + $0x50] sm:$0xff]  ;;  %v13538_v61 = vsub.f32 %v224_v54, %v13479_v53  ;;  %v13542_v9 = vand.u32 4294901760, %v220_v55  ;;  %v18394_v28 = vld [vmem:[#allocation10_spill] sm:$0xff] }
 0x370   :  { %18385 = vst [vmem:[#allocation14_spill] sm:$0xff] %v13516_v14  ;;  %5642 = vmatpush2.msra.mxu1 %v18388_v46  ;;  %v13535_v4 = vsub.f32 %v13419_v16, %v18390_v38  ;;  %v18395_v43 = vand.u32 4294901760, %v18242_v60  ;;  %v18396_v46 = vand.u32 4294901760, %v13432_v35  ;;  %v18397_v38 = vand.u32 4294901760, %v13435_v51  ;;  %v18398_v53 = vld [vmem:[#allocation6_spill] sm:$0xff] }
 0x371   :  { %5425 = vmatprep.subr.mxu0 %v18382_v41  ;;  %18386 = vst [vmem:[#allocation7_spill] sm:$0xff] %v13519_v2  ;;  %v13521_v41 = vand.u32 4294901760, %v222_v15  ;;  %18391 = vst [vmem:[#allocation19_spill] sm:$0xff] %v13538_v61  ;;  %5644 = vmatprep.subr.mxu1 %v18394_v28  ;;  %v18399_v28 = vld [vmem:[#allocation15_spill] sm:$0xff]  ;;  %v18401_v60 = vand.u32 4294901760, %v13457_v49  ;;  %v16486_v16 = vand.u32 4294901760, %v13519_v2 }
 0x372   :  { %5429 = vmatpush2.msra.mxu0 %v18384_v45  ;;  %v18389_v45 = vand.u32 4294901760, %v18241_v27  ;;  %18393 = vst [vmem:[#allocation35_spill] sm:$0xff] %v13542_v9  ;;  %v13556_v54 = vsub.f32 %v13435_v51, %v18397_v38  ;;  %5646 = vmatpush2.msra.mxu1 %v18398_v53  ;;  %v18400_v34 = vand.u32 4294901760, %v18399_v28  ;;  %v13570_v27 = vand.u32 4294901760, %v219_v1  ;;  %v217_v38 = vld [vmem:[%s15590_s1 + $0x48] sm:$0xff]  ;;  %v18405_v53 = vld [vmem:[#allocation82_spill] sm:$0xff] }
 0x373   :  { %18387 = vst [vmem:[#allocation81_spill] sm:$0xff] %v13521_v41  ;;  %5648 = vmatprep.subr.mxu1 %v12671_v52  ;;  %v18407_v28 = vand.u32 4294901760, %v13464_v8  ;;  %v18409_v51 = vand.u32 4294901760, %v18245_v7 }
 0x374   :  { %5433 = vmatprep.subr.mxu0 %v18389_v45  ;;  %v13551_v45 = vsub.f32 %v13432_v35, %v18396_v46  ;;  %v13568_v46 = vsub.f32 %v223_v31, %v13509_v13  ;;  %18403 = vst [vmem:[#allocation36_spill] sm:$0xff] %v13570_v27  ;;  %v13572_v35 = vand.u32 4294901760, %v218_v36  ;;  %5650 = vmatpush2.msra.mxu1 %v12688_v47  ;;  %v18412_v31 = vld [vmem:[#allocation9_spill] sm:$0xff] }
 0x375   :  { %5437 = vmatpush2.msra.mxu0 %v18395_v43  ;;  %v13565_v43 = vsub.f32 %v13457_v49, %v18401_v60  ;;  %v13583_v60 = vsub.f32 %v13464_v8, %v18407_v28  ;;  %v13588_v49 = vsub.f32 %v222_v15, %v13521_v41  ;;  %v13599_v28 = vsub.f32 %v220_v55, %v13542_v9  ;;  %v18416_v55 = vld [vmem:[#allocation24_spill] sm:$0xff]  ;;  %v215_v47 = vld [vmem:[%s15590_s1 + $0x38] sm:$0xff] }
 0x376   :  { %5441 = vmatprep.subr.mxu0 %v18400_v34  ;;  %18402 = vst [vmem:[#allocation29_spill] sm:$0xff] %v13568_v46  ;;  %18404 = vst [vmem:[#allocation26_spill] sm:$0xff] %v13572_v35  ;;  %v18406_v34 = vand.u32 4294901760, %v18405_v53  ;;  %5652 = vmatprep.subr.mxu1 %v18412_v31  ;;  %v18413_v15 = vand.u32 4294901760, %v18246_v29  ;;  %v13611_v53 = vand.u32 4294901760, %v217_v38  ;;  %v18417_v29 = vand.u32 4294901760, %v18247_v33 }
 0x377   :  { %18408 = vst [vmem:[#allocation48_spill] sm:$0xff] %v13588_v49  ;;  %18411 = vst [vmem:[#allocation55_spill] sm:$0xff] %v13599_v28  ;;  %5654 = vmatpush2.msra.mxu1 %v18416_v55  ;;  %v13622_v7 = vsub.f32 %v219_v1, %v13570_v27  ;;  %v214_v55 = vld [vmem:[%s15590_s1 + $0x30] sm:$0xff]  ;;  %v18420_v33 = vand.u32 4294901760, %v18248_v42  ;;  %v18421_v1 = vand.u32 4294901760, %v13516_v14  ;;  %v13645_v31 = vsub.f32 %v13519_v2, %v16486_v16  ;;  %v18422_v42 = vld [vmem:[#allocation22_spill] sm:$0xff] }
 0x378   :  { %5445 = vmatpush2.msra.mxu0 %v18406_v34  ;;  %v13596_v34 = vsub.f32 %v221_v30, %v13540_v24  ;;  %18415 = vst [vmem:[#allocation43_spill] sm:$0xff] %v13611_v53  ;;  %v216_v30 = vld [vmem:[%s15590_s1 + $0x40] sm:$0xff]  ;;  %5656 = vmatprep.subr.mxu1 %v12789_v59  ;;  %v213_v59 = vld [vmem:[%s15590_s1 + $0x28] sm:$0xff]  ;;  %v18431_v16 = vld [vmem:[#allocation25_spill] sm:$0xff]  ;;  %v18433_v8 = vand.u32 4294901760, %v13568_v46 }
 0x379   :  { %5449 = vmatprep.subr.mxu0 %v18409_v51  ;;  %v18414_v51 = vand.u32 4294901760, %v13495_v10  ;;  %18418 = vst [vmem:[#allocation66_spill] sm:$0xff] %v13622_v7  ;;  %5658 = vmatpush2.msra.mxu1 %v18422_v42  ;;  %v13661_v2 = vand.u32 4294901760, %v216_v30  ;;  %v211_v42 = vld [vmem:[%s15590_s1 + $0x18] sm:$0xff] }
 0x37a   :  { %18410 = vst [vmem:[#allocation42_spill] sm:$0xff] %v13596_v34  ;;  %5453 = vmatpush2.msra.mxu0 %v18413_v15  ;;  %v212_v15 = vld [vmem:[%s15590_s1 + $0x20] sm:$0xff] }
 0x37b   :  { %v13609_v52 = vsub.f32 %v13495_v10, %v18414_v51  ;;  %5457 = vmatprep.subr.mxu0 %v18417_v29  ;;  %v13625_v51 = vsub.f32 %v218_v36, %v13572_v35  ;;  %v13640_v36 = vsub.f32 %v13516_v14, %v18421_v1  ;;  %v18424_v29 = vand.u32 4294901760, %v13538_v61  ;;  %18425 = vst [vmem:[#allocation71_spill] sm:$0xff] %v13661_v2  ;;  %v18426_v10 = vld [vmem:[#allocation23_spill] sm:$0xff] }
 0x37c   :  { %5461 = vmatpush2.msra.mxu0 %v18420_v33  ;;  %v18423_v33 = vand.u32 4294901760, %v18249_v63  ;;  %5660 = vmatprep.subr.mxu1 %v18426_v10  ;;  %v18427_v63 = vand.u32 4294901760, %v18250_v57  ;;  %v13675_v14 = vand.u32 4294901760, %v214_v55  ;;  %v13683_v10 = vsub.f32 %v13568_v46, %v18433_v8 }
 0x37d   :  { %18419 = vst [vmem:[#allocation64_spill] sm:$0xff] %v13625_v51  ;;  %v13657_v1 = vsub.f32 %v13538_v61, %v18424_v29  ;;  %v13671_v29 = vsub.f32 %v217_v38, %v13611_v53  ;;  %5662 = vmatpush2.msra.mxu1 %v18431_v16  ;;  %v18432_v61 = vand.u32 4294901760, %v18251_v39  ;;  %v13687_v38 = vand.u32 4294901760, %v213_v59  ;;  %v18435_v53 = vld [vmem:[#allocation27_spill] sm:$0xff] }
 0x37e   :  { %5465 = vmatprep.subr.mxu0 %v18423_v33  ;;  %v13673_v33 = vand.u32 4294901760, %v215_v47  ;;  %18430 = vst [vmem:[#allocation32_spill] sm:$0xff] %v13675_v14  ;;  %5664 = vmatprep.subr.mxu1 %v18435_v53  ;;  %v18436_v39 = vand.u32 4294901760, %v18252_v3  ;;  %v18439_v46 = vand.u32 4294901760, %v18253_v23  ;;  %v18440_v3 = vand.u32 4294901760, %v13596_v34  ;;  %v209_v23 = vld [vmem:[%s15590_s1 + $0x8] sm:$0xff] }
 0x37f   :  { %5469 = vmatpush2.msra.mxu0 %v18427_v63  ;;  %18428 = vst [vmem:[#allocation30_spill] sm:$0xff] %v13671_v29  ;;  %18434 = vst [vmem:[#allocation40_spill] sm:$0xff] %v13687_v38  ;;  %v13702_v63 = vand.u32 4294901760, %v212_v15  ;;  %5666 = vmatpush2.msra.mxu1 %v12864_v22  ;;  %v18441_v8 = vand.u32 4294901760, %v13599_v28  ;;  %v210_v22 = vld [vmem:[%s15590_s1 + $0x10] sm:$0xff]  ;;  %v13737_v53 = vand.u32 4294901760, %v211_v42 }
 0x380   :  { %18429 = vst [vmem:[#allocation39_spill] sm:$0xff] %v13673_v33  ;;  %5473 = vmatprep.subr.mxu0 %v18432_v61  ;;  %v18437_v61 = vand.u32 4294901760, %v13588_v49  ;;  %5668 = vmatprep.subr.mxu1 %v12879_v0  ;;  %v18447_v0 = vand.u32 4294901760, %v18255_v56  ;;  %v18451_v56 = vand.u32 4294901760, %v18256_v40 }
 0x381   :  { %5477 = vmatpush2.msra.mxu0 %v18436_v39  ;;  %18438 = vst [vmem:[#allocation45_spill] sm:$0xff] %v13702_v63  ;;  %v13711_v39 = vsub.f32 %v13596_v34, %v18440_v3  ;;  %v13716_v16 = vsub.f32 %v13599_v28, %v18441_v8  ;;  %v13732_v8 = vsub.f32 %v215_v47, %v13673_v33  ;;  %18446 = vst [vmem:[#allocation17_spill] sm:$0xff] %v13737_v53  ;;  %v208_v28 = vld [vmem:[%s15590_s1] sm:$0xff] }
 0x382   :  { %v13700_v57 = vsub.f32 %v13588_v49, %v18437_v61  ;;  %5481 = vmatprep.subr.mxu0 %v18439_v46  ;;  %v13719_v61 = vsub.f32 %v216_v30, %v13661_v2  ;;  %v18443_v46 = vand.u32 4294901760, %v18254_v37  ;;  %v13735_v30 = vsub.f32 %v214_v55, %v13675_v14  ;;  %5670 = vmatpush2.msra.mxu1 %v12894_v11 }
 0x383   :  { %18444 = vst [vmem:[#allocation11_spill] sm:$0xff] %v13732_v8  ;;  %v18449_v55 = vand.u32 4294901760, %v13625_v51  ;;  %v13757_v34 = vsub.f32 %v213_v59, %v13687_v38  ;;  %5672 = vmatprep.subr.mxu1 %v12905_v50  ;;  %v13768_v37 = vand.u32 4294901760, %v209_v23  ;;  %v18455_v59 = vld [vmem:[#allocation60_spill] sm:$0xff]  ;;  %v18456_v50 = vand.u32 4294901760, %v18257_v44 }
 0x384   :  { %18442 = vst [vmem:[#allocation47_spill] sm:$0xff] %v13719_v61  ;;  %5485 = vmatpush2.msra.mxu0 %v18443_v46  ;;  %18445 = vst [vmem:[#allocation56_spill] sm:$0xff] %v13735_v30  ;;  %v18448_v46 = vand.u32 4294901760, %v13622_v7  ;;  %5674 = vmatpush2.msra.mxu1 %v18455_v59  ;;  %v13779_v11 = vand.u32 4294901760, %v208_v28  ;;  %v18459_v49 = vand.u32 4294901760, %v12892_v32  ;;  %v18460_v44 = vand.u32 4294901760, %v13671_v29 }
 0x385   :  { %5489 = vmatprep.subr.mxu0 %v18447_v0  ;;  %v13754_v3 = vsub.f32 %v13625_v51, %v18449_v55  ;;  %18450 = vst [vmem:[#allocation74_spill] sm:$0xff] %v13757_v34  ;;  %v13764_v0 = vsub.f32 %v212_v15, %v13702_v63  ;;  %18454 = vst [vmem:[#allocation46_spill] sm:$0xff] %v13768_v37  ;;  %v271_v55 = vld [vmem:[%s15590_s1 + $0x1f8] sm:$0xff]  ;;  %v270_v51 = vld [vmem:[%s15590_s1 + $0x1f0] sm:$0xff]  ;;  %v13795_v40 = vsub.f32 %v211_v42, %v13737_v53 }
 0x386   :  { %v13749_v47 = vsub.f32 %v13622_v7, %v18448_v46  ;;  %5493 = vmatpush2.msra.mxu0 %v18451_v56  ;;  %v13766_v46 = vand.u32 4294901760, %v210_v22  ;;  %18457 = vst [vmem:[#allocation94_spill] sm:$0xff] %v13779_v11  ;;  %v18458_v7 = vld [vmem:[#allocation53_spill] sm:$0xff]  ;;  %v13790_v59 = vsub.f32 %v13671_v29, %v18460_v44  ;;  %v269_v15 = vld [vmem:[%s15590_s1 + $0x1e8] sm:$0xff]  ;;  %v268_v32 = vld [vmem:[%s15590_s1 + $0x1e0] sm:$0xff]  ;;  %v18465_v29 = vand.u32 4294901760, %v12914_v18 }
 0x387   :  { %18452 = vst [vmem:[#allocation44_spill] sm:$0xff] %v13764_v0  ;;  %5497 = vmatprep.subr.mxu0 %v18456_v50  ;;  %5676 = vmatprep.subr.mxu1 %v18458_v7  ;;  %18461 = vst [vmem:[#allocation34_spill] sm:$0xff] %v13795_v40  ;;  %v18463_v7 = vand.u32 4294901760, %v12903_v17  ;;  %v13809_v50 = vand.u32 4294901760, %v271_v55  ;;  %v13819_v17 = vsub.f32 %v209_v23, %v13768_v37  ;;  %v267_v56 = vld [vmem:[%s15590_s1 + $0x1d8] sm:$0xff]  ;;  %v18469_v18 = vld [vmem:[#allocation102_spill] sm:$0xff] }
 0x388   :  { %18453 = vst [vmem:[#allocation92_spill] sm:$0xff] %v13766_v46  ;;  %5501 = vmatpush2.msra.mxu0 %v18459_v49  ;;  %v18462_v49 = vld [vmem:[#allocation72_spill] sm:$0xff]  ;;  %v13838_v44 = vsub.f32 %v208_v28, %v13779_v11  ;;  %v13840_v53 = vand.u32 4294901760, %v269_v15  ;;  %v13842_v42 = vand.u32 4294901760, %v268_v32  ;;  %v18475_v37 = vand.u32 4294901760, %v18258_v62  ;;  %v18478_v11 = vld [vmem:[#allocation107_spill] sm:$0xff] }
 0x389   :  { %5678 = vmatpush2.msra.mxu1 %v18462_v49  ;;  %5505 = vmatprep.subr.mxu0 %v18463_v7  ;;  %18464 = vst [vmem:[#allocation96_spill] sm:$0xff] %v13809_v50  ;;  %v13816_v49 = vsub.f32 %v210_v22, %v13766_v46  ;;  %18467 = vst [vmem:[#allocation108_spill] sm:$0xff] %v13819_v17  ;;  %v13821_v7 = vand.u32 4294901760, %v270_v51  ;;  %v18471_v22 = vand.u32 4294901760, %v13719_v61  ;;  %v18481_v62 = vand.u32 4294901760, %v13757_v34 }
 0x38a   :  { %5680 = vmatprep.subr.mxu1 %v12951_v6  ;;  %5509 = vmatpush2.msra.mxu0 %v18465_v29  ;;  %v266_v6 = vld [vmem:[%s15590_s1 + $0x1d0] sm:$0xff]  ;;  %v18470_v29 = vand.u32 4294901760, %v12925_v58  ;;  %18472 = vst [vmem:[#allocation114_spill] sm:$0xff] %v13838_v44  ;;  %18473 = vst [vmem:[#allocation67_spill] sm:$0xff] %v13840_v53  ;;  %v13870_v58 = vand.u32 4294901760, %v267_v56  ;;  %v18491_v63 = vand.u32 4294901760, %v13401_v21 }
 0x38b   :  { %18466 = vst [vmem:[#allocation50_spill] sm:$0xff] %v13816_v49  ;;  %18468 = vst [vmem:[#allocation62_spill] sm:$0xff] %v13821_v7  ;;  %5682 = vmatpush2.msra.mxu1 %v18469_v18  ;;  %v13835_v23 = vsub.f32 %v13719_v61, %v18471_v22  ;;  %v18476_v18 = vand.u32 4294901760, %v13732_v8  ;;  %v18477_v22 = vand.u32 4294901760, %v13735_v30  ;;  %v18494_v61 = vld [vmem:[#allocation104_spill] sm:$0xff]  ;;  %v18508_v21 = vand.u32 4294901760, %v13819_v17 }
 0x38c   :  { %5513 = vmatprep.subr.mxu0 %v18470_v29  ;;  %18474 = vst [vmem:[#allocation119_spill] sm:$0xff] %v13842_v42  ;;  %5684 = vmatprep.subr.mxu1 %v12974_v48  ;;  %v18479_v48 = vld [vmem:[#allocation79_spill] sm:$0xff]  ;;  %18483 = vst [vmem:[#allocation38_spill] sm:$0xff] %v13870_v58 }
 0x38d   :  { %5517 = vmatpush2.msra.mxu0 %v18475_v37  ;;  %v13851_v29 = vsub.f32 %v13732_v8, %v18476_v18  ;;  %v13856_v28 = vsub.f32 %v13735_v30, %v18477_v22  ;;  %5686 = vmatpush2.msra.mxu1 %v18478_v11  ;;  %v18480_v46 = vand.u32 4294901760, %v18479_v48  ;;  %v13865_v37 = vsub.f32 %v13757_v34, %v18481_v62  ;;  %v265_v22 = vld [vmem:[%s15590_s1 + $0x1c8] sm:$0xff]  ;;  %v18485_v11 = vld [vmem:[#allocation120_spill] sm:$0xff]  ;;  %v18489_v30 = vld [vmem:[#allocation90_spill] sm:$0xff] }
 0x38e   :  { %v13868_v18 = vsub.f32 %v271_v55, %v13809_v50  ;;  %v13872_v8 = vand.u32 4294901760, %v266_v6  ;;  %5690 = vmatmul.mubr.f32.vlgmr.msra.gmra.mxu1 %v18485_v11  ;;  %v18487_v48 = vand.u32 4294901760, %v13764_v0  ;;  %v13888_v34 = vsub.f32 %v270_v51, %v13821_v7 }
 0x38f   :  { %5521 = vmatprep.subr.mxu0 %v18480_v46  ;;  %v18486_v46 = vand.u32 4294901760, %v13386_v19  ;;  %v18490_v50 = vand.u32 4294901760, %v18489_v30  ;;  %v13900_v55 = vsub.f32 %v268_v32, %v13842_v42  ;;  %v18496_v51 = vand.u32 4294901760, %v13411_v26  ;;  %v264_v32 = vld [vmem:[%s15590_s1 + $0x1c0] sm:$0xff]  ;;  %v263_v19 = vld [vmem:[%s15590_s1 + $0x1b8] sm:$0xff] }
 0x390   :  { %18482 = vst [vmem:[#allocation77_spill] sm:$0xff] %v13868_v18  ;;  %18484 = vst [vmem:[#allocation99_spill] sm:$0xff] %v13872_v8  ;;  %v13883_v62 = vsub.f32 %v13764_v0, %v18487_v48  ;;  %v13897_v48 = vsub.f32 %v269_v15, %v13840_v53  ;;  %v18495_v0 = vand.u32 4294901760, %v18494_v61  ;;  %v13913_v15 = vand.u32 4294901760, %v265_v22  ;;  %v18499_v61 = vld [vmem:[#allocation105_spill] sm:$0xff] }
 0x391   :  { %5846 = vmatprep.subr.mxu1 %v18486_v46  ;;  %18488 = vst [vmem:[#allocation41_spill] sm:$0xff] %v13888_v34  ;;  %5525 = vmatpush2.msra.mxu0 %v18490_v50  ;;  %18493 = vst [vmem:[#allocation61_spill] sm:$0xff] %v13900_v55  ;;  %v18501_v26 = vand.u32 4294901760, %v13416_v5  ;;  %v13925_v30 = vsub.f32 %v267_v56, %v13870_v58  ;;  %v18504_v5 = vld [vmem:[#allocation111_spill] sm:$0xff]  ;;  %v13949_v46 = vsub.f32 %v13819_v17, %v18508_v21 }
 0x392   :  { %5852 = vmatpush1.msra.mxu1 %v18491_v63  ;;  %18492 = vst [vmem:[#allocation112_spill] sm:$0xff] %v13897_v48  ;;  %5529 = vmatprep.subr.mxu0 %v18495_v0  ;;  %v18497_v63 = vand.u32 4294901760, %v13795_v40  ;;  %18498 = vst [vmem:[#allocation117_spill] sm:$0xff] %v13913_v15  ;;  %v18500_v0 = vand.u32 4294901760, %v18499_v61  ;;  %v262_v61 = vld [vmem:[%s15590_s1 + $0x1b0] sm:$0xff]  ;;  %v13979_v21 = vand.u32 4294901760, %v263_v19 }
 0x393   :  { %5858 = vmatprep.subr.mxu1 %v18496_v51  ;;  %18502 = vst [vmem:[#allocation68_spill] sm:$0xff] %v13925_v30  ;;  %v18507_v51 = vand.u32 4294901760, %v13816_v49  ;;  %v13981_v17 = vand.u32 4294901760, %v262_v61  ;;  %v18522_v58 = vand.u32 4294901760, %v13535_v4 }
 0x394   :  { %v13911_v50 = vsub.f32 %v13795_v40, %v18497_v63  ;;  %5533 = vmatpush2.msra.mxu0 %v18500_v0  ;;  %5864 = vmatpush1.msra.mxu1 %v18501_v26  ;;  %v13928_v63 = vsub.f32 %v266_v6, %v13872_v8  ;;  %v18505_v0 = vand.u32 4294901760, %v18504_v5  ;;  %v18506_v26 = vand.u32 4294901760, %v13449_v12  ;;  %v261_v5 = vld [vmem:[%s15590_s1 + $0x1a8] sm:$0xff]  ;;  %v18509_v12 = vld [vmem:[#allocation116_spill] sm:$0xff]  ;;  %18518 = vst [vmem:[#allocation97_spill] sm:$0xff] %v13979_v21 }
 0x395   :  { %v13944_v6 = vsub.f32 %v13816_v49, %v18507_v51  ;;  %v18512_v51 = vand.u32 4294901760, %v13838_v44  ;;  %v13966_v40 = vand.u32 4294901760, %v264_v32  ;;  %v260_v49 = vld [vmem:[%s15590_s1 + $0x1a0] sm:$0xff]  ;;  %18519 = vst [vmem:[#allocation54_spill] sm:$0xff] %v13981_v17 }
 0x396   :  { %18503 = vst [vmem:[#allocation83_spill] sm:$0xff] %v13928_v63  ;;  %5537 = vmatprep.subr.mxu0 %v18505_v0  ;;  %5870 = vmatprep.subr.mxu1 %v18506_v26  ;;  %v18510_v0 = vand.u32 4294901760, %v18509_v12  ;;  %v18511_v26 = vand.u32 4294901760, %v13454_v20  ;;  %v18514_v12 = vld [vmem:[#allocation12_spill] sm:$0xff]  ;;  %v18516_v20 = vand.u32 4294901760, %v13490_v25 }
 0x397   :  { %v13962_v56 = vsub.f32 %v13838_v44, %v18512_v51  ;;  %18513 = vst [vmem:[#allocation75_spill] sm:$0xff] %v13966_v40  ;;  %v13977_v51 = vsub.f32 %v265_v22, %v13913_v15  ;;  %v18520_v44 = vld [vmem:[#allocation118_spill] sm:$0xff]  ;;  %v14008_v22 = vand.u32 4294901760, %v260_v49 }
 0x398   :  { %5541 = vmatpush2.msra.mxu0 %v18510_v0  ;;  %5876 = vmatpush1.msra.mxu1 %v18511_v26  ;;  %v18515_v0 = vand.u32 4294901760, %v18514_v12  ;;  %v18521_v8 = vand.u32 4294901760, %v18520_v44  ;;  %v18523_v12 = vand.u32 4294901760, %v13868_v18  ;;  %v259_v26 = vld [vmem:[%s15590_s1 + $0x198] sm:$0xff]  ;;  %v18531_v44 = vand.u32 4294901760, %v13900_v55 }
 0x399   :  { %5882 = vmatprep.subr.mxu1 %v18516_v20  ;;  %18517 = vst [vmem:[#allocation2_spill] sm:$0xff] %v13977_v51  ;;  %v13994_v20 = vand.u32 4294901760, %v261_v5  ;;  %18527 = vst [vmem:[#allocation37_spill] sm:$0xff] %v14008_v22 }
 0x39a   :  { %5545 = vmatprep.subr.mxu0 %v18515_v0  ;;  %5888 = vmatpush1.msra.mxu1 %v18522_v58  ;;  %v13990_v25 = vsub.f32 %v13868_v18, %v18523_v12  ;;  %v18526_v58 = vand.u32 4294901760, %v13888_v34  ;;  %v18528_v0 = vand.u32 4294901760, %v13551_v45  ;;  %v18529_v18 = vld [vmem:[#allocation121_spill] sm:$0xff]  ;;  %v14022_v15 = vsub.f32 %v13900_v55, %v18531_v44  ;;  %v258_v45 = vld [vmem:[%s15590_s1 + $0x190] sm:$0xff] }
 0x39b   :  { %5549 = vmatpush2.msra.mxu0 %v18521_v8  ;;  %18524 = vst [vmem:[#allocation89_spill] sm:$0xff] %v13994_v20  ;;  %v18525_v8 = vld [vmem:[#allocation63_spill] sm:$0xff]  ;;  %v14038_v44 = vsub.f32 %v263_v19, %v13979_v21  ;;  %v14043_v55 = vand.u32 4294901760, %v259_v26  ;;  %v14066_v21 = vsub.f32 %v261_v5, %v13994_v20  ;;  %v18552_v19 = vand.u32 4294901760, %v13640_v36  ;;  %v252_v5 = vld [vmem:[%s15590_s1 + $0x160] sm:$0xff] }
 0x39c   :  { %5553 = vmatmul.mubr.f32.vlgmr.msra.gmra.mxu0 %v18485_v11  ;;  %5697 = vmatprep.subr.mxu0 %v18525_v8  ;;  %v14006_v12 = vsub.f32 %v13888_v34, %v18526_v58  ;;  %v18530_v8 = vand.u32 4294901760, %v13897_v48  ;;  %v14025_v58 = vsub.f32 %v264_v32, %v13966_v40  ;;  %v18533_v11 = vand.u32 4294901760, %v13556_v54  ;;  %v256_v34 = vld [vmem:[%s15590_s1 + $0x180] sm:$0xff]  ;;  %v255_v54 = vld [vmem:[%s15590_s1 + $0x178] sm:$0xff]  ;;  %v253_v20 = vld [vmem:[%s15590_s1 + $0x168] sm:$0xff] }
 0x39d   :  { %5894 = vmatprep.subr.mxu1 %v18528_v0  ;;  %5699 = vmatpush1.msra.mxu0 %v18529_v18  ;;  %v257_v0 = vld [vmem:[%s15590_s1 + $0x188] sm:$0xff]  ;;  %18535 = vst [vmem:[#allocation78_spill] sm:$0xff] %v14038_v44  ;;  %v14041_v32 = vsub.f32 %v262_v61, %v13981_v17  ;;  %18537 = vst [vmem:[#allocation98_spill] sm:$0xff] %v14043_v55  ;;  %v18540_v61 = vand.u32 4294901760, %v13925_v30  ;;  %v18541_v18 = vand.u32 4294901760, %v13928_v63  ;;  %v18556_v36 = vand.u32 4294901760, %v13645_v31 }
 0x39e   :  { %v14017_v4 = vsub.f32 %v13897_v48, %v18530_v8  ;;  %18532 = vst [vmem:[#allocation80_spill] sm:$0xff] %v14025_v58  ;;  %5900 = vmatpush1.msra.mxu1 %v18533_v11  ;;  %v18534_v8 = vld [vmem:[#allocation122_spill] sm:$0xff]  ;;  %v18538_v11 = vand.u32 4294901760, %v13565_v43  ;;  %v18539_v48 = vld [vmem:[#allocation123_spill] sm:$0xff]  ;;  %18542 = vst [vmem:[#allocation88_spill] sm:$0xff] %v14066_v21  ;;  %v18543_v43 = vand.u32 4294901760, %v13583_v60 }
 0x39f   :  { %5701 = vmatprep.subr.mxu0 %v18534_v8  ;;  %18536 = vst [vmem:[#allocation91_spill] sm:$0xff] %v14041_v32  ;;  %v14058_v8 = vsub.f32 %v13925_v30, %v18540_v61  ;;  %v14063_v17 = vsub.f32 %v13928_v63, %v18541_v18  ;;  %v14075_v61 = vand.u32 4294901760, %v258_v45  ;;  %v14077_v30 = vand.u32 4294901760, %v257_v0  ;;  %v18549_v63 = vld [vmem:[#allocation31_spill] sm:$0xff] }
 0x3a0   :  { %5906 = vmatprep.subr.mxu1 %v18538_v11  ;;  %5703 = vmatpush1.msra.mxu0 %v18539_v48  ;;  %v18544_v11 = vld [vmem:[#allocation18_spill] sm:$0xff]  ;;  %v14073_v48 = vsub.f32 %v260_v49, %v14008_v22  ;;  %v18548_v18 = vand.u32 4294901760, %v13609_v52  ;;  %v254_v49 = vld [vmem:[%s15590_s1 + $0x170] sm:$0xff]  ;;  %v18553_v22 = vld [vmem:[#allocation73_spill] sm:$0xff]  ;;  %v18554_v52 = vand.u32 4294901760, %v13977_v51 }
 0x3a1   :  { %5912 = vmatpush1.msra.mxu1 %v18543_v43  ;;  %5705 = vmatprep.subr.mxu0 %v18544_v11  ;;  %18546 = vst [vmem:[#allocation100_spill] sm:$0xff] %v14075_v61  ;;  %18547 = vst [vmem:[#allocation101_spill] sm:$0xff] %v14077_v30  ;;  %v14084_v43 = vand.u32 4294901760, %v256_v34  ;;  %v14086_v11 = vand.u32 4294901760, %v255_v54  ;;  %v14119_v31 = vsub.f32 %v258_v45, %v14075_v61  ;;  %v18563_v45 = vand.u32 4294901760, %v13683_v10  ;;  %v18570_v10 = vld [vmem:[#allocation84_spill] sm:$0xff] }
 0x3a2   :  { %18545 = vst [vmem:[#allocation69_spill] sm:$0xff] %v14073_v48  ;;  %5918 = vmatprep.subr.mxu1 %v18548_v18  ;;  %5707 = vmatpush1.msra.mxu0 %v18549_v63  ;;  %v14097_v18 = vsub.f32 %v13977_v51, %v18554_v52  ;;  %v14102_v63 = vsub.f32 %v259_v26, %v14043_v55  ;;  %v18558_v26 = vand.u32 4294901760, %v13657_v1  ;;  %v18559_v51 = vld [vmem:[#allocation52_spill] sm:$0xff]  ;;  %v251_v1 = vld [vmem:[%s15590_s1 + $0x158] sm:$0xff] }
 0x3a3   :  { %18550 = vst [vmem:[#allocation103_spill] sm:$0xff] %v14084_v43  ;;  %18551 = vst [vmem:[#allocation95_spill] sm:$0xff] %v14086_v11  ;;  %5924 = vmatpush1.msra.mxu1 %v18552_v19  ;;  %5709 = vmatprep.subr.mxu0 %v18553_v22  ;;  %v18557_v19 = vld [vmem:[#allocation51_spill] sm:$0xff]  ;;  %v14124_v22 = vand.u32 4294901760, %v254_v49  ;;  %v18564_v52 = vld [vmem:[#allocation49_spill] sm:$0xff]  ;;  %v14144_v60 = vsub.f32 %v256_v34, %v14084_v43  ;;  %v18572_v34 = vand.u32 4294901760, %v14041_v32 }
 0x3a4   :  { %18555 = vst [vmem:[#allocation113_spill] sm:$0xff] %v14102_v63  ;;  %5930 = vmatprep.subr.mxu1 %v18556_v36  ;;  %5711 = vmatpush1.msra.mxu0 %v18557_v19  ;;  %18560 = vst [vmem:[#allocation58_spill] sm:$0xff] %v14119_v31  ;;  %v14122_v36 = vsub.f32 %v257_v0, %v14077_v30  ;;  %v18565_v0 = vand.u32 4294901760, %v14025_v58  ;;  %v14149_v19 = vand.u32 4294901760, %v253_v20  ;;  %v18569_v30 = vand.u32 4294901760, %v13700_v57  ;;  %v18574_v57 = vld [vmem:[#allocation21_spill] sm:$0xff] }
 0x3a5   :  { %5936 = vmatpush1.msra.mxu1 %v18558_v26  ;;  %5713 = vmatprep.subr.mxu0 %v18559_v51  ;;  %18562 = vst [vmem:[#allocation10_spill] sm:$0xff] %v14124_v22  ;;  %v250_v26 = vld [vmem:[%s15590_s1 + $0x150] sm:$0xff]  ;;  %18566 = vst [vmem:[#allocation6_spill] sm:$0xff] %v14144_v60  ;;  %v14147_v51 = vsub.f32 %v255_v54, %v14086_v11  ;;  %v18573_v11 = vand.u32 4294901760, %v13711_v39  ;;  %v18579_v54 = vand.u32 4294901760, %v13716_v16  ;;  %v18580_v39 = vld [vmem:[#allocation109_spill] sm:$0xff] }
 0x3a6   :  { %18561 = vst [vmem:[#allocation16_spill] sm:$0xff] %v14122_v36  ;;  %5942 = vmatprep.subr.mxu1 %v18563_v45  ;;  %5715 = vmatpush1.msra.mxu0 %v18564_v52  ;;  %v14141_v55 = vsub.f32 %v14025_v58, %v18565_v0  ;;  %18568 = vst [vmem:[#allocation82_spill] sm:$0xff] %v14149_v19  ;;  %v18571_v52 = vand.u32 4294901760, %v14038_v44  ;;  %v14163_v58 = vsub.f32 %v14041_v32, %v18572_v34  ;;  %v18584_v61 = vld [vmem:[#allocation65_spill] sm:$0xff] }
 0x3a7   :  { %18567 = vst [vmem:[#allocation15_spill] sm:$0xff] %v14147_v51  ;;  %5948 = vmatpush1.msra.mxu1 %v18569_v30  ;;  %5717 = vmatprep.subr.mxu0 %v18570_v10  ;;  %v14169_v30 = vpop.permute.xlu1 %20  ;;  %v18575_v45 = vand.u32 4294901760, %v14066_v21  ;;  %v14180_v34 = vand.u32 4294901760, %v250_v26  ;;  %v18583_v43 = vand.u32 4294901760, %v13749_v47  ;;  %v18589_v16 = vand.u32 4294901760, %v14102_v63 }
 0x3a8   :  { %v14158_v0 = vsub.f32 %v14038_v44, %v18571_v52  ;;  %5954 = vmatprep.subr.mxu1 %v18573_v11  ;;  %5719 = vmatpush1.msra.mxu0 %v18574_v57  ;;  %v14176_v52 = vand.u32 4294901760, %v252_v5  ;;  %v14178_v44 = vand.u32 4294901760, %v251_v1  ;;  %v18581_v11 = vand.u32 4294901760, %v14073_v48 }
 0x3a9   :  { %v14174_v10 = vsub.f32 %v14066_v21, %v18575_v45  ;;  %18578 = vst [vmem:[#allocation22_spill] sm:$0xff] %v14180_v34  ;;  %5960 = vmatpush1.msra.mxu1 %v18579_v54  ;;  %5721 = vmatprep.subr.mxu0 %v18580_v39  ;;  %v14193_v21 = vsub.f32 %v254_v49, %v14124_v22  ;;  %v18586_v57 = vand.u32 4294901760, %v13754_v3  ;;  %v18587_v45 = vld [vmem:[#allocation70_spill] sm:$0xff]  ;;  %v18588_v49 = vld [vmem:[#allocation8_spill] sm:$0xff]  ;;  %v18591_v39 = vld [vmem:[#allocation115_spill] sm:$0xff] }
 0x3aa   :  { %18576 = vst [vmem:[#allocation9_spill] sm:$0xff] %v14176_v52  ;;  %18577 = vst [vmem:[#allocation24_spill] sm:$0xff] %v14178_v44  ;;  %v14188_v32 = vsub.f32 %v14073_v48, %v18581_v11  ;;  %5966 = vmatprep.subr.mxu1 %v18583_v43  ;;  %5723 = vmatpush1.msra.mxu0 %v18584_v61  ;;  %v14202_v11 = vsub.f32 %v253_v20, %v14149_v19  ;;  %v18590_v20 = vand.u32 4294901760, %v13790_v59 }
 0x3ab   :  { %18582 = vst [vmem:[#allocation23_spill] sm:$0xff] %v14193_v21  ;;  %5972 = vmatpush1.msra.mxu1 %v18586_v57  ;;  %5725 = vmatprep.subr.mxu0 %v18587_v45  ;;  %vm24_vm8 = vcmp.eq.s32.totalorder %v14169_v30, %v18588_v49  ;;  %v14214_v54 = vsub.f32 %v14102_v63, %v18589_v16  ;;  %v249_v16 = vld [vmem:[%s15590_s1 + $0x148] sm:$0xff]  ;;  %v18595_v59 = vand.u32 4294901760, %v13835_v23  ;;  %v18598_v63 = vand.u32 4294901760, %v13851_v29 }
 0x3ac   :  { %18585 = vst [vmem:[#allocation25_spill] sm:$0xff] %v14202_v11  ;;  %5978 = vmatprep.subr.mxu1 %v18590_v20  ;;  %5727 = vmatpush1.msra.mxu0 %v18591_v39  ;;  %v14221_v57 = vsub.f32 %v252_v5, %v14176_v52  ;;  %v14224_v48 = vsub.f32 %v251_v1, %v14178_v44  ;;  %v18596_v5 = vand.u32 4294901760, %v14119_v31  ;;  %v18597_v1 = vand.u32 4294901760, %v14122_v36  ;;  %v33_v20 = vpop.permute.xlu1 %32 }
 0x3ad   :  { %v14227_v43 = vsub.f32 %v250_v26, %v14180_v34  ;;  %5984 = vmatpush1.msra.mxu1 %v18595_v59  ;;  %5729 = vmatprep.subr.mxu0 %v13509_v13  ;;  %v18599_v23 = vmov 0.0   ;;  %vm36_vm11 = vcmp.eq.s32.totalorder %v33_v20, %v18588_v49 }
 0x3ae   :  { %18592 = vst [vmem:[#allocation27_spill] sm:$0xff] %v14221_v57  ;;  %18593 = vst [vmem:[#allocation60_spill] sm:$0xff] %v14224_v48  ;;  %v14239_v3 = vsub.f32 %v14119_v31, %v18596_v5  ;;  %v14244_v26 = vsub.f32 %v14122_v36, %v18597_v1  ;;  %5990 = vmatprep.subr.mxu1 %v18598_v63  ;;  %5731 = vmatpush1.msra.mxu0 %v13521_v41  ;;  %v7843_v59 = vsel %vm24_vm8, 1.0, %v18599_v23  ;;  %v18603_v36 = vld [vmem:[#allocation86_spill] sm:$0xff] }
 0x3af   :  { %18594 = vst [vmem:[#allocation53_spill] sm:$0xff] %v14227_v43  ;;  %v18600_v5 = vand.u32 4294901760, %v14144_v60  ;;  %v18601_v1 = vand.u32 4294901760, %v14147_v51  ;;  %v18602_v63 = vand.u32 4294901760, %v13856_v28  ;;  %5733 = vmatprep.subr.mxu0 %v13540_v24  ;;  %vm23_vm9 = vcmp.eq.s32.totalorder %v14169_v30, %v18603_v36 }
 0x3b0   :  { %vm35_vm10 = vcmp.eq.s32.totalorder %v33_v20, %v18603_v36  ;;  %5735 = vmatpush1.msra.mxu0 %v13542_v9  ;;  %v18608_v28 = vand.u32 4294901760, %v13911_v50  ;;  %v18610_v50 = vand.u32 4294901760, %v13944_v6  ;;  %v247_v6 = vld [vmem:[%s15590_s1 + $0x138] sm:$0xff]  ;;  %v18618_v41 = vand.u32 4294901760, %v13962_v56  ;;  %v48_v56 = vpop.permute.xlu0 %47 }
 0x3b1   :  { %v14257_v31 = vsub.f32 %v14144_v60, %v18600_v5  ;;  %v14262_v47 = vsub.f32 %v14147_v51, %v18601_v1  ;;  %5996 = vmatpush1.msra.mxu1 %v18602_v63  ;;  %v14272_v5 = vand.u32 4294901760, %v249_v16  ;;  %v18605_v60 = vand.u32 4294901760, %v13865_v37  ;;  %5737 = vmatprep.subr.mxu0 %v13570_v27  ;;  %v18612_v37 = vld [vmem:[#allocation43_spill] sm:$0xff] }
 0x3b2   :  { %v7846_v1 = vsel %vm36_vm11, 1.0, %v18599_v23  ;;  %v18606_v51 = vand.u32 4294901760, %v13883_v62  ;;  %5739 = vmatpush1.msra.mxu0 %v13572_v35  ;;  %v7842_v62 = vsel %vm23_vm9, 1.0, %v18599_v23  ;;  %vm50_vm1 = vcmp.eq.s32.totalorder %v48_v56, %v18603_v36  ;;  %v18628_v35 = vld [vmem:[#allocation92_spill] sm:$0xff] }
 0x3b3   :  { %18604 = vst [vmem:[#allocation72_spill] sm:$0xff] %v14272_v5  ;;  %6002 = vmatprep.subr.mxu1 %v18605_v60  ;;  %v45_v24 = vadd.f32 %v7846_v1, %v7843_v59  ;;  %v18607_v60 = vand.u32 4294901760, %v14193_v21  ;;  %v18609_v1 = vand.u32 4294901760, %v14202_v11  ;;  %5741 = vmatprep.subr.mxu0 %v18612_v37  ;;  %v14315_v29 = vsub.f32 %v249_v16, %v14272_v5  ;;  %v14326_v59 = vpop.permute.xlu1 %62 }
 0x3b4   :  { %6008 = vmatpush1.msra.mxu1 %v18606_v51  ;;  %v7845_v51 = vsel %vm35_vm10, 1.0, %v18599_v23  ;;  %5743 = vmatpush1.msra.mxu0 %v13661_v2  ;;  %v18615_v16 = vand.u32 4294901760, %v14221_v57  ;;  %v18617_v37 = vand.u32 4294901760, %v14227_v43  ;;  %vm65_vm14 = vcmp.eq.s32.totalorder %v14326_v59, %v18603_v36 }
 0x3b5   :  { %v14289_v9 = vsub.f32 %v14193_v21, %v18607_v60  ;;  %6014 = vmatprep.subr.mxu1 %v18608_v28  ;;  %v14305_v60 = vsub.f32 %v14202_v11, %v18609_v1  ;;  %v18611_v28 = vld [vmem:[#allocation85_spill] sm:$0xff]  ;;  %18613 = vst [vmem:[#allocation102_spill] sm:$0xff] %v14315_v29  ;;  %v248_v1 = vld [vmem:[%s15590_s1 + $0x140] sm:$0xff]  ;;  %v18616_v11 = vand.u32 4294901760, %v14224_v48  ;;  %5745 = vmatprep.subr.mxu0 %v13673_v33  ;;  %v245_v33 = vld [vmem:[%s15590_s1 + $0x128] sm:$0xff]  ;;  %v18627_v2 = vand.u32 4294901760, %v14058_v8 }
 0x3b6   :  { %6020 = vmatpush1.msra.mxu1 %v18610_v50  ;;  %vm22_vm12 = vcmp.eq.s32.totalorder %v14169_v30, %v18611_v28  ;;  %vm34_vm13 = vcmp.eq.s32.totalorder %v33_v20, %v18611_v28  ;;  %v18614_v50 = vand.u32 4294901760, %v13949_v46  ;;  %v14332_v63 = vsub.f32 %v14221_v57, %v18615_v16  ;;  %5747 = vmatpush1.msra.mxu0 %v13675_v14  ;;  %v18632_v8 = vld [vmem:[#allocation46_spill] sm:$0xff] }
 0x3b7   :  { %v14337_v21 = vsub.f32 %v14224_v48, %v18616_v11  ;;  %v14342_v46 = vsub.f32 %v14227_v43, %v18617_v37  ;;  %v44_v16 = vadd.f32 %v7845_v51, %v7842_v62  ;;  %vm66_vm15 = vcmp.eq.s32.totalorder %v14326_v59, %v18588_v49  ;;  %5749 = vmatprep.subr.mxu0 %v13687_v38  ;;  %v18634_v14 = vld [vmem:[#allocation94_spill] sm:$0xff] }
 0x3b8   :  { %6026 = vmatprep.subr.mxu1 %v18614_v50  ;;  %v246_v50 = vld [vmem:[%s15590_s1 + $0x130] sm:$0xff]  ;;  %v7841_v37 = vsel %vm22_vm12, 1.0, %v18599_v23  ;;  %v18619_v43 = vand.u32 4294901760, %v13990_v25  ;;  %v14365_v62 = vand.u32 4294901760, %v248_v1  ;;  %v14367_v51 = vand.u32 4294901760, %v247_v6 }
 0x3b9   :  { %6032 = vmatpush1.msra.mxu1 %v18618_v41  ;;  %v7844_v41 = vsel %vm34_vm13, 1.0, %v18599_v23  ;;  %v18621_v11 = vand.u32 4294901760, %v14006_v12  ;;  %vm49_vm0 = vcmp.eq.s32.totalorder %v48_v56, %v18611_v28  ;;  %vm51_vm2 = vcmp.eq.s32.totalorder %v48_v56, %v18588_v49 }
 0x3ba   :  { %6038 = vmatprep.subr.mxu1 %v18619_v43  ;;  %18620 = vst [vmem:[#allocation107_spill] sm:$0xff] %v14365_v62  ;;  %v14375_v25 = vand.u32 4294901760, %v246_v50  ;;  %v18623_v30 = vand.u32 4294901760, %v14017_v4  ;;  %v18624_v43 = vld [vmem:[#allocation45_spill] sm:$0xff]  ;;  %v7851_v12 = vsel %vm65_vm14, 1.0, %v18599_v23  ;;  %v7852_v20 = vsel %vm66_vm15, 1.0, %v18599_v23 }
 0x3bb   :  { %6044 = vmatpush2.msra.mxu1 %v18621_v11  ;;  %5751 = vmatpush1.msra.mxu0 %v18624_v43  ;;  %v7848_v11 = vsel %vm50_vm1, 1.0, %v18599_v23  ;;  %v7849_v48 = vsel %vm51_vm2, 1.0, %v18599_v23  ;;  %v43_v57 = vadd.f32 %v7844_v41, %v7841_v37  ;;  %v18625_v4 = vand.u32 4294901760, %v14022_v15  ;;  %v78_v41 = vpop.permute.xlu1 %77 }
 0x3bc   :  { %18622 = vst [vmem:[#allocation79_spill] sm:$0xff] %v14375_v25  ;;  %6050 = vmatprep.subr.mxu1 %v18623_v30  ;;  %v18626_v30 = vld [vmem:[#allocation17_spill] sm:$0xff]  ;;  %v59_v43 = vadd.f32 %v7848_v11, %v44_v16  ;;  %v60_v38 = vadd.f32 %v7849_v48, %v45_v24  ;;  %v7847_v15 = vsel %vm49_vm0, 1.0, %v18599_v23  ;;  %v14405_v16 = vsub.f32 %v248_v1, %v14365_v62  ;;  %v244_v48 = vld [vmem:[%s15590_s1 + $0x120] sm:$0xff]  ;;  %v242_v1 = vld [vmem:[%s15590_s1 + $0x110] sm:$0xff] }
 0x3bd   :  { %6056 = vmatpush2.msra.mxu1 %v18625_v4  ;;  %5753 = vmatprep.subr.mxu0 %v18626_v30  ;;  %v14408_v24 = vsub.f32 %v247_v6, %v14367_v51  ;;  %vm64_vm3 = vcmp.eq.s32.totalorder %v14326_v59, %v18611_v28  ;;  %v243_v6 = vld [vmem:[%s15590_s1 + $0x118] sm:$0xff]  ;;  %v18633_v4 = vand.u32 4294901760, %v14097_v18  ;;  %vm80_vm4 = vcmp.eq.s32.totalorder %v78_v41, %v18603_v36  ;;  %v240_v59 = vld [vmem:[%s15590_s1 + $0x100] sm:$0xff] }
 0x3be   :  { %6062 = vmatprep.subr.mxu1 %v18627_v2  ;;  %5755 = vmatpush1.msra.mxu0 %v18628_v35  ;;  %18629 = vst [vmem:[#allocation120_spill] sm:$0xff] %v14405_v16  ;;  %v18631_v2 = vand.u32 4294901760, %v14063_v17  ;;  %v74_v56 = vadd.f32 %v7851_v12, %v59_v43  ;;  %v75_v11 = vadd.f32 %v7852_v20, %v60_v38  ;;  %v14430_v43 = vand.u32 4294901760, %v245_v33  ;;  %v18638_v20 = vld [vmem:[#allocation96_spill] sm:$0xff] }
 0x3bf   :  { %18630 = vst [vmem:[#allocation90_spill] sm:$0xff] %v14408_v24  ;;  %5757 = vmatprep.subr.mxu0 %v18632_v8  ;;  %vm81_vm5 = vcmp.eq.s32.totalorder %v78_v41, %v18588_v49  ;;  %v14428_v17 = vsub.f32 %v246_v50, %v14375_v25  ;;  %v58_v38 = vadd.f32 %v7847_v15, %v43_v57  ;;  %v18637_v12 = vand.u32 4294901760, %v14141_v55 }
 0x3c0   :  { %6068 = vmatpush2.msra.mxu1 %v18631_v2  ;;  %5759 = vmatpush1.msra.mxu0 %v18634_v14  ;;  %18636 = vst [vmem:[#allocation105_spill] sm:$0xff] %v14430_v43  ;;  %v7854_v18 = vsel %vm80_vm4, 1.0, %v18599_v23  ;;  %v7855_v2 = vsel %vm81_vm5, 1.0, %v18599_v23  ;;  %v7850_v57 = vsel %vm64_vm3, 1.0, %v18599_v23  ;;  %v18640_v55 = vand.u32 4294901760, %v14158_v0 }
 0x3c1   :  { %6074 = vmatprep.subr.mxu1 %v18633_v4  ;;  %18635 = vst [vmem:[#allocation104_spill] sm:$0xff] %v14428_v17  ;;  %5761 = vmatprep.subr.mxu0 %v18638_v20  ;;  %v14437_v4 = vand.u32 4294901760, %v244_v48  ;;  %v89_v50 = vadd.f32 %v7854_v18, %v74_v56  ;;  %v90_v15 = vadd.f32 %v7855_v2, %v75_v11  ;;  %v14449_v37 = vand.u32 4294901760, %v243_v6  ;;  %v241_v20 = vld [vmem:[%s15590_s1 + $0x108] sm:$0xff]  ;;  %v18646_v2 = vld [vmem:[#allocation38_spill] sm:$0xff] }
 0x3c2   :  { %6080 = vmatpush2.msra.mxu1 %v18637_v12  ;;  %5763 = vmatpush2.msra.mxu0 %v13821_v7  ;;  %v93_v12 = vpop.permute.xlu0 %92  ;;  %v18642_v14 = vand.u32 4294901760, %v14163_v58  ;;  %vm79_vm6 = vcmp.eq.s32.totalorder %v78_v41, %v18611_v28  ;;  %v18643_v56 = vand.u32 4294901760, %v14174_v10  ;;  %v14470_v11 = vsub.f32 %v245_v33, %v14430_v43  ;;  %v18651_v41 = vld [vmem:[#allocation117_spill] sm:$0xff] }
 0x3c3   :  { %18639 = vst [vmem:[#allocation111_spill] sm:$0xff] %v14437_v4  ;;  %6086 = vmatprep.subr.mxu1 %v18640_v55  ;;  %18641 = vst [vmem:[#allocation116_spill] sm:$0xff] %v14449_v37  ;;  %5765 = vmatprep.subr.mxu0 %v13840_v53  ;;  %vm95_vm7 = vcmp.eq.s32.totalorder %v93_v12, %v18603_v36  ;;  %vm96_vm8 = vcmp.eq.s32.totalorder %v93_v12, %v18588_v49  ;;  %v14472_v36 = vand.u32 4294901760, %v242_v1 }
 0x3c4   :  { %6092 = vmatpush2.msra.mxu1 %v18642_v14  ;;  %5767 = vmatpush2.msra.mxu0 %v13842_v42  ;;  %v7857_v14 = vsel %vm95_vm7, 1.0, %v18599_v23  ;;  %v7858_v58 = vsel %vm96_vm8, 1.0, %v18599_v23  ;;  %18644 = vst [vmem:[#allocation12_spill] sm:$0xff] %v14470_v11  ;;  %v73_v49 = vadd.f32 %v7850_v57, %v58_v38  ;;  %v18645_v18 = vand.u32 4294901760, %v14188_v32  ;;  %v18649_v42 = vld [vmem:[#allocation99_spill] sm:$0xff] }
 0x3c5   :  { %6098 = vmatprep.subr.mxu1 %v18643_v56  ;;  %5769 = vmatprep.subr.mxu0 %v18646_v2  ;;  %v104_v55 = vadd.f32 %v7857_v14, %v89_v50  ;;  %v14477_v10 = vadd.f32 %v7858_v58, %v90_v15  ;;  %v14479_v56 = vand.u32 4294901760, %v241_v20  ;;  %v7853_v0 = vsel %vm79_vm6, 1.0, %v18599_v23 }
 0x3c6   :  { %6104 = vmatpush2.msra.mxu1 %v18645_v18  ;;  %v18648_v33 = vand.u32 4294901760, %v14214_v54  ;;  %5771 = vmatpush2.msra.mxu0 %v18649_v42  ;;  %v14489_v32 = vsub.f32 %v244_v48, %v14437_v4  ;;  %v14491_v57 = vand.u32 4294901760, %v240_v59  ;;  %vm94_vm9 = vcmp.eq.s32.totalorder %v93_v12, %v18611_v28 }
 0x3c7   :  { %18647 = vst [vmem:[#allocation118_spill] sm:$0xff] %v14477_v10  ;;  %v14494_v50 = vand.u32 4294901760, %v104_v55  ;;  %v18650_v15 = vand.u32 4294901760, %v14239_v3  ;;  %5773 = vmatprep.subr.mxu0 %v18651_v41  ;;  %v14501_v14 = vsub.f32 %v243_v6, %v14449_v37  ;;  %v18652_v58 = vand.u32 4294901760, %v14244_v26 }
 0x3c8   :  { %6110 = vmatprep.subr.mxu1 %v18648_v33  ;;  %5775 = vmatpush2.msra.mxu0 %v13966_v40  ;;  %v18653_v48 = vand.u32 4294901760, %v14315_v29  ;;  %v18654_v33 = vand.u32 4294901760, %v14405_v16  ;;  %v14514_v54 = vsub.f32 %v242_v1, %v14472_v36  ;;  %v88_v6 = vadd.f32 %v7853_v0, %v73_v49  ;;  %v18658_v0 = vld [vmem:[#allocation54_spill] sm:$0xff] }
 0x3c9   :  { %6116 = vmatpush2.msra.mxu1 %v18650_v15  ;;  %v14517_v38 = vsub.f32 %v104_v55, %v14494_v50  ;;  %v18655_v26 = vand.u32 4294901760, %v14257_v31  ;;  %v14524_v10 = vsub.f32 %v241_v20, %v14479_v56  ;;  %v18657_v1 = vand.u32 4294901760, %v14262_v47  ;;  %6226 = vmatprep.mubr.f32.mxu1 %v14494_v50 }
 0x3ca   :  { %6122 = vmatprep.subr.mxu1 %v18652_v58  ;;  %v6168_v18 = vsub.f32 %v14315_v29, %v18653_v48  ;;  %v6174_v3 = vsub.f32 %v14405_v16, %v18654_v33  ;;  %v18656_v58 = vld [vmem:[#allocation97_spill] sm:$0xff]  ;;  %v6157_v48 = vand.u32 4294901760, %v14337_v21  ;;  %v7856_v33 = vsel %vm94_vm9, 1.0, %v18599_v23 }
 0x3cb   :  { %6128 = vmatpush2.msra.mxu1 %v18655_v26  ;;  %5777 = vmatprep.subr.mxu0 %v18656_v58  ;;  %v18659_v49 = vand.u32 4294901760, %v14408_v24  ;;  %v14537_v21 = vsub.f32 %v240_v59, %v14491_v57  ;;  %v18660_v20 = vand.u32 4294901760, %v14289_v9  ;;  %v18661_v26 = vld [vmem:[#allocation89_spill] sm:$0xff]  ;;  %v6163_v28 = vand.u32 4294901760, %v14342_v46 }
 0x3cc   :  { %6134 = vmatprep.subr.mxu1 %v18657_v1  ;;  %5779 = vmatpush2.msra.mxu0 %v18658_v0  ;;  %v18662_v47 = vand.u32 4294901760, %v14428_v17  ;;  %v5826_v1 = vand.u32 4294901760, %v14517_v38  ;;  %v18663_v55 = vand.u32 4294901760, %v14305_v60  ;;  %v18664_v59 = vld [vmem:[#allocation37_spill] sm:$0xff]  ;;  %v6169_v15 = vand.u32 4294901760, %v6168_v18  ;;  %v18672_v60 = vld [vmem:[#allocation103_spill] sm:$0xff] }
 0x3cd   :  { %v6180_v31 = vsub.f32 %v14408_v24, %v18659_v49  ;;  %6140 = vmatpush2.msra.mxu1 %v18660_v20  ;;  %5781 = vmatprep.subr.mxu0 %v18661_v26  ;;  %v18665_v9 = vand.u32 4294901760, %v14470_v11  ;;  %v16637_v46 = vand.u32 4294901760, %v14514_v54  ;;  %v103_v23 = vadd.f32 %v7856_v33, %v88_v6  ;;  %v18675_v6 = vld [vmem:[#allocation95_spill] sm:$0xff] }
 0x3ce   :  { %v6186_v12 = vsub.f32 %v14428_v17, %v18662_v47  ;;  %6146 = vmatprep.subr.mxu1 %v18663_v55  ;;  %5783 = vmatpush2.msra.mxu0 %v18664_v59  ;;  %v18666_v24 = vand.u32 4294901760, %v14332_v63  ;;  %v18667_v47 = vld [vmem:[#allocation98_spill] sm:$0xff]  ;;  %v6175_v17 = vand.u32 4294901760, %v6174_v3  ;;  %v5827_v49 = vsub.f32 %v14517_v38, %v5826_v1  ;;  %v18668_v55 = vld [vmem:[#allocation100_spill] sm:$0xff]  ;;  %v18670_v63 = vld [vmem:[#allocation101_spill] sm:$0xff] }
 0x3cf   :  { %v6192_v20 = vsub.f32 %v14470_v11, %v18665_v9  ;;  %5785 = vmatprep.subr.mxu0 %v18667_v47  ;;  %v6181_v18 = vand.u32 4294901760, %v6180_v31  ;;  %v18669_v16 = vand.u32 4294901760, %v14489_v32  ;;  %v18671_v3 = vand.u32 4294901760, %v14501_v14 }
 0x3d0   :  { %6152 = vmatpush2.msra.mxu1 %v18666_v24  ;;  %5787 = vmatpush2.msra.mxu0 %v18668_v55  ;;  %v6187_v24 = vand.u32 4294901760, %v6186_v12  ;;  %v6210_v31 = vsub.f32 %v14514_v54, %v16637_v46  ;;  %v14573_v11 = vand.u32 4294901760, %v103_v23 }
 0x3d1   :  { %6158 = vmatprep.subr.mxu1 %v6157_v48  ;;  %v6198_v9 = vsub.f32 %v14489_v32, %v18669_v16  ;;  %5789 = vmatprep.subr.mxu0 %v18670_v63  ;;  %v6204_v33 = vsub.f32 %v14501_v14, %v18671_v3  ;;  %v6193_v48 = vand.u32 4294901760, %v6192_v20  ;;  %v5828_v16 = vand.u32 4294901760, %v5827_v49 }
 0x3d2   :  { %6164 = vmatpush2.msra.mxu1 %v6163_v28  ;;  %5791 = vmatpush2.msra.mxu0 %v18672_v60  ;;  %18673 = vst [vmem:[#allocation8_spill] sm:$0xff] %v14573_v11  ;;  %v18674_v28 = vand.u32 4294901760, %v14524_v10  ;;  %v18676_v20 = vand.u32 4294901760, %v14537_v21  ;;  %v14586_v49 = vsub.f32 %v103_v23, %v14573_v11 }
 0x3d3   :  { %6170 = vmatprep.subr.mxu1 %v6169_v15  ;;  %5793 = vmatprep.subr.mxu0 %v18675_v6  ;;  %v6199_v15 = vand.u32 4294901760, %v6198_v9  ;;  %v6205_v46 = vand.u32 4294901760, %v6204_v33 }
 0x3d4   :  { %6176 = vmatpush2.msra.mxu1 %v6175_v17  ;;  %v6216_v12 = vsub.f32 %v14524_v10, %v18674_v28  ;;  %v6222_v3 = vsub.f32 %v14537_v21, %v18676_v20  ;;  %5795 = vmatpush2.msra.mxu0 %v14124_v22  ;;  %v6211_v17 = vand.u32 4294901760, %v6210_v31  ;;  %v16638_v23 = vand.u32 4294901760, %v14586_v49  ;;  %v18680_v31 = vld [vmem:[#allocation123_spill] sm:$0xff]  ;;  %v18685_v20 = vld [vmem:[#allocation124_spill] sm:$0xff] }
 0x3d5   :  { %6182 = vmatprep.subr.mxu1 %v6181_v18  ;;  %5797 = vmatprep.subr.mxu0 %v14149_v19  ;;  %v18682_v28 = vld [vmem:[#allocation31_spill] sm:$0xff] }
 0x3d6   :  { %6188 = vmatpush2.msra.mxu1 %v6187_v24  ;;  %5799 = vmatpush2.msra.mxu0 %v14176_v52  ;;  %v6217_v18 = vand.u32 4294901760, %v6216_v12  ;;  %v6223_v9 = vand.u32 4294901760, %v6222_v3  ;;  %v18677_v24 = vld [vmem:[#allocation63_spill] sm:$0xff]  ;;  %v5833_v33 = vsub.f32 %v14586_v49, %v16638_v23  ;;  %v18683_v12 = vld [vmem:[#allocation73_spill] sm:$0xff]  ;;  %v18686_v3 = vld [vmem:[#allocation52_spill] sm:$0xff] }
 0x3d7   :  { %6194 = vmatprep.subr.mxu1 %v6193_v48  ;;  %5829 = vmatprep.mubr.f32.mxu0 %v5828_v16  ;;  %v18679_v48 = vld [vmem:[#allocation122_spill] sm:$0xff]  ;;  %v18691_v23 = vld [vmem:[#allocation59_spill] sm:$0xff] }
 0x3d8   :  { %6200 = vmatpush2.msra.mxu1 %v6199_v15  ;;  %5801 = vmatprep.subr.mxu0 %v14178_v44  ;;  %v18681_v16 = vld [vmem:[#allocation18_spill] sm:$0xff]  ;;  %v18684_v15 = vld [vmem:[#allocation51_spill] sm:$0xff] }
 0x3d9   :  { %6206 = vmatprep.subr.mxu1 %v6205_v46  ;;  %5803 = vmatpush2.msra.mxu0 %v14180_v34  ;;  %v18678_v46 = vld [vmem:[#allocation121_spill] sm:$0xff] }
 0x3da   :  { %6212 = vmatpush2.msra.mxu1 %v6211_v17  ;;  %5805 = vmatprep.subr.mxu0 %v14272_v5  ;;  %v18687_v17 = vld [vmem:[#allocation57_spill] sm:$0xff] }
 0x3db   :  { %6218 = vmatprep.subr.mxu1 %v6217_v18  ;;  %5807 = vmatpush2.msra.mxu0 %v14365_v62  ;;  %v18688_v18 = vld [vmem:[#allocation49_spill] sm:$0xff] }
 0x3dc   :  { %6224 = vmatpush2.msra.mxu1 %v6223_v9  ;;  %5809 = vmatprep.subr.mxu0 %v14367_v51  ;;  %v18689_v9 = vld [vmem:[#allocation4_spill] sm:$0xff] }
 0x3dd   :  { %6228 = vmatmul.mubr.f32.vlgmr.msra.gmra.mxu1 %v14573_v11  ;;  %6438 = vmatprep.subr.mxu1 %v18677_v24  ;;  %v18692_v11 = vld [vmem:[#allocation21_spill] sm:$0xff] }
 0x3de   :  { %5811 = vmatpush2.msra.mxu0 %v14375_v25  ;;  %6440 = vmatpush1.msra.mxu1 %v18678_v46 }
 0x3df   :  { %6568 = vmatprep.mubr.f32.mxu1 %v5826_v1  ;;  %5813 = vmatprep.subr.mxu0 %v14430_v43  ;;  %v5834_v1 = vand.u32 4294901760, %v5833_v33  ;;  %v18690_v33 = vld [vmem:[#allocation84_spill] sm:$0xff] }
 0x3e0   :  { %6442 = vmatprep.subr.mxu1 %v18679_v48  ;;  %5815 = vmatpush2.msra.mxu0 %v14437_v4 }
 0x3e1   :  { %6444 = vmatpush1.msra.mxu1 %v18680_v31  ;;  %5817 = vmatprep.subr.mxu0 %v14449_v37 }
 0x3e2   :  { %6446 = vmatprep.subr.mxu1 %v18681_v16  ;;  %5819 = vmatpush2.msra.mxu0 %v14472_v36 }
 0x3e3   :  { %6448 = vmatpush1.msra.mxu1 %v18682_v28  ;;  %5821 = vmatprep.subr.mxu0 %v14479_v56 }
 0x3e4   :  { %6450 = vmatprep.subr.mxu1 %v18683_v12  ;;  %5823 = vmatpush2.msra.mxu0 %v14491_v57 }
 0x3e5   :  { %6452 = vmatpush1.msra.mxu1 %v18684_v15  ;;  %5835 = vmatmul.mubr.f32.vlgmr.msra.gmra.mxu0 %v5834_v1  ;;  %v18693_v15 = vld [vmem:[#allocation33_spill] sm:$0xff] }
 0x3e6   :  { %6236 = vmatprep.subr.mxu0 %v18685_v20  ;;  %6454 = vmatprep.subr.mxu1 %v18686_v3  ;;  %v18694_v1 = vld [vmem:[#allocation109_spill] sm:$0xff] }
 0x3e7   :  { %6239 = vmatpush1.msra.mxu0 %v18687_v17  ;;  %6428 = vmatprep.mubr.f32.mxu0 %v14517_v38  ;;  %v18695_v20 = vld [vmem:[#allocation5_spill] sm:$0xff]  ;;  %v18696_v17 = vld [vmem:[#allocation28_spill] sm:$0xff] }
 0x3e8   :  { %6456 = vmatpush1.msra.mxu1 %v18688_v18  ;;  %6242 = vmatprep.subr.mxu0 %v18689_v9  ;;  %v18697_v38 = vld [vmem:[#allocation93_spill] sm:$0xff] }
 0x3e9   :  { %6458 = vmatprep.subr.mxu1 %v18690_v33  ;;  %6245 = vmatpush1.msra.mxu0 %v18691_v23  ;;  %v18698_v33 = vld [vmem:[#allocation76_spill] sm:$0xff] }
 0x3ea   :  { %6460 = vmatpush1.msra.mxu1 %v18692_v11  ;;  %6248 = vmatprep.subr.mxu0 %v18693_v15  ;;  %v18699_v11 = vld [vmem:[#allocation106_spill] sm:$0xff]  ;;  %v18700_v15 = vld [vmem:[#allocation81_spill] sm:$0xff] }
 0x3eb   :  { %6462 = vmatprep.subr.mxu1 %v18694_v1  ;;  %6251 = vmatpush1.msra.mxu0 %v18695_v20  ;;  %v18701_v1 = vld [vmem:[#allocation87_spill] sm:$0xff]  ;;  %v18702_v20 = vld [vmem:[#allocation20_spill] sm:$0xff] }
 0x3ec   :  { %6464 = vmatpush1.msra.mxu1 %v18584_v61  ;;  %6254 = vmatprep.subr.mxu0 %v18696_v17  ;;  %v18703_v61 = vld [vmem:[#allocation110_spill] sm:$0xff]  ;;  %v18704_v17 = vld [vmem:[#allocation35_spill] sm:$0xff] }
 0x3ed   :  { %6466 = vmatprep.subr.mxu1 %v18587_v45  ;;  %6257 = vmatpush1.msra.mxu0 %v18697_v38  ;;  %v18705_v45 = vld [vmem:[#allocation3_spill] sm:$0xff] }
 0x3ee   :  { %6468 = vmatpush1.msra.mxu1 %v18591_v39  ;;  %6260 = vmatprep.subr.mxu0 %v18698_v33  ;;  %v18706_v39 = vld [vmem:[#allocation14_spill] sm:$0xff] }
 0x3ef   :  { %6470 = vmatprep.subr.mxu1 %v13509_v13  ;;  %6263 = vmatpush1.msra.mxu0 %v18699_v11  ;;  %v18707_v33 = vld [vmem:[#allocation26_spill] sm:$0xff]  ;;  %v18708_v13 = vld [vmem:[#allocation7_spill] sm:$0xff] }
 0x3f0   :  { %6472 = vmatpush1.msra.mxu1 %v18700_v15  ;;  %6266 = vmatprep.subr.mxu0 %v18701_v1  ;;  %v18709_v11 = vld [vmem:[#allocation43_spill] sm:$0xff] }
 0x3f1   :  { %6474 = vmatprep.subr.mxu1 %v18702_v20  ;;  %6269 = vmatpush1.msra.mxu0 %v18703_v61  ;;  %v18710_v15 = vld [vmem:[#allocation19_spill] sm:$0xff]  ;;  %v18712_v20 = vld [vmem:[#allocation29_spill] sm:$0xff] }
 0x3f2   :  { %6476 = vmatpush1.msra.mxu1 %v18704_v17  ;;  %6272 = vmatprep.subr.mxu0 %v18705_v45  ;;  %v18711_v1 = vld [vmem:[#allocation71_spill] sm:$0xff]  ;;  %v18714_v17 = vld [vmem:[#allocation48_spill] sm:$0xff] }
 0x3f3   :  { %6478 = vmatprep.subr.mxu1 %v13570_v27  ;;  %6275 = vmatpush1.msra.mxu0 %v18706_v39  ;;  %v18713_v61 = vld [vmem:[#allocation39_spill] sm:$0xff]  ;;  %v18715_v45 = vld [vmem:[#allocation32_spill] sm:$0xff]  ;;  %v18716_v27 = vld [vmem:[#allocation42_spill] sm:$0xff] }
 0x3f4   :  { %6480 = vmatpush1.msra.mxu1 %v18707_v33  ;;  %6278 = vmatprep.subr.mxu0 %v18708_v13  ;;  %v18717_v39 = vld [vmem:[#allocation40_spill] sm:$0xff]  ;;  %v18718_v33 = vld [vmem:[#allocation55_spill] sm:$0xff]  ;;  %v18719_v13 = vld [vmem:[#allocation45_spill] sm:$0xff] }
 0x3f5   :  { %6482 = vmatprep.subr.mxu1 %v18709_v11  ;;  %6281 = vmatpush1.msra.mxu0 %v18710_v15  ;;  %v18720_v11 = vld [vmem:[#allocation66_spill] sm:$0xff] }
 0x3f6   :  { %6484 = vmatpush1.msra.mxu1 %v18711_v1  ;;  %6284 = vmatprep.subr.mxu0 %v18712_v20  ;;  %v18721_v1 = vld [vmem:[#allocation64_spill] sm:$0xff] }
 0x3f7   :  { %6486 = vmatprep.subr.mxu1 %v18713_v61  ;;  %6287 = vmatpush1.msra.mxu0 %v18714_v17  ;;  %v18722_v61 = vld [vmem:[#allocation30_spill] sm:$0xff] }
 0x3f8   :  { %6488 = vmatpush1.msra.mxu1 %v18715_v45  ;;  %6290 = vmatprep.subr.mxu0 %v18716_v27  ;;  %v18723_v45 = vld [vmem:[#allocation47_spill] sm:$0xff]  ;;  %v18724_v27 = vld [vmem:[#allocation94_spill] sm:$0xff] }
 0x3f9   :  { %6490 = vmatprep.subr.mxu1 %v18717_v39  ;;  %6293 = vmatpush1.msra.mxu0 %v18718_v33  ;;  %v18725_v39 = vld [vmem:[#allocation11_spill] sm:$0xff]  ;;  %v18726_v33 = vld [vmem:[#allocation96_spill] sm:$0xff] }
 0x3fa   :  { %6492 = vmatpush1.msra.mxu1 %v18719_v13  ;;  %6296 = vmatprep.subr.mxu0 %v18720_v11  ;;  %v18727_v13 = vld [vmem:[#allocation56_spill] sm:$0xff] }
 0x3fb   :  { %6494 = vmatprep.subr.mxu1 %v18626_v30  ;;  %6299 = vmatpush1.msra.mxu0 %v18721_v1  ;;  %v18728_v30 = vld [vmem:[#allocation74_spill] sm:$0xff] }
 0x3fc   :  { %6496 = vmatpush1.msra.mxu1 %v18628_v35  ;;  %6302 = vmatprep.subr.mxu0 %v18722_v61  ;;  %v18729_v35 = vld [vmem:[#allocation44_spill] sm:$0xff]  ;;  %v18730_v61 = vld [vmem:[#allocation119_spill] sm:$0xff] }
 0x3fd   :  { %6498 = vmatprep.subr.mxu1 %v18632_v8  ;;  %6305 = vmatpush1.msra.mxu0 %v18723_v45  ;;  %v18731_v8 = vld [vmem:[#allocation34_spill] sm:$0xff] }
 0x3fe   :  { %6500 = vmatpush1.msra.mxu1 %v18724_v27  ;;  %6308 = vmatprep.subr.mxu0 %v18725_v39  ;;  %v18732_v27 = vld [vmem:[#allocation50_spill] sm:$0xff] }
 0x3ff   :  { %6502 = vmatprep.subr.mxu1 %v18726_v33  ;;  %6311 = vmatpush1.msra.mxu0 %v18727_v13  ;;  %v18733_v33 = vld [vmem:[#allocation108_spill] sm:$0xff] }
 0x400   :  { %6504 = vmatpush2.msra.mxu1 %v13821_v7  ;;  %6314 = vmatprep.subr.mxu0 %v18728_v30  ;;  %v18734_v7 = vld [vmem:[#allocation114_spill] sm:$0xff] }
 0x401   :  { %6506 = vmatprep.subr.mxu1 %v13840_v53  ;;  %6317 = vmatpush1.msra.mxu0 %v18729_v35  ;;  %v18735_v53 = vld [vmem:[#allocation77_spill] sm:$0xff] }
 0x402   :  { %6508 = vmatpush2.msra.mxu1 %v18730_v61  ;;  %6320 = vmatprep.subr.mxu0 %v18731_v8  ;;  %v18736_v61 = vld [vmem:[#allocation41_spill] sm:$0xff] }
 0x403   :  { %6510 = vmatprep.subr.mxu1 %v18646_v2  ;;  %6323 = vmatpush1.msra.mxu0 %v18732_v27  ;;  %v18737_v2 = vld [vmem:[#allocation112_spill] sm:$0xff] }
 0x404   :  { %6512 = vmatpush2.msra.mxu1 %v18649_v42  ;;  %6326 = vmatprep.subr.mxu0 %v18733_v33  ;;  %v18738_v42 = vld [vmem:[#allocation61_spill] sm:$0xff] }
 0x405   :  { %6514 = vmatprep.subr.mxu1 %v18651_v41  ;;  %6329 = vmatpush1.msra.mxu0 %v18734_v7  ;;  %v18739_v41 = vld [vmem:[#allocation68_spill] sm:$0xff] }
 0x406   :  { %6516 = vmatpush2.msra.mxu1 %v13966_v40  ;;  %6332 = vmatprep.subr.mxu0 %v18735_v53  ;;  %v18740_v40 = vld [vmem:[#allocation83_spill] sm:$0xff] }
 0x407   :  { %6518 = vmatprep.subr.mxu1 %v18656_v58  ;;  %6335 = vmatpush2.msra.mxu0 %v18736_v61  ;;  %v18741_v58 = vld [vmem:[#allocation2_spill] sm:$0xff] }
 0x408   :  { %6520 = vmatpush2.msra.mxu1 %v18658_v0  ;;  %6338 = vmatprep.subr.mxu0 %v18737_v2  ;;  %v18742_v0 = vld [vmem:[#allocation80_spill] sm:$0xff] }
 0x409   :  { %6522 = vmatprep.subr.mxu1 %v18661_v26  ;;  %6341 = vmatpush2.msra.mxu0 %v18738_v42  ;;  %v18743_v26 = vld [vmem:[#allocation78_spill] sm:$0xff] }
 0x40a   :  { %6524 = vmatpush2.msra.mxu1 %v18664_v59  ;;  %6344 = vmatprep.subr.mxu0 %v18739_v41  ;;  %v18744_v59 = vld [vmem:[#allocation91_spill] sm:$0xff] }
 0x40b   :  { %6526 = vmatprep.subr.mxu1 %v18667_v47  ;;  %6347 = vmatpush2.msra.mxu0 %v18740_v40  ;;  %v18745_v47 = vld [vmem:[#allocation88_spill] sm:$0xff] }
 0x40c   :  { %6528 = vmatpush2.msra.mxu1 %v18668_v55  ;;  %6350 = vmatprep.subr.mxu0 %v18741_v58  ;;  %v18746_v55 = vld [vmem:[#allocation69_spill] sm:$0xff] }
 0x40d   :  { %6530 = vmatprep.subr.mxu1 %v18670_v63  ;;  %6353 = vmatpush2.msra.mxu0 %v18742_v0  ;;  %v18747_v63 = vld [vmem:[#allocation113_spill] sm:$0xff] }
 0x40e   :  { %6532 = vmatpush2.msra.mxu1 %v18672_v60  ;;  %6356 = vmatprep.subr.mxu0 %v18743_v26  ;;  %v18748_v60 = vld [vmem:[#allocation58_spill] sm:$0xff] }
 0x40f   :  { %6534 = vmatprep.subr.mxu1 %v18675_v6  ;;  %6359 = vmatpush2.msra.mxu0 %v18744_v59  ;;  %v18749_v6 = vld [vmem:[#allocation16_spill] sm:$0xff] }
 0x410   :  { %6536 = vmatpush2.msra.mxu1 %v14124_v22  ;;  %6362 = vmatprep.subr.mxu0 %v18745_v47  ;;  %v18750_v22 = vld [vmem:[#allocation6_spill] sm:$0xff] }
 0x411   :  { %6538 = vmatprep.subr.mxu1 %v14149_v19  ;;  %6365 = vmatpush2.msra.mxu0 %v18746_v55  ;;  %v18751_v19 = vld [vmem:[#allocation15_spill] sm:$0xff] }
 0x412   :  { %6540 = vmatpush2.msra.mxu1 %v14176_v52  ;;  %6368 = vmatprep.subr.mxu0 %v18747_v63  ;;  %v18752_v52 = vld [vmem:[#allocation23_spill] sm:$0xff] }
 0x413   :  { %6542 = vmatprep.subr.mxu1 %v14178_v44  ;;  %6371 = vmatpush2.msra.mxu0 %v18748_v60  ;;  %v18753_v44 = vld [vmem:[#allocation25_spill] sm:$0xff] }
 0x414   :  { %6544 = vmatpush2.msra.mxu1 %v14180_v34  ;;  %6374 = vmatprep.subr.mxu0 %v18749_v6  ;;  %v18754_v34 = vld [vmem:[#allocation27_spill] sm:$0xff] }
 0x415   :  { %6546 = vmatprep.subr.mxu1 %v14272_v5  ;;  %6377 = vmatpush2.msra.mxu0 %v18750_v22  ;;  %v18755_v5 = vld [vmem:[#allocation60_spill] sm:$0xff] }
 0x416   :  { %6548 = vmatpush2.msra.mxu1 %v14365_v62  ;;  %6380 = vmatprep.subr.mxu0 %v18751_v19  ;;  %v18756_v62 = vld [vmem:[#allocation53_spill] sm:$0xff] }
 0x417   :  { %6550 = vmatprep.subr.mxu1 %v14367_v51  ;;  %6383 = vmatpush2.msra.mxu0 %v18752_v52 }
 0x418   :  { %6552 = vmatpush2.msra.mxu1 %v14375_v25  ;;  %6386 = vmatprep.subr.mxu0 %v18753_v44  ;;  %v18757_v25 = vld [vmem:[#allocation120_spill] sm:$0xff] }
 0x419   :  { %6554 = vmatprep.subr.mxu1 %v14430_v43  ;;  %6389 = vmatpush2.msra.mxu0 %v18754_v34  ;;  %v18758_v43 = vld [vmem:[#allocation90_spill] sm:$0xff] }
 0x41a   :  { %6556 = vmatpush2.msra.mxu1 %v14437_v4  ;;  %6392 = vmatprep.subr.mxu0 %v18755_v5  ;;  %v18759_v4 = vand.u32 4294901760, %v14586_v49 }
 0x41b   :  { %6558 = vmatprep.subr.mxu1 %v14449_v37  ;;  %6395 = vmatpush2.msra.mxu0 %v18756_v62  ;;  %v18760_v37 = vld [vmem:[#allocation104_spill] sm:$0xff] }
 0x41c   :  { %6560 = vmatpush2.msra.mxu1 %v14472_v36  ;;  %6398 = vmatprep.subr.mxu0 %v14315_v29  ;;  %v18761_v29 = vld [vmem:[#allocation12_spill] sm:$0xff] }
 0x41d   :  { %6562 = vmatprep.subr.mxu1 %v14479_v56  ;;  %6401 = vmatpush2.msra.mxu0 %v18757_v25 }
 0x41e   :  { %6564 = vmatpush2.msra.mxu1 %v14491_v57  ;;  %6404 = vmatprep.subr.mxu0 %v18758_v43 }
 0x41f   :  { %6572 = vmatmul.mubr.f32.vlgmr.msra.gmra.mxu1 %v18759_v4  ;;  %6844 = vmatprep.subr.mxu1 %v18677_v24  ;;  %v18762_v4 = vld [vmem:[#allocation51_spill] sm:$0xff]  ;;  %v18763_v24 = vld [vmem:[#allocation124_spill] sm:$0xff] }
 0x420   :  { %6407 = vmatpush2.msra.mxu0 %v18760_v37  ;;  %6846 = vmatpush1.msra.mxu1 %v18678_v46  ;;  %v18764_v46 = vand.u32 4294901760, %v18763_v24 }
 0x421   :  { %6972 = vmatprep.mubr.f32.mxu1 %v14494_v50  ;;  %6410 = vmatprep.subr.mxu0 %v18761_v29 }
 0x422   :  { %6848 = vmatprep.subr.mxu1 %v18679_v48  ;;  %6413 = vmatpush2.msra.mxu0 %v14489_v32  ;;  %v18765_v48 = vld [vmem:[#allocation57_spill] sm:$0xff] }
 0x423   :  { %6850 = vmatpush1.msra.mxu1 %v18680_v31  ;;  %6416 = vmatprep.subr.mxu0 %v14501_v14  ;;  %v18766_v31 = vand.u32 4294901760, %v18765_v48 }
 0x424   :  { %6852 = vmatprep.subr.mxu1 %v18681_v16  ;;  %6419 = vmatpush2.msra.mxu0 %v14514_v54  ;;  %v18767_v16 = vand.u32 4294901760, %v18689_v9 }
 0x425   :  { %6854 = vmatpush1.msra.mxu1 %v18682_v28  ;;  %6422 = vmatprep.subr.mxu0 %v14524_v10  ;;  %v18768_v28 = vld [vmem:[#allocation84_spill] sm:$0xff] }
 0x426   :  { %6856 = vmatprep.subr.mxu1 %v18683_v12  ;;  %6425 = vmatpush2.msra.mxu0 %v14537_v21  ;;  %v18769_v12 = vand.u32 4294901760, %v18691_v23  ;;  %v18780_v23 = vand.u32 4294901760, %v18697_v38 }
 0x427   :  { %6858 = vmatpush1.msra.mxu1 %v18762_v4  ;;  %6431 = vmatmul.mubr.f32.vlgmr.msra.gmra.mxu0 %v14586_v49  ;;  %v18770_v49 = vld [vmem:[#allocation21_spill] sm:$0xff] }
 0x428   :  { %6581 = vmatprep.subr.mxu0 %v18764_v46  ;;  %6860 = vmatprep.subr.mxu1 %v18686_v3  ;;  %v18771_v4 = vld [vmem:[#allocation33_spill] sm:$0xff] }
 0x429   :  { %6585 = vmatpush1.msra.mxu0 %v18766_v31  ;;  %6835 = vmatprep.mubr.f32.mxu0 %v14494_v50  ;;  %v18772_v24 = vand.u32 4294901760, %v18771_v4  ;;  %v18773_v3 = vld [vmem:[#allocation109_spill] sm:$0xff]  ;;  %v18779_v31 = vld [vmem:[#allocation70_spill] sm:$0xff] }
 0x42a   :  { %6862 = vmatpush1.msra.mxu1 %v18688_v18  ;;  %6589 = vmatprep.subr.mxu0 %v18767_v16  ;;  %v18774_v46 = vld [vmem:[#allocation5_spill] sm:$0xff]  ;;  %v18777_v18 = vld [vmem:[#allocation28_spill] sm:$0xff]  ;;  %v18781_v16 = vld [vmem:[#allocation115_spill] sm:$0xff] }
 0x42b   :  { %6864 = vmatprep.subr.mxu1 %v18768_v28  ;;  %6593 = vmatpush1.msra.mxu0 %v18769_v12  ;;  %v18775_v48 = vand.u32 4294901760, %v18774_v46  ;;  %v18776_v50 = vld [vmem:[#allocation65_spill] sm:$0xff]  ;;  %v18778_v9 = vand.u32 4294901760, %v18777_v18  ;;  %v18782_v28 = vld [vmem:[#allocation76_spill] sm:$0xff]  ;;  %v18785_v4 = vld [vmem:[#allocation106_spill] sm:$0xff] }
 0x42c   :  { %6866 = vmatpush1.msra.mxu1 %v18770_v49  ;;  %6597 = vmatprep.subr.mxu0 %v18772_v24  ;;  %v18783_v12 = vand.u32 4294901760, %v18782_v28  ;;  %v18784_v49 = vld [vmem:[#allocation13_spill] sm:$0xff]  ;;  %v18786_v24 = vand.u32 4294901760, %v18785_v4  ;;  %v18788_v46 = vld [vmem:[#allocation87_spill] sm:$0xff]  ;;  %v18791_v18 = vld [vmem:[#allocation110_spill] sm:$0xff] }
 0x42d   :  { %6868 = vmatprep.subr.mxu1 %v18773_v3  ;;  %6601 = vmatpush1.msra.mxu0 %v18775_v48  ;;  %v18787_v3 = vld [vmem:[#allocation81_spill] sm:$0xff]  ;;  %v18789_v48 = vand.u32 4294901760, %v18788_v46  ;;  %v18792_v38 = vand.u32 4294901760, %v18791_v18  ;;  %v18797_v28 = vld [vmem:[#allocation14_spill] sm:$0xff]  ;;  %v18800_v4 = vld [vmem:[#allocation7_spill] sm:$0xff]  ;;  %v18803_v46 = vand.u32 4294901760, %v18710_v15 }
 0x42e   :  { %6870 = vmatpush1.msra.mxu1 %v18776_v50  ;;  %6605 = vmatprep.subr.mxu0 %v18778_v9  ;;  %v18790_v50 = vld [vmem:[#allocation20_spill] sm:$0xff]  ;;  %v18793_v9 = vld [vmem:[#allocation35_spill] sm:$0xff] }
 0x42f   :  { %6872 = vmatprep.subr.mxu1 %v18779_v31  ;;  %6609 = vmatpush1.msra.mxu0 %v18780_v23  ;;  %v18794_v31 = vld [vmem:[#allocation3_spill] sm:$0xff] }
 0x430   :  { %6874 = vmatpush1.msra.mxu1 %v18781_v16  ;;  %6613 = vmatprep.subr.mxu0 %v18783_v12  ;;  %v18795_v23 = vand.u32 4294901760, %v18794_v31  ;;  %v18796_v16 = vld [vmem:[#allocation36_spill] sm:$0xff]  ;;  %v18798_v12 = vand.u32 4294901760, %v18797_v28  ;;  %v18806_v18 = vld [vmem:[#allocation39_spill] sm:$0xff]  ;;  %v18809_v31 = vld [vmem:[#allocation42_spill] sm:$0xff] }
 0x431   :  { %6876 = vmatprep.subr.mxu1 %v18784_v49  ;;  %6617 = vmatpush1.msra.mxu0 %v18786_v24  ;;  %v18799_v49 = vld [vmem:[#allocation26_spill] sm:$0xff]  ;;  %v18801_v24 = vand.u32 4294901760, %v18800_v4  ;;  %v18812_v28 = vld [vmem:[#allocation55_spill] sm:$0xff]  ;;  %v18818_v4 = vld [vmem:[#allocation92_spill] sm:$0xff] }
 0x432   :  { %6878 = vmatpush1.msra.mxu1 %v18787_v3  ;;  %6621 = vmatprep.subr.mxu0 %v18789_v48  ;;  %v18802_v3 = vld [vmem:[#allocation43_spill] sm:$0xff]  ;;  %v18813_v15 = vand.u32 4294901760, %v18812_v28 }
 0x433   :  { %6880 = vmatprep.subr.mxu1 %v18790_v50  ;;  %6625 = vmatpush1.msra.mxu0 %v18792_v38  ;;  %v18804_v48 = vld [vmem:[#allocation71_spill] sm:$0xff]  ;;  %v18805_v50 = vand.u32 4294901760, %v18712_v20  ;;  %v18807_v38 = vand.u32 4294901760, %v18714_v17  ;;  %v18815_v20 = vand.u32 4294901760, %v18720_v11  ;;  %v18817_v17 = vand.u32 4294901760, %v18721_v1 }
 0x434   :  { %6882 = vmatpush1.msra.mxu1 %v18793_v9  ;;  %6629 = vmatprep.subr.mxu0 %v18795_v23  ;;  %v18808_v9 = vld [vmem:[#allocation32_spill] sm:$0xff]  ;;  %v18810_v23 = vand.u32 4294901760, %v18809_v31  ;;  %v18824_v11 = vand.u32 4294901760, %v18725_v39  ;;  %v18826_v1 = vand.u32 4294901760, %v18727_v13  ;;  %v18829_v31 = vld [vmem:[#allocation67_spill] sm:$0xff]  ;;  %v18832_v39 = vand.u32 4294901760, %v18731_v8 }
 0x435   :  { %6884 = vmatprep.subr.mxu1 %v18796_v16  ;;  %6633 = vmatpush1.msra.mxu0 %v18798_v12  ;;  %v18811_v16 = vld [vmem:[#allocation40_spill] sm:$0xff]  ;;  %v18814_v12 = vld [vmem:[#allocation45_spill] sm:$0xff]  ;;  %v18834_v13 = vand.u32 4294901760, %v18732_v27  ;;  %v18835_v28 = vld [vmem:[#allocation99_spill] sm:$0xff] }
 0x436   :  { %6886 = vmatpush1.msra.mxu1 %v18799_v49  ;;  %6637 = vmatprep.subr.mxu0 %v18801_v24  ;;  %v18816_v49 = vld [vmem:[#allocation17_spill] sm:$0xff]  ;;  %v18819_v24 = vld [vmem:[#allocation30_spill] sm:$0xff]  ;;  %v302_v27 = vld [vmem:[%s15590_s1 + $0x2f0] sm:$0xff] }
 0x437   :  { %6888 = vmatprep.subr.mxu1 %v18802_v3  ;;  %6641 = vmatpush1.msra.mxu0 %v18803_v46  ;;  %v18820_v3 = vand.u32 4294901760, %v18819_v24  ;;  %v18821_v46 = vld [vmem:[#allocation46_spill] sm:$0xff]  ;;  %v303_v8 = vld [vmem:[%s15590_s1 + $0x2f8] sm:$0xff] }
 0x438   :  { %6890 = vmatpush1.msra.mxu1 %v18804_v48  ;;  %6645 = vmatprep.subr.mxu0 %v18805_v50  ;;  %v18822_v48 = vand.u32 4294901760, %v18723_v45  ;;  %v18823_v50 = vld [vmem:[#allocation94_spill] sm:$0xff]  ;;  %v18830_v45 = vand.u32 4294901760, %v18729_v35  ;;  %v18838_v35 = vand.u32 4294901760, %v18734_v7  ;;  %v301_v7 = vld [vmem:[%s15590_s1 + $0x2e8] sm:$0xff] }
 0x439   :  { %6892 = vmatprep.subr.mxu1 %v18806_v18  ;;  %6649 = vmatpush1.msra.mxu0 %v18807_v38  ;;  %v18825_v18 = vld [vmem:[#allocation96_spill] sm:$0xff]  ;;  %v18827_v38 = vld [vmem:[#allocation62_spill] sm:$0xff] }
 0x43a   :  { %6894 = vmatpush1.msra.mxu1 %v18808_v9  ;;  %6653 = vmatprep.subr.mxu0 %v18810_v23  ;;  %v18828_v9 = vand.u32 4294901760, %v18728_v30  ;;  %v18831_v23 = vld [vmem:[#allocation119_spill] sm:$0xff]  ;;  %v18836_v30 = vand.u32 4294901760, %v18733_v33  ;;  %v18841_v33 = vld [vmem:[#allocation97_spill] sm:$0xff]  ;;  %v300_v24 = vld [vmem:[%s15590_s1 + $0x2e0] sm:$0xff] }
 0x43b   :  { %6896 = vmatprep.subr.mxu1 %v18811_v16  ;;  %6657 = vmatpush1.msra.mxu0 %v18813_v15  ;;  %v18833_v16 = vld [vmem:[#allocation38_spill] sm:$0xff]  ;;  %v18837_v15 = vld [vmem:[#allocation117_spill] sm:$0xff] }
 0x43c   :  { %6898 = vmatpush1.msra.mxu1 %v18814_v12  ;;  %6661 = vmatprep.subr.mxu0 %v18815_v20  ;;  %v18839_v12 = vld [vmem:[#allocation75_spill] sm:$0xff]  ;;  %v18840_v20 = vand.u32 4294901760, %v18735_v53  ;;  %v14861_v53 = vand.u32 4294901760, %v303_v8 }
 0x43d   :  { %6900 = vmatprep.subr.mxu1 %v18816_v49  ;;  %6665 = vmatpush1.msra.mxu0 %v18817_v17  ;;  %v18842_v49 = vand.u32 4294901760, %v18736_v61  ;;  %v18843_v17 = vld [vmem:[#allocation54_spill] sm:$0xff]  ;;  %v18846_v61 = vand.u32 4294901760, %v18738_v42  ;;  %v18850_v42 = vand.u32 4294901760, %v18740_v40 }
 0x43e   :  { %6902 = vmatpush1.msra.mxu1 %v18818_v4  ;;  %6669 = vmatprep.subr.mxu0 %v18820_v3  ;;  %v18844_v4 = vand.u32 4294901760, %v18737_v2  ;;  %v18845_v3 = vld [vmem:[#allocation89_spill] sm:$0xff]  ;;  %v18848_v2 = vand.u32 4294901760, %v18739_v41  ;;  %v18852_v41 = vand.u32 4294901760, %v18741_v58  ;;  %v296_v40 = vld [vmem:[%s15590_s1 + $0x2c0] sm:$0xff] }
 0x43f   :  { %6904 = vmatprep.subr.mxu1 %v18821_v46  ;;  %6673 = vmatpush1.msra.mxu0 %v18822_v48  ;;  %v14869_v46 = vand.u32 4294901760, %v302_v27  ;;  %v299_v48 = vld [vmem:[%s15590_s1 + $0x2d8] sm:$0xff] }
 0x440   :  { %6906 = vmatpush1.msra.mxu1 %v18823_v50  ;;  %6677 = vmatprep.subr.mxu0 %v18824_v11  ;;  %v18847_v50 = vld [vmem:[#allocation37_spill] sm:$0xff]  ;;  %v14877_v11 = vand.u32 4294901760, %v301_v7 }
 0x441   :  { %6908 = vmatprep.subr.mxu1 %v18825_v18  ;;  %6681 = vmatpush1.msra.mxu0 %v18826_v1  ;;  %v298_v18 = vld [vmem:[%s15590_s1 + $0x2d0] sm:$0xff]  ;;  %v18849_v1 = vld [vmem:[#allocation98_spill] sm:$0xff]  ;;  %v295_v58 = vld [vmem:[%s15590_s1 + $0x2b8] sm:$0xff] }
 0x442   :  { %6910 = vmatpush2.msra.mxu1 %v18827_v38  ;;  %6685 = vmatprep.subr.mxu0 %v18828_v9  ;;  %v14885_v38 = vand.u32 4294901760, %v300_v24  ;;  %v297_v9 = vld [vmem:[%s15590_s1 + $0x2c8] sm:$0xff] }
 0x443   :  { %6912 = vmatprep.subr.mxu1 %v18829_v31  ;;  %6689 = vmatpush1.msra.mxu0 %v18830_v45  ;;  %v18851_v31 = vld [vmem:[#allocation100_spill] sm:$0xff]  ;;  %v14894_v45 = vsub.f32 %v303_v8, %v14861_v53  ;;  %v14918_v8 = vand.u32 4294901760, %v297_v9 }
 0x444   :  { %6914 = vmatpush2.msra.mxu1 %v18831_v23  ;;  %6693 = vmatprep.subr.mxu0 %v18832_v39  ;;  %v14896_v23 = vand.u32 4294901760, %v299_v48  ;;  %v18853_v39 = vld [vmem:[#allocation101_spill] sm:$0xff] }
 0x445   :  { %6916 = vmatprep.subr.mxu1 %v18833_v16  ;;  %6697 = vmatpush1.msra.mxu0 %v18834_v13  ;;  %v18854_v16 = vand.u32 4294901760, %v18742_v0  ;;  %v14905_v13 = vsub.f32 %v302_v27, %v14869_v46  ;;  %v294_v0 = vld [vmem:[%s15590_s1 + $0x2b0] sm:$0xff]  ;;  %v14927_v27 = vsub.f32 %v300_v24, %v14885_v38  ;;  %v292_v24 = vld [vmem:[%s15590_s1 + $0x2a0] sm:$0xff] }
 0x446   :  { %6918 = vmatpush2.msra.mxu1 %v18835_v28  ;;  %6701 = vmatprep.subr.mxu0 %v18836_v30  ;;  %v14907_v28 = vand.u32 4294901760, %v298_v18  ;;  %v18855_v30 = vld [vmem:[#allocation103_spill] sm:$0xff] }
 0x447   :  { %6920 = vmatprep.subr.mxu1 %v18837_v15  ;;  %6705 = vmatpush1.msra.mxu0 %v18838_v35  ;;  %v18856_v15 = vand.u32 4294901760, %v18743_v26  ;;  %v14916_v35 = vsub.f32 %v301_v7, %v14877_v11  ;;  %18859 = vst [vmem:[#allocation86_spill] sm:$0xff] %v14927_v27  ;;  %v293_v26 = vld [vmem:[%s15590_s1 + $0x2a8] sm:$0xff]  ;;  %v18861_v7 = vand.u32 4294901760, %v18745_v47 }
 0x448   :  { %6922 = vmatpush2.msra.mxu1 %v18839_v12  ;;  %6709 = vmatprep.subr.mxu0 %v18840_v20  ;;  %v18857_v12 = vld [vmem:[#allocation95_spill] sm:$0xff]  ;;  %v18858_v20 = vand.u32 4294901760, %v18744_v59  ;;  %v14941_v59 = vand.u32 4294901760, %v295_v58  ;;  %v14951_v47 = vsub.f32 %v298_v18, %v14907_v28  ;;  %v290_v18 = vld [vmem:[%s15590_s1 + $0x290] sm:$0xff] }
 0x449   :  { %6924 = vmatprep.subr.mxu1 %v18841_v33  ;;  %6713 = vmatpush2.msra.mxu0 %v18842_v49  ;;  %v14929_v33 = vand.u32 4294901760, %v296_v40  ;;  %v18860_v49 = vld [vmem:[#allocation10_spill] sm:$0xff] }
 0x44a   :  { %6926 = vmatpush2.msra.mxu1 %v18843_v17  ;;  %6717 = vmatprep.subr.mxu0 %v18844_v4  ;;  %v16679_v17 = vand.u32 4294901760, %v14894_v45  ;;  %v14939_v4 = vsub.f32 %v299_v48, %v14896_v23  ;;  %18865 = vst [vmem:[#allocation63_spill] sm:$0xff] %v14951_v47  ;;  %v291_v48 = vld [vmem:[%s15590_s1 + $0x298] sm:$0xff] }
 0x44b   :  { %6928 = vmatprep.subr.mxu1 %v18845_v3  ;;  %6721 = vmatpush2.msra.mxu0 %v18846_v61  ;;  %v18863_v3 = vld [vmem:[#allocation82_spill] sm:$0xff]  ;;  %v18864_v61 = vand.u32 4294901760, %v18746_v55  ;;  %v14963_v55 = vsub.f32 %v297_v9, %v14918_v8  ;;  %v289_v9 = vld [vmem:[%s15590_s1 + $0x288] sm:$0xff] }
 0x44c   :  { %6930 = vmatpush2.msra.mxu1 %v18847_v50  ;;  %6725 = vmatprep.subr.mxu0 %v18848_v2  ;;  %18862 = vst [vmem:[#allocation85_spill] sm:$0xff] %v14939_v4  ;;  %v16677_v50 = vand.u32 4294901760, %v14905_v13  ;;  %v14953_v2 = vand.u32 4294901760, %v294_v0 }
 0x44d   :  { %6932 = vmatprep.subr.mxu1 %v18849_v1  ;;  %6729 = vmatpush2.msra.mxu0 %v18850_v42  ;;  %v18866_v1 = vld [vmem:[#allocation9_spill] sm:$0xff]  ;;  %v18867_v42 = vand.u32 4294901760, %v18747_v63  ;;  %18868 = vst [vmem:[#allocation121_spill] sm:$0xff] %v14963_v55  ;;  %v14975_v63 = vsub.f32 %v296_v40, %v14929_v33  ;;  %v14992_v40 = vsub.f32 %v295_v58, %v14941_v59 }
 0x44e   :  { %6934 = vmatpush2.msra.mxu1 %v18851_v31  ;;  %6733 = vmatprep.subr.mxu0 %v18852_v41  ;;  %v16676_v31 = vand.u32 4294901760, %v14916_v35  ;;  %v14965_v41 = vand.u32 4294901760, %v293_v26  ;;  %v15009_v58 = vsub.f32 %v294_v0, %v14953_v2  ;;  %v18881_v0 = vand.u32 4294901760, %v18752_v52 }
 0x44f   :  { %6936 = vmatprep.subr.mxu1 %v18853_v39  ;;  %6737 = vmatpush2.msra.mxu0 %v18854_v16  ;;  %v18869_v39 = vld [vmem:[#allocation24_spill] sm:$0xff]  ;;  %v18870_v16 = vand.u32 4294901760, %v18748_v60  ;;  %18871 = vst [vmem:[#allocation122_spill] sm:$0xff] %v14975_v63  ;;  %v14988_v60 = vsub.f32 %v14894_v45, %v16679_v17  ;;  %18874 = vst [vmem:[#allocation123_spill] sm:$0xff] %v14992_v40  ;;  %v18887_v17 = vand.u32 4294901760, %v18754_v34  ;;  %v18890_v34 = vand.u32 4294901760, %v18755_v5 }
 0x450   :  { %6938 = vmatpush2.msra.mxu1 %v18855_v30  ;;  %6741 = vmatprep.subr.mxu0 %v18856_v15  ;;  %v16678_v30 = vand.u32 4294901760, %v14927_v27  ;;  %v14977_v15 = vand.u32 4294901760, %v292_v24  ;;  %18877 = vst [vmem:[#allocation18_spill] sm:$0xff] %v15009_v58  ;;  %v18893_v5 = vand.u32 4294901760, %v18756_v62  ;;  %v18895_v62 = vld [vmem:[#allocation102_spill] sm:$0xff] }
 0x451   :  { %6940 = vmatprep.subr.mxu1 %v18857_v12  ;;  %6745 = vmatpush2.msra.mxu0 %v18858_v20  ;;  %v18872_v12 = vld [vmem:[#allocation22_spill] sm:$0xff]  ;;  %v18873_v20 = vand.u32 4294901760, %v18749_v6  ;;  %v18876_v6 = vand.u32 4294901760, %v18750_v22  ;;  %v15019_v22 = vsub.f32 %v14916_v35, %v16676_v31  ;;  %v7092_v52 = vand.u32 4294901760, %v14988_v60 }
 0x452   :  { %6942 = vmatpush2.msra.mxu1 %v18860_v49  ;;  %6749 = vmatprep.subr.mxu0 %v18861_v7  ;;  %v16681_v49 = vand.u32 4294901760, %v14939_v4  ;;  %v14994_v7 = vand.u32 4294901760, %v291_v48  ;;  %v16685_v60 = vand.u32 4294901760, %v15009_v58 }
 0x453   :  { %6944 = vmatprep.subr.mxu1 %v18863_v3  ;;  %6753 = vmatpush2.msra.mxu0 %v18864_v61  ;;  %v288_v3 = vld [vmem:[%s15590_s1 + $0x280] sm:$0xff]  ;;  %v18875_v61 = vld [vmem:[#allocation72_spill] sm:$0xff] }
 0x454   :  { %6946 = vmatpush2.msra.mxu1 %v18866_v1  ;;  %6757 = vmatprep.subr.mxu0 %v18867_v42  ;;  %v15005_v1 = vsub.f32 %v14905_v13, %v16677_v50  ;;  %v16680_v42 = vand.u32 4294901760, %v14951_v47  ;;  %v15039_v31 = vand.u32 4294901760, %v288_v3  ;;  %v18884_v50 = vand.u32 4294901760, %v18753_v44 }
 0x455   :  { %6948 = vmatprep.subr.mxu1 %v18869_v39  ;;  %6761 = vmatpush2.msra.mxu0 %v18870_v16  ;;  %v15011_v39 = vand.u32 4294901760, %v290_v18  ;;  %v18878_v16 = vld [vmem:[#allocation107_spill] sm:$0xff] }
 0x456   :  { %6950 = vmatpush2.msra.mxu1 %v18872_v12  ;;  %6765 = vmatprep.subr.mxu0 %v18873_v20  ;;  %v18879_v12 = vand.u32 4294901760, %v18751_v19  ;;  %v16682_v20 = vand.u32 4294901760, %v14963_v55  ;;  %v15033_v19 = vsub.f32 %v14927_v27, %v16678_v30  ;;  %v15052_v30 = vsub.f32 %v291_v48, %v14994_v7  ;;  %v287_v48 = vld [vmem:[%s15590_s1 + $0x278] sm:$0xff] }
 0x457   :  { %6952 = vmatprep.subr.mxu1 %v18875_v61  ;;  %6769 = vmatpush2.msra.mxu0 %v18876_v6  ;;  %v15023_v61 = vsub.f32 %v293_v26, %v14965_v41  ;;  %v15025_v6 = vand.u32 4294901760, %v289_v9  ;;  %v18883_v26 = vld [vmem:[#allocation79_spill] sm:$0xff]  ;;  %v7098_v44 = vand.u32 4294901760, %v15005_v1 }
 0x458   :  { %6954 = vmatpush2.msra.mxu1 %v18878_v16  ;;  %6773 = vmatprep.subr.mxu0 %v18879_v12  ;;  %v16683_v16 = vand.u32 4294901760, %v14975_v63  ;;  %v15037_v12 = vsub.f32 %v292_v24, %v14977_v15  ;;  %18885 = vst [vmem:[#allocation52_spill] sm:$0xff] %v15052_v30  ;;  %v18886_v24 = vld [vmem:[#allocation105_spill] sm:$0xff]  ;;  %v15077_v1 = vsub.f32 %v14963_v55, %v16682_v20  ;;  %v284_v20 = vld [vmem:[%s15590_s1 + $0x260] sm:$0xff] }
 0x459   :  { %18880 = vst [vmem:[#allocation31_spill] sm:$0xff] %v15023_v61  ;;  %6956 = vmatprep.subr.mxu1 %v14367_v51  ;;  %6777 = vmatpush2.msra.mxu0 %v18881_v0  ;;  %v15048_v51 = vsub.f32 %v14939_v4, %v16681_v49  ;;  %v16684_v0 = vand.u32 4294901760, %v14992_v40  ;;  %v286_v49 = vld [vmem:[%s15590_s1 + $0x270] sm:$0xff] }
 0x45a   :  { %18882 = vst [vmem:[#allocation73_spill] sm:$0xff] %v15037_v12  ;;  %6958 = vmatpush2.msra.mxu1 %v18883_v26  ;;  %6781 = vmatprep.subr.mxu0 %v18884_v50  ;;  %v15061_v50 = vsub.f32 %v14951_v47, %v16680_v42  ;;  %v15065_v26 = vsub.f32 %v290_v18, %v15011_v39  ;;  %v285_v42 = vld [vmem:[%s15590_s1 + $0x268] sm:$0xff] }
 0x45b   :  { %6960 = vmatprep.subr.mxu1 %v18886_v24  ;;  %6785 = vmatpush2.msra.mxu0 %v18887_v17  ;;  %v18889_v24 = vld [vmem:[#allocation111_spill] sm:$0xff]  ;;  %v7104_v17 = vand.u32 4294901760, %v15019_v22  ;;  %v15081_v18 = vsub.f32 %v289_v9, %v15025_v6  ;;  %v7110_v22 = vand.u32 4294901760, %v15033_v19  ;;  %v15097_v9 = vsub.f32 %v288_v3, %v15039_v31 }
 0x45c   :  { %18888 = vst [vmem:[#allocation49_spill] sm:$0xff] %v15065_v26  ;;  %6962 = vmatpush2.msra.mxu1 %v18889_v24  ;;  %6789 = vmatprep.subr.mxu0 %v18890_v34  ;;  %v18892_v24 = vld [vmem:[#allocation116_spill] sm:$0xff]  ;;  %v15093_v34 = vsub.f32 %v14975_v63, %v16683_v16  ;;  %v7116_v19 = vand.u32 4294901760, %v15048_v51  ;;  %v15112_v3 = vand.u32 4294901760, %v287_v48  ;;  %v7122_v51 = vand.u32 4294901760, %v15061_v50  ;;  %v283_v16 = vld [vmem:[%s15590_s1 + $0x258] sm:$0xff] }
 0x45d   :  { %18891 = vst [vmem:[#allocation4_spill] sm:$0xff] %v15081_v18  ;;  %6964 = vmatprep.subr.mxu1 %v18892_v24  ;;  %6793 = vmatpush2.msra.mxu0 %v18893_v5  ;;  %18894 = vst [vmem:[#allocation59_spill] sm:$0xff] %v15097_v9  ;;  %v18896_v24 = vand.u32 4294901760, %v18895_v62  ;;  %v15109_v5 = vsub.f32 %v14992_v40, %v16684_v0  ;;  %v15124_v62 = vsub.f32 %v15009_v58, %v16685_v60  ;;  %v282_v58 = vld [vmem:[%s15590_s1 + $0x250] sm:$0xff]  ;;  %v281_v60 = vld [vmem:[%s15590_s1 + $0x248] sm:$0xff] }
 0x45e   :  { %6966 = vmatpush2.msra.mxu1 %v14472_v36  ;;  %v18897_v36 = vand.u32 4294901760, %v18757_v25  ;;  %v15127_v0 = vand.u32 4294901760, %v286_v49  ;;  %v18898_v25 = vand.u32 4294901760, %v18758_v43  ;;  %v18899_v50 = vand.u32 4294901760, %v15023_v61  ;;  %v18900_v40 = vld [vmem:[#allocation8_spill] sm:$0xff] }
 0x45f   :  { %6797 = vmatprep.subr.mxu0 %v18896_v24  ;;  %6968 = vmatprep.subr.mxu1 %v14479_v56  ;;  %v7128_v56 = vand.u32 4294901760, %v15077_v1  ;;  %v15142_v24 = vand.u32 4294901760, %v285_v42  ;;  %v7134_v43 = vand.u32 4294901760, %v15093_v34  ;;  %v18903_v34 = vand.u32 4294901760, %v15052_v30 }
 0x460   :  { %6801 = vmatpush2.msra.mxu0 %v18897_v36  ;;  %6970 = vmatpush2.msra.mxu1 %v14491_v57  ;;  %v15139_v36 = vsub.f32 %v15023_v61, %v18899_v50  ;;  %v18901_v57 = vand.u32 4294901760, %v15037_v12  ;;  %v15155_v50 = vand.u32 4294901760, %v284_v20  ;;  %v18902_v61 = vand.u32 4294901760, %v18760_v37 }
 0x461   :  { %6805 = vmatprep.subr.mxu0 %v18898_v25  ;;  %6974 = vmatmul.mubr.f32.vlgmr.msra.gmra.mxu1 %v18900_v40  ;;  %v15166_v63 = vsub.f32 %v15052_v30, %v18903_v34  ;;  %v15171_v25 = vand.u32 4294901760, %v283_v16  ;;  %v18906_v37 = vand.u32 4294901760, %v18761_v29  ;;  %v15187_v34 = vand.u32 4294901760, %v282_v58  ;;  %v279_v30 = vld [vmem:[%s15590_s1 + $0x238] sm:$0xff] }
 0x462   :  { %7093 = vmatprep.subr.mxu1 %v7092_v52  ;;  %v15152_v1 = vsub.f32 %v15037_v12, %v18901_v57  ;;  %6809 = vmatpush2.msra.mxu0 %v18902_v61  ;;  %v7140_v52 = vand.u32 4294901760, %v15109_v5  ;;  %v15169_v57 = vsub.f32 %v287_v48, %v15112_v3  ;;  %v280_v12 = vld [vmem:[%s15590_s1 + $0x240] sm:$0xff]  ;;  %v7146_v61 = vand.u32 4294901760, %v15124_v62 }
 0x463   :  { %7099 = vmatpush1.msra.mxu1 %v7098_v44  ;;  %18905 = vst [vmem:[#allocation19_spill] sm:$0xff] %v15171_v25  ;;  %6813 = vmatprep.subr.mxu0 %v18906_v37  ;;  %v18907_v44 = vand.u32 4294901760, %v15065_v26  ;;  %v15185_v48 = vsub.f32 %v286_v49, %v15127_v0  ;;  %v18909_v29 = vand.u32 4294901760, %v14489_v32  ;;  %v18910_v62 = vand.u32 4294901760, %v15081_v18 }
 0x464   :  { %18904 = vst [vmem:[#allocation93_spill] sm:$0xff] %v15169_v57  ;;  %7105 = vmatprep.subr.mxu1 %v7104_v17  ;;  %v7152_v17 = vand.u32 4294901760, %v15139_v36  ;;  %v15201_v49 = vsub.f32 %v285_v42, %v15142_v24  ;;  %v18912_v32 = vand.u32 4294901760, %v14501_v14  ;;  %v18913_v36 = vand.u32 4294901760, %v15097_v9 }
 0x465   :  { %v15182_v5 = vsub.f32 %v15065_v26, %v18907_v44  ;;  %18908 = vst [vmem:[#allocation29_spill] sm:$0xff] %v15185_v48  ;;  %6817 = vmatpush2.msra.mxu0 %v18909_v29  ;;  %7111 = vmatpush1.msra.mxu1 %v7110_v22  ;;  %v15198_v37 = vsub.f32 %v15081_v18, %v18910_v62  ;;  %v15203_v44 = vand.u32 4294901760, %v281_v60  ;;  %v278_v26 = vld [vmem:[%s15590_s1 + $0x230] sm:$0xff]  ;;  %v7158_v22 = vand.u32 4294901760, %v15152_v1  ;;  %v277_v18 = vld [vmem:[%s15590_s1 + $0x228] sm:$0xff] }
 0x466   :  { %18911 = vst [vmem:[#allocation48_spill] sm:$0xff] %v15201_v49  ;;  %6821 = vmatprep.subr.mxu0 %v18912_v32  ;;  %7117 = vmatprep.subr.mxu1 %v7116_v19  ;;  %v15214_v29 = vsub.f32 %v15097_v9, %v18913_v36  ;;  %v15217_v42 = vsub.f32 %v284_v20, %v15155_v50  ;;  %v15219_v62 = vand.u32 4294901760, %v280_v12  ;;  %v18914_v14 = vand.u32 4294901760, %v14514_v54  ;;  %v276_v20 = vld [vmem:[%s15590_s1 + $0x220] sm:$0xff] }
 0x467   :  { %7123 = vmatpush1.msra.mxu1 %v7122_v51  ;;  %v7164_v19 = vand.u32 4294901760, %v15166_v63  ;;  %v15229_v32 = vsub.f32 %v283_v16, %v15171_v25  ;;  %v15231_v36 = vand.u32 4294901760, %v279_v30  ;;  %v18916_v9 = vand.u32 4294901760, %v14524_v10  ;;  %v275_v16 = vld [vmem:[%s15590_s1 + $0x218] sm:$0xff]  ;;  %v272_v51 = vld [vmem:[%s15590_s1 + $0x200] sm:$0xff] }
 0x468   :  { %6825 = vmatpush2.msra.mxu0 %v18914_v14  ;;  %7129 = vmatprep.subr.mxu1 %v7128_v56  ;;  %v7170_v54 = vand.u32 4294901760, %v15182_v5  ;;  %v15241_v63 = vsub.f32 %v282_v58, %v15187_v34  ;;  %v15243_v14 = vand.u32 4294901760, %v278_v26  ;;  %v18917_v1 = vand.u32 4294901760, %v14537_v21  ;;  %v274_v58 = vld [vmem:[%s15590_s1 + $0x210] sm:$0xff] }
 0x469   :  { %18915 = vst [vmem:[#allocation66_spill] sm:$0xff] %v15229_v32  ;;  %6829 = vmatprep.subr.mxu0 %v18916_v9  ;;  %7135 = vmatpush1.msra.mxu1 %v7134_v43  ;;  %v7176_v10 = vand.u32 4294901760, %v15198_v37  ;;  %v15253_v56 = vsub.f32 %v281_v60, %v15203_v44  ;;  %v15255_v5 = vand.u32 4294901760, %v277_v18  ;;  %v7182_v21 = vand.u32 4294901760, %v15214_v29  ;;  %v273_v60 = vld [vmem:[%s15590_s1 + $0x208] sm:$0xff] }
 0x46a   :  { %6833 = vmatpush2.msra.mxu0 %v18917_v1  ;;  %v15265_v37 = vsub.f32 %v280_v12, %v15219_v62  ;;  %v15267_v1 = vand.u32 4294901760, %v276_v20  ;;  %7141 = vmatprep.subr.mxu1 %v7140_v52  ;;  %v15278_v43 = vsub.f32 %v279_v30, %v15231_v36  ;;  %v15280_v12 = vand.u32 4294901760, %v275_v16 }
 0x46b   :  { %6837 = vmatmul.mubr.f32.vlgmr.msra.gmra.mxu0 %v18900_v40  ;;  %6981 = vmatprep.subr.mxu0 %v14861_v53  ;;  %v18919_v40 = vand.u32 4294901760, %v15169_v57  ;;  %v18920_v52 = vand.u32 4294901760, %v15185_v48  ;;  %v15291_v29 = vsub.f32 %v278_v26, %v15243_v14  ;;  %v15293_v30 = vand.u32 4294901760, %v274_v58 }
 0x46c   :  { %18918 = vst [vmem:[#allocation64_spill] sm:$0xff] %v15265_v37  ;;  %6983 = vmatpush1.msra.mxu0 %v14869_v46  ;;  %7147 = vmatpush1.msra.mxu1 %v7146_v61  ;;  %v15301_v4 = vsub.f32 %v277_v18, %v15255_v5  ;;  %v18922_v26 = vand.u32 4294901760, %v15217_v42  ;;  %v18924_v47 = vand.u32 4294901760, %v15229_v32  ;;  %v15321_v27 = vsub.f32 %v275_v16, %v15280_v12 }
 0x46d   :  { %v7187_v9 = vsub.f32 %v15169_v57, %v18919_v40  ;;  %6985 = vmatprep.subr.mxu0 %v14877_v11  ;;  %v7193_v55 = vsub.f32 %v15185_v48, %v18920_v52  ;;  %7153 = vmatprep.subr.mxu1 %v7152_v17  ;;  %v18921_v57 = vand.u32 4294901760, %v15201_v49  ;;  %v15303_v52 = vand.u32 4294901760, %v273_v60 }
 0x46e   :  { %6987 = vmatpush1.msra.mxu0 %v14885_v38  ;;  %7159 = vmatpush1.msra.mxu1 %v7158_v22  ;;  %v7205_v17 = vsub.f32 %v15217_v42, %v18922_v26  ;;  %v15311_v48 = vsub.f32 %v276_v20, %v15267_v1  ;;  %v7211_v22 = vsub.f32 %v15229_v32, %v18924_v47  ;;  %v18925_v26 = vand.u32 4294901760, %v15241_v63 }
 0x46f   :  { %v7199_v61 = vsub.f32 %v15201_v49, %v18921_v57  ;;  %6989 = vmatprep.subr.mxu0 %v14896_v23  ;;  %v15313_v57 = vand.u32 4294901760, %v272_v51  ;;  %7165 = vmatprep.subr.mxu1 %v7164_v19  ;;  %v7188_v18 = vand.u32 4294901760, %v7187_v9  ;;  %v7194_v20 = vand.u32 4294901760, %v7193_v55 }
 0x470   :  { %18923 = vst [vmem:[#allocation47_spill] sm:$0xff] %v15311_v48  ;;  %6991 = vmatpush1.msra.mxu0 %v14907_v28  ;;  %7171 = vmatpush1.msra.mxu1 %v7170_v54  ;;  %v7217_v19 = vsub.f32 %v15241_v63, %v18925_v26  ;;  %v15329_v9 = vsub.f32 %v274_v58, %v15293_v30  ;;  %v18926_v16 = vand.u32 4294901760, %v15253_v56  ;;  %v7206_v26 = vand.u32 4294901760, %v7205_v17 }
 0x471   :  { %6993 = vmatprep.subr.mxu0 %v14918_v8  ;;  %7177 = vmatprep.subr.mxu1 %v7176_v10  ;;  %v7200_v47 = vand.u32 4294901760, %v7199_v61  ;;  %v15337_v55 = vsub.f32 %v273_v60, %v15303_v52  ;;  %v18927_v58 = vand.u32 4294901760, %v15265_v37  ;;  %v15345_v61 = vsub.f32 %v272_v51, %v15313_v57  ;;  %v18935_v51 = vld [vmem:[#allocation118_spill] sm:$0xff] }
 0x472   :  { %6995 = vmatpush1.msra.mxu0 %v14929_v33  ;;  %v7223_v54 = vsub.f32 %v15253_v56, %v18926_v16  ;;  %7183 = vmatpush1.msra.mxu1 %v7182_v21  ;;  %v7212_v16 = vand.u32 4294901760, %v7211_v22  ;;  %v18928_v60 = vand.u32 4294901760, %v15278_v43  ;;  %v7218_v17 = vand.u32 4294901760, %v7217_v19 }
 0x473   :  { %6997 = vmatprep.subr.mxu0 %v14941_v59  ;;  %v7229_v10 = vsub.f32 %v15265_v37, %v18927_v58  ;;  %7189 = vmatprep.subr.mxu1 %v7188_v18  ;;  %v18929_v58 = vand.u32 4294901760, %v15291_v29  ;;  %v18930_v22 = vand.u32 4294901760, %v15301_v4  ;;  %v18931_v19 = vand.u32 4294901760, %v15311_v48 }
 0x474   :  { %6999 = vmatpush1.msra.mxu0 %v14953_v2  ;;  %v7235_v21 = vsub.f32 %v15278_v43, %v18928_v60  ;;  %7195 = vmatpush1.msra.mxu1 %v7194_v20  ;;  %v7224_v18 = vand.u32 4294901760, %v7223_v54  ;;  %v18932_v54 = vand.u32 4294901760, %v15321_v27 }
 0x475   :  { %7001 = vmatprep.subr.mxu0 %v14965_v41  ;;  %v7241_v40 = vsub.f32 %v15291_v29, %v18929_v58  ;;  %7201 = vmatprep.subr.mxu1 %v7200_v47  ;;  %v7247_v60 = vsub.f32 %v15301_v4, %v18930_v22  ;;  %v7230_v20 = vand.u32 4294901760, %v7229_v10  ;;  %v7253_v58 = vsub.f32 %v15311_v48, %v18931_v19 }
 0x476   :  { %7003 = vmatpush1.msra.mxu0 %v14977_v15  ;;  %7207 = vmatpush1.msra.mxu1 %v7206_v26  ;;  %v7236_v47 = vand.u32 4294901760, %v7235_v21  ;;  %v7259_v22 = vsub.f32 %v15321_v27, %v18932_v54  ;;  %v18933_v10 = vand.u32 4294901760, %v15329_v9  ;;  %v15380_v48 = vand.u32 4294901760, %v18935_v51 }
 0x477   :  { %7005 = vmatprep.subr.mxu0 %v14994_v7  ;;  %7213 = vmatprep.subr.mxu1 %v7212_v16  ;;  %v7242_v26 = vand.u32 4294901760, %v7241_v40  ;;  %v7248_v19 = vand.u32 4294901760, %v7247_v60  ;;  %v18934_v16 = vand.u32 4294901760, %v15337_v55  ;;  %v18937_v40 = vand.u32 4294901760, %v15345_v61 }
 0x478   :  { %7007 = vmatpush1.msra.mxu0 %v15011_v39  ;;  %7219 = vmatpush1.msra.mxu1 %v7218_v17  ;;  %v7265_v49 = vsub.f32 %v15329_v9, %v18933_v10  ;;  %18936 = vst [vmem:[#allocation11_spill] sm:$0xff] %v15380_v48  ;;  %v7254_v17 = vand.u32 4294901760, %v7253_v58 }
 0x479   :  { %7009 = vmatprep.subr.mxu0 %v15025_v6  ;;  %7225 = vmatprep.subr.mxu1 %v7224_v18  ;;  %v7271_v21 = vsub.f32 %v15337_v55, %v18934_v16  ;;  %v7277_v54 = vsub.f32 %v15345_v61, %v18937_v40  ;;  %v7260_v18 = vand.u32 4294901760, %v7259_v22  ;;  %v18941_v16 = vld [vmem:[#allocation63_spill] sm:$0xff] }
 0x47a   :  { %7011 = vmatpush1.msra.mxu0 %v15039_v31  ;;  %7231 = vmatpush1.msra.mxu1 %v7230_v20  ;;  %v7266_v60 = vand.u32 4294901760, %v7265_v49  ;;  %v15391_v20 = vsub.f32 %v18935_v51, %v15380_v48  ;;  %v18938_v49 = vmov 0.0   ;;  %v18944_v40 = vld [vmem:[#allocation123_spill] sm:$0xff] }
 0x47b   :  { %7013 = vmatprep.subr.mxu0 %v15112_v3  ;;  %7237 = vmatprep.subr.mxu1 %v7236_v47  ;;  %v7272_v10 = vand.u32 4294901760, %v7271_v21  ;;  %v7278_v58 = vand.u32 4294901760, %v7277_v54  ;;  %v18942_v21 = vld [vmem:[#allocation121_spill] sm:$0xff]  ;;  %v18945_v54 = vld [vmem:[#allocation18_spill] sm:$0xff] }
 0x47c   :  { %7015 = vmatpush1.msra.mxu0 %v15127_v0  ;;  %7243 = vmatpush1.msra.mxu1 %v7242_v26  ;;  %v16720_v47 = vand.u32 4294901760, %v15391_v20  ;;  %v18939_v26 = vld [vmem:[#allocation86_spill] sm:$0xff] }
 0x47d   :  { %7017 = vmatprep.subr.mxu0 %v15142_v24  ;;  %7249 = vmatprep.subr.mxu1 %v7248_v19  ;;  %v18940_v19 = vld [vmem:[#allocation85_spill] sm:$0xff] }
 0x47e   :  { %7019 = vmatpush1.msra.mxu0 %v15155_v50  ;;  %7255 = vmatpush1.msra.mxu1 %v7254_v17  ;;  %v7080_v51 = vsub.f32 %v15391_v20, %v16720_v47  ;;  %v18943_v17 = vld [vmem:[#allocation122_spill] sm:$0xff]  ;;  %v18952_v47 = vld [vmem:[#allocation93_spill] sm:$0xff] }
 0x47f   :  { %7021 = vmatprep.subr.mxu0 %v15171_v25  ;;  %7261 = vmatprep.subr.mxu1 %v7260_v18  ;;  %v18946_v18 = vld [vmem:[#allocation31_spill] sm:$0xff] }
 0x480   :  { %7023 = vmatpush1.msra.mxu0 %v15187_v34  ;;  %7267 = vmatpush1.msra.mxu1 %v7266_v60  ;;  %v7081_v22 = vand.u32 4294901760, %v7080_v51  ;;  %v18947_v60 = vld [vmem:[#allocation73_spill] sm:$0xff]  ;;  %v18950_v51 = vld [vmem:[#allocation4_spill] sm:$0xff] }
 0x481   :  { %7025 = vmatprep.subr.mxu0 %v15203_v44  ;;  %7273 = vmatprep.subr.mxu1 %v7272_v10  ;;  %v18948_v10 = vld [vmem:[#allocation52_spill] sm:$0xff] }
 0x482   :  { %7027 = vmatpush1.msra.mxu0 %v15219_v62  ;;  %7279 = vmatpush1.msra.mxu1 %v7278_v58  ;;  %v18949_v58 = vld [vmem:[#allocation49_spill] sm:$0xff] }
 0x483   :  { %7312 = vmatprep.mubr.f32.mxu1 %v18938_v49  ;;  %7029 = vmatprep.subr.mxu0 %v15231_v36 }
 0x484   :  { %7314 = vmatmul.mubr.f32.vlgmr.msra.gmra.mxu1 %v15380_v48  ;;  %7458 = vmatprep.subr.mxu1 %v14861_v53  ;;  %v18953_v48 = vld [vmem:[#allocation29_spill] sm:$0xff] }
 0x485   :  { %7031 = vmatpush1.msra.mxu0 %v15243_v14  ;;  %7460 = vmatpush1.msra.mxu1 %v14869_v46 }
 0x486   :  { %7033 = vmatprep.subr.mxu0 %v15255_v5  ;;  %7462 = vmatprep.subr.mxu1 %v14877_v11 }
 0x487   :  { %7035 = vmatpush1.msra.mxu0 %v15267_v1  ;;  %7464 = vmatpush1.msra.mxu1 %v14885_v38 }
 0x488   :  { %7037 = vmatprep.subr.mxu0 %v15280_v12  ;;  %7466 = vmatprep.subr.mxu1 %v14896_v23 }
 0x489   :  { %7039 = vmatpush1.msra.mxu0 %v15293_v30  ;;  %7468 = vmatpush1.msra.mxu1 %v14907_v28 }
 0x48a   :  { %7041 = vmatprep.subr.mxu0 %v15303_v52  ;;  %7470 = vmatprep.subr.mxu1 %v14918_v8 }
 0x48b   :  { %7043 = vmatpush1.msra.mxu0 %v15313_v57  ;;  %7076 = vmatprep.mubr.f32.mxu0 %v18938_v49 }
 0x48c   :  { %7472 = vmatpush1.msra.mxu1 %v14929_v33  ;;  %7082 = vmatmul.mubr.f32.vlgmr.msra.gmra.mxu0 %v7081_v22  ;;  %v18951_v22 = vld [vmem:[#allocation59_spill] sm:$0xff] }
 0x48d   :  { %7322 = vmatprep.subr.mxu0 %v14894_v45  ;;  %7474 = vmatprep.subr.mxu1 %v14941_v59 }
 0x48e   :  { %7325 = vmatpush1.msra.mxu0 %v14905_v13  ;;  %7476 = vmatpush1.msra.mxu1 %v14953_v2 }
 0x48f   :  { %7328 = vmatprep.subr.mxu0 %v14916_v35  ;;  %7478 = vmatprep.subr.mxu1 %v14965_v41 }
 0x490   :  { %7331 = vmatpush1.msra.mxu0 %v18939_v26  ;;  %7480 = vmatpush1.msra.mxu1 %v14977_v15 }
 0x491   :  { %7334 = vmatprep.subr.mxu0 %v18940_v19  ;;  %7482 = vmatprep.subr.mxu1 %v14994_v7 }
 0x492   :  { %7337 = vmatpush1.msra.mxu0 %v18941_v16  ;;  %7484 = vmatpush1.msra.mxu1 %v15011_v39 }
 0x493   :  { %7340 = vmatprep.subr.mxu0 %v18942_v21  ;;  %7486 = vmatprep.subr.mxu1 %v15025_v6 }
 0x494   :  { %7343 = vmatpush1.msra.mxu0 %v18943_v17  ;;  %7488 = vmatpush1.msra.mxu1 %v15039_v31 }
 0x495   :  { %7346 = vmatprep.subr.mxu0 %v18944_v40  ;;  %7490 = vmatprep.subr.mxu1 %v15112_v3 }
 0x496   :  { %7349 = vmatpush1.msra.mxu0 %v18945_v54  ;;  %7492 = vmatpush1.msra.mxu1 %v15127_v0 }
 0x497   :  { %7352 = vmatprep.subr.mxu0 %v18946_v18  ;;  %7494 = vmatprep.subr.mxu1 %v15142_v24 }
 0x498   :  { %7355 = vmatpush1.msra.mxu0 %v18947_v60  ;;  %7496 = vmatpush1.msra.mxu1 %v15155_v50 }
 0x499   :  { %7358 = vmatprep.subr.mxu0 %v18948_v10  ;;  %7498 = vmatprep.subr.mxu1 %v15171_v25  ;;  %v18954_v25 = vld [vmem:[#allocation48_spill] sm:$0xff] }
 0x49a   :  { %7361 = vmatpush1.msra.mxu0 %v18949_v58  ;;  %7500 = vmatpush1.msra.mxu1 %v15187_v34 }
 0x49b   :  { %7364 = vmatprep.subr.mxu0 %v18950_v51  ;;  %7502 = vmatprep.subr.mxu1 %v15203_v44 }
 0x49c   :  { %7367 = vmatpush1.msra.mxu0 %v18951_v22  ;;  %7504 = vmatpush1.msra.mxu1 %v15219_v62 }
 0x49d   :  { %7370 = vmatprep.subr.mxu0 %v18952_v47  ;;  %7506 = vmatprep.subr.mxu1 %v15231_v36 }
 0x49e   :  { %7373 = vmatpush1.msra.mxu0 %v18953_v48  ;;  %7508 = vmatpush1.msra.mxu1 %v15243_v14 }
 0x49f   :  { %7376 = vmatprep.subr.mxu0 %v18954_v25  ;;  %7510 = vmatprep.subr.mxu1 %v15255_v5 }
 0x4a0   :  { %7379 = vmatpush1.msra.mxu0 %v15217_v42  ;;  %7512 = vmatpush1.msra.mxu1 %v15267_v1 }
 0x4a1   :  { %7382 = vmatprep.subr.mxu0 %v15229_v32  ;;  %7514 = vmatprep.subr.mxu1 %v15280_v12  ;;  %v18955_v32 = vand.u32 4294901760, %v15391_v20 }
 0x4a2   :  { %7385 = vmatpush1.msra.mxu0 %v15241_v63  ;;  %7516 = vmatpush1.msra.mxu1 %v15293_v30 }
 0x4a3   :  { %7388 = vmatprep.subr.mxu0 %v15253_v56  ;;  %7518 = vmatprep.subr.mxu1 %v15303_v52 }
 0x4a4   :  { %7391 = vmatpush1.msra.mxu0 %v15265_v37  ;;  %7520 = vmatpush1.msra.mxu1 %v15313_v57  ;;  %v18956_v37 = vld [vmem:[#allocation47_spill] sm:$0xff] }
 0x4a5   :  { %7553 = vmatprep.mubr.f32.mxu1 %v18938_v49  ;;  %7394 = vmatprep.subr.mxu0 %v15278_v43 }
 0x4a6   :  { %7557 = vmatmul.mubr.f32.vlgmr.msra.gmra.mxu1 %v18955_v32  ;;  %7732 = vmatprep.subr.mxu1 %v14861_v53  ;;  %v18957_v53 = vand.u32 4294901760, %v14894_v45  ;;  %v18961_v45 = vand.u32 4294901760, %v18940_v19  ;;  %v18986_v32 = vand.u32 4294901760, %v15291_v29 }
 0x4a7   :  { %7397 = vmatpush1.msra.mxu0 %v15291_v29  ;;  %7734 = vmatpush1.msra.mxu1 %v14869_v46  ;;  %v18958_v46 = vand.u32 4294901760, %v14905_v13  ;;  %v18963_v13 = vand.u32 4294901760, %v18942_v21  ;;  %v1093_v29 = vpop.f32.mrf.mxu1 }
 0x4a8   :  { %7400 = vmatprep.subr.mxu0 %v15301_v4  ;;  %7736 = vmatprep.subr.mxu1 %v14877_v11  ;;  %v18959_v11 = vand.u32 4294901760, %v14916_v35  ;;  %v18965_v35 = vand.u32 4294901760, %v18944_v40 }
 0x4a9   :  { %7403 = vmatpush1.msra.mxu0 %v18956_v37  ;;  %7738 = vmatpush1.msra.mxu1 %v14885_v38  ;;  %v18960_v38 = vand.u32 4294901760, %v18939_v26 }
 0x4aa   :  { %7406 = vmatprep.subr.mxu0 %v15321_v27  ;;  %7740 = vmatprep.subr.mxu1 %v14896_v23  ;;  %v18962_v23 = vand.u32 4294901760, %v18941_v16 }
 0x4ab   :  { %7409 = vmatpush1.msra.mxu0 %v15329_v9  ;;  %7742 = vmatpush1.msra.mxu1 %v14907_v28  ;;  %v18964_v28 = vand.u32 4294901760, %v18943_v17 }
 0x4ac   :  { %7412 = vmatprep.subr.mxu0 %v15337_v55  ;;  %7744 = vmatprep.subr.mxu1 %v14918_v8  ;;  %v18966_v8 = vand.u32 4294901760, %v18945_v54 }
 0x4ad   :  { %7415 = vmatpush1.msra.mxu0 %v15345_v61  ;;  %7448 = vmatprep.mubr.f32.mxu0 %v18938_v49 }
 0x4ae   :  { %7746 = vmatpush1.msra.mxu1 %v14929_v33  ;;  %7451 = vmatmul.mubr.f32.vlgmr.msra.gmra.mxu0 %v15391_v20  ;;  %v18967_v33 = vand.u32 4294901760, %v18946_v18 }
 0x4af   :  { %7566 = vmatprep.subr.mxu0 %v18957_v53  ;;  %7748 = vmatprep.subr.mxu1 %v14941_v59  ;;  %v18968_v59 = vand.u32 4294901760, %v18947_v60 }
 0x4b0   :  { %7570 = vmatpush1.msra.mxu0 %v18958_v46  ;;  %7750 = vmatpush1.msra.mxu1 %v14953_v2  ;;  %v18969_v2 = vand.u32 4294901760, %v18948_v10 }
 0x4b1   :  { %7574 = vmatprep.subr.mxu0 %v18959_v11  ;;  %7752 = vmatprep.subr.mxu1 %v14965_v41  ;;  %v18971_v41 = vand.u32 4294901760, %v18949_v58 }
 0x4b2   :  { %7578 = vmatpush1.msra.mxu0 %v18960_v38  ;;  %7754 = vmatpush1.msra.mxu1 %v14977_v15  ;;  %v18972_v15 = vand.u32 4294901760, %v18950_v51 }
 0x4b3   :  { %7582 = vmatprep.subr.mxu0 %v18961_v45  ;;  %7756 = vmatprep.subr.mxu1 %v14994_v7  ;;  %v18973_v7 = vand.u32 4294901760, %v18951_v22 }
 0x4b4   :  { %7586 = vmatpush1.msra.mxu0 %v18962_v23  ;;  %7758 = vmatpush1.msra.mxu1 %v15011_v39  ;;  %v18974_v39 = vand.u32 4294901760, %v18952_v47 }
 0x4b5   :  { %7590 = vmatprep.subr.mxu0 %v18963_v13  ;;  %7760 = vmatprep.subr.mxu1 %v15025_v6  ;;  %v18975_v6 = vand.u32 4294901760, %v18953_v48  ;;  %v18980_v48 = vand.u32 4294901760, %v15241_v63  ;;  %v18988_v63 = vmov 8  }
 0x4b6   :  { %7594 = vmatpush1.msra.mxu0 %v18964_v28  ;;  %7762 = vmatpush1.msra.mxu1 %v15039_v31  ;;  %v18970_v31 = vld [vmem:[#allocation19_spill] sm:$0xff] }
 0x4b7   :  { %7598 = vmatprep.subr.mxu0 %v18965_v35  ;;  %7764 = vmatprep.subr.mxu1 %v15112_v3  ;;  %v18977_v3 = vand.u32 4294901760, %v15217_v42  ;;  %v18984_v42 = vand.u32 4294901760, %v15278_v43  ;;  %v18992_v43 = vand.u32 4294901760, %v15337_v55 }
 0x4b8   :  { %7602 = vmatpush1.msra.mxu0 %v18966_v8  ;;  %7766 = vmatpush1.msra.mxu1 %v15127_v0  ;;  %v18976_v0 = vand.u32 4294901760, %v18954_v25  ;;  %v18981_v25 = vand.u32 4294901760, %v15253_v56  ;;  %v18990_v56 = vand.u32 4294901760, %v15321_v27 }
 0x4b9   :  { %7606 = vmatprep.subr.mxu0 %v18967_v33  ;;  %7768 = vmatprep.subr.mxu1 %v15142_v24  ;;  %v18978_v24 = vld [vmem:[#allocation66_spill] sm:$0xff] }
 0x4ba   :  { %7610 = vmatpush1.msra.mxu0 %v18968_v59  ;;  %7770 = vmatpush1.msra.mxu1 %v15155_v50  ;;  %v18979_v50 = vand.u32 4294901760, %v18978_v24 }
 0x4bb   :  { %7614 = vmatprep.subr.mxu0 %v18969_v2  ;;  %7772 = vmatprep.subr.mxu1 %v18970_v31 }
 0x4bc   :  { %7618 = vmatpush1.msra.mxu0 %v18971_v41  ;;  %7774 = vmatpush1.msra.mxu1 %v15187_v34  ;;  %v18982_v34 = vld [vmem:[#allocation64_spill] sm:$0xff] }
 0x4bd   :  { %7622 = vmatprep.subr.mxu0 %v18972_v15  ;;  %7776 = vmatprep.subr.mxu1 %v15203_v44  ;;  %v18983_v44 = vand.u32 4294901760, %v18982_v34 }
 0x4be   :  { %7626 = vmatpush1.msra.mxu0 %v18973_v7  ;;  %7778 = vmatpush1.msra.mxu1 %v15219_v62  ;;  %v18985_v62 = vld [vmem:[#allocation11_spill] sm:$0xff] }
 0x4bf   :  { %7630 = vmatprep.subr.mxu0 %v18974_v39  ;;  %7780 = vmatprep.subr.mxu1 %v15231_v36  ;;  %v18987_v36 = vand.u32 4294901760, %v15301_v4  ;;  %v700_v4 = vpop.f32.mrf.mxu0 }
 0x4c0   :  { %7634 = vmatpush1.msra.mxu0 %v18975_v6  ;;  %7782 = vmatpush1.msra.mxu1 %v15243_v14  ;;  %v18989_v14 = vand.u32 4294901760, %v18956_v37  ;;  %v1095_v37 = vpop.f32.mrf.mxu1 }
 0x4c1   :  { %7638 = vmatprep.subr.mxu0 %v18976_v0  ;;  %7784 = vmatprep.subr.mxu1 %v15255_v5  ;;  %v18991_v5 = vand.u32 4294901760, %v15329_v9 }
 0x4c2   :  { %7642 = vmatpush1.msra.mxu0 %v18977_v3  ;;  %7786 = vmatpush1.msra.mxu1 %v15267_v1  ;;  %v18993_v1 = vand.u32 4294901760, %v15345_v61 }
 0x4c3   :  { %7646 = vmatprep.subr.mxu0 %v18979_v50  ;;  %7788 = vmatprep.subr.mxu1 %v15280_v12  ;;  %v702_v12 = vpop.f32.mrf.mxu0 }
 0x4c4   :  { %7650 = vmatpush1.msra.mxu0 %v18980_v48  ;;  %7790 = vmatpush1.msra.mxu1 %v15293_v30  ;;  %v1096_v20 = vadd.f32 %v1095_v37, %v702_v12 }
 0x4c5   :  { %7654 = vmatprep.subr.mxu0 %v18981_v25  ;;  %7792 = vmatprep.subr.mxu1 %v15303_v52  ;;  %v1296_v30 = vpop.f32.mrf.mxu0  ;;  %v1094_v52 = vadd.f32 %v1093_v29, %v700_v4 }
 0x4c6   :  { %7658 = vmatpush1.msra.mxu0 %v18983_v44  ;;  %7794 = vmatpush1.msra.mxu1 %v15313_v57  ;;  %v1437_v57 = vpop.f32.mrf.mxu1 }
 0x4c7   :  { %7827 = vmatprep.mubr.f32.mxu1 %v18938_v49  ;;  %7662 = vmatprep.subr.mxu0 %v18984_v42  ;;  %v1298_v27 = vpop.f32.mrf.mxu0 }
 0x4c8   :  { %7829 = vmatmul.mubr.f32.vlgmr.msra.gmra.mxu1 %v18985_v62  ;;  %7666 = vmatpush1.msra.mxu0 %v18986_v32  ;;  %v1299_v47 = vadd.f32 %v1298_v27, %v1096_v20  ;;  %v1439_v26 = vpop.f32.mrf.mxu1 }
 0x4c9   :  { %7723 = vmatprep.mubr.f32.mxu0 %v18938_v49  ;;  %7670 = vmatprep.subr.mxu0 %v18987_v36  ;;  %v1297_v49 = vadd.f32 %v1296_v30, %v1094_v52  ;;  %v1702_v9 = vpop.f32.mrf.mxu0 }
 0x4ca   :  { %7902 = vset.pattern.permute.xlu0 %v18988_v63  ;;  %7674 = vmatpush1.msra.mxu0 %v18989_v14  ;;  %v1839_v19 = vpop.f32.mrf.mxu1  ;;  %v1440_v21 = vadd.f32 %v1439_v26, %v1299_v47 }
 0x4cb   :  { %7678 = vmatprep.subr.mxu0 %v18990_v56  ;;  %v1438_v55 = vadd.f32 %v1437_v57, %v1297_v49  ;;  %v1704_v16 = vpop.f32.mrf.mxu0 }
 0x4cc   :  { %7682 = vmatpush1.msra.mxu0 %v18991_v5  ;;  %v1705_v40 = vadd.f32 %v1704_v16, %v1440_v21  ;;  %v1841_v54 = vpop.f32.mrf.mxu1 }
 0x4cd   :  { %7686 = vmatprep.subr.mxu0 %v18992_v43  ;;  %v1703_v61 = vadd.f32 %v1702_v9, %v1438_v55  ;;  %v1984_v17 = vpop.f32.mrf.mxu0 }
 0x4ce   :  { %7690 = vmatpush1.msra.mxu0 %v18993_v1  ;;  %v2377_v60 = vpop.f32.mrf.mxu1  ;;  %v1842_v51 = vadd.f32 %v1841_v54, %v1705_v40 }
 0x4cf   :  { %7725 = vmatmul.mubr.f32.vlgmr.msra.gmra.mxu0 %v18985_v62  ;;  %v1840_v18 = vadd.f32 %v1839_v19, %v1703_v61  ;;  %v1986_v10 = vpop.f32.mrf.mxu0 }
 0x4d0   :  { %v1987_v53 = vadd.f32 %v1986_v10, %v1842_v51  ;;  %v2379_v46 = vpop.f32.mrf.mxu1 }
 0x4d1   :  { %v1985_v58 = vadd.f32 %v1984_v17, %v1840_v18  ;;  %v2580_v22 = vpop.f32.mrf.mxu0 }
 0x4d2   :  { %v2721_v38 = vpop.f32.mrf.mxu1  ;;  %v2380_v13 = vadd.f32 %v2379_v46, %v1987_v53 }
 0x4d3   :  { %v2378_v11 = vadd.f32 %v2377_v60, %v1985_v58  ;;  %v2582_v45 = vpop.f32.mrf.mxu0 }
 0x4d4   :  { %v2583_v35 = vadd.f32 %v2582_v45, %v2380_v13  ;;  %v2723_v8 = vpop.f32.mrf.mxu1 }
 0x4d5   :  { %v2581_v23 = vadd.f32 %v2580_v22, %v2378_v11  ;;  %v2986_v28 = vpop.f32.mrf.mxu0 }
 0x4d6   :  { %v3123_v59 = vpop.f32.mrf.mxu1  ;;  %v2724_v41 = vadd.f32 %v2723_v8, %v2583_v35 }
 0x4d7   :  { %v2722_v33 = vadd.f32 %v2721_v38, %v2581_v23  ;;  %v2988_v2 = vpop.f32.mrf.mxu0 }
 0x4d8   :  { %v2989_v7 = vadd.f32 %v2988_v2, %v2724_v41  ;;  %v3125_v39 = vpop.f32.mrf.mxu1 }
 0x4d9   :  { %v2987_v31 = vadd.f32 %v2986_v28, %v2722_v33  ;;  %v3268_v15 = vpop.f32.mrf.mxu0 }
 0x4da   :  { %v3661_v0 = vpop.f32.mrf.mxu1  ;;  %v3126_v50 = vadd.f32 %v3125_v39, %v2989_v7 }
 0x4db   :  { %v3124_v6 = vadd.f32 %v3123_v59, %v2987_v31  ;;  %v3270_v3 = vpop.f32.mrf.mxu0 }
 0x4dc   :  { %v3271_v25 = vadd.f32 %v3270_v3, %v3126_v50  ;;  %v3663_v34 = vpop.f32.mrf.mxu1 }
 0x4dd   :  { %v3269_v24 = vadd.f32 %v3268_v15, %v3124_v6  ;;  %v3864_v48 = vpop.f32.mrf.mxu0 }
 0x4de   :  { %v4005_v42 = vpop.f32.mrf.mxu1  ;;  %v3664_v36 = vadd.f32 %v3663_v34, %v3271_v25 }
 0x4df   :  { %v3662_v44 = vadd.f32 %v3661_v0, %v3269_v24  ;;  %v3866_v62 = vpop.f32.mrf.mxu0 }
 0x4e0   :  { %v3867_v14 = vadd.f32 %v3866_v62, %v3664_v36  ;;  %v4007_v56 = vpop.f32.mrf.mxu1 }
 0x4e1   :  { %v3865_v32 = vadd.f32 %v3864_v48, %v3662_v44  ;;  %v4270_v63 = vpop.f32.mrf.mxu0 }
 0x4e2   :  { %v4407_v43 = vpop.f32.mrf.mxu1  ;;  %v4008_v29 = vadd.f32 %v4007_v56, %v3867_v14 }
 0x4e3   :  { %v4006_v5 = vadd.f32 %v4005_v42, %v3865_v32  ;;  %v4272_v1 = vpop.f32.mrf.mxu0 }
 0x4e4   :  { %v4273_v30 = vadd.f32 %v4272_v1, %v4008_v29  ;;  %v4409_v37 = vpop.f32.mrf.mxu1 }
 0x4e5   :  { %v4271_v4 = vadd.f32 %v4270_v63, %v4006_v5  ;;  %v4552_v12 = vpop.f32.mrf.mxu0 }
 0x4e6   :  { %v4945_v57 = vpop.f32.mrf.mxu1  ;;  %v4410_v49 = vadd.f32 %v4409_v37, %v4273_v30 }
 0x4e7   :  { %v4408_v52 = vadd.f32 %v4407_v43, %v4271_v4  ;;  %v4554_v27 = vpop.f32.mrf.mxu0 }
 0x4e8   :  { %v4555_v47 = vadd.f32 %v4554_v27, %v4410_v49  ;;  %v4947_v26 = vpop.f32.mrf.mxu1 }
 0x4e9   :  { %v4553_v20 = vadd.f32 %v4552_v12, %v4408_v52  ;;  %v5148_v9 = vpop.f32.mrf.mxu0 }
 0x4ea   :  { %v5289_v19 = vpop.f32.mrf.mxu1  ;;  %v4948_v21 = vadd.f32 %v4947_v26, %v4555_v47 }
 0x4eb   :  { %v4946_v55 = vadd.f32 %v4945_v57, %v4553_v20  ;;  %v5150_v16 = vpop.f32.mrf.mxu0 }
 0x4ec   :  { %v5151_v40 = vadd.f32 %v5150_v16, %v4948_v21  ;;  %v5291_v54 = vpop.f32.mrf.mxu1 }
 0x4ed   :  { %v5149_v61 = vadd.f32 %v5148_v9, %v4946_v55  ;;  %v5554_v17 = vpop.f32.mrf.mxu0 }
 0x4ee   :  { %v5691_v60 = vpop.f32.mrf.mxu1  ;;  %v5292_v51 = vadd.f32 %v5291_v54, %v5151_v40 }
 0x4ef   :  { %v5290_v18 = vadd.f32 %v5289_v19, %v5149_v61  ;;  %v5556_v10 = vpop.f32.mrf.mxu0 }
 0x4f0   :  { %v5557_v53 = vadd.f32 %v5556_v10, %v5292_v51  ;;  %v5693_v46 = vpop.f32.mrf.mxu1 }
 0x4f1   :  { %v5555_v58 = vadd.f32 %v5554_v17, %v5290_v18  ;;  %v5836_v22 = vpop.f32.mrf.mxu0 }
 0x4f2   :  { %v6229_v38 = vpop.f32.mrf.mxu1  ;;  %v5694_v13 = vadd.f32 %v5693_v46, %v5557_v53 }
 0x4f3   :  { %v5692_v11 = vadd.f32 %v5691_v60, %v5555_v58  ;;  %v5838_v45 = vpop.f32.mrf.mxu0 }
 0x4f4   :  { %v5839_v35 = vadd.f32 %v5838_v45, %v5694_v13  ;;  %v6231_v8 = vpop.f32.mrf.mxu1 }
 0x4f5   :  { %v5837_v23 = vadd.f32 %v5836_v22, %v5692_v11  ;;  %v6432_v28 = vpop.f32.mrf.mxu0 }
 0x4f6   :  { %v6573_v59 = vpop.f32.mrf.mxu1  ;;  %v6232_v41 = vadd.f32 %v6231_v8, %v5839_v35 }
 0x4f7   :  { %v6230_v33 = vadd.f32 %v6229_v38, %v5837_v23  ;;  %v6434_v2 = vpop.f32.mrf.mxu0 }
 0x4f8   :  { %v6435_v7 = vadd.f32 %v6434_v2, %v6232_v41  ;;  %v6575_v39 = vpop.f32.mrf.mxu1 }
 0x4f9   :  { %v6433_v31 = vadd.f32 %v6432_v28, %v6230_v33 }
 0x4fa   :  { %v6576_v50 = vadd.f32 %v6575_v39, %v6435_v7 }
 0x4fb   :  { %v6574_v6 = vadd.f32 %v6573_v59, %v6433_v31 }
 0x521   :  { %v6975_v0 = vpop.f32.mrf.mxu1 }
 0x523   :  { %v6977_v34 = vpop.f32.mrf.mxu1 }
 0x52b   :  { %v6838_v15 = vpop.f32.mrf.mxu0 }
 0x52c   :  { %v6839_v24 = vadd.f32 %v6838_v15, %v6574_v6 }
 0x52d   :  { %v6840_v3 = vpop.f32.mrf.mxu0 }
 0x52e   :  { %v6841_v25 = vadd.f32 %v6840_v3, %v6576_v50  ;;  %v6976_v44 = vadd.f32 %v6975_v0, %v6839_v24 }
 0x530   :  { %v6978_v36 = vadd.f32 %v6977_v34, %v6841_v25 }
 0x544   :  { %v7315_v42 = vpop.f32.mrf.mxu1 }
 0x546   :  { %v7317_v56 = vpop.f32.mrf.mxu1 }
 0x54c   :  { %v7083_v48 = vpop.f32.mrf.mxu0 }
 0x54d   :  { %v7084_v32 = vadd.f32 %v7083_v48, %v6976_v44 }
 0x54e   :  { %v7085_v62 = vpop.f32.mrf.mxu0 }
 0x54f   :  { %v7086_v14 = vadd.f32 %v7085_v62, %v6978_v36  ;;  %v7316_v5 = vadd.f32 %v7315_v42, %v7084_v32 }
 0x551   :  { %v7318_v29 = vadd.f32 %v7317_v56, %v7086_v14 }
 0x566   :  { %v7558_v43 = vpop.f32.mrf.mxu1 }
 0x568   :  { %v7560_v30 = vpop.f32.mrf.mxu1 }
 0x56e   :  { %v7452_v63 = vpop.f32.mrf.mxu0 }
 0x56f   :  { %v7453_v4 = vadd.f32 %v7452_v63, %v7316_v5 }
 0x570   :  { %v7454_v1 = vpop.f32.mrf.mxu0 }
 0x571   :  { %v7455_v12 = vadd.f32 %v7454_v1, %v7318_v29  ;;  %v7559_v37 = vadd.f32 %v7558_v43, %v7453_v4 }
 0x573   :  { %v7561_v20 = vadd.f32 %v7560_v30, %v7455_v12 }
 0x588   :  { %v7830_v52 = vpop.f32.mrf.mxu1 }
 0x58a   :  { %v7832_v26 = vpop.f32.mrf.mxu1 }
 0x58f   :  { %v7726_v57 = vpop.f32.mrf.mxu0 }
 0x590   :  { %v7727_v27 = vadd.f32 %v7726_v57, %v7559_v37 }
 0x591   :  { %v7728_v49 = vpop.f32.mrf.mxu0 }
 0x592   :  { %v7831_v9 = vadd.f32 %v7830_v52, %v7727_v27  ;;  %v7729_v47 = vadd.f32 %v7728_v49, %v7561_v20 }
 0x594   :  { %7835 = vst [vmem:[%s15591_s3] sm:$0xff] %v7831_v9  ;;  %v7833_v55 = vadd.f32 %v7832_v26, %v7729_v47 }
 0x596   :  { %7836 = vst [vmem:[%s15591_s3 + $0x8] sm:$0xff] %v7833_v55 }

</bundles_post_ra>
